<compile_context>
chip_gen: v5e
topology: v5e:2x2
jax: 0.10.0
libtpu: 0.0.40
codegen_flags: <defaults>
</compile_context>

<pallas_src>
import functools

import jax
import jax.numpy as jnp
from jax import lax
from jax.experimental import pallas as pl
from jax.experimental.pallas import tpu as pltpu


def _round_up(x, m):
    return ((x + m - 1) // m) * m


@functools.lru_cache(maxsize=None)
def _tpu_generation():
    """Best-effort TPU generation (7 for v7x, 6 for v6e, 5 for v5e, 0 unknown)."""
    try:
        kind = jax.devices()[0].device_kind.lower()
    except Exception:
        return 0
    for gen in (7, 6, 5, 4):
        if str(gen) in kind:
            return gen
    return 0


def rcnn_head_kernel(x_ref, w1_ref, b1_ref, wh_ref, bh_ref, out_ref, *,
                     n_classes, relu_dtype):
    """One row tile: FC(K->1024)+ReLU, fused (cls|bbox) head, masked softmax.

    x_ref:  (TM, K)      f32    (K zero-padded 245 -> 256); cast to bf16 in-kernel
    w1_ref: (K, 1024)    bf16
    b1_ref: (1, 1024)    f32
    wh_ref: (1024, HP)   bf16   fused [wc | wb], lane-padded to HP = round_up(5C, 128)
    bh_ref: (1, HP)      f32
    out_ref:(TM, HP)     f32    cols [0:C) = cls_prob, [C:5C) = bbox_pred, rest = pad
    """
    # RCNN_top: Linear + ReLU (bf16 MXU operands, f32 accumulation).
    x = x_ref[...].astype(w1_ref.dtype)                          # f32 -> bf16 in VMEM
    fc7 = jnp.dot(x, w1_ref[...],
                  preferred_element_type=jnp.float32) + b1_ref[...]
    # ReLU on bf16 vregs where the VALU supports it (v6e/v7x), f32 on v5e; the
    # cast and max(·, 0) commute, so the bf16 result is identical either way.
    fc7 = jnp.maximum(fc7.astype(relu_dtype), 0.0).astype(wh_ref.dtype)

    # Fused cls_score / bbox_pred head: one lane-dense MXU push + store.
    head = jnp.dot(fc7, wh_ref[...],
                   preferred_element_type=jnp.float32) + bh_ref[...]

    # Softmax restricted to the real class columns [0, n_classes); padded / bbox
    # columns must not pollute the max or the denominator.
    col = lax.broadcasted_iota(jnp.int32, head.shape, 1)
    is_cls = col < n_classes
    scores = jnp.where(is_cls, head, -jnp.inf)
    m = jnp.max(scores, axis=-1, keepdims=True)
    e = jnp.exp(scores - m)                                      # exactly 0 off-class
    denom = jnp.sum(e, axis=-1, keepdims=True)
    prob = e * pl.reciprocal(denom, approx=True)                 # EUP slot, frees VPU

    # Class columns carry probabilities, all other columns carry raw head output.
    out_ref[...] = jnp.where(is_cls, prob, head)


def prepare_params(params):
    """One-time weight preprocessing (pad / fuse / cast) — hoisted off the hot path."""
    feat, c_in = params["w1"].shape                  # 245, 1024
    n_classes = params["wc"].shape[1]
    head_w = 5 * n_classes                           # C + 4C
    k_pad = _round_up(feat, 256)                     # 245 -> 256 contraction dim
    hp = _round_up(head_w, 128)                      # fused head width, lane aligned

    w1 = jnp.pad(params["w1"], ((0, k_pad - feat), (0, 0))).astype(jnp.bfloat16)
    wh = jnp.pad(jnp.concatenate([params["wc"], params["wb"]], axis=1),
                 ((0, 0), (0, hp - head_w))).astype(jnp.bfloat16)
    bh = jnp.pad(jnp.concatenate([params["bc"], params["bb"]], axis=1),
                 ((0, 0), (0, hp - head_w))).astype(jnp.float32)
    b1 = params["b1"].astype(jnp.float32)

    return {
        "w1": w1, "b1": b1, "wh": wh, "bh": bh,
        "feat": feat, "k_pad": k_pad, "c_in": c_in,
        "n_classes": n_classes, "head_w": head_w, "hp": hp,
    }


def _row_tiling(n):
    """Pick (tm, n_pad, tiles, dimension_semantics) for the ROI-row grid."""
    gen = _tpu_generation()
    num_tc = 2 if gen >= 7 else 1                    # v7x has 2 TensorCores/chip
    rows = _round_up(max(n, 16), 16)                 # sublane-friendly, minimal pad
    max_rows_per_tile = 512                          # keep tiles comfortably in VMEM
    tiles = max(num_tc, num_tc * pl.cdiv(rows, num_tc * max_rows_per_tile))
    tm = _round_up(pl.cdiv(rows, tiles), 16)
    n_pad = tm * tiles
    if num_tc == 2:
        semantics = (pltpu.CORE_PARALLEL,)           # actually splits rows across TCs
    else:
        semantics = ("arbitrary",)                   # grid is 1 (or few) serial steps
    return tm, n_pad, tiles, semantics


def faster_rcnn_head(pool5, prep):
    """pool5: (N, 5, 7, 7) float32. prep: output of prepare_params.

    Returns [cls_prob (N, C), bbox_pred (N, 4C)].
    """
    n = pool5.shape[0]
    feat, k_pad = prep["feat"], prep["k_pad"]
    c_in, hp = prep["c_in"], prep["hp"]
    n_classes, head_w = prep["n_classes"], prep["head_w"]

    tm, n_pad, tiles, semantics = _row_tiling(n)

    # Activation-only glue: flatten exactly like pool5.view(N, -1), zero-pad rows
    # and the contraction dim.  Stays f32; the bf16 cast happens inside the kernel.
    x = pool5.reshape(n, -1)
    x = jnp.pad(x, ((0, n_pad - n), (0, k_pad - feat))).astype(jnp.float32)

    gen = _tpu_generation()
    relu_dtype = jnp.bfloat16 if gen >= 6 else jnp.float32

    def build(single_buffer_weights):
        if single_buffer_weights:
            def wspec(shape):
                return pl.BlockSpec(shape, lambda i: (0, 0),
                                    pipeline_mode=pl.Buffered(1))
        else:
            def wspec(shape):
                return pl.BlockSpec(shape, lambda i: (0, 0))
        return pl.pallas_call(
            functools.partial(rcnn_head_kernel, n_classes=n_classes,
                              relu_dtype=relu_dtype),
            out_shape=jax.ShapeDtypeStruct((n_pad, hp), jnp.float32),
            grid=(tiles,),
            in_specs=[
                pl.BlockSpec((tm, k_pad), lambda i: (i, 0)),   # x rows: pipelined
                wspec((k_pad, c_in)),                          # resident weights
                wspec((1, c_in)),
                wspec((c_in, hp)),
                wspec((1, hp)),
            ],
            out_specs=pl.BlockSpec((tm, hp), lambda i: (i, 0)),
            compiler_params=pltpu.CompilerParams(dimension_semantics=semantics),
        )

    args = (x, prep["w1"], prep["b1"], prep["wh"], prep["bh"])
    try:
        out = build(True)(*args)
    except Exception:
        # pl.Buffered(1) not accepted by this jax/Mosaic build: default buffering.
        out = build(False)(*args)

    cls_prob = out[:n, :n_classes]
    bbox_pred = out[:n, n_classes:head_w]
    return [cls_prob, bbox_pred]


def init_params(key, n_classes, c_in=1024, feat=5 * 7 * 7):
    """Deterministic synthetic parameters (shapes match the PyTorch module)."""
    ks = jax.random.split(key, 6)
    scale = 0.02
    return {
        # Linear(245 -> 1024) — stored as (in, out)
        "w1": scale * jax.random.normal(ks[0], (feat, c_in), jnp.float32),
        "b1": scale * jax.random.normal(ks[1], (1, c_in), jnp.float32),
        # Linear(1024 -> n_classes)
        "wc": scale * jax.random.normal(ks[2], (c_in, n_classes), jnp.float32),
        "bc": scale * jax.random.normal(ks[3], (1, n_classes), jnp.float32),
        # Linear(1024 -> 4*n_classes)
        "wb": scale * jax.random.normal(ks[4], (c_in, 4 * n_classes), jnp.float32),
        "bb": scale * jax.random.normal(ks[5], (1, 4 * n_classes), jnp.float32),
    }


def _reference(pool5, params):
    """Pure-JAX f32 reference matching the PyTorch forward."""
    x = pool5.reshape(pool5.shape[0], -1)
    fc7 = jnp.maximum(x @ params["w1"] + params["b1"], 0.0)
    cls_score = fc7 @ params["wc"] + params["bc"]
    cls_prob = jax.nn.softmax(cls_score, axis=1)
    bbox_pred = fc7 @ params["wb"] + params["bb"]
    return cls_prob, bbox_pred


if __name__ == "__main__":
    key = jax.random.PRNGKey(0)
    k_in, k_par = jax.random.split(key)

    n_rois = 256          # batch of ROIs — fills MXU rows, realistic head batch
    n_classes = 8

    # pool5 in NCHW, exactly as the PyTorch module expects: (N, 5, 7, 7)
    pool5 = jax.random.normal(k_in, (n_rois, 5, 7, 7), jnp.float32)
    params = init_params(k_par, n_classes)

    # One-time weight preprocessing (hot path only touches activations).
    prep = prepare_params(params)

    cls_prob, bbox_pred = faster_rcnn_head(pool5, prep)
    jax.block_until_ready(cls_prob)
    jax.block_until_ready(bbox_pred)

    # sanity: shapes, softmax normalization, and agreement with f32 reference
    assert cls_prob.shape == (n_rois, n_classes)
    assert bbox_pred.shape == (n_rois, 4 * n_classes)
    assert bool(jnp.all(jnp.isfinite(cls_prob))) and bool(jnp.all(jnp.isfinite(bbox_pred)))
    assert jnp.allclose(jnp.sum(cls_prob, axis=1), 1.0, atol=1e-2)
    ref_cls, ref_bbox = _reference(pool5, params)
    assert jnp.allclose(cls_prob, ref_cls, atol=3e-2)
    assert jnp.allclose(bbox_pred, ref_bbox, atol=3e-2)

    print("KERNEL_OK")
</pallas_src>

<mosaic_0001>
module attributes {stable_mosaic.version = 11 : i64} {
  func.func @rcnn_head_kernel(%arg0: i32, %arg1: memref<256x256xf32, #tpu.memory_space<vmem>>, %arg2: memref<256x1024xbf16, #tpu.memory_space<vmem>>, %arg3: memref<1x1024xf32, #tpu.memory_space<vmem>>, %arg4: memref<1024x128xbf16, #tpu.memory_space<vmem>>, %arg5: memref<1x128xf32, #tpu.memory_space<vmem>>, %arg6: memref<256x128xf32, #tpu.memory_space<vmem>>) attributes {dimension_semantics = [#tpu.dimension_semantics<arbitrary>], iteration_bounds = array<i64: 1>, scalar_prefetch = 0 : i64, scratch_operands = 0 : i64, tpu.core_type = #tpu.core_type<tc>, window_params = [{transform_indices = @transform_0, window_bounds = array<i64: 256, 256>}, {pipeline_mode = #tpu.pipeline_mode<synchronous>, transform_indices = @transform_1, window_bounds = array<i64: 256, 1024>}, {pipeline_mode = #tpu.pipeline_mode<synchronous>, transform_indices = @transform_2, window_bounds = array<i64: 1, 1024>}, {pipeline_mode = #tpu.pipeline_mode<synchronous>, transform_indices = @transform_3, window_bounds = array<i64: 1024, 128>}, {pipeline_mode = #tpu.pipeline_mode<synchronous>, transform_indices = @transform_4, window_bounds = array<i64: 1, 128>}, {transform_indices = @transform_5, window_bounds = array<i64: 256, 128>}]} {
    %c0 = arith.constant 0 : index
    %c0_0 = arith.constant 0 : index
    %0 = vector.load %arg1[%c0, %c0_0] : memref<256x256xf32, #tpu.memory_space<vmem>>, vector<256x256xf32>
    %1 = arith.truncf %0 : vector<256x256xf32> to vector<256x256xbf16>
    %c0_1 = arith.constant 0 : index
    %c0_2 = arith.constant 0 : index
    %2 = vector.load %arg2[%c0_1, %c0_2] : memref<256x1024xbf16, #tpu.memory_space<vmem>>, vector<256x1024xbf16>
    %cst = arith.constant dense<0.000000e+00> : vector<256x1024xf32>
    %3 = tpu.matmul %1, %2, %cst {dimension_numbers = #tpu.dot_dimension_numbers<[1], [0], [0], [1], [0, 0, 1, 1], [], []>} : vector<256x256xbf16>, vector<256x1024xbf16>, vector<256x1024xf32> -> vector<256x1024xf32>
    %c0_3 = arith.constant 0 : index
    %c0_4 = arith.constant 0 : index
    %4 = vector.load %arg3[%c0_3, %c0_4] : memref<1x1024xf32, #tpu.memory_space<vmem>>, vector<1x1024xf32>
    %5 = vector.broadcast %4 : vector<1x1024xf32> to vector<256x1024xf32>
    %6 = arith.addf %3, %5 : vector<256x1024xf32>
    %cst_5 = arith.constant 0.000000e+00 : f32
    %7 = vector.broadcast %cst_5 : f32 to vector<256x1024xf32>
    %8 = arith.maximumf %6, %7 : vector<256x1024xf32>
    %9 = arith.truncf %8 : vector<256x1024xf32> to vector<256x1024xbf16>
    %c0_6 = arith.constant 0 : index
    %c0_7 = arith.constant 0 : index
    %10 = vector.load %arg4[%c0_6, %c0_7] : memref<1024x128xbf16, #tpu.memory_space<vmem>>, vector<1024x128xbf16>
    %cst_8 = arith.constant dense<0.000000e+00> : vector<256x128xf32>
    %11 = tpu.matmul %9, %10, %cst_8 {dimension_numbers = #tpu.dot_dimension_numbers<[1], [0], [0], [1], [0, 0, 1, 1], [], []>} : vector<256x1024xbf16>, vector<1024x128xbf16>, vector<256x128xf32> -> vector<256x128xf32>
    %c0_9 = arith.constant 0 : index
    %c0_10 = arith.constant 0 : index
    %12 = vector.load %arg5[%c0_9, %c0_10] : memref<1x128xf32, #tpu.memory_space<vmem>>, vector<1x128xf32>
    %13 = vector.broadcast %12 : vector<1x128xf32> to vector<256x128xf32>
    %14 = arith.addf %11, %13 : vector<256x128xf32>
    %15 = tpu.iota {dimensions = array<i32: 1>} : vector<256x128xi32>
    %c8_i32 = arith.constant 8 : i32
    %16 = vector.broadcast %c8_i32 : i32 to vector<256x128xi32>
    %17 = arith.cmpi slt, %15, %16 : vector<256x128xi32>
    %cst_11 = arith.constant 0xFF800000 : f32
    %18 = vector.broadcast %cst_11 : f32 to vector<256x128xf32>
    %19 = arith.select %17, %14, %18 : vector<256x128xi1>, vector<256x128xf32>
    %cst_12 = arith.constant dense<0xFF800000> : vector<256xf32>
    %20 = vector.multi_reduction <maximumf>, %19, %cst_12 [1] : vector<256x128xf32> to vector<256xf32>
    %21 = vector.shape_cast %20 : vector<256xf32> to vector<256x1xf32>
    %22 = vector.broadcast %21 : vector<256x1xf32> to vector<256x128xf32>
    %23 = arith.subf %19, %22 : vector<256x128xf32>
    %24 = math.exp %23 : vector<256x128xf32>
    %cst_13 = arith.constant dense<0.000000e+00> : vector<256xf32>
    %25 = vector.multi_reduction <add>, %24, %cst_13 [1] : vector<256x128xf32> to vector<256xf32>
    %26 = vector.shape_cast %25 : vector<256xf32> to vector<256x1xf32>
    %27 = tpu.reciprocal %26 {approx = true} : vector<256x1xf32> -> vector<256x1xf32>
    %28 = vector.broadcast %27 : vector<256x1xf32> to vector<256x128xf32>
    %29 = arith.mulf %24, %28 : vector<256x128xf32>
    %30 = arith.select %17, %29, %14 : vector<256x128xi1>, vector<256x128xf32>
    %c0_14 = arith.constant 0 : index
    %c0_15 = arith.constant 0 : index
    %31 = vector.load %arg6[%c0_14, %c0_15] : memref<256x128xf32, #tpu.memory_space<vmem>>, vector<256x128xf32>
    tpu.vector_store %arg6[%c0_14, %c0_15], %30 {strides = array<i32>} : memref<256x128xf32, #tpu.memory_space<vmem>>, vector<256x128xf32>,
    return
  }
  func.func @transform_0(%arg0: i32) -> (i32, i32) {
    %c0_i32 = arith.constant 0 : i32
    %c0_i32_0 = arith.constant 0 : i32
    return %arg0, %c0_i32 : i32, i32
  }
  func.func @transform_1(%arg0: i32) -> (i32, i32) {
    %c0_i32 = arith.constant 0 : i32
    %c0_i32_0 = arith.constant 0 : i32
    %c0_i32_1 = arith.constant 0 : i32
    return %c0_i32, %c0_i32_0 : i32, i32
  }
  func.func @transform_2(%arg0: i32) -> (i32, i32) {
    %c0_i32 = arith.constant 0 : i32
    %c0_i32_0 = arith.constant 0 : i32
    %c0_i32_1 = arith.constant 0 : i32
    return %c0_i32, %c0_i32_0 : i32, i32
  }
  func.func @transform_3(%arg0: i32) -> (i32, i32) {
    %c0_i32 = arith.constant 0 : i32
    %c0_i32_0 = arith.constant 0 : i32
    %c0_i32_1 = arith.constant 0 : i32
    return %c0_i32, %c0_i32_0 : i32, i32
  }
  func.func @transform_4(%arg0: i32) -> (i32, i32) {
    %c0_i32 = arith.constant 0 : i32
    %c0_i32_0 = arith.constant 0 : i32
    %c0_i32_1 = arith.constant 0 : i32
    return %c0_i32, %c0_i32_0 : i32, i32
  }
  func.func @transform_5(%arg0: i32) -> (i32, i32) {
    %c0_i32 = arith.constant 0 : i32
    %c0_i32_0 = arith.constant 0 : i32
    return %arg0, %c0_i32 : i32, i32
  }
}

module attributes {stable_mosaic.version = 11 : i64} {
  func.func @rcnn_head_kernel(%arg0: i32, %arg1: memref<256x256xf32, #tpu.memory_space<vmem>>, %arg2: memref<256x1024xbf16, #tpu.memory_space<vmem>>, %arg3: memref<1x1024xf32, #tpu.memory_space<vmem>>, %arg4: memref<1024x128xbf16, #tpu.memory_space<vmem>>, %arg5: memref<1x128xf32, #tpu.memory_space<vmem>>, %arg6: memref<256x128xf32, #tpu.memory_space<vmem>>) attributes {dimension_semantics = [#tpu.dimension_semantics<arbitrary>], iteration_bounds = array<i64: 1>, scalar_prefetch = 0 : i64, scratch_operands = 0 : i64, tpu.core_type = #tpu.core_type<tc>, window_params = [{transform_indices = @transform_0, window_bounds = array<i64: 256, 256>}, {pipeline_mode = #tpu.pipeline_mode<synchronous>, transform_indices = @transform_1, window_bounds = array<i64: 256, 1024>}, {pipeline_mode = #tpu.pipeline_mode<synchronous>, transform_indices = @transform_2, window_bounds = array<i64: 1, 1024>}, {pipeline_mode = #tpu.pipeline_mode<synchronous>, transform_indices = @transform_3, window_bounds = array<i64: 1024, 128>}, {pipeline_mode = #tpu.pipeline_mode<synchronous>, transform_indices = @transform_4, window_bounds = array<i64: 1, 128>}, {transform_indices = @transform_5, window_bounds = array<i64: 256, 128>}]} {
    %c0 = arith.constant 0 : index
    %c0_0 = arith.constant 0 : index
    %0 = vector.load %arg1[%c0, %c0_0] : memref<256x256xf32, #tpu.memory_space<vmem>>, vector<256x256xf32>
    %1 = arith.truncf %0 : vector<256x256xf32> to vector<256x256xbf16>
    %c0_1 = arith.constant 0 : index
    %c0_2 = arith.constant 0 : index
    %2 = vector.load %arg2[%c0_1, %c0_2] : memref<256x1024xbf16, #tpu.memory_space<vmem>>, vector<256x1024xbf16>
    %cst = arith.constant dense<0.000000e+00> : vector<256x1024xf32>
    %3 = tpu.matmul %1, %2, %cst {dimension_numbers = #tpu.dot_dimension_numbers<[1], [0], [0], [1], [0, 0, 1, 1], [], []>} : vector<256x256xbf16>, vector<256x1024xbf16>, vector<256x1024xf32> -> vector<256x1024xf32>
    %c0_3 = arith.constant 0 : index
    %c0_4 = arith.constant 0 : index
    %4 = vector.load %arg3[%c0_3, %c0_4] : memref<1x1024xf32, #tpu.memory_space<vmem>>, vector<1x1024xf32>
    %5 = vector.broadcast %4 : vector<1x1024xf32> to vector<256x1024xf32>
    %6 = arith.addf %3, %5 : vector<256x1024xf32>
    %cst_5 = arith.constant 0.000000e+00 : f32
    %7 = vector.broadcast %cst_5 : f32 to vector<256x1024xf32>
    %8 = arith.maximumf %6, %7 : vector<256x1024xf32>
    %9 = arith.truncf %8 : vector<256x1024xf32> to vector<256x1024xbf16>
    %c0_6 = arith.constant 0 : index
    %c0_7 = arith.constant 0 : index
    %10 = vector.load %arg4[%c0_6, %c0_7] : memref<1024x128xbf16, #tpu.memory_space<vmem>>, vector<1024x128xbf16>
    %cst_8 = arith.constant dense<0.000000e+00> : vector<256x128xf32>
    %11 = tpu.matmul %9, %10, %cst_8 {dimension_numbers = #tpu.dot_dimension_numbers<[1], [0], [0], [1], [0, 0, 1, 1], [], []>} : vector<256x1024xbf16>, vector<1024x128xbf16>, vector<256x128xf32> -> vector<256x128xf32>
    %c0_9 = arith.constant 0 : index
    %c0_10 = arith.constant 0 : index
    %12 = vector.load %arg5[%c0_9, %c0_10] : memref<1x128xf32, #tpu.memory_space<vmem>>, vector<1x128xf32>
    %13 = vector.broadcast %12 : vector<1x128xf32> to vector<256x128xf32>
    %14 = arith.addf %11, %13 : vector<256x128xf32>
    %15 = tpu.iota {dimensions = array<i32: 1>} : vector<256x128xi32>
    %c8_i32 = arith.constant 8 : i32
    %16 = vector.broadcast %c8_i32 : i32 to vector<256x128xi32>
    %17 = arith.cmpi slt, %15, %16 : vector<256x128xi32>
    %cst_11 = arith.constant 0xFF800000 : f32
    %18 = vector.broadcast %cst_11 : f32 to vector<256x128xf32>
    %19 = arith.select %17, %14, %18 : vector<256x128xi1>, vector<256x128xf32>
    %cst_12 = arith.constant dense<0xFF800000> : vector<256xf32>
    %20 = vector.multi_reduction <maximumf>, %19, %cst_12 [1] : vector<256x128xf32> to vector<256xf32>
    %21 = vector.shape_cast %20 : vector<256xf32> to vector<256x1xf32>
    %22 = vector.broadcast %21 : vector<256x1xf32> to vector<256x128xf32>
    %23 = arith.subf %19, %22 : vector<256x128xf32>
    %24 = math.exp %23 : vector<256x128xf32>
    %cst_13 = arith.constant dense<0.000000e+00> : vector<256xf32>
    %25 = vector.multi_reduction <add>, %24, %cst_13 [1] : vector<256x128xf32> to vector<256xf32>
    %26 = vector.shape_cast %25 : vector<256xf32> to vector<256x1xf32>
    %27 = tpu.reciprocal %26 {approx = true} : vector<256x1xf32> -> vector<256x1xf32>
    %28 = vector.broadcast %27 : vector<256x1xf32> to vector<256x128xf32>
    %29 = arith.mulf %24, %28 : vector<256x128xf32>
    %30 = arith.select %17, %29, %14 : vector<256x128xi1>, vector<256x128xf32>
    %c0_14 = arith.constant 0 : index
    %c0_15 = arith.constant 0 : index
    %31 = vector.load %arg6[%c0_14, %c0_15] : memref<256x128xf32, #tpu.memory_space<vmem>>, vector<256x128xf32>
    tpu.vector_store %arg6[%c0_14, %c0_15], %30 {strides = array<i32>} : memref<256x128xf32, #tpu.memory_space<vmem>>, vector<256x128xf32>,
    return
  }
  func.func @transform_0(%arg0: i32) -> (i32, i32) {
    %c0_i32 = arith.constant 0 : i32
    %c0_i32_0 = arith.constant 0 : i32
    return %arg0, %c0_i32 : i32, i32
  }
  func.func @transform_1(%arg0: i32) -> (i32, i32) {
    %c0_i32 = arith.constant 0 : i32
    %c0_i32_0 = arith.constant 0 : i32
    %c0_i32_1 = arith.constant 0 : i32
    return %c0_i32, %c0_i32_0 : i32, i32
  }
  func.func @transform_2(%arg0: i32) -> (i32, i32) {
    %c0_i32 = arith.constant 0 : i32
    %c0_i32_0 = arith.constant 0 : i32
    %c0_i32_1 = arith.constant 0 : i32
    return %c0_i32, %c0_i32_0 : i32, i32
  }
  func.func @transform_3(%arg0: i32) -> (i32, i32) {
    %c0_i32 = arith.constant 0 : i32
    %c0_i32_0 = arith.constant 0 : i32
    %c0_i32_1 = arith.constant 0 : i32
    return %c0_i32, %c0_i32_0 : i32, i32
  }
  func.func @transform_4(%arg0: i32) -> (i32, i32) {
    %c0_i32 = arith.constant 0 : i32
    %c0_i32_0 = arith.constant 0 : i32
    %c0_i32_1 = arith.constant 0 : i32
    return %c0_i32, %c0_i32_0 : i32, i32
  }
  func.func @transform_5(%arg0: i32) -> (i32, i32) {
    %c0_i32 = arith.constant 0 : i32
    %c0_i32_0 = arith.constant 0 : i32
    return %arg0, %c0_i32 : i32, i32
  }
}

</mosaic_0001>

<bundles_post_ra>
// kernel: tpu_custom_call.1
= control target key start
LH: loop header
LB: loop body
LE: loop exit
PB: predicated region body
PF: predicated region fallthrough
CT: control target
= control target key end

     0   :  { %10 = vsyncpa [#allocation3], 0  ;;  %s7328_s0 = inlined_call_operand.hbm [shape: f32[256,256], index: 0, kind: input, shape index: {}]   ;;  %s7329_s1 = inlined_call_operand.hbm [shape: bf16[256,1024], index: 1, kind: input, shape index: {}]   ;;  %s7330_s2 = inlined_call_operand.hbm [shape: f32[1,1024], index: 2, kind: input, shape index: {}]   ;;  %s7331_s3 = inlined_call_operand.hbm [shape: bf16[1024,128], index: 3, kind: input, shape index: {}]   ;;  %s7332_s4 = inlined_call_operand.vmem [shape: f32[1,128], index: 4, kind: input, shape index: {}]   ;;  %s7333_s5 = inlined_call_operand.hbm [shape: f32[256,128], index: 5, kind: output, shape index: {}]  }
   0x1   :  { %11 = vsyncpa [#allocation6], 0 }
   0x2   :  { %12 = vsyncpa [#allocation9], 0  ;;  %s31_s20 = sshll.u32 %s7329_s1, 4  ;;  %s32_s20 = int_to_ptr.hbm [resolvable:$true] %s31_s20 }
   0x3   :  { %13 = vsyncpa [#allocation4], 0  ;;  %s5641_s21 = smov [#allocation5]   ;;  %s18_s25 = sshll.u32 %s7328_s0, 4  ;;  %s19_s25 = int_to_ptr.hbm [resolvable:$true] %s18_s25 }
   0x4   :  { %s33_s22 = sshll.u32 %s5641_s21, 4  ;;  %s5642_s26 = smov 512   ;;  %s34_s22 = int_to_ptr.vmem [resolvable:$true] %s33_s22 }
   0x5   :  { %s5643_s27 = smov 32   ;;  %s5644_s28 = smov [#allocation2]  }
   0x6   :  { %39 = dma.hbm_to_vmem [thread:$0]  %s32_s20, 16384, %s34_s22, [#allocation6], %s5642_s26, %s5642_s26, %s5643_s27  }
   0x7   :  { %s20_s29 = sshll.u32 %s5644_s28, 4  ;;  %s5645_s30 = smov 256   ;;  %s21_s29 = int_to_ptr.vmem [resolvable:$true] %s20_s29 }
   0x8   :  { %s5646_s6 = smov 16   ;;  %s45_s8 = sshll.u32 %s7330_s2, 4  ;;  %s46_s8 = int_to_ptr.hbm [resolvable:$true] %s45_s8 }
   0x9   :  { %26 = dma.hbm_to_vmem [thread:$0]  %s19_s25, 8192, %s21_s29, [#allocation3], %s5645_s30, %s5645_s30, %s5646_s6  }
   0xa   :  { %s5647_s9 = smov [#allocation7]   ;;  %s55_s12 = sshll.u32 %s7331_s3, 4  ;;  %s56_s12 = int_to_ptr.hbm [resolvable:$true] %s55_s12 }
   0xb   :  { %s47_s10 = sshll.u32 %s5647_s9, 4  ;;  %s5648_s13 = smov [#allocation8]   ;;  %s48_s10 = int_to_ptr.vmem [resolvable:$true] %s47_s10 }
   0xc   :  { %50 = dma.hbm_to_vmem [thread:$0]  %s46_s8, 128, %s48_s10, [#allocation6]  }
   0xd   :  { %s57_s14 = sshll.u32 %s5648_s13, 4  ;;  %s5649_s15 = smov 64   ;;  %s58_s14 = int_to_ptr.vmem [resolvable:$true] %s57_s14 }
   0xe   :  { %s5650_s16 = smov 4  }
   0xf   :  { %63 = dma.hbm_to_vmem [thread:$0]  %s56_s12, 8192, %s58_s14, [#allocation9], %s5649_s15, %s5649_s15, %s5650_s16  }
  0x10   :  { %5633 = dma.done.wait [#allocation3], 8192  }
  0x11   :  { %5634 = vsyncadd [#allocation3], 4294959104 }
  0x12   :  { %5635 = dma.done.wait [#allocation6], 16512  }
  0x13   :  { %5636 = vsyncadd [#allocation6], 4294950784 }
  0x14   :  { %5637 = dma.done.wait [#allocation9], 8192  }
  0x15   :  { %5638 = vsyncadd [#allocation9], 4294959104  ;;  %v4634_v0 = vld [vmem:[#allocation5 + $0x1c0] sm:$0xf]  ;;  %v5232_v5 = vld [vmem:[#allocation5 + $0x1c4] sm:$0xf] }
  0x16   :  { %v5236_v1 = vld [vmem:[#allocation5 + $0x1dc] sm:$0xf0]  ;;  %v4636_v6 = vld [vmem:[#allocation5 + $0x1e0] sm:$0xf0]  ;;  %s4393_s20 = sshll.u32 %s7333_s5, 4  ;;  %s5652_s21 = smov 128   ;;  %s4394_s20 = int_to_ptr.hbm [resolvable:$true] %s4393_s20 }
  0x17   :  { %v4890_v2 = vld [vmem:[#allocation5 + $0x3c0] sm:$0xf]  ;;  %v4635_v3 = vor.u32 %v5236_v1, %v4634_v0  ;;  %v4639_v8 = vor.u32 %v5232_v5, %v4636_v6  ;;  %v5296_v9 = vld [vmem:[#allocation5 + $0x3c4] sm:$0xf]  ;;  %s5653_s22 = smov 8  }
  0x18   :  { %v5300_v4 = vld [vmem:[#allocation5 + $0x3dc] sm:$0xf0]  ;;  %v4892_v10 = vld [vmem:[#allocation5 + $0x3e0] sm:$0xf0] }
  0x19   :  { %v4891_v7 = vor.u32 %v5300_v4, %v4890_v2  ;;  %v4602_v11 = vld [vmem:[#allocation5 + $0x180] sm:$0xf]  ;;  %964 = vmatpush.bf16.msra.mxu0 %v4635_v3  ;;  %v4895_v12 = vor.u32 %v5296_v9, %v4892_v10  ;;  %1142 = vmatpush.bf16.msra.mxu2 %v4639_v8  ;;  %v5224_v18 = vld [vmem:[#allocation5 + $0x184] sm:$0xf] }
  0x1a   :  { %v5228_v13 = vld [vmem:[#allocation5 + $0x19c] sm:$0xf0]  ;;  %v4604_v19 = vld [vmem:[#allocation5 + $0x1a0] sm:$0xf0] }
  0x1b   :  { %v4858_v14 = vld [vmem:[#allocation5 + $0x380] sm:$0xf]  ;;  %1053 = vmatpush.bf16.msra.mxu1 %v4891_v7  ;;  %v4603_v16 = vor.u32 %v5228_v13, %v4602_v11  ;;  %v5288_v20 = vld [vmem:[#allocation5 + $0x384] sm:$0xf]  ;;  %1231 = vmatpush.bf16.msra.mxu3 %v4895_v12  ;;  %v4607_v21 = vor.u32 %v5224_v18, %v4604_v19 }
  0x1c   :  { %v5292_v15 = vld [vmem:[#allocation5 + $0x39c] sm:$0xf0]  ;;  %v4860_v22 = vld [vmem:[#allocation5 + $0x3a0] sm:$0xf0] }
  0x1d   :  { %v4859_v17 = vor.u32 %v5292_v15, %v4858_v14  ;;  %v4570_v23 = vld [vmem:[#allocation5 + $0x140] sm:$0xf]  ;;  %v4863_v25 = vor.u32 %v5288_v20, %v4860_v22  ;;  %v5216_v28 = vld [vmem:[#allocation5 + $0x144] sm:$0xf]  ;;  %965 = vmatpush.bf16.msra.mxu0 %v4603_v16  ;;  %1143 = vmatpush.bf16.msra.mxu2 %v4607_v21 }
  0x1e   :  { %v5220_v24 = vld [vmem:[#allocation5 + $0x15c] sm:$0xf0]  ;;  %v4572_v30 = vld [vmem:[#allocation5 + $0x160] sm:$0xf0] }
  0x1f   :  { %v4826_v26 = vld [vmem:[#allocation5 + $0x340] sm:$0xf]  ;;  %v4571_v29 = vor.u32 %v5220_v24, %v4570_v23  ;;  %v5280_v31 = vld [vmem:[#allocation5 + $0x344] sm:$0xf]  ;;  %1054 = vmatpush.bf16.msra.mxu1 %v4859_v17  ;;  %v4575_v34 = vor.u32 %v5216_v28, %v4572_v30  ;;  %1232 = vmatpush.bf16.msra.mxu3 %v4863_v25  ;;  %v5233_v30 = vld [vmem:[#allocation5 + $0x1cc] sm:$0xf] }
  0x20   :  { %v5284_v27 = vld [vmem:[#allocation5 + $0x35c] sm:$0xf0]  ;;  %v4828_v32 = vld [vmem:[#allocation5 + $0x360] sm:$0xf0] }
  0x21   :  { %v4827_v33 = vor.u32 %v5284_v27, %v4826_v26  ;;  %v4538_v35 = vld [vmem:[#allocation5 + $0x100] sm:$0xf]  ;;  %v4831_v38 = vor.u32 %v5280_v31, %v4828_v32  ;;  %v5208_v40 = vld [vmem:[#allocation5 + $0x104] sm:$0xf]  ;;  %966 = vmatpush.bf16.msra.mxu0 %v4571_v29  ;;  %1144 = vmatpush.bf16.msra.mxu2 %v4575_v34  ;;  %v84_v29 = vld [vmem:[#allocation2 + $0x10] sm:$0xff] }
  0x22   :  { %v5212_v36 = vld [vmem:[#allocation5 + $0x11c] sm:$0xf0]  ;;  %v4540_v41 = vld [vmem:[#allocation5 + $0x120] sm:$0xf0]  ;;  %v4644_v31 = vld [vmem:[#allocation5 + $0x1e8] sm:$0xf0] }
  0x23   :  { %v4794_v37 = vld [vmem:[#allocation5 + $0x300] sm:$0xf]  ;;  %v5272_v42 = vld [vmem:[#allocation5 + $0x304] sm:$0xf]  ;;  %v4539_v44 = vor.u32 %v5212_v36, %v4538_v35  ;;  %1055 = vmatpush.bf16.msra.mxu1 %v4827_v33  ;;  %v4543_v46 = vor.u32 %v5208_v40, %v4540_v41  ;;  %1233 = vmatpush.bf16.msra.mxu3 %v4831_v38  ;;  %v5297_v33 = vld [vmem:[#allocation5 + $0x3cc] sm:$0xf]  ;;  %v4647_v40 = vor.u32 %v5233_v30, %v4644_v31 }
  0x24   :  { %v5276_v39 = vld [vmem:[#allocation5 + $0x31c] sm:$0xf0]  ;;  %v4796_v43 = vld [vmem:[#allocation5 + $0x320] sm:$0xf0]  ;;  %v4900_v34 = vld [vmem:[#allocation5 + $0x3e8] sm:$0xf0] }
  0x25   :  { %v4795_v45 = vor.u32 %v5276_v39, %v4794_v37  ;;  %v4506_v47 = vld [vmem:[#allocation5 + $0xc0] sm:$0xf]  ;;  %v4799_v50 = vor.u32 %v5272_v42, %v4796_v43  ;;  %v5200_v52 = vld [vmem:[#allocation5 + $0xc4] sm:$0xf]  ;;  %967 = vmatpush.bf16.msra.mxu0 %v4539_v44  ;;  %1145 = vmatpush.bf16.msra.mxu2 %v4543_v46  ;;  %v83_v37 = vld [vmem:[#allocation2 + $0x8] sm:$0xff]  ;;  %v4903_v44 = vor.u32 %v5297_v33, %v4900_v34 }
  0x26   :  { %v5204_v48 = vld [vmem:[#allocation5 + $0xdc] sm:$0xf0]  ;;  %v4508_v53 = vld [vmem:[#allocation5 + $0xe0] sm:$0xf0]  ;;  %v85_v38 = vld [vmem:[#allocation2 + $0x18] sm:$0xff] }
  0x27   :  { %v4762_v49 = vld [vmem:[#allocation5 + $0x2c0] sm:$0xf]  ;;  %v5264_v54 = vld [vmem:[#allocation5 + $0x2c4] sm:$0xf]  ;;  %v4507_v56 = vor.u32 %v5204_v48, %v4506_v47  ;;  %1056 = vmatpush.bf16.msra.mxu1 %v4795_v45  ;;  %v4511_v58 = vor.u32 %v5200_v52, %v4508_v53  ;;  %1234 = vmatpush.bf16.msra.mxu3 %v4799_v50  ;;  %v4642_v41 = vld [vmem:[#allocation5 + $0x1c8] sm:$0xf]  ;;  %v5698_v47 = vpack.c.bf16 %v85_v38, %v83_v37 }
  0x28   :  { %v5268_v51 = vld [vmem:[#allocation5 + $0x2dc] sm:$0xf0]  ;;  %v4764_v55 = vld [vmem:[#allocation5 + $0x2e0] sm:$0xf0]  ;;  %v5237_v42 = vld [vmem:[#allocation5 + $0x1e4] sm:$0xf0] }
  0x29   :  { %v4763_v57 = vor.u32 %v5268_v51, %v4762_v49  ;;  %v4474_v59 = vld [vmem:[#allocation5 + $0x80] sm:$0xf]  ;;  %v4767_v62 = vor.u32 %v5264_v54, %v4764_v55  ;;  %v5192_v0 = vld [vmem:[#allocation5 + $0x84] sm:$0xf]  ;;  %968 = vmatpush.bf16.msra.mxu0 %v4507_v56  ;;  %1146 = vmatpush.bf16.msra.mxu2 %v4511_v58  ;;  %v4898_v45 = vld [vmem:[#allocation5 + $0x3c8] sm:$0xf]  ;;  %v4643_v48 = vor.u32 %v5237_v42, %v4642_v41 }
  0x2a   :  { %v5196_v60 = vld [vmem:[#allocation5 + $0x9c] sm:$0xf0]  ;;  %v4476_v1 = vld [vmem:[#allocation5 + $0xa0] sm:$0xf0]  ;;  %v5301_v46 = vld [vmem:[#allocation5 + $0x3e4] sm:$0xf0] }
  0x2b   :  { %v4730_v61 = vld [vmem:[#allocation5 + $0x280] sm:$0xf]  ;;  %v5256_v2 = vld [vmem:[#allocation5 + $0x284] sm:$0xf]  ;;  %v4475_v4 = vor.u32 %v5196_v60, %v4474_v59  ;;  %1057 = vmatpush.bf16.msra.mxu1 %v4763_v57  ;;  %v4479_v6 = vor.u32 %v5192_v0, %v4476_v1  ;;  %1235 = vmatpush.bf16.msra.mxu3 %v4767_v62  ;;  %v4899_v49 = vor.u32 %v5301_v46, %v4898_v45  ;;  %v5225_v50 = vld [vmem:[#allocation5 + $0x18c] sm:$0xf] }
  0x2c   :  { %v5260_v63 = vld [vmem:[#allocation5 + $0x29c] sm:$0xf0]  ;;  %v4732_v3 = vld [vmem:[#allocation5 + $0x2a0] sm:$0xf0]  ;;  %v4612_v51 = vld [vmem:[#allocation5 + $0x1a8] sm:$0xf0] }
  0x2d   :  { %v4731_v5 = vor.u32 %v5260_v63, %v4730_v61  ;;  %v4442_v7 = vld [vmem:[#allocation5 + $0x40] sm:$0xf]  ;;  %v4735_v10 = vor.u32 %v5256_v2, %v4732_v3  ;;  %v5184_v12 = vld [vmem:[#allocation5 + $0x44] sm:$0xf]  ;;  %969 = vmatpush.bf16.msra.mxu0 %v4475_v4  ;;  %1147 = vmatpush.bf16.msra.mxu2 %v4479_v6  ;;  %v4610_v52 = vld [vmem:[#allocation5 + $0x188] sm:$0xf]  ;;  %v4615_v53 = vor.u32 %v5225_v50, %v4612_v51 }
  0x2e   :  { %v5188_v8 = vld [vmem:[#allocation5 + $0x5c] sm:$0xf0]  ;;  %v4444_v13 = vld [vmem:[#allocation5 + $0x60] sm:$0xf0]  ;;  %v5229_v54 = vld [vmem:[#allocation5 + $0x1a4] sm:$0xf0] }
  0x2f   :  { %v4698_v9 = vld [vmem:[#allocation5 + $0x240] sm:$0xf]  ;;  %v5248_v14 = vld [vmem:[#allocation5 + $0x244] sm:$0xf]  ;;  %v4443_v16 = vor.u32 %v5188_v8, %v4442_v7  ;;  %1058 = vmatpush.bf16.msra.mxu1 %v4731_v5  ;;  %v4447_v21 = vor.u32 %v5184_v12, %v4444_v13  ;;  %1236 = vmatpush.bf16.msra.mxu3 %v4735_v10  ;;  %v5289_v55 = vld [vmem:[#allocation5 + $0x38c] sm:$0xf]  ;;  %v4611_v57 = vor.u32 %v5229_v54, %v4610_v52 }
  0x30   :  { %v5252_v11 = vld [vmem:[#allocation5 + $0x25c] sm:$0xf0]  ;;  %v4700_v15 = vld [vmem:[#allocation5 + $0x260] sm:$0xf0]  ;;  %v4868_v56 = vld [vmem:[#allocation5 + $0x3a8] sm:$0xf0] }
  0x31   :  { %v4410_v17 = vld [vmem:[#allocation5] sm:$0xf]  ;;  %v4699_v20 = vor.u32 %v5252_v11, %v4698_v9  ;;  %v5176_v23 = vld [vmem:[#allocation5 + $0x4] sm:$0xf]  ;;  %v4703_v25 = vor.u32 %v5248_v14, %v4700_v15  ;;  %970 = vmatpush.bf16.msra.mxu0 %v4443_v16  ;;  %1148 = vmatpush.bf16.msra.mxu2 %v4447_v21  ;;  %v4871_v58 = vor.u32 %v5289_v55, %v4868_v56  ;;  %v4866_v59 = vld [vmem:[#allocation5 + $0x388] sm:$0xf] }
  0x32   :  { %v5180_v18 = vld [vmem:[#allocation5 + $0x1c] sm:$0xf0]  ;;  %v4412_v24 = vld [vmem:[#allocation5 + $0x20] sm:$0xf0]  ;;  %v5293_v60 = vld [vmem:[#allocation5 + $0x3a4] sm:$0xf0] }
  0x33   :  { %v4666_v19 = vld [vmem:[#allocation5 + $0x200] sm:$0xf]  ;;  %v5240_v26 = vld [vmem:[#allocation5 + $0x204] sm:$0xf]  ;;  %v4411_v32 = vor.u32 %v5180_v18, %v4410_v17  ;;  %1059 = vmatpush.bf16.msra.mxu1 %v4699_v20  ;;  %v4415_v36 = vor.u32 %v5176_v23, %v4412_v24  ;;  %1237 = vmatpush.bf16.msra.mxu3 %v4703_v25  ;;  %v4867_v61 = vor.u32 %v5293_v60, %v4866_v59  ;;  %v88_v63 = vld [vmem:[#allocation2 + $0x30] sm:$0xff] }
  0x34   :  { %v5244_v22 = vld [vmem:[#allocation5 + $0x21c] sm:$0xf0]  ;;  %v4668_v27 = vld [vmem:[#allocation5 + $0x220] sm:$0xf0]  ;;  %v87_v0 = vld [vmem:[#allocation2 + $0x28] sm:$0xff] }
  0x35   :  { %v82_v28 = vld [vmem:[#allocation2] sm:$0xff]  ;;  %v4667_v35 = vor.u32 %v5244_v22, %v4666_v19  ;;  %v4671_v39 = vor.u32 %v5240_v26, %v4668_v27  ;;  %971 = vmatpush.bf16.msra.mxu0 %v4411_v32  ;;  %1149 = vmatpush.bf16.msra.mxu2 %v4415_v36  ;;  %v89_v1 = vld [vmem:[#allocation2 + $0x38] sm:$0xff]  ;;  %v92_v5 = vld [vmem:[#allocation2 + $0x50] sm:$0xff] }
  0x36   :  { %v5696_v43 = vpack.c.bf16 %v84_v29, %v82_v28  ;;  %v86_v62 = vld [vmem:[#allocation2 + $0x20] sm:$0xff]  ;;  %v5706_v3 = vpack.c.bf16 %v89_v1, %v87_v0  ;;  %v91_v6 = vld [vmem:[#allocation2 + $0x48] sm:$0xff]  ;;  %v93_v7 = vld [vmem:[#allocation2 + $0x58] sm:$0xff] }
  0x37   :  { %1060 = vmatpush.bf16.msra.mxu1 %v4667_v35  ;;  %1238 = vmatpush.bf16.msra.mxu3 %v4671_v39  ;;  %v5704_v2 = vpack.c.bf16 %v88_v63, %v86_v62  ;;  %v90_v4 = vld [vmem:[#allocation2 + $0x40] sm:$0xff]  ;;  %v5714_v9 = vpack.c.bf16 %v93_v7, %v91_v6  ;;  %v5217_v10 = vld [vmem:[#allocation5 + $0x14c] sm:$0xf]  ;;  %v4578_v12 = vld [vmem:[#allocation5 + $0x148] sm:$0xf] }
  0x38   :  { %972 = vmatmul.bf16.vlgmr.msra.gmra.mxu0 %v5696_v43  ;;  %1150 = vmatmul.bf16.vlgmr.msra.gmra.mxu2 %v5696_v43  ;;  %v5712_v8 = vpack.c.bf16 %v92_v5, %v90_v4  ;;  %v4580_v11 = vld [vmem:[#allocation5 + $0x168] sm:$0xf0]  ;;  %v5221_v14 = vld [vmem:[#allocation5 + $0x164] sm:$0xf0]  ;;  %v94_v22 = vld [vmem:[#allocation2 + $0x60] sm:$0xff] }
  0x39   :  { %1498 = vmatpush.bf16.msrb.mxu2 %v4647_v40  ;;  %1320 = vmatpush.bf16.msrb.mxu0 %v4643_v48  ;;  %v4583_v13 = vor.u32 %v5217_v10, %v4580_v11  ;;  %v5281_v15 = vld [vmem:[#allocation5 + $0x34c] sm:$0xf]  ;;  %v4579_v17 = vor.u32 %v5221_v14, %v4578_v12  ;;  %v4834_v19 = vld [vmem:[#allocation5 + $0x348] sm:$0xf]  ;;  %v96_v23 = vld [vmem:[#allocation2 + $0x70] sm:$0xff] }
  0x3a   :  { %1061 = vmatmul.bf16.vlgmr.msra.gmra.mxu1 %v5698_v47  ;;  %1239 = vmatmul.bf16.vlgmr.msra.gmra.mxu3 %v5698_v47  ;;  %v4836_v16 = vld [vmem:[#allocation5 + $0x368] sm:$0xf0]  ;;  %v5285_v20 = vld [vmem:[#allocation5 + $0x364] sm:$0xf0]  ;;  %v97_v25 = vld [vmem:[#allocation2 + $0x78] sm:$0xff]  ;;  %v5720_v26 = vpack.c.bf16 %v96_v23, %v94_v22 }
  0x3b   :  { %1587 = vmatpush.bf16.msrb.mxu3 %v4903_v44  ;;  %1409 = vmatpush.bf16.msrb.mxu1 %v4899_v49  ;;  %v4839_v18 = vor.u32 %v5281_v15, %v4836_v16  ;;  %v4835_v21 = vor.u32 %v5285_v20, %v4834_v19  ;;  %v95_v24 = vld [vmem:[#allocation2 + $0x68] sm:$0xff]  ;;  %v98_v28 = vld [vmem:[#allocation2 + $0x80] sm:$0xff]  ;;  %v100_v29 = vld [vmem:[#allocation2 + $0x90] sm:$0xff] }
  0x3c   :  { %v5722_v27 = vpack.c.bf16 %v97_v25, %v95_v24  ;;  %v99_v30 = vld [vmem:[#allocation2 + $0x88] sm:$0xff]  ;;  %v101_v31 = vld [vmem:[#allocation2 + $0x98] sm:$0xff]  ;;  %v5728_v32 = vpack.c.bf16 %v100_v29, %v98_v28  ;;  %v102_v48 = vld [vmem:[#allocation2 + $0xa0] sm:$0xff] }
  0x3d   :  { %1499 = vmatpush.bf16.msrb.mxu2 %v4615_v53  ;;  %1321 = vmatpush.bf16.msrb.mxu0 %v4611_v57  ;;  %v5730_v33 = vpack.c.bf16 %v101_v31, %v99_v30  ;;  %v5209_v34 = vld [vmem:[#allocation5 + $0x10c] sm:$0xf]  ;;  %v4546_v36 = vld [vmem:[#allocation5 + $0x108] sm:$0xf]  ;;  %v104_v49 = vld [vmem:[#allocation2 + $0xb0] sm:$0xff] }
  0x3e   :  { %v4548_v35 = vld [vmem:[#allocation5 + $0x128] sm:$0xf0]  ;;  %v5213_v38 = vld [vmem:[#allocation5 + $0x124] sm:$0xf0]  ;;  %v105_v51 = vld [vmem:[#allocation2 + $0xb8] sm:$0xff]  ;;  %v5736_v52 = vpack.c.bf16 %v104_v49, %v102_v48 }
  0x3f   :  { %1588 = vmatpush.bf16.msrb.mxu3 %v4871_v58  ;;  %1410 = vmatpush.bf16.msrb.mxu1 %v4867_v61  ;;  %v4551_v37 = vor.u32 %v5209_v34, %v4548_v35  ;;  %v5273_v39 = vld [vmem:[#allocation5 + $0x30c] sm:$0xf]  ;;  %v4547_v41 = vor.u32 %v5213_v38, %v4546_v36  ;;  %v4802_v44 = vld [vmem:[#allocation5 + $0x308] sm:$0xf]  ;;  %v106_v54 = vld [vmem:[#allocation2 + $0xc0] sm:$0xff] }
  0x40   :  { %v4804_v40 = vld [vmem:[#allocation5 + $0x328] sm:$0xf0]  ;;  %v5277_v45 = vld [vmem:[#allocation5 + $0x324] sm:$0xf0]  ;;  %v108_v55 = vld [vmem:[#allocation2 + $0xd0] sm:$0xff] }
  0x41   :  { %1500 = vmatpush.bf16.msrb.mxu2 %v4583_v13  ;;  %1322 = vmatpush.bf16.msrb.mxu0 %v4579_v17  ;;  %v4807_v42 = vor.u32 %v5273_v39, %v4804_v40  ;;  %v4803_v46 = vor.u32 %v5277_v45, %v4802_v44  ;;  %v103_v50 = vld [vmem:[#allocation2 + $0xa8] sm:$0xff]  ;;  %v109_v57 = vld [vmem:[#allocation2 + $0xd8] sm:$0xff]  ;;  %v5744_v58 = vpack.c.bf16 %v108_v55, %v106_v54  ;;  %v110_v7 = vld [vmem:[#allocation2 + $0xe0] sm:$0xff] }
  0x42   :  { %v5738_v53 = vpack.c.bf16 %v105_v51, %v103_v50  ;;  %v107_v56 = vld [vmem:[#allocation2 + $0xc8] sm:$0xff]  ;;  %v112_v10 = vld [vmem:[#allocation2 + $0xf0] sm:$0xff]  ;;  %v113_v14 = vld [vmem:[#allocation2 + $0xf8] sm:$0xff] }
  0x43   :  { %1589 = vmatpush.bf16.msrb.mxu3 %v4839_v18  ;;  %1411 = vmatpush.bf16.msrb.mxu1 %v4835_v21  ;;  %v5746_v59 = vpack.c.bf16 %v109_v57, %v107_v56  ;;  %v5201_v60 = vld [vmem:[#allocation5 + $0xcc] sm:$0xf]  ;;  %v4514_v62 = vld [vmem:[#allocation5 + $0xc8] sm:$0xf]  ;;  %v5752_v16 = vpack.c.bf16 %v112_v10, %v110_v7  ;;  %v306_v18 = vld [vmem:[#allocation7] sm:$0xff] }
  0x44   :  { %v4516_v61 = vld [vmem:[#allocation5 + $0xe8] sm:$0xf0]  ;;  %v5205_v0 = vld [vmem:[#allocation5 + $0xe4] sm:$0xf0]  ;;  %v114_v19 = vld [vmem:[#allocation2 + $0x100] sm:$0xff]  ;;  %v5760_v21 = vperm.slane %v306_v18, 0 }
  0x45   :  { %1501 = vmatpush.bf16.msrb.mxu2 %v4551_v37  ;;  %1323 = vmatpush.bf16.msrb.mxu0 %v4547_v41  ;;  %v4519_v63 = vor.u32 %v5201_v60, %v4516_v61  ;;  %v5265_v1 = vld [vmem:[#allocation5 + $0x2cc] sm:$0xf]  ;;  %v4515_v5 = vor.u32 %v5205_v0, %v4514_v62  ;;  %v4770_v11 = vld [vmem:[#allocation5 + $0x2c8] sm:$0xf]  ;;  %v116_v20 = vld [vmem:[#allocation2 + $0x110] sm:$0xff]  ;;  %v5770_v34 = vperm.slane %v306_v18, 1 }
  0x46   :  { %v4772_v4 = vld [vmem:[#allocation5 + $0x2e8] sm:$0xf0]  ;;  %v5269_v12 = vld [vmem:[#allocation5 + $0x2e4] sm:$0xf0]  ;;  %v117_v23 = vld [vmem:[#allocation2 + $0x118] sm:$0xff]  ;;  %v5762_v24 = vpack.c.bf16 %v116_v20, %v114_v19 }
  0x47   :  { %1590 = vmatpush.bf16.msrb.mxu3 %v4807_v42  ;;  %1412 = vmatpush.bf16.msrb.mxu1 %v4803_v46  ;;  %v4775_v6 = vor.u32 %v5265_v1, %v4772_v4  ;;  %v111_v13 = vld [vmem:[#allocation2 + $0xe8] sm:$0xff]  ;;  %v4771_v15 = vor.u32 %v5269_v12, %v4770_v11  ;;  %v118_v56 = vld [vmem:[#allocation2 + $0x120] sm:$0xff]  ;;  %v120_v57 = vld [vmem:[#allocation2 + $0x130] sm:$0xff] }
  0x48   :  { %977 = vmatmul.bf16.gmra.mxu0 %v5704_v2  ;;  %1155 = vmatmul.bf16.gmra.mxu2 %v5704_v2  ;;  %v5754_v17 = vpack.c.bf16 %v113_v14, %v111_v13  ;;  %v115_v22 = vld [vmem:[#allocation2 + $0x108] sm:$0xff]  ;;  %v121_v1 = vld [vmem:[#allocation2 + $0x138] sm:$0xff]  ;;  %v5777_v7 = vpack.c.bf16 %v120_v57, %v118_v56 }
  0x49   :  { %1502 = vmatpush.bf16.msrb.mxu2 %v4519_v63  ;;  %1324 = vmatpush.bf16.msrb.mxu0 %v4515_v5  ;;  %v5764_v28 = vpack.c.bf16 %v117_v23, %v115_v22  ;;  %v5193_v35 = vld [vmem:[#allocation5 + $0x8c] sm:$0xf]  ;;  %v4482_v38 = vld [vmem:[#allocation5 + $0x88] sm:$0xf] }
  0x4a   :  { %1066 = vmatmul.bf16.gmra.mxu1 %v5706_v3  ;;  %1244 = vmatmul.bf16.gmra.mxu3 %v5706_v3  ;;  %v4484_v36 = vld [vmem:[#allocation5 + $0xa8] sm:$0xf0]  ;;  %v5197_v39 = vld [vmem:[#allocation5 + $0xa4] sm:$0xf0] }
  0x4b   :  { %1591 = vmatpush.bf16.msrb.mxu3 %v4775_v6  ;;  %1413 = vmatpush.bf16.msrb.mxu1 %v4771_v15  ;;  %v4487_v37 = vor.u32 %v5193_v35, %v4484_v36  ;;  %v5257_v40 = vld [vmem:[#allocation5 + $0x28c] sm:$0xf]  ;;  %v4483_v42 = vor.u32 %v5197_v39, %v4482_v38  ;;  %v4738_v60 = vld [vmem:[#allocation5 + $0x288] sm:$0xf]  ;;  %v122_v39 = vld [vmem:[#allocation2 + $0x140] sm:$0xff] }
  0x4c   :  { %v4740_v44 = vld [vmem:[#allocation5 + $0x2a8] sm:$0xf0]  ;;  %v5261_v61 = vld [vmem:[#allocation5 + $0x2a4] sm:$0xf0] }
  0x4d   :  { %1503 = vmatpush.bf16.msrb.mxu2 %v4487_v37  ;;  %v4743_v49 = vor.u32 %v5257_v40, %v4740_v44  ;;  %1325 = vmatpush.bf16.msrb.mxu0 %v4483_v42  ;;  %v119_v0 = vld [vmem:[#allocation2 + $0x128] sm:$0xff]  ;;  %v4739_v4 = vor.u32 %v5261_v61, %v4738_v60  ;;  %v124_v40 = vld [vmem:[#allocation2 + $0x150] sm:$0xff] }
  0x4e   :  { %v5780_v13 = vpack.c.bf16 %v121_v1, %v119_v0  ;;  %v123_v44 = vld [vmem:[#allocation2 + $0x148] sm:$0xff] }
  0x4f   :  { %1592 = vmatpush.bf16.msrb.mxu3 %v4743_v49  ;;  %1414 = vmatpush.bf16.msrb.mxu1 %v4739_v4  ;;  %v5185_v0 = vld [vmem:[#allocation5 + $0x4c] sm:$0xf] }
  0x50   :  { %v4452_v1 = vld [vmem:[#allocation5 + $0x68] sm:$0xf0] }
  0x51   :  { %v4455_v4 = vor.u32 %v5185_v0, %v4452_v1 }
  0x53   :  { %1504 = vmatpush.bf16.msrb.mxu2 %v4455_v4 }
  0x58   :  { %982 = vmatmul.bf16.gmra.mxu0 %v5712_v8  ;;  %1160 = vmatmul.bf16.gmra.mxu2 %v5712_v8 }
  0x5a   :  { %1071 = vmatmul.bf16.gmra.mxu1 %v5714_v9  ;;  %1249 = vmatmul.bf16.gmra.mxu3 %v5714_v9 }
  0x68   :  { %987 = vmatmul.bf16.gmra.mxu0 %v5720_v26  ;;  %1165 = vmatmul.bf16.gmra.mxu2 %v5720_v26 }
  0x6a   :  { %1076 = vmatmul.bf16.gmra.mxu1 %v5722_v27  ;;  %1254 = vmatmul.bf16.gmra.mxu3 %v5722_v27 }
  0x78   :  { %992 = vmatmul.bf16.gmra.mxu0 %v5728_v32  ;;  %1170 = vmatmul.bf16.gmra.mxu2 %v5728_v32 }
  0x7a   :  { %1081 = vmatmul.bf16.gmra.mxu1 %v5730_v33  ;;  %1259 = vmatmul.bf16.gmra.mxu3 %v5730_v33 }
  0x88   :  { %997 = vmatmul.bf16.gmra.mxu0 %v5736_v52  ;;  %1175 = vmatmul.bf16.gmra.mxu2 %v5736_v52 }
  0x8a   :  { %1086 = vmatmul.bf16.gmra.mxu1 %v5738_v53  ;;  %1264 = vmatmul.bf16.gmra.mxu3 %v5738_v53 }
  0x98   :  { %1002 = vmatmul.bf16.gmra.mxu0 %v5744_v58  ;;  %1180 = vmatmul.bf16.gmra.mxu2 %v5744_v58 }
  0x9a   :  { %1091 = vmatmul.bf16.gmra.mxu1 %v5746_v59  ;;  %1269 = vmatmul.bf16.gmra.mxu3 %v5746_v59 }
  0xa8   :  { %1007 = vmatmul.bf16.gmra.mxu0 %v5752_v16  ;;  %1185 = vmatmul.bf16.gmra.mxu2 %v5752_v16 }
  0xaa   :  { %1096 = vmatmul.bf16.gmra.mxu1 %v5754_v17  ;;  %1274 = vmatmul.bf16.gmra.mxu3 %v5754_v17 }
  0xb5   :  { %v973_v25 = vpop.f32.mrf.mxu0 }
  0xb6   :  { %v974_v29 = vadd.f32 %v973_v25, %v5760_v21 }
  0xb7   :  { %v1062_v30 = vpop.f32.mrf.mxu1 }
  0xb8   :  { %v1063_v31 = vadd.f32 %v1062_v30, %v974_v29  ;;  %1012 = vmatmul.bf16.gmra.mxu0 %v5762_v24  ;;  %1190 = vmatmul.bf16.gmra.mxu2 %v5762_v24 }
  0xba   :  { %1101 = vmatmul.bf16.gmra.mxu1 %v5764_v28  ;;  %1279 = vmatmul.bf16.gmra.mxu3 %v5764_v28  ;;  %v2388_v62 = vmax.f32 %v1063_v31, 0.0 }
  0xbb   :  { %v1151_v41 = vpop.f32.mrf.mxu2 }
  0xbc   :  { %v1152_v45 = vadd.f32 %v1151_v41, %v5770_v34 }
  0xbd   :  { %v1240_v46 = vpop.f32.mrf.mxu3  ;;  %v975_v48 = vpop.f32.mrf.mxu0 }
  0xbe   :  { %v976_v50 = vadd.f32 %v975_v48, %v5760_v21  ;;  %v1241_v54 = vadd.f32 %v1240_v46, %v1152_v45  ;;  %v125_v45 = vld [vmem:[#allocation2 + $0x158] sm:$0xff]  ;;  %v5791_v48 = vpack.c.bf16 %v124_v40, %v122_v39  ;;  %v5253_v39 = vld [vmem:[#allocation5 + $0x264] sm:$0xf0] }
  0xbf   :  { %v1064_v51 = vpop.f32.mrf.mxu1 }
  0xc0   :  { %v1065_v55 = vadd.f32 %v1064_v51, %v976_v50  ;;  %v2389_v20 = vmax.f32 %v1241_v54, 0.0 }
  0xc2   :  { %v2396_v63 = vmax.f32 %v1065_v55, 0.0  ;;  %v5796_v55 = vpack.c.bf16 %v125_v45, %v123_v44  ;;  %v129_v44 = vld [vmem:[#allocation2 + $0x178] sm:$0xff] }
  0xc3   :  { %v1153_v6 = vpop.f32.mrf.mxu2 }
  0xc4   :  { %v5775_v5 = vpack.c.bf16 %v2396_v63, %v2388_v62  ;;  %v1154_v10 = vadd.f32 %v1153_v6, %v5770_v34  ;;  %v4450_v6 = vld [vmem:[#allocation5 + $0x48] sm:$0xf] }
  0xc5   :  { %v1242_v11 = vpop.f32.mrf.mxu3  ;;  %v978_v12 = vpop.f32.mrf.mxu0 }
  0xc6   :  { %v979_v14 = vadd.f32 %v978_v12, %v5760_v21  ;;  %v1243_v18 = vadd.f32 %v1242_v11, %v1154_v10  ;;  %v5189_v10 = vld [vmem:[#allocation5 + $0x64] sm:$0xf0]  ;;  %v5249_v11 = vld [vmem:[#allocation5 + $0x24c] sm:$0xf] }
  0xc7   :  { %v1067_v15 = vpop.f32.mrf.mxu1 }
  0xc8   :  { %v1068_v19 = vadd.f32 %v1067_v15, %v979_v14  ;;  %1017 = vmatmul.bf16.gmra.mxu0 %v5777_v7  ;;  %v2397_v22 = vmax.f32 %v1243_v18, 0.0  ;;  %1195 = vmatmul.bf16.gmra.mxu2 %v5777_v7  ;;  %v4451_v15 = vor.u32 %v5189_v10, %v4450_v6  ;;  %v4708_v18 = vld [vmem:[#allocation5 + $0x268] sm:$0xf0] }
  0xca   :  { %1106 = vmatmul.bf16.gmra.mxu1 %v5780_v13  ;;  %1284 = vmatmul.bf16.gmra.mxu3 %v5780_v13  ;;  %v5787_v23 = vpack.c.bf16 %v2397_v22, %v2389_v20  ;;  %v2404_v41 = vmax.f32 %v1068_v19, 0.0 }
  0xcb   :  { %v1156_v25 = vpop.f32.mrf.mxu2  ;;  %1326 = vmatpush.bf16.msrb.mxu0 %v4451_v15 }
  0xcc   :  { %v1157_v29 = vadd.f32 %v1156_v25, %v5770_v34  ;;  %v4711_v25 = vor.u32 %v5249_v11, %v4708_v18 }
  0xcd   :  { %v1245_v30 = vpop.f32.mrf.mxu3  ;;  %v980_v31 = vpop.f32.mrf.mxu0 }
  0xce   :  { %v981_v35 = vadd.f32 %v980_v31, %v5760_v21  ;;  %v1246_v37 = vadd.f32 %v1245_v30, %v1157_v29  ;;  %1593 = vmatpush.bf16.msrb.mxu3 %v4711_v25  ;;  %v130_v25 = vld [vmem:[#allocation2 + $0x180] sm:$0xff] }
  0xcf   :  { %v1069_v36 = vpop.f32.mrf.mxu1 }
  0xd0   :  { %v1070_v38 = vadd.f32 %v1069_v36, %v981_v35  ;;  %v2405_v62 = vmax.f32 %v1246_v37, 0.0  ;;  %v126_v36 = vld [vmem:[#allocation2 + $0x160] sm:$0xff]  ;;  %v128_v37 = vld [vmem:[#allocation2 + $0x170] sm:$0xff] }
  0xd2   :  { %v2412_v42 = vmax.f32 %v1070_v38, 0.0  ;;  %v4706_v38 = vld [vmem:[#allocation5 + $0x248] sm:$0xf] }
  0xd3   :  { %v1158_v46 = vpop.f32.mrf.mxu2  ;;  %v4707_v45 = vor.u32 %v5253_v39, %v4706_v38 }
  0xd4   :  { %v5793_v49 = vpack.c.bf16 %v2412_v42, %v2404_v41  ;;  %v1159_v50 = vadd.f32 %v1158_v46, %v5770_v34  ;;  %v127_v42 = vld [vmem:[#allocation2 + $0x168] sm:$0xff] }
  0xd5   :  { %v1247_v51 = vpop.f32.mrf.mxu3  ;;  %v983_v54 = vpop.f32.mrf.mxu0  ;;  %1415 = vmatpush.bf16.msrb.mxu1 %v4707_v45 }
  0xd6   :  { %v984_v56 = vadd.f32 %v983_v54, %v5760_v21  ;;  %v1248_v60 = vadd.f32 %v1247_v51, %v1159_v50  ;;  %v5807_v50 = vpack.c.bf16 %v128_v37, %v126_v36  ;;  %v133_v36 = vld [vmem:[#allocation2 + $0x198] sm:$0xff] }
  0xd7   :  { %v1072_v57 = vpop.f32.mrf.mxu1 }
  0xd8   :  { %v1073_v61 = vadd.f32 %v1072_v57, %v984_v56  ;;  %1022 = vmatmul.bf16.gmra.mxu0 %v5791_v48  ;;  %v2413_v63 = vmax.f32 %v1248_v60, 0.0  ;;  %1200 = vmatmul.bf16.gmra.mxu2 %v5791_v48  ;;  %v5812_v60 = vpack.c.bf16 %v129_v44, %v127_v42 }
  0xda   :  { %1111 = vmatmul.bf16.gmra.mxu1 %v5796_v55  ;;  %1289 = vmatmul.bf16.gmra.mxu3 %v5796_v55  ;;  %v5803_v12 = vpack.c.bf16 %v2413_v63, %v2405_v62  ;;  %v2420_v40 = vmax.f32 %v1073_v61, 0.0 }
  0xdb   :  { %v1161_v14 = vpop.f32.mrf.mxu2 }
  0xdc   :  { %v1162_v19 = vadd.f32 %v1161_v14, %v5770_v34 }
  0xdd   :  { %v1250_v20 = vpop.f32.mrf.mxu3  ;;  %v985_v22 = vpop.f32.mrf.mxu0 }
  0xde   :  { %v986_v29 = vadd.f32 %v985_v22, %v5760_v21  ;;  %v1251_v31 = vadd.f32 %v1250_v20, %v1162_v19 }
  0xdf   :  { %v1074_v30 = vpop.f32.mrf.mxu1 }
  0xe0   :  { %v1075_v35 = vadd.f32 %v1074_v30, %v986_v29  ;;  %v2421_v1 = vmax.f32 %v1251_v31, 0.0  ;;  %v132_v29 = vld [vmem:[#allocation2 + $0x190] sm:$0xff] }
  0xe1   :  { %v5823_v38 = vpack.c.bf16 %v132_v29, %v130_v25 }
  0xe2   :  { %v2428_v41 = vmax.f32 %v1075_v35, 0.0  ;;  %v131_v35 = vld [vmem:[#allocation2 + $0x188] sm:$0xff] }
  0xe3   :  { %v1163_v46 = vpop.f32.mrf.mxu2  ;;  %v5828_v44 = vpack.c.bf16 %v133_v36, %v131_v35  ;;  %v134_v36 = vld [vmem:[#allocation2 + $0x1a0] sm:$0xff] }
  0xe4   :  { %v5809_v51 = vpack.c.bf16 %v2428_v41, %v2420_v40  ;;  %v1164_v54 = vadd.f32 %v1163_v46, %v5770_v34 }
  0xe5   :  { %v1252_v56 = vpop.f32.mrf.mxu3  ;;  %v988_v57 = vpop.f32.mrf.mxu0 }
  0xe6   :  { %7350 = vst [vmem:[#allocation15_spill] sm:$0xff] %v5809_v51  ;;  %v989_v62 = vadd.f32 %v988_v57, %v5760_v21  ;;  %v1253_v61 = vadd.f32 %v1252_v56, %v1164_v54  ;;  %v5263_v51 = vld [vmem:[#allocation5 + $0x2b4] sm:$0xf0] }
  0xe7   :  { %v1077_v63 = vpop.f32.mrf.mxu1 }
  0xe8   :  { %v1078_v0 = vadd.f32 %v1077_v63, %v989_v62  ;;  %1027 = vmatmul.bf16.gmra.mxu0 %v5807_v50  ;;  %v2429_v4 = vmax.f32 %v1253_v61, 0.0  ;;  %1205 = vmatmul.bf16.gmra.mxu2 %v5807_v50  ;;  %v5177_v63 = vld [vmem:[#allocation5 + $0xc] sm:$0xf] }
  0xe9   :  { %v4420_v61 = vld [vmem:[#allocation5 + $0x28] sm:$0xf0] }
  0xea   :  { %1116 = vmatmul.bf16.gmra.mxu1 %v5812_v60  ;;  %1294 = vmatmul.bf16.gmra.mxu3 %v5812_v60  ;;  %v5819_v6 = vpack.c.bf16 %v2429_v4, %v2421_v1  ;;  %v2436_v30 = vmax.f32 %v1078_v0, 0.0  ;;  %v4423_v0 = vor.u32 %v5177_v63, %v4420_v61  ;;  %v4418_v1 = vld [vmem:[#allocation5 + $0x8] sm:$0xf] }
  0xeb   :  { %v1166_v10 = vpop.f32.mrf.mxu2  ;;  %v5181_v4 = vld [vmem:[#allocation5 + $0x24] sm:$0xf0] }
  0xec   :  { %7351 = vst [vmem:[#allocation16_spill] sm:$0xff] %v5819_v6  ;;  %v1167_v11 = vadd.f32 %v1166_v10, %v5770_v34  ;;  %v5241_v10 = vld [vmem:[#allocation5 + $0x20c] sm:$0xf]  ;;  %1505 = vmatpush.bf16.msrb.mxu2 %v4423_v0 }
  0xed   :  { %v1255_v14 = vpop.f32.mrf.mxu3  ;;  %v990_v15 = vpop.f32.mrf.mxu0 }
  0xee   :  { %v991_v18 = vadd.f32 %v990_v15, %v5760_v21  ;;  %v1256_v20 = vadd.f32 %v1255_v14, %v1167_v11  ;;  %v4419_v15 = vor.u32 %v5181_v4, %v4418_v1 }
  0xef   :  { %v1079_v19 = vpop.f32.mrf.mxu1 }
  0xf0   :  { %v1080_v22 = vadd.f32 %v1079_v19, %v991_v18  ;;  %v2437_v57 = vmax.f32 %v1256_v20, 0.0  ;;  %v4676_v18 = vld [vmem:[#allocation5 + $0x228] sm:$0xf0]  ;;  %1327 = vmatpush.bf16.msrb.mxu0 %v4419_v15 }
  0xf1   :  { %v4679_v25 = vor.u32 %v5241_v10, %v4676_v18 }
  0xf2   :  { %v2444_v31 = vmax.f32 %v1080_v22, 0.0 }
  0xf3   :  { %v1168_v37 = vpop.f32.mrf.mxu2  ;;  %1594 = vmatpush.bf16.msrb.mxu3 %v4679_v25 }
  0xf4   :  { %v5825_v39 = vpack.c.bf16 %v2444_v31, %v2436_v30  ;;  %v1169_v40 = vadd.f32 %v1168_v37, %v5770_v34  ;;  %v136_v37 = vld [vmem:[#allocation2 + $0x1b0] sm:$0xff] }
  0xf5   :  { %v1257_v41 = vpop.f32.mrf.mxu3  ;;  %v993_v42 = vpop.f32.mrf.mxu0  ;;  %v5839_v63 = vpack.c.bf16 %v136_v37, %v134_v36 }
  0xf6   :  { %7352 = vst [vmem:[#allocation17_spill] sm:$0xff] %v5825_v39  ;;  %v994_v45 = vadd.f32 %v993_v42, %v5760_v21  ;;  %v1258_v54 = vadd.f32 %v1257_v41, %v1169_v40  ;;  %v4674_v40 = vld [vmem:[#allocation5 + $0x208] sm:$0xf]  ;;  %v5254_v39 = vld [vmem:[#allocation5 + $0x26c] sm:$0xf0] }
  0xf7   :  { %v1082_v46 = vpop.f32.mrf.mxu1  ;;  %v5245_v41 = vld [vmem:[#allocation5 + $0x224] sm:$0xf0] }
  0xf8   :  { %v1083_v56 = vadd.f32 %v1082_v46, %v994_v45  ;;  %1032 = vmatmul.bf16.gmra.mxu0 %v5823_v38  ;;  %v2445_v62 = vmax.f32 %v1258_v54, 0.0  ;;  %1210 = vmatmul.bf16.gmra.mxu2 %v5823_v38  ;;  %v135_v46 = vld [vmem:[#allocation2 + $0x1a8] sm:$0xff]  ;;  %v137_v54 = vld [vmem:[#allocation2 + $0x1b8] sm:$0xff] }
  0xf9   :  { %v5844_v10 = vpack.c.bf16 %v137_v54, %v135_v46  ;;  %v139_v54 = vld [vmem:[#allocation2 + $0x1c8] sm:$0xff] }
  0xfa   :  { %1121 = vmatmul.bf16.gmra.mxu1 %v5828_v44  ;;  %1299 = vmatmul.bf16.gmra.mxu3 %v5828_v44  ;;  %v5835_v11 = vpack.c.bf16 %v2445_v62, %v2437_v57  ;;  %v2452_v42 = vmax.f32 %v1083_v56, 0.0  ;;  %v4675_v57 = vor.u32 %v5245_v41, %v4674_v40 }
  0xfb   :  { %v1171_v14 = vpop.f32.mrf.mxu2 }
  0xfc   :  { %7353 = vst [vmem:[#allocation18_spill] sm:$0xff] %v5835_v11  ;;  %v1172_v19 = vadd.f32 %v1171_v14, %v5770_v34  ;;  %1416 = vmatpush.bf16.msrb.mxu1 %v4675_v57  ;;  %v141_v57 = vld [vmem:[#allocation2 + $0x1d8] sm:$0xff] }
  0xfd   :  { %v1260_v20 = vpop.f32.mrf.mxu3  ;;  %v995_v22 = vpop.f32.mrf.mxu0 }
  0xfe   :  { %v996_v29 = vadd.f32 %v995_v22, %v5760_v21  ;;  %v1261_v31 = vadd.f32 %v1260_v20, %v1172_v19 }
  0xff   :  { %v1084_v30 = vpop.f32.mrf.mxu1 }
 0x100   :  { %v1085_v35 = vadd.f32 %v1084_v30, %v996_v29  ;;  %v2453_v19 = vmax.f32 %v1261_v31, 0.0  ;;  %v138_v31 = vld [vmem:[#allocation2 + $0x1c0] sm:$0xff] }
 0x102   :  { %v2460_v45 = vmax.f32 %v1085_v35, 0.0 }
 0x103   :  { %v1173_v62 = vpop.f32.mrf.mxu2 }
 0x104   :  { %v5841_v61 = vpack.c.bf16 %v2460_v45, %v2452_v42  ;;  %v1174_v0 = vadd.f32 %v1173_v62, %v5770_v34  ;;  %v140_v42 = vld [vmem:[#allocation2 + $0x1d0] sm:$0xff] }
 0x105   :  { %v1262_v1 = vpop.f32.mrf.mxu3  ;;  %v998_v4 = vpop.f32.mrf.mxu0 }
 0x106   :  { %7354 = vst [vmem:[#allocation19_spill] sm:$0xff] %v5841_v61  ;;  %v999_v14 = vadd.f32 %v998_v4, %v5760_v21  ;;  %v1263_v56 = vadd.f32 %v1262_v1, %v1174_v0  ;;  %v5855_v0 = vpack.c.bf16 %v140_v42, %v138_v31  ;;  %v5238_v31 = vld [vmem:[#allocation5 + $0x1ec] sm:$0xf0]  ;;  %v5298_v42 = vld [vmem:[#allocation5 + $0x3d4] sm:$0xf] }
 0x107   :  { %v1087_v15 = vpop.f32.mrf.mxu1 }
 0x108   :  { %v1088_v18 = vadd.f32 %v1087_v15, %v999_v14  ;;  %1037 = vmatmul.bf16.gmra.mxu0 %v5839_v63  ;;  %v2461_v20 = vmax.f32 %v1263_v56, 0.0  ;;  %1215 = vmatmul.bf16.gmra.mxu2 %v5839_v63  ;;  %v5860_v56 = vpack.c.bf16 %v141_v57, %v139_v54  ;;  %v4908_v57 = vld [vmem:[#allocation5 + $0x3f0] sm:$0xf0] }
 0x10a   :  { %1126 = vmatmul.bf16.gmra.mxu1 %v5844_v10  ;;  %1304 = vmatmul.bf16.gmra.mxu3 %v5844_v10  ;;  %v5851_v22 = vpack.c.bf16 %v2461_v20, %v2453_v19  ;;  %v2468_v45 = vmax.f32 %v1088_v18, 0.0 }
 0x10b   :  { %v1176_v25 = vpop.f32.mrf.mxu2 }
 0x10c   :  { %7355 = vst [vmem:[#allocation20_spill] sm:$0xff] %v5851_v22  ;;  %v1177_v29 = vadd.f32 %v1176_v25, %v5770_v34 }
 0x10d   :  { %v1265_v30 = vpop.f32.mrf.mxu3  ;;  %v1000_v35 = vpop.f32.mrf.mxu0 }
 0x10e   :  { %v1001_v36 = vadd.f32 %v1000_v35, %v5760_v21  ;;  %v1266_v40 = vadd.f32 %v1265_v30, %v1177_v29  ;;  %v5234_v35 = vld [vmem:[#allocation5 + $0x1d4] sm:$0xf] }
 0x10f   :  { %v1089_v37 = vpop.f32.mrf.mxu1 }
 0x110   :  { %v1090_v41 = vadd.f32 %v1089_v37, %v1001_v36  ;;  %v2469_v18 = vmax.f32 %v1266_v40, 0.0  ;;  %v4652_v36 = vld [vmem:[#allocation5 + $0x1f0] sm:$0xf0] }
 0x111   :  { %v4655_v37 = vor.u32 %v5234_v35, %v4652_v36  ;;  %v142_v35 = vld [vmem:[#allocation2 + $0x1e0] sm:$0xff]  ;;  %v144_v36 = vld [vmem:[#allocation2 + $0x1f0] sm:$0xff] }
 0x112   :  { %v2476_v46 = vmax.f32 %v1090_v41, 0.0  ;;  %v4650_v41 = vld [vmem:[#allocation5 + $0x1d0] sm:$0xf]  ;;  %v5871_v61 = vpack.c.bf16 %v144_v36, %v142_v35 }
 0x113   :  { %v1178_v62 = vpop.f32.mrf.mxu2  ;;  %v4651_v54 = vor.u32 %v5238_v31, %v4650_v41  ;;  %1854 = vmatpush.bf16.msra.mxu2 %v4655_v37  ;;  %v143_v31 = vld [vmem:[#allocation2 + $0x1e8] sm:$0xff] }
 0x114   :  { %v5857_v1 = vpack.c.bf16 %v2476_v46, %v2468_v45  ;;  %v1179_v4 = vadd.f32 %v1178_v62, %v5770_v34 }
 0x115   :  { %v1267_v14 = vpop.f32.mrf.mxu3  ;;  %v1003_v15 = vpop.f32.mrf.mxu0  ;;  %1676 = vmatpush.bf16.msra.mxu0 %v4651_v54 }
 0x116   :  { %7356 = vst [vmem:[#allocation21_spill] sm:$0xff] %v5857_v1  ;;  %v1004_v19 = vadd.f32 %v1003_v15, %v5760_v21  ;;  %v1268_v25 = vadd.f32 %v1267_v14, %v1179_v4  ;;  %v4911_v14 = vor.u32 %v5298_v42, %v4908_v57  ;;  %v145_v1 = vld [vmem:[#allocation2 + $0x1f8] sm:$0xff] }
 0x117   :  { %v1092_v20 = vpop.f32.mrf.mxu1 }
 0x118   :  { %v1093_v29 = vadd.f32 %v1092_v20, %v1004_v19  ;;  %1042 = vmatmul.bf16.gmra.mxu0 %v5855_v0  ;;  %v2477_v30 = vmax.f32 %v1268_v25, 0.0  ;;  %1220 = vmatmul.bf16.gmra.mxu2 %v5855_v0 }
 0x119   :  { %1943 = vmatpush.bf16.msra.mxu3 %v4911_v14 }
 0x11a   :  { %1131 = vmatmul.bf16.gmra.mxu1 %v5860_v56  ;;  %1309 = vmatmul.bf16.gmra.mxu3 %v5860_v56  ;;  %v5867_v45 = vpack.c.bf16 %v2477_v30, %v2469_v18  ;;  %v4906_v18 = vld [vmem:[#allocation5 + $0x3d0] sm:$0xf] }
 0x11b   :  { %v1181_v46 = vpop.f32.mrf.mxu2  ;;  %v5302_v30 = vld [vmem:[#allocation5 + $0x3ec] sm:$0xf0] }
 0x11c   :  { %7357 = vst [vmem:[#allocation22_spill] sm:$0xff] %v5867_v45  ;;  %v1182_v40 = vadd.f32 %v1181_v46, %v5770_v34  ;;  %v2484_v45 = vmax.f32 %v1093_v29, 0.0  ;;  %v4907_v46 = vor.u32 %v5302_v30, %v4906_v18 }
 0x11d   :  { %v1270_v62 = vpop.f32.mrf.mxu3  ;;  %v1005_v4 = vpop.f32.mrf.mxu0 }
 0x11e   :  { %v1006_v15 = vadd.f32 %v1005_v4, %v5760_v21  ;;  %v1271_v20 = vadd.f32 %v1270_v62, %v1182_v40  ;;  %1765 = vmatpush.bf16.msra.mxu1 %v4907_v46  ;;  %v5876_v40 = vpack.c.bf16 %v145_v1, %v143_v31 }
 0x11f   :  { %v1094_v19 = vpop.f32.mrf.mxu1 }
 0x120   :  { %v1095_v25 = vadd.f32 %v1094_v19, %v1006_v15  ;;  %v2485_v15 = vmax.f32 %v1271_v20, 0.0 }
 0x122   :  { %v2492_v41 = vmax.f32 %v1095_v25, 0.0 }
 0x123   :  { %v1183_v22 = vpop.f32.mrf.mxu2 }
 0x124   :  { %v5873_v37 = vpack.c.bf16 %v2492_v41, %v2484_v45  ;;  %v1184_v42 = vadd.f32 %v1183_v22, %v5770_v34 }
 0x125   :  { %v1272_v54 = vpop.f32.mrf.mxu3  ;;  %v1008_v57 = vpop.f32.mrf.mxu0 }
 0x126   :  { %7358 = vst [vmem:[#allocation23_spill] sm:$0xff] %v5873_v37  ;;  %v1009_v62 = vadd.f32 %v1008_v57, %v5760_v21  ;;  %v1273_v29 = vadd.f32 %v1272_v54, %v1184_v42 }
 0x127   :  { %v1097_v4 = vpop.f32.mrf.mxu1 }
 0x128   :  { %v1098_v14 = vadd.f32 %v1097_v4, %v1009_v62  ;;  %1047 = vmatmul.bf16.gmra.mxu0 %v5871_v61  ;;  %v2493_v19 = vmax.f32 %v1273_v29, 0.0  ;;  %1225 = vmatmul.bf16.gmra.mxu2 %v5871_v61 }
 0x12a   :  { %1136 = vmatmul.bf16.gmra.mxu1 %v5876_v40  ;;  %1314 = vmatmul.bf16.gmra.mxu3 %v5876_v40  ;;  %v5883_v22 = vpack.c.bf16 %v2493_v19, %v2485_v15  ;;  %v2500_v20 = vmax.f32 %v1098_v14, 0.0  ;;  %v5226_v14 = vld [vmem:[#allocation5 + $0x194] sm:$0xf] }
 0x12b   :  { %v1186_v45 = vpop.f32.mrf.mxu2 }
 0x12c   :  { %7359 = vst [vmem:[#allocation24_spill] sm:$0xff] %v5883_v22  ;;  %v1187_v1 = vadd.f32 %v1186_v45, %v5770_v34  ;;  %v5294_v22 = vld [vmem:[#allocation5 + $0x3ac] sm:$0xf0] }
 0x12d   :  { %v1275_v25 = vpop.f32.mrf.mxu3  ;;  %v1010_v35 = vpop.f32.mrf.mxu0 }
 0x12e   :  { %v1011_v36 = vadd.f32 %v1010_v35, %v5760_v21  ;;  %v1276_v30 = vadd.f32 %v1275_v25, %v1187_v1  ;;  %v4620_v1 = vld [vmem:[#allocation5 + $0x1b0] sm:$0xf0] }
 0x12f   :  { %v1099_v18 = vpop.f32.mrf.mxu1  ;;  %v4623_v25 = vor.u32 %v5226_v14, %v4620_v1  ;;  %v4874_v1 = vld [vmem:[#allocation5 + $0x390] sm:$0xf] }
 0x130   :  { %v1100_v41 = vadd.f32 %v1099_v18, %v1011_v36  ;;  %v2501_v45 = vmax.f32 %v1276_v30, 0.0  ;;  %v4618_v36 = vld [vmem:[#allocation5 + $0x190] sm:$0xf] }
 0x131   :  { %v5230_v18 = vld [vmem:[#allocation5 + $0x1ac] sm:$0xf0]  ;;  %1855 = vmatpush.bf16.msra.mxu2 %v4623_v25 }
 0x132   :  { %v2508_v31 = vmax.f32 %v1100_v41, 0.0  ;;  %v5290_v41 = vld [vmem:[#allocation5 + $0x394] sm:$0xf] }
 0x133   :  { %v1188_v46 = vpop.f32.mrf.mxu2 }
 0x134   :  { %v5887_v42 = vpack.c.bf16 %v2508_v31, %v2500_v20  ;;  %v1189_v54 = vadd.f32 %v1188_v46, %v5770_v34  ;;  %v4619_v46 = vor.u32 %v5230_v18, %v4618_v36 }
 0x135   :  { %v1277_v57 = vpop.f32.mrf.mxu3  ;;  %v1013_v62 = vpop.f32.mrf.mxu0 }
 0x136   :  { %7360 = vst [vmem:[#allocation25_spill] sm:$0xff] %v5887_v42  ;;  %v1014_v4 = vadd.f32 %v1013_v62, %v5760_v21  ;;  %v1278_v15 = vadd.f32 %v1277_v57, %v1189_v54  ;;  %v4876_v54 = vld [vmem:[#allocation5 + $0x3b0] sm:$0xf0]  ;;  %1677 = vmatpush.bf16.msra.mxu0 %v4619_v46 }
 0x137   :  { %v1102_v29 = vpop.f32.mrf.mxu1 }
 0x138   :  { %v1103_v19 = vadd.f32 %v1102_v29, %v1014_v4  ;;  %1328 = vmatmul.bf16.vlgmr.msrb.gmra.mxu0 %v5696_v43  ;;  %v2509_v35 = vmax.f32 %v1278_v15, 0.0  ;;  %1506 = vmatmul.bf16.vlgmr.msrb.gmra.mxu2 %v5696_v43  ;;  %v4879_v4 = vor.u32 %v5290_v41, %v4876_v54 }
 0x13a   :  { %1417 = vmatmul.bf16.vlgmr.msrb.gmra.mxu1 %v5698_v47  ;;  %1595 = vmatmul.bf16.vlgmr.msrb.gmra.mxu3 %v5698_v47  ;;  %v5895_v20 = vpack.c.bf16 %v2509_v35, %v2501_v45  ;;  %v2516_v45 = vmax.f32 %v1103_v19, 0.0 }
 0x13b   :  { %v1191_v31 = vpop.f32.mrf.mxu2  ;;  %1944 = vmatpush.bf16.msra.mxu3 %v4879_v4 }
 0x13c   :  { %7361 = vst [vmem:[#allocation26_spill] sm:$0xff] %v5895_v20  ;;  %v1192_v30 = vadd.f32 %v1191_v31, %v5770_v34  ;;  %v4875_v20 = vor.u32 %v5294_v22, %v4874_v1 }
 0x13d   :  { %v1280_v57 = vpop.f32.mrf.mxu3  ;;  %v1015_v62 = vpop.f32.mrf.mxu0 }
 0x13e   :  { %v1016_v29 = vadd.f32 %v1015_v62, %v5760_v21  ;;  %v1281_v42 = vadd.f32 %v1280_v57, %v1192_v30  ;;  %1766 = vmatpush.bf16.msra.mxu1 %v4875_v20 }
 0x13f   :  { %v1104_v15 = vpop.f32.mrf.mxu1 }
 0x140   :  { %v1105_v14 = vadd.f32 %v1104_v15, %v1016_v29  ;;  %v2517_v57 = vmax.f32 %v1281_v42, 0.0 }
 0x142   :  { %v2524_v35 = vmax.f32 %v1105_v14, 0.0 }
 0x143   :  { %v1193_v36 = vpop.f32.mrf.mxu2 }
 0x144   :  { %v5899_v18 = vpack.c.bf16 %v2524_v35, %v2516_v45  ;;  %v1194_v31 = vadd.f32 %v1193_v36, %v5770_v34 }
 0x145   :  { %v1282_v25 = vpop.f32.mrf.mxu3  ;;  %v1018_v41 = vpop.f32.mrf.mxu0 }
 0x146   :  { %7362 = vst [vmem:[#allocation27_spill] sm:$0xff] %v5899_v18  ;;  %v1019_v54 = vadd.f32 %v1018_v41, %v5760_v21  ;;  %v1283_v46 = vadd.f32 %v1282_v25, %v1194_v31  ;;  %v5286_v18 = vld [vmem:[#allocation5 + $0x36c] sm:$0xf0] }
 0x147   :  { %v1107_v62 = vpop.f32.mrf.mxu1 }
 0x148   :  { %v1108_v30 = vadd.f32 %v1107_v62, %v1019_v54  ;;  %1333 = vmatmul.bf16.gmra.mxu0 %v5704_v2  ;;  %v2525_v4 = vmax.f32 %v1283_v46, 0.0  ;;  %1511 = vmatmul.bf16.gmra.mxu2 %v5704_v2 }
 0x14a   :  { %1422 = vmatmul.bf16.gmra.mxu1 %v5706_v3  ;;  %1600 = vmatmul.bf16.gmra.mxu3 %v5706_v3  ;;  %v5907_v22 = vpack.c.bf16 %v2525_v4, %v2517_v57  ;;  %v2532_v42 = vmax.f32 %v1108_v30, 0.0  ;;  %v5218_v30 = vld [vmem:[#allocation5 + $0x154] sm:$0xf] }
 0x14b   :  { %v1196_v19 = vpop.f32.mrf.mxu2 }
 0x14c   :  { %7363 = vst [vmem:[#allocation28_spill] sm:$0xff] %v5907_v22  ;;  %v1197_v20 = vadd.f32 %v1196_v19, %v5770_v34 }
 0x14d   :  { %v1285_v29 = vpop.f32.mrf.mxu3  ;;  %v1020_v15 = vpop.f32.mrf.mxu0 }
 0x14e   :  { %v1021_v14 = vadd.f32 %v1020_v15, %v5760_v21  ;;  %v1286_v45 = vadd.f32 %v1285_v29, %v1197_v20  ;;  %v4588_v20 = vld [vmem:[#allocation5 + $0x170] sm:$0xf0] }
 0x14f   :  { %v1109_v1 = vpop.f32.mrf.mxu1  ;;  %v4591_v29 = vor.u32 %v5218_v30, %v4588_v20  ;;  %v4842_v20 = vld [vmem:[#allocation5 + $0x350] sm:$0xf] }
 0x150   :  { %v1110_v35 = vadd.f32 %v1109_v1, %v1021_v14  ;;  %v2533_v15 = vmax.f32 %v1286_v45, 0.0  ;;  %v4586_v14 = vld [vmem:[#allocation5 + $0x150] sm:$0xf] }
 0x151   :  { %v5222_v1 = vld [vmem:[#allocation5 + $0x16c] sm:$0xf0]  ;;  %1856 = vmatpush.bf16.msra.mxu2 %v4591_v29 }
 0x152   :  { %v2540_v36 = vmax.f32 %v1110_v35, 0.0  ;;  %v5282_v35 = vld [vmem:[#allocation5 + $0x354] sm:$0xf] }
 0x153   :  { %v1198_v31 = vpop.f32.mrf.mxu2 }
 0x154   :  { %v5911_v25 = vpack.c.bf16 %v2540_v36, %v2532_v42  ;;  %v1199_v41 = vadd.f32 %v1198_v31, %v5770_v34  ;;  %v4587_v31 = vor.u32 %v5222_v1, %v4586_v14 }
 0x155   :  { %v1287_v54 = vpop.f32.mrf.mxu3  ;;  %v1023_v62 = vpop.f32.mrf.mxu0 }
 0x156   :  { %7364 = vst [vmem:[#allocation29_spill] sm:$0xff] %v5911_v25  ;;  %v1024_v46 = vadd.f32 %v1023_v62, %v5760_v21  ;;  %v1288_v4 = vadd.f32 %v1287_v54, %v1199_v41  ;;  %v4844_v41 = vld [vmem:[#allocation5 + $0x370] sm:$0xf0]  ;;  %1678 = vmatpush.bf16.msra.mxu0 %v4587_v31 }
 0x157   :  { %v1112_v57 = vpop.f32.mrf.mxu1 }
 0x158   :  { %v1113_v19 = vadd.f32 %v1112_v57, %v1024_v46  ;;  %1338 = vmatmul.bf16.gmra.mxu0 %v5712_v8  ;;  %v2541_v22 = vmax.f32 %v1288_v4, 0.0  ;;  %1516 = vmatmul.bf16.gmra.mxu2 %v5712_v8  ;;  %v4847_v46 = vor.u32 %v5282_v35, %v4844_v41 }
 0x15a   :  { %1427 = vmatmul.bf16.gmra.mxu1 %v5714_v9  ;;  %1605 = vmatmul.bf16.gmra.mxu3 %v5714_v9  ;;  %v5919_v42 = vpack.c.bf16 %v2541_v22, %v2533_v15  ;;  %v2548_v22 = vmax.f32 %v1113_v19, 0.0 }
 0x15b   :  { %v1201_v36 = vpop.f32.mrf.mxu2  ;;  %1945 = vmatpush.bf16.msra.mxu3 %v4847_v46 }
 0x15c   :  { %7365 = vst [vmem:[#allocation30_spill] sm:$0xff] %v5919_v42  ;;  %v1202_v45 = vadd.f32 %v1201_v36, %v5770_v34  ;;  %v4843_v42 = vor.u32 %v5286_v18, %v4842_v20 }
 0x15d   :  { %v1290_v54 = vpop.f32.mrf.mxu3  ;;  %v1025_v62 = vpop.f32.mrf.mxu0 }
 0x15e   :  { %v1026_v57 = vadd.f32 %v1025_v62, %v5760_v21  ;;  %v1291_v25 = vadd.f32 %v1290_v54, %v1202_v45  ;;  %1767 = vmatpush.bf16.msra.mxu1 %v4843_v42 }
 0x15f   :  { %v1114_v4 = vpop.f32.mrf.mxu1 }
 0x160   :  { %v1115_v30 = vadd.f32 %v1114_v4, %v1026_v57  ;;  %v2549_v54 = vmax.f32 %v1291_v25, 0.0 }
 0x162   :  { %v2556_v15 = vmax.f32 %v1115_v30, 0.0 }
 0x163   :  { %v1203_v14 = vpop.f32.mrf.mxu2 }
 0x164   :  { %v5923_v1 = vpack.c.bf16 %v2556_v15, %v2548_v22  ;;  %v1204_v36 = vadd.f32 %v1203_v14, %v5770_v34 }
 0x165   :  { %v1292_v29 = vpop.f32.mrf.mxu3  ;;  %v1028_v35 = vpop.f32.mrf.mxu0 }
 0x166   :  { %7366 = vst [vmem:[#allocation31_spill] sm:$0xff] %v5923_v1  ;;  %v1029_v41 = vadd.f32 %v1028_v35, %v5760_v21  ;;  %v1293_v31 = vadd.f32 %v1292_v29, %v1204_v36  ;;  %v5278_v1 = vld [vmem:[#allocation5 + $0x32c] sm:$0xf0] }
 0x167   :  { %v1117_v62 = vpop.f32.mrf.mxu1 }
 0x168   :  { %v1118_v45 = vadd.f32 %v1117_v62, %v1029_v41  ;;  %1343 = vmatmul.bf16.gmra.mxu0 %v5720_v26  ;;  %v2557_v46 = vmax.f32 %v1293_v31, 0.0  ;;  %1521 = vmatmul.bf16.gmra.mxu2 %v5720_v26 }
 0x16a   :  { %1432 = vmatmul.bf16.gmra.mxu1 %v5722_v27  ;;  %1610 = vmatmul.bf16.gmra.mxu3 %v5722_v27  ;;  %v5931_v18 = vpack.c.bf16 %v2557_v46, %v2549_v54  ;;  %v2564_v25 = vmax.f32 %v1118_v45, 0.0  ;;  %v5210_v45 = vld [vmem:[#allocation5 + $0x114] sm:$0xf] }
 0x16b   :  { %v1206_v19 = vpop.f32.mrf.mxu2 }
 0x16c   :  { %7367 = vst [vmem:[#allocation32_spill] sm:$0xff] %v5931_v18  ;;  %v1207_v42 = vadd.f32 %v1206_v19, %v5770_v34 }
 0x16d   :  { %v1295_v57 = vpop.f32.mrf.mxu3  ;;  %v1030_v4 = vpop.f32.mrf.mxu0 }
 0x16e   :  { %v1031_v30 = vadd.f32 %v1030_v4, %v5760_v21  ;;  %v1296_v22 = vadd.f32 %v1295_v57, %v1207_v42  ;;  %v4556_v42 = vld [vmem:[#allocation5 + $0x130] sm:$0xf0] }
 0x16f   :  { %v1119_v20 = vpop.f32.mrf.mxu1  ;;  %v4559_v57 = vor.u32 %v5210_v45, %v4556_v42  ;;  %v4810_v42 = vld [vmem:[#allocation5 + $0x310] sm:$0xf] }
 0x170   :  { %v1120_v15 = vadd.f32 %v1119_v20, %v1031_v30  ;;  %v2565_v4 = vmax.f32 %v1296_v22, 0.0  ;;  %v4554_v30 = vld [vmem:[#allocation5 + $0x110] sm:$0xf] }
 0x171   :  { %v5214_v20 = vld [vmem:[#allocation5 + $0x12c] sm:$0xf0]  ;;  %1857 = vmatpush.bf16.msra.mxu2 %v4559_v57 }
 0x172   :  { %v2572_v14 = vmax.f32 %v1120_v15, 0.0  ;;  %v5274_v15 = vld [vmem:[#allocation5 + $0x314] sm:$0xf] }
 0x173   :  { %v1208_v36 = vpop.f32.mrf.mxu2 }
 0x174   :  { %v5935_v29 = vpack.c.bf16 %v2572_v14, %v2564_v25  ;;  %v1209_v35 = vadd.f32 %v1208_v36, %v5770_v34  ;;  %v4555_v36 = vor.u32 %v5214_v20, %v4554_v30 }
 0x175   :  { %v1297_v41 = vpop.f32.mrf.mxu3  ;;  %v1033_v62 = vpop.f32.mrf.mxu0 }
 0x176   :  { %7368 = vst [vmem:[#allocation33_spill] sm:$0xff] %v5935_v29  ;;  %v1034_v31 = vadd.f32 %v1033_v62, %v5760_v21  ;;  %v1298_v46 = vadd.f32 %v1297_v41, %v1209_v35  ;;  %v4812_v35 = vld [vmem:[#allocation5 + $0x330] sm:$0xf0]  ;;  %1679 = vmatpush.bf16.msra.mxu0 %v4555_v36 }
 0x177   :  { %v1122_v54 = vpop.f32.mrf.mxu1 }
 0x178   :  { %v1123_v19 = vadd.f32 %v1122_v54, %v1034_v31  ;;  %1348 = vmatmul.bf16.gmra.mxu0 %v5728_v32  ;;  %v2573_v18 = vmax.f32 %v1298_v46, 0.0  ;;  %1526 = vmatmul.bf16.gmra.mxu2 %v5728_v32  ;;  %v4815_v31 = vor.u32 %v5274_v15, %v4812_v35 }
 0x17a   :  { %1437 = vmatmul.bf16.gmra.mxu1 %v5730_v33  ;;  %1615 = vmatmul.bf16.gmra.mxu3 %v5730_v33  ;;  %v5943_v25 = vpack.c.bf16 %v2573_v18, %v2565_v4  ;;  %v2580_v18 = vmax.f32 %v1123_v19, 0.0 }
 0x17b   :  { %v1211_v14 = vpop.f32.mrf.mxu2  ;;  %1946 = vmatpush.bf16.msra.mxu3 %v4815_v31 }
 0x17c   :  { %7369 = vst [vmem:[#allocation34_spill] sm:$0xff] %v5943_v25  ;;  %v1212_v22 = vadd.f32 %v1211_v14, %v5770_v34  ;;  %v4811_v25 = vor.u32 %v5278_v1, %v4810_v42 }
 0x17d   :  { %v1300_v41 = vpop.f32.mrf.mxu3  ;;  %v1035_v62 = vpop.f32.mrf.mxu0 }
 0x17e   :  { %v1036_v54 = vadd.f32 %v1035_v62, %v5760_v21  ;;  %v1301_v29 = vadd.f32 %v1300_v41, %v1212_v22  ;;  %1768 = vmatpush.bf16.msra.mxu1 %v4811_v25 }
 0x17f   :  { %v1124_v46 = vpop.f32.mrf.mxu1 }
 0x180   :  { %v1125_v45 = vadd.f32 %v1124_v46, %v1036_v54  ;;  %v2581_v41 = vmax.f32 %v1301_v29, 0.0 }
 0x182   :  { %v2588_v4 = vmax.f32 %v1125_v45, 0.0 }
 0x183   :  { %v1213_v30 = vpop.f32.mrf.mxu2 }
 0x184   :  { %v5947_v20 = vpack.c.bf16 %v2588_v4, %v2580_v18  ;;  %v1214_v14 = vadd.f32 %v1213_v30, %v5770_v34 }
 0x185   :  { %v1302_v57 = vpop.f32.mrf.mxu3  ;;  %v1038_v15 = vpop.f32.mrf.mxu0 }
 0x186   :  { %7370 = vst [vmem:[#allocation35_spill] sm:$0xff] %v5947_v20  ;;  %v1039_v35 = vadd.f32 %v1038_v15, %v5760_v21  ;;  %v1303_v36 = vadd.f32 %v1302_v57, %v1214_v14  ;;  %v5270_v20 = vld [vmem:[#allocation5 + $0x2ec] sm:$0xf0] }
 0x187   :  { %v1127_v62 = vpop.f32.mrf.mxu1 }
 0x188   :  { %v1128_v22 = vadd.f32 %v1127_v62, %v1039_v35  ;;  %1353 = vmatmul.bf16.gmra.mxu0 %v5736_v52  ;;  %v2589_v31 = vmax.f32 %v1303_v36, 0.0  ;;  %1531 = vmatmul.bf16.gmra.mxu2 %v5736_v52 }
 0x18a   :  { %1442 = vmatmul.bf16.gmra.mxu1 %v5738_v53  ;;  %1620 = vmatmul.bf16.gmra.mxu3 %v5738_v53  ;;  %v5955_v1 = vpack.c.bf16 %v2589_v31, %v2581_v41  ;;  %v2596_v29 = vmax.f32 %v1128_v22, 0.0  ;;  %v5202_v22 = vld [vmem:[#allocation5 + $0xd4] sm:$0xf] }
 0x18b   :  { %v1216_v19 = vpop.f32.mrf.mxu2 }
 0x18c   :  { %7371 = vst [vmem:[#allocation36_spill] sm:$0xff] %v5955_v1  ;;  %v1217_v25 = vadd.f32 %v1216_v19, %v5770_v34 }
 0x18d   :  { %v1305_v54 = vpop.f32.mrf.mxu3  ;;  %v1040_v46 = vpop.f32.mrf.mxu0 }
 0x18e   :  { %v1041_v45 = vadd.f32 %v1040_v46, %v5760_v21  ;;  %v1306_v18 = vadd.f32 %v1305_v54, %v1217_v25  ;;  %v4524_v25 = vld [vmem:[#allocation5 + $0xf0] sm:$0xf0] }
 0x18f   :  { %v1129_v42 = vpop.f32.mrf.mxu1  ;;  %v4527_v54 = vor.u32 %v5202_v22, %v4524_v25  ;;  %v4778_v25 = vld [vmem:[#allocation5 + $0x2d0] sm:$0xf] }
 0x190   :  { %v1130_v4 = vadd.f32 %v1129_v42, %v1041_v45  ;;  %v2597_v46 = vmax.f32 %v1306_v18, 0.0  ;;  %v4522_v45 = vld [vmem:[#allocation5 + $0xd0] sm:$0xf] }
 0x191   :  { %v5206_v42 = vld [vmem:[#allocation5 + $0xec] sm:$0xf0]  ;;  %1858 = vmatpush.bf16.msra.mxu2 %v4527_v54 }
 0x192   :  { %v2604_v30 = vmax.f32 %v1130_v4, 0.0  ;;  %v5266_v4 = vld [vmem:[#allocation5 + $0x2d4] sm:$0xf] }
 0x193   :  { %v1218_v14 = vpop.f32.mrf.mxu2 }
 0x194   :  { %v5959_v57 = vpack.c.bf16 %v2604_v30, %v2596_v29  ;;  %v1219_v15 = vadd.f32 %v1218_v14, %v5770_v34  ;;  %v4523_v14 = vor.u32 %v5206_v42, %v4522_v45 }
 0x195   :  { %v1307_v35 = vpop.f32.mrf.mxu3  ;;  %v1043_v62 = vpop.f32.mrf.mxu0 }
 0x196   :  { %7372 = vst [vmem:[#allocation37_spill] sm:$0xff] %v5959_v57  ;;  %v1044_v36 = vadd.f32 %v1043_v62, %v5760_v21  ;;  %v1308_v31 = vadd.f32 %v1307_v35, %v1219_v15  ;;  %v4780_v15 = vld [vmem:[#allocation5 + $0x2f0] sm:$0xf0]  ;;  %1680 = vmatpush.bf16.msra.mxu0 %v4523_v14 }
 0x197   :  { %v1132_v41 = vpop.f32.mrf.mxu1 }
 0x198   :  { %v1133_v19 = vadd.f32 %v1132_v41, %v1044_v36  ;;  %1358 = vmatmul.bf16.gmra.mxu0 %v5744_v58  ;;  %v2605_v1 = vmax.f32 %v1308_v31, 0.0  ;;  %1536 = vmatmul.bf16.gmra.mxu2 %v5744_v58  ;;  %v4783_v36 = vor.u32 %v5266_v4, %v4780_v15 }
 0x19a   :  { %1447 = vmatmul.bf16.gmra.mxu1 %v5746_v59  ;;  %1625 = vmatmul.bf16.gmra.mxu3 %v5746_v59  ;;  %v5967_v29 = vpack.c.bf16 %v2605_v1, %v2597_v46  ;;  %v2612_v1 = vmax.f32 %v1133_v19, 0.0 }
 0x19b   :  { %v1221_v30 = vpop.f32.mrf.mxu2  ;;  %1947 = vmatpush.bf16.msra.mxu3 %v4783_v36 }
 0x19c   :  { %7373 = vst [vmem:[#allocation38_spill] sm:$0xff] %v5967_v29  ;;  %v1222_v18 = vadd.f32 %v1221_v30, %v5770_v34  ;;  %v4779_v29 = vor.u32 %v5270_v20, %v4778_v25 }
 0x19d   :  { %v1310_v35 = vpop.f32.mrf.mxu3  ;;  %v1045_v62 = vpop.f32.mrf.mxu0 }
 0x19e   :  { %v1046_v41 = vadd.f32 %v1045_v62, %v5760_v21  ;;  %v1311_v57 = vadd.f32 %v1310_v35, %v1222_v18  ;;  %1769 = vmatpush.bf16.msra.mxu1 %v4779_v29 }
 0x19f   :  { %v1134_v31 = vpop.f32.mrf.mxu1 }
 0x1a0   :  { %v1135_v22 = vadd.f32 %v1134_v31, %v1046_v41  ;;  %v2613_v35 = vmax.f32 %v1311_v57, 0.0 }
 0x1a2   :  { %v2620_v46 = vmax.f32 %v1135_v22, 0.0 }
 0x1a3   :  { %v1223_v45 = vpop.f32.mrf.mxu2 }
 0x1a4   :  { %v5971_v42 = vpack.c.bf16 %v2620_v46, %v2612_v1  ;;  %v1224_v30 = vadd.f32 %v1223_v45, %v5770_v34 }
 0x1a5   :  { %v1312_v54 = vpop.f32.mrf.mxu3  ;;  %v1048_v4 = vpop.f32.mrf.mxu0 }
 0x1a6   :  { %7374 = vst [vmem:[#allocation39_spill] sm:$0xff] %v5971_v42  ;;  %v1049_v15 = vadd.f32 %v1048_v4, %v5760_v21  ;;  %v1313_v14 = vadd.f32 %v1312_v54, %v1224_v30  ;;  %v5510_v30 = vld [vmem:[#allocation7] sm:$0xff]  ;;  %v5262_v42 = vld [vmem:[#allocation5 + $0x2ac] sm:$0xf0] }
 0x1a7   :  { %v1137_v62 = vpop.f32.mrf.mxu1  ;;  %v5983_v54 = vperm.slane %v5510_v30, 2 }
 0x1a8   :  { %v1138_v18 = vadd.f32 %v1137_v62, %v1049_v15  ;;  %1363 = vmatmul.bf16.gmra.mxu0 %v5752_v16  ;;  %v2621_v36 = vmax.f32 %v1313_v14, 0.0  ;;  %1541 = vmatmul.bf16.gmra.mxu2 %v5752_v16 }
 0x1aa   :  { %1452 = vmatmul.bf16.gmra.mxu1 %v5754_v17  ;;  %1630 = vmatmul.bf16.gmra.mxu3 %v5754_v17  ;;  %v5979_v20 = vpack.c.bf16 %v2621_v36, %v2613_v35  ;;  %v2628_v57 = vmax.f32 %v1138_v18, 0.0 }
 0x1ab   :  { %v1226_v19 = vpop.f32.mrf.mxu2 }
 0x1ac   :  { %7375 = vst [vmem:[#allocation40_spill] sm:$0xff] %v5979_v20  ;;  %v1227_v29 = vadd.f32 %v1226_v19, %v5770_v34 }
 0x1ad   :  { %v1315_v41 = vpop.f32.mrf.mxu3  ;;  %v1050_v31 = vpop.f32.mrf.mxu0 }
 0x1ae   :  { %v1051_v22 = vadd.f32 %v1050_v31, %v5760_v21  ;;  %v1316_v1 = vadd.f32 %v1315_v41, %v1227_v29  ;;  %v5992_v41 = vperm.slane %v5510_v30, 3  ;;  %v4492_v31 = vld [vmem:[#allocation5 + $0xb0] sm:$0xf0] }
 0x1af   :  { %v1139_v25 = vpop.f32.mrf.mxu1 }
 0x1b0   :  { %v1140_v46 = vadd.f32 %v1139_v25, %v1051_v22  ;;  %v2629_v29 = vmax.f32 %v1316_v1, 0.0  ;;  %v4490_v25 = vld [vmem:[#allocation5 + $0x90] sm:$0xf]  ;;  %v4748_v1 = vld [vmem:[#allocation5 + $0x2b0] sm:$0xf0] }
 0x1b2   :  { %v2636_v45 = vmax.f32 %v1140_v46, 0.0  ;;  %v5198_v46 = vld [vmem:[#allocation5 + $0xac] sm:$0xf0] }
 0x1b3   :  { %v1228_v4 = vpop.f32.mrf.mxu2 }
 0x1b4   :  { %v5985_v15 = vpack.c.bf16 %v2636_v45, %v2628_v57  ;;  %v1229_v62 = vadd.f32 %v1228_v4, %v5770_v34  ;;  %v5194_v34 = vld [vmem:[#allocation5 + $0x94] sm:$0xf] }
 0x1b5   :  { %v1317_v14 = vpop.f32.mrf.mxu3  ;;  %v1329_v35 = vpop.f32.mrf.mxu0  ;;  %v4495_v22 = vor.u32 %v5194_v34, %v4492_v31  ;;  %v5258_v57 = vld [vmem:[#allocation5 + $0x294] sm:$0xf]  ;;  %v4746_v31 = vld [vmem:[#allocation5 + $0x290] sm:$0xf] }
 0x1b6   :  { %7376 = vst [vmem:[#allocation41_spill] sm:$0xff] %v5985_v15  ;;  %v1330_v36 = vadd.f32 %v1329_v35, %v5983_v54  ;;  %v1318_v20 = vadd.f32 %v1317_v14, %v1229_v62  ;;  %v4491_v62 = vor.u32 %v5198_v46, %v4490_v25  ;;  %v4751_v30 = vor.u32 %v5258_v57, %v4748_v1 }
 0x1b7   :  { %v1418_v19 = vpop.f32.mrf.mxu1  ;;  %1859 = vmatpush.bf16.msra.mxu2 %v4495_v22 }
 0x1b8   :  { %v1419_v21 = vadd.f32 %v1418_v19, %v1330_v36  ;;  %1368 = vmatmul.bf16.gmra.mxu0 %v5762_v24  ;;  %v2637_v18 = vmax.f32 %v1318_v20, 0.0  ;;  %1546 = vmatmul.bf16.gmra.mxu2 %v5762_v24 }
 0x1b9   :  { %1681 = vmatpush.bf16.msra.mxu0 %v4491_v62  ;;  %1948 = vmatpush.bf16.msra.mxu3 %v4751_v30 }
 0x1ba   :  { %1457 = vmatmul.bf16.gmra.mxu1 %v5764_v28  ;;  %1635 = vmatmul.bf16.gmra.mxu3 %v5764_v28  ;;  %v5995_v45 = vpack.c.bf16 %v2637_v18, %v2629_v29  ;;  %v2390_v29 = vmax.f32 %v1419_v21, 0.0 }
 0x1bb   :  { %v1507_v4 = vpop.f32.mrf.mxu2 }
 0x1bc   :  { %7377 = vst [vmem:[#allocation42_spill] sm:$0xff] %v5995_v45  ;;  %v1508_v20 = vadd.f32 %v1507_v4, %v5992_v41  ;;  %v4747_v45 = vor.u32 %v5262_v42, %v4746_v31 }
 0x1bd   :  { %v1596_v14 = vpop.f32.mrf.mxu3  ;;  %v1331_v35 = vpop.f32.mrf.mxu0 }
 0x1be   :  { %v1332_v36 = vadd.f32 %v1331_v35, %v5983_v54  ;;  %v1597_v15 = vadd.f32 %v1596_v14, %v1508_v20  ;;  %1770 = vmatpush.bf16.msra.mxu1 %v4747_v45 }
 0x1bf   :  { %v1420_v19 = vpop.f32.mrf.mxu1 }
 0x1c0   :  { %v1421_v34 = vadd.f32 %v1420_v19, %v1332_v36  ;;  %v2391_v14 = vmax.f32 %v1597_v15, 0.0 }
 0x1c2   :  { %v2398_v18 = vmax.f32 %v1421_v34, 0.0 }
 0x1c3   :  { %v1509_v46 = vpop.f32.mrf.mxu2 }
 0x1c4   :  { %v5999_v25 = vpack.c.bf16 %v2398_v18, %v2390_v29  ;;  %v1510_v4 = vadd.f32 %v1509_v46, %v5992_v41 }
 0x1c5   :  { %v1598_v22 = vpop.f32.mrf.mxu3  ;;  %v1334_v57 = vpop.f32.mrf.mxu0 }
 0x1c6   :  { %v1335_v1 = vadd.f32 %v1334_v57, %v5983_v54  ;;  %v1599_v62 = vadd.f32 %v1598_v22, %v1510_v4 }
 0x1c7   :  { %v1423_v35 = vpop.f32.mrf.mxu1 }
 0x1c8   :  { %v1424_v20 = vadd.f32 %v1423_v35, %v1335_v1  ;;  %1373 = vmatmul.bf16.gmra.mxu0 %v5777_v7  ;;  %v2399_v30 = vmax.f32 %v1599_v62, 0.0  ;;  %1551 = vmatmul.bf16.gmra.mxu2 %v5777_v7 }
 0x1ca   :  { %1462 = vmatmul.bf16.gmra.mxu1 %v5780_v13  ;;  %1640 = vmatmul.bf16.gmra.mxu3 %v5780_v13  ;;  %v6007_v42 = vpack.c.bf16 %v2399_v30, %v2391_v14  ;;  %v2406_v15 = vmax.f32 %v1424_v20, 0.0  ;;  %v5186_v20 = vld [vmem:[#allocation5 + $0x54] sm:$0xf] }
 0x1cb   :  { %v1512_v21 = vpop.f32.mrf.mxu2 }
 0x1cc   :  { %v1513_v45 = vadd.f32 %v1512_v21, %v5992_v41 }
 0x1cd   :  { %v1601_v36 = vpop.f32.mrf.mxu3  ;;  %v1336_v19 = vpop.f32.mrf.mxu0 }
 0x1ce   :  { %v1337_v34 = vadd.f32 %v1336_v19, %v5983_v54  ;;  %v1602_v29 = vadd.f32 %v1601_v36, %v1513_v45  ;;  %v4460_v45 = vld [vmem:[#allocation5 + $0x70] sm:$0xf0] }
 0x1cf   :  { %v1425_v31 = vpop.f32.mrf.mxu1  ;;  %v4463_v36 = vor.u32 %v5186_v20, %v4460_v45  ;;  %v4714_v45 = vld [vmem:[#allocation5 + $0x250] sm:$0xf] }
 0x1d0   :  { %v1426_v18 = vadd.f32 %v1425_v31, %v1337_v34  ;;  %v2407_v19 = vmax.f32 %v1602_v29, 0.0  ;;  %v4458_v34 = vld [vmem:[#allocation5 + $0x50] sm:$0xf]  ;;  %v4715_v6 = vor.u32 %v5254_v39, %v4714_v45 }
 0x1d1   :  { %v5190_v31 = vld [vmem:[#allocation5 + $0x6c] sm:$0xf0]  ;;  %1860 = vmatpush.bf16.msra.mxu2 %v4463_v36 }
 0x1d2   :  { %v2414_v46 = vmax.f32 %v1426_v18, 0.0  ;;  %v5250_v18 = vld [vmem:[#allocation5 + $0x254] sm:$0xf]  ;;  %1771 = vmatpush.bf16.msra.mxu1 %v4715_v6 }
 0x1d3   :  { %v1514_v4 = vpop.f32.mrf.mxu2 }
 0x1d4   :  { %v6011_v22 = vpack.c.bf16 %v2414_v46, %v2406_v15  ;;  %v1515_v57 = vadd.f32 %v1514_v4, %v5992_v41  ;;  %v4459_v4 = vor.u32 %v5190_v31, %v4458_v34 }
 0x1d5   :  { %v1603_v1 = vpop.f32.mrf.mxu3  ;;  %v1339_v35 = vpop.f32.mrf.mxu0 }
 0x1d6   :  { %v1340_v62 = vadd.f32 %v1339_v35, %v5983_v54  ;;  %v1604_v30 = vadd.f32 %v1603_v1, %v1515_v57  ;;  %v4716_v57 = vld [vmem:[#allocation5 + $0x270] sm:$0xf0]  ;;  %1682 = vmatpush.bf16.msra.mxu0 %v4459_v4 }
 0x1d7   :  { %v1428_v14 = vpop.f32.mrf.mxu1 }
 0x1d8   :  { %v1429_v21 = vadd.f32 %v1428_v14, %v1340_v62  ;;  %1378 = vmatmul.bf16.gmra.mxu0 %v5791_v48  ;;  %v2415_v37 = vmax.f32 %v1604_v30, 0.0  ;;  %1556 = vmatmul.bf16.gmra.mxu2 %v5791_v48  ;;  %v4719_v62 = vor.u32 %v5250_v18, %v4716_v57 }
 0x1da   :  { %1467 = vmatmul.bf16.gmra.mxu1 %v5796_v55  ;;  %1645 = vmatmul.bf16.gmra.mxu3 %v5796_v55  ;;  %v6019_v15 = vpack.c.bf16 %v2415_v37, %v2407_v19  ;;  %v2422_v37 = vmax.f32 %v1429_v21, 0.0 }
 0x1db   :  { %v1517_v46 = vpop.f32.mrf.mxu2  ;;  %1949 = vmatpush.bf16.msra.mxu3 %v4719_v62 }
 0x1dc   :  { %v1518_v29 = vadd.f32 %v1517_v46, %v5992_v41 }
 0x1dd   :  { %v1606_v1 = vpop.f32.mrf.mxu3  ;;  %v1341_v35 = vpop.f32.mrf.mxu0 }
 0x1de   :  { %v1342_v14 = vadd.f32 %v1341_v35, %v5983_v54  ;;  %v1607_v11 = vadd.f32 %v1606_v1, %v1518_v29 }
 0x1df   :  { %v1430_v30 = vpop.f32.mrf.mxu1 }
 0x1e0   :  { %v1431_v20 = vadd.f32 %v1430_v30, %v1342_v14  ;;  %v2423_v1 = vmax.f32 %v1607_v11, 0.0 }
 0x1e2   :  { %v2430_v19 = vmax.f32 %v1431_v20, 0.0 }
 0x1e3   :  { %v1519_v34 = vpop.f32.mrf.mxu2 }
 0x1e4   :  { %v6023_v31 = vpack.c.bf16 %v2430_v19, %v2422_v37  ;;  %v1520_v46 = vadd.f32 %v1519_v34, %v5992_v41 }
 0x1e5   :  { %v1608_v36 = vpop.f32.mrf.mxu3  ;;  %v1344_v18 = vpop.f32.mrf.mxu0 }
 0x1e6   :  { %7378 = vst [vmem:[#allocation43_spill] sm:$0xff] %v6023_v31  ;;  %v1345_v57 = vadd.f32 %v1344_v18, %v5983_v54  ;;  %v1609_v4 = vadd.f32 %v1608_v36, %v1520_v46  ;;  %v5246_v31 = vld [vmem:[#allocation5 + $0x22c] sm:$0xf0] }
 0x1e7   :  { %v1433_v35 = vpop.f32.mrf.mxu1 }
 0x1e8   :  { %v1434_v29 = vadd.f32 %v1433_v35, %v1345_v57  ;;  %1383 = vmatmul.bf16.gmra.mxu0 %v5807_v50  ;;  %v2431_v62 = vmax.f32 %v1609_v4, 0.0  ;;  %1561 = vmatmul.bf16.gmra.mxu2 %v5807_v50 }
 0x1ea   :  { %1472 = vmatmul.bf16.gmra.mxu1 %v5812_v60  ;;  %1650 = vmatmul.bf16.gmra.mxu3 %v5812_v60  ;;  %v6031_v6 = vpack.c.bf16 %v2431_v62, %v2423_v1  ;;  %v2438_v11 = vmax.f32 %v1434_v29, 0.0  ;;  %v5178_v29 = vld [vmem:[#allocation5 + $0x14] sm:$0xf] }
 0x1eb   :  { %v1522_v39 = vpop.f32.mrf.mxu2 }
 0x1ec   :  { %7379 = vst [vmem:[#allocation44_spill] sm:$0xff] %v6031_v6  ;;  %v1523_v21 = vadd.f32 %v1522_v39, %v5992_v41 }
 0x1ed   :  { %v1611_v14 = vpop.f32.mrf.mxu3  ;;  %v1346_v30 = vpop.f32.mrf.mxu0 }
 0x1ee   :  { %v1347_v20 = vadd.f32 %v1346_v30, %v5983_v54  ;;  %v1612_v37 = vadd.f32 %v1611_v14, %v1523_v21  ;;  %v4428_v21 = vld [vmem:[#allocation5 + $0x30] sm:$0xf0] }
 0x1ef   :  { %v1435_v45 = vpop.f32.mrf.mxu1  ;;  %v4431_v14 = vor.u32 %v5178_v29, %v4428_v21  ;;  %v4682_v21 = vld [vmem:[#allocation5 + $0x210] sm:$0xf] }
 0x1f0   :  { %v1436_v19 = vadd.f32 %v1435_v45, %v1347_v20  ;;  %v2439_v30 = vmax.f32 %v1612_v37, 0.0  ;;  %v4426_v20 = vld [vmem:[#allocation5 + $0x10] sm:$0xf] }
 0x1f1   :  { %v5182_v45 = vld [vmem:[#allocation5 + $0x2c] sm:$0xf0]  ;;  %1861 = vmatpush.bf16.msra.mxu2 %v4431_v14 }
 0x1f2   :  { %v2446_v34 = vmax.f32 %v1436_v19, 0.0  ;;  %v5242_v19 = vld [vmem:[#allocation5 + $0x214] sm:$0xf] }
 0x1f3   :  { %v1524_v46 = vpop.f32.mrf.mxu2 }
 0x1f4   :  { %v6035_v36 = vpack.c.bf16 %v2446_v34, %v2438_v11  ;;  %v1525_v18 = vadd.f32 %v1524_v46, %v5992_v41  ;;  %v4427_v46 = vor.u32 %v5182_v45, %v4426_v20 }
 0x1f5   :  { %v1613_v57 = vpop.f32.mrf.mxu3  ;;  %v1349_v35 = vpop.f32.mrf.mxu0 }
 0x1f6   :  { %7380 = vst [vmem:[#allocation45_spill] sm:$0xff] %v6035_v36  ;;  %v1350_v4 = vadd.f32 %v1349_v35, %v5983_v54  ;;  %v1614_v62 = vadd.f32 %v1613_v57, %v1525_v18  ;;  %v4684_v18 = vld [vmem:[#allocation5 + $0x230] sm:$0xf0]  ;;  %1683 = vmatpush.bf16.msra.mxu0 %v4427_v46 }
 0x1f7   :  { %v1438_v1 = vpop.f32.mrf.mxu1 }
 0x1f8   :  { %v1439_v39 = vadd.f32 %v1438_v1, %v1350_v4  ;;  %1388 = vmatmul.bf16.gmra.mxu0 %v5823_v38  ;;  %v2447_v6 = vmax.f32 %v1614_v62, 0.0  ;;  %1566 = vmatmul.bf16.gmra.mxu2 %v5823_v38  ;;  %v4687_v4 = vor.u32 %v5242_v19, %v4684_v18 }
 0x1fa   :  { %1477 = vmatmul.bf16.gmra.mxu1 %v5828_v44  ;;  %1655 = vmatmul.bf16.gmra.mxu3 %v5828_v44  ;;  %v6043_v11 = vpack.c.bf16 %v2447_v6, %v2439_v30  ;;  %v2454_v6 = vmax.f32 %v1439_v39, 0.0 }
 0x1fb   :  { %v1527_v34 = vpop.f32.mrf.mxu2  ;;  %1950 = vmatpush.bf16.msra.mxu3 %v4687_v4 }
 0x1fc   :  { %7381 = vst [vmem:[#allocation46_spill] sm:$0xff] %v6043_v11  ;;  %v1528_v37 = vadd.f32 %v1527_v34, %v5992_v41  ;;  %v4683_v11 = vor.u32 %v5246_v31, %v4682_v21 }
 0x1fd   :  { %v1616_v57 = vpop.f32.mrf.mxu3  ;;  %v1351_v35 = vpop.f32.mrf.mxu0 }
 0x1fe   :  { %v1352_v1 = vadd.f32 %v1351_v35, %v5983_v54  ;;  %v1617_v36 = vadd.f32 %v1616_v57, %v1528_v37  ;;  %1772 = vmatpush.bf16.msra.mxu1 %v4683_v11 }
 0x1ff   :  { %v1440_v62 = vpop.f32.mrf.mxu1 }
 0x200   :  { %v1441_v29 = vadd.f32 %v1440_v62, %v1352_v1  ;;  %v2455_v57 = vmax.f32 %v1617_v36, 0.0 }
 0x202   :  { %v2462_v30 = vmax.f32 %v1441_v29, 0.0 }
 0x203   :  { %v1529_v20 = vpop.f32.mrf.mxu2 }
 0x204   :  { %v6047_v45 = vpack.c.bf16 %v2462_v30, %v2454_v6  ;;  %v1530_v34 = vadd.f32 %v1529_v20, %v5992_v41 }
 0x205   :  { %v1618_v14 = vpop.f32.mrf.mxu3  ;;  %v1354_v19 = vpop.f32.mrf.mxu0 }
 0x206   :  { %7382 = vst [vmem:[#allocation47_spill] sm:$0xff] %v6047_v45  ;;  %v1355_v18 = vadd.f32 %v1354_v19, %v5983_v54  ;;  %v1619_v46 = vadd.f32 %v1618_v14, %v1530_v34  ;;  %v5303_v45 = vld [vmem:[#allocation5 + $0x3f4] sm:$0xf0] }
 0x207   :  { %v1443_v35 = vpop.f32.mrf.mxu1 }
 0x208   :  { %v1444_v37 = vadd.f32 %v1443_v35, %v1355_v18  ;;  %1393 = vmatmul.bf16.gmra.mxu0 %v5839_v63  ;;  %v2463_v4 = vmax.f32 %v1619_v46, 0.0  ;;  %1571 = vmatmul.bf16.gmra.mxu2 %v5839_v63 }
 0x20a   :  { %1482 = vmatmul.bf16.gmra.mxu1 %v5844_v10  ;;  %1660 = vmatmul.bf16.gmra.mxu3 %v5844_v10  ;;  %v6055_v31 = vpack.c.bf16 %v2463_v4, %v2455_v57  ;;  %v2470_v36 = vmax.f32 %v1444_v37, 0.0  ;;  %v5235_v37 = vld [vmem:[#allocation5 + $0x1dc] sm:$0xf] }
 0x20b   :  { %v1532_v39 = vpop.f32.mrf.mxu2 }
 0x20c   :  { %7383 = vst [vmem:[#allocation48_spill] sm:$0xff] %v6055_v31  ;;  %v1533_v11 = vadd.f32 %v1532_v39, %v5992_v41 }
 0x20d   :  { %v1621_v1 = vpop.f32.mrf.mxu3  ;;  %v1356_v62 = vpop.f32.mrf.mxu0 }
 0x20e   :  { %v1357_v29 = vadd.f32 %v1356_v62, %v5983_v54  ;;  %v1622_v6 = vadd.f32 %v1621_v1, %v1533_v11  ;;  %v4660_v11 = vld [vmem:[#allocation5 + $0x1f8] sm:$0xf0] }
 0x20f   :  { %v1445_v21 = vpop.f32.mrf.mxu1  ;;  %v4663_v1 = vor.u32 %v5235_v37, %v4660_v11  ;;  %v4914_v11 = vld [vmem:[#allocation5 + $0x3d8] sm:$0xf] }
 0x210   :  { %v1446_v30 = vadd.f32 %v1445_v21, %v1357_v29  ;;  %v2471_v62 = vmax.f32 %v1622_v6, 0.0  ;;  %v4658_v29 = vld [vmem:[#allocation5 + $0x1d8] sm:$0xf] }
 0x211   :  { %v5239_v21 = vld [vmem:[#allocation5 + $0x1f4] sm:$0xf0]  ;;  %2210 = vmatpush.bf16.msrb.mxu2 %v4663_v1 }
 0x212   :  { %v2478_v20 = vmax.f32 %v1446_v30, 0.0  ;;  %v5299_v30 = vld [vmem:[#allocation5 + $0x3dc] sm:$0xf] }
 0x213   :  { %v1534_v34 = vpop.f32.mrf.mxu2 }
 0x214   :  { %v6059_v14 = vpack.c.bf16 %v2478_v20, %v2470_v36  ;;  %v1535_v19 = vadd.f32 %v1534_v34, %v5992_v41  ;;  %v4659_v34 = vor.u32 %v5239_v21, %v4658_v29 }
 0x215   :  { %v1623_v18 = vpop.f32.mrf.mxu3  ;;  %v1359_v35 = vpop.f32.mrf.mxu0 }
 0x216   :  { %7384 = vst [vmem:[#allocation49_spill] sm:$0xff] %v6059_v14  ;;  %v1360_v46 = vadd.f32 %v1359_v35, %v5983_v54  ;;  %v1624_v4 = vadd.f32 %v1623_v18, %v1535_v19  ;;  %v4916_v19 = vld [vmem:[#allocation5 + $0x3f8] sm:$0xf0]  ;;  %2032 = vmatpush.bf16.msrb.mxu0 %v4659_v34 }
 0x217   :  { %v1448_v57 = vpop.f32.mrf.mxu1 }
 0x218   :  { %v1449_v39 = vadd.f32 %v1448_v57, %v1360_v46  ;;  %1398 = vmatmul.bf16.gmra.mxu0 %v5855_v0  ;;  %v2479_v31 = vmax.f32 %v1624_v4, 0.0  ;;  %1576 = vmatmul.bf16.gmra.mxu2 %v5855_v0  ;;  %v4919_v46 = vor.u32 %v5299_v30, %v4916_v19 }
 0x21a   :  { %1487 = vmatmul.bf16.gmra.mxu1 %v5860_v56  ;;  %1665 = vmatmul.bf16.gmra.mxu3 %v5860_v56  ;;  %v6067_v36 = vpack.c.bf16 %v2479_v31, %v2471_v62  ;;  %v2486_v31 = vmax.f32 %v1449_v39, 0.0 }
 0x21b   :  { %v1537_v20 = vpop.f32.mrf.mxu2  ;;  %2299 = vmatpush.bf16.msrb.mxu3 %v4919_v46 }
 0x21c   :  { %7385 = vst [vmem:[#allocation50_spill] sm:$0xff] %v6067_v36  ;;  %v1538_v6 = vadd.f32 %v1537_v20, %v5992_v41  ;;  %v4915_v36 = vor.u32 %v5303_v45, %v4914_v11 }
 0x21d   :  { %v1626_v18 = vpop.f32.mrf.mxu3  ;;  %v1361_v35 = vpop.f32.mrf.mxu0 }
 0x21e   :  { %v1362_v57 = vadd.f32 %v1361_v35, %v5983_v54  ;;  %v1627_v14 = vadd.f32 %v1626_v18, %v1538_v6  ;;  %2121 = vmatpush.bf16.msrb.mxu1 %v4915_v36 }
 0x21f   :  { %v1450_v4 = vpop.f32.mrf.mxu1 }
 0x220   :  { %v1451_v37 = vadd.f32 %v1450_v4, %v1362_v57  ;;  %v2487_v18 = vmax.f32 %v1627_v14, 0.0 }
 0x222   :  { %v2494_v62 = vmax.f32 %v1451_v37, 0.0 }
 0x223   :  { %v1539_v29 = vpop.f32.mrf.mxu2 }
 0x224   :  { %v6071_v21 = vpack.c.bf16 %v2494_v62, %v2486_v31  ;;  %v1540_v20 = vadd.f32 %v1539_v29, %v5992_v41 }
 0x225   :  { %v1628_v1 = vpop.f32.mrf.mxu3  ;;  %v1364_v30 = vpop.f32.mrf.mxu0 }
 0x226   :  { %7386 = vst [vmem:[#allocation51_spill] sm:$0xff] %v6071_v21  ;;  %v1365_v19 = vadd.f32 %v1364_v30, %v5983_v54  ;;  %v1629_v34 = vadd.f32 %v1628_v1, %v1540_v20  ;;  %v5295_v21 = vld [vmem:[#allocation5 + $0x3b4] sm:$0xf0] }
 0x227   :  { %v1453_v35 = vpop.f32.mrf.mxu1 }
 0x228   :  { %v1454_v6 = vadd.f32 %v1453_v35, %v1365_v19  ;;  %1403 = vmatmul.bf16.gmra.mxu0 %v5871_v61  ;;  %v2495_v46 = vmax.f32 %v1629_v34, 0.0  ;;  %1581 = vmatmul.bf16.gmra.mxu2 %v5871_v61 }
 0x22a   :  { %1492 = vmatmul.bf16.gmra.mxu1 %v5876_v40  ;;  %1670 = vmatmul.bf16.gmra.mxu3 %v5876_v40  ;;  %v6079_v45 = vpack.c.bf16 %v2495_v46, %v2487_v18  ;;  %v2502_v14 = vmax.f32 %v1454_v6, 0.0  ;;  %v5227_v6 = vld [vmem:[#allocation5 + $0x19c] sm:$0xf] }
 0x22b   :  { %v1542_v39 = vpop.f32.mrf.mxu2 }
 0x22c   :  { %7387 = vst [vmem:[#allocation52_spill] sm:$0xff] %v6079_v45  ;;  %v1543_v36 = vadd.f32 %v1542_v39, %v5992_v41 }
 0x22d   :  { %v1631_v57 = vpop.f32.mrf.mxu3  ;;  %v1366_v4 = vpop.f32.mrf.mxu0 }
 0x22e   :  { %v1367_v37 = vadd.f32 %v1366_v4, %v5983_v54  ;;  %v1632_v31 = vadd.f32 %v1631_v57, %v1543_v36  ;;  %v4628_v36 = vld [vmem:[#allocation5 + $0x1b8] sm:$0xf0] }
 0x22f   :  { %v1455_v11 = vpop.f32.mrf.mxu1  ;;  %v4631_v57 = vor.u32 %v5227_v6, %v4628_v36  ;;  %v4882_v36 = vld [vmem:[#allocation5 + $0x398] sm:$0xf] }
 0x230   :  { %v1456_v62 = vadd.f32 %v1455_v11, %v1367_v37  ;;  %v2503_v4 = vmax.f32 %v1632_v31, 0.0  ;;  %v4626_v37 = vld [vmem:[#allocation5 + $0x198] sm:$0xf] }
 0x231   :  { %v5231_v11 = vld [vmem:[#allocation5 + $0x1b4] sm:$0xf0]  ;;  %2211 = vmatpush.bf16.msrb.mxu2 %v4631_v57 }
 0x232   :  { %v2510_v29 = vmax.f32 %v1456_v62, 0.0  ;;  %v5291_v62 = vld [vmem:[#allocation5 + $0x39c] sm:$0xf] }
 0x233   :  { %v1544_v20 = vpop.f32.mrf.mxu2 }
 0x234   :  { %v6083_v1 = vpack.c.bf16 %v2510_v29, %v2502_v14  ;;  %v1545_v30 = vadd.f32 %v1544_v20, %v5992_v41  ;;  %v4627_v20 = vor.u32 %v5231_v11, %v4626_v37 }
 0x235   :  { %v1633_v19 = vpop.f32.mrf.mxu3  ;;  %v1369_v35 = vpop.f32.mrf.mxu0 }
 0x236   :  { %7388 = vst [vmem:[#allocation53_spill] sm:$0xff] %v6083_v1  ;;  %v1370_v34 = vadd.f32 %v1369_v35, %v5983_v54  ;;  %v1634_v46 = vadd.f32 %v1633_v19, %v1545_v30  ;;  %v4884_v30 = vld [vmem:[#allocation5 + $0x3b8] sm:$0xf0]  ;;  %2033 = vmatpush.bf16.msrb.mxu0 %v4627_v20 }
 0x237   :  { %v1458_v18 = vpop.f32.mrf.mxu1 }
 0x238   :  { %v1459_v39 = vadd.f32 %v1458_v18, %v1370_v34  ;;  %1684 = vmatmul.bf16.vlgmr.msra.gmra.mxu0 %v5696_v43  ;;  %v2511_v45 = vmax.f32 %v1634_v46, 0.0  ;;  %1862 = vmatmul.bf16.vlgmr.msra.gmra.mxu2 %v5696_v43  ;;  %v4887_v34 = vor.u32 %v5291_v62, %v4884_v30 }
 0x23a   :  { %1773 = vmatmul.bf16.vlgmr.msra.gmra.mxu1 %v5698_v47  ;;  %1951 = vmatmul.bf16.vlgmr.msra.gmra.mxu3 %v5698_v47  ;;  %v6091_v14 = vpack.c.bf16 %v2511_v45, %v2503_v4  ;;  %v2518_v45 = vmax.f32 %v1459_v39, 0.0 }
 0x23b   :  { %v1547_v29 = vpop.f32.mrf.mxu2  ;;  %2300 = vmatpush.bf16.msrb.mxu3 %v4887_v34 }
 0x23c   :  { %7389 = vst [vmem:[#allocation54_spill] sm:$0xff] %v6091_v14  ;;  %v1548_v31 = vadd.f32 %v1547_v29, %v5992_v41  ;;  %v4883_v14 = vor.u32 %v5295_v21, %v4882_v36 }
 0x23d   :  { %v1636_v19 = vpop.f32.mrf.mxu3  ;;  %v1371_v35 = vpop.f32.mrf.mxu0 }
 0x23e   :  { %v1372_v18 = vadd.f32 %v1371_v35, %v5983_v54  ;;  %v1637_v1 = vadd.f32 %v1636_v19, %v1548_v31  ;;  %2122 = vmatpush.bf16.msrb.mxu1 %v4883_v14 }
 0x23f   :  { %v1460_v46 = vpop.f32.mrf.mxu1 }
 0x240   :  { %v1461_v6 = vadd.f32 %v1460_v46, %v1372_v18  ;;  %v2519_v19 = vmax.f32 %v1637_v1, 0.0 }
 0x242   :  { %v2526_v4 = vmax.f32 %v1461_v6, 0.0 }
 0x243   :  { %v1549_v37 = vpop.f32.mrf.mxu2 }
 0x244   :  { %v6095_v11 = vpack.c.bf16 %v2526_v4, %v2518_v45  ;;  %v1550_v29 = vadd.f32 %v1549_v37, %v5992_v41 }
 0x245   :  { %v1638_v57 = vpop.f32.mrf.mxu3  ;;  %v1374_v62 = vpop.f32.mrf.mxu0 }
 0x246   :  { %7390 = vst [vmem:[#allocation55_spill] sm:$0xff] %v6095_v11  ;;  %v1375_v30 = vadd.f32 %v1374_v62, %v5983_v54  ;;  %v1639_v20 = vadd.f32 %v1638_v57, %v1550_v29  ;;  %v5287_v11 = vld [vmem:[#allocation5 + $0x374] sm:$0xf0] }
 0x247   :  { %v1463_v35 = vpop.f32.mrf.mxu1 }
 0x248   :  { %v1464_v31 = vadd.f32 %v1463_v35, %v1375_v30  ;;  %1689 = vmatmul.bf16.gmra.mxu0 %v5704_v2  ;;  %v2527_v34 = vmax.f32 %v1639_v20, 0.0  ;;  %1867 = vmatmul.bf16.gmra.mxu2 %v5704_v2 }
 0x24a   :  { %1778 = vmatmul.bf16.gmra.mxu1 %v5706_v3  ;;  %1956 = vmatmul.bf16.gmra.mxu3 %v5706_v3  ;;  %v6103_v21 = vpack.c.bf16 %v2527_v34, %v2519_v19  ;;  %v2534_v1 = vmax.f32 %v1464_v31, 0.0  ;;  %v5219_v31 = vld [vmem:[#allocation5 + $0x15c] sm:$0xf] }
 0x24b   :  { %v1552_v39 = vpop.f32.mrf.mxu2 }
 0x24c   :  { %7391 = vst [vmem:[#allocation56_spill] sm:$0xff] %v6103_v21  ;;  %v1553_v14 = vadd.f32 %v1552_v39, %v5992_v41 }
 0x24d   :  { %v1641_v18 = vpop.f32.mrf.mxu3  ;;  %v1376_v46 = vpop.f32.mrf.mxu0 }
 0x24e   :  { %v1377_v6 = vadd.f32 %v1376_v46, %v5983_v54  ;;  %v1642_v45 = vadd.f32 %v1641_v18, %v1553_v14  ;;  %v4596_v14 = vld [vmem:[#allocation5 + $0x178] sm:$0xf0] }
 0x24f   :  { %v1465_v36 = vpop.f32.mrf.mxu1  ;;  %v4599_v18 = vor.u32 %v5219_v31, %v4596_v14  ;;  %v4850_v14 = vld [vmem:[#allocation5 + $0x358] sm:$0xf] }
 0x250   :  { %v1466_v4 = vadd.f32 %v1465_v36, %v1377_v6  ;;  %v2535_v46 = vmax.f32 %v1642_v45, 0.0  ;;  %v4594_v6 = vld [vmem:[#allocation5 + $0x158] sm:$0xf] }
 0x251   :  { %v5223_v36 = vld [vmem:[#allocation5 + $0x174] sm:$0xf0]  ;;  %2212 = vmatpush.bf16.msrb.mxu2 %v4599_v18 }
 0x252   :  { %v2542_v37 = vmax.f32 %v1466_v4, 0.0  ;;  %v5283_v4 = vld [vmem:[#allocation5 + $0x35c] sm:$0xf] }
 0x253   :  { %v1554_v29 = vpop.f32.mrf.mxu2 }
 0x254   :  { %v6107_v57 = vpack.c.bf16 %v2542_v37, %v2534_v1  ;;  %v1555_v62 = vadd.f32 %v1554_v29, %v5992_v41  ;;  %v4595_v29 = vor.u32 %v5223_v36, %v4594_v6 }
 0x255   :  { %v1643_v30 = vpop.f32.mrf.mxu3  ;;  %v1379_v35 = vpop.f32.mrf.mxu0 }
 0x256   :  { %7392 = vst [vmem:[#allocation57_spill] sm:$0xff] %v6107_v57  ;;  %v1380_v20 = vadd.f32 %v1379_v35, %v5983_v54  ;;  %v1644_v34 = vadd.f32 %v1643_v30, %v1555_v62  ;;  %v4852_v62 = vld [vmem:[#allocation5 + $0x378] sm:$0xf0]  ;;  %2034 = vmatpush.bf16.msrb.mxu0 %v4595_v29 }
 0x257   :  { %v1468_v19 = vpop.f32.mrf.mxu1 }
 0x258   :  { %v1469_v39 = vadd.f32 %v1468_v19, %v1380_v20  ;;  %1694 = vmatmul.bf16.gmra.mxu0 %v5712_v8  ;;  %v2543_v21 = vmax.f32 %v1644_v34, 0.0  ;;  %1872 = vmatmul.bf16.gmra.mxu2 %v5712_v8  ;;  %v4855_v20 = vor.u32 %v5283_v4, %v4852_v62 }
 0x25a   :  { %1783 = vmatmul.bf16.gmra.mxu1 %v5714_v9  ;;  %1961 = vmatmul.bf16.gmra.mxu3 %v5714_v9  ;;  %v6115_v1 = vpack.c.bf16 %v2543_v21, %v2535_v46  ;;  %v2550_v21 = vmax.f32 %v1469_v39, 0.0 }
 0x25b   :  { %v1557_v37 = vpop.f32.mrf.mxu2  ;;  %2301 = vmatpush.bf16.msrb.mxu3 %v4855_v20 }
 0x25c   :  { %7393 = vst [vmem:[#allocation58_spill] sm:$0xff] %v6115_v1  ;;  %v1558_v45 = vadd.f32 %v1557_v37, %v5992_v41  ;;  %v4851_v1 = vor.u32 %v5287_v11, %v4850_v14 }
 0x25d   :  { %v1646_v30 = vpop.f32.mrf.mxu3  ;;  %v1381_v35 = vpop.f32.mrf.mxu0 }
 0x25e   :  { %v1382_v19 = vadd.f32 %v1381_v35, %v5983_v54  ;;  %v1647_v57 = vadd.f32 %v1646_v30, %v1558_v45  ;;  %2123 = vmatpush.bf16.msrb.mxu1 %v4851_v1 }
 0x25f   :  { %v1470_v34 = vpop.f32.mrf.mxu1 }
 0x260   :  { %v1471_v31 = vadd.f32 %v1470_v34, %v1382_v19  ;;  %v2551_v30 = vmax.f32 %v1647_v57, 0.0 }
 0x262   :  { %v2558_v46 = vmax.f32 %v1471_v31, 0.0 }
 0x263   :  { %v1559_v6 = vpop.f32.mrf.mxu2 }
 0x264   :  { %v6119_v36 = vpack.c.bf16 %v2558_v46, %v2550_v21  ;;  %v1560_v37 = vadd.f32 %v1559_v6, %v5992_v41 }
 0x265   :  { %v1648_v18 = vpop.f32.mrf.mxu3  ;;  %v1384_v4 = vpop.f32.mrf.mxu0 }
 0x266   :  { %7394 = vst [vmem:[#allocation59_spill] sm:$0xff] %v6119_v36  ;;  %v1385_v62 = vadd.f32 %v1384_v4, %v5983_v54  ;;  %v1649_v29 = vadd.f32 %v1648_v18, %v1560_v37  ;;  %v5279_v36 = vld [vmem:[#allocation5 + $0x334] sm:$0xf0] }
 0x267   :  { %v1473_v35 = vpop.f32.mrf.mxu1 }
 0x268   :  { %v1474_v45 = vadd.f32 %v1473_v35, %v1385_v62  ;;  %1699 = vmatmul.bf16.gmra.mxu0 %v5720_v26  ;;  %v2559_v20 = vmax.f32 %v1649_v29, 0.0  ;;  %1877 = vmatmul.bf16.gmra.mxu2 %v5720_v26 }
 0x26a   :  { %1788 = vmatmul.bf16.gmra.mxu1 %v5722_v27  ;;  %1966 = vmatmul.bf16.gmra.mxu3 %v5722_v27  ;;  %v6127_v11 = vpack.c.bf16 %v2559_v20, %v2551_v30  ;;  %v2566_v57 = vmax.f32 %v1474_v45, 0.0  ;;  %v5211_v45 = vld [vmem:[#allocation5 + $0x11c] sm:$0xf] }
 0x26b   :  { %v1562_v39 = vpop.f32.mrf.mxu2 }
 0x26c   :  { %7395 = vst [vmem:[#allocation60_spill] sm:$0xff] %v6127_v11  ;;  %v1563_v1 = vadd.f32 %v1562_v39, %v5992_v41 }
 0x26d   :  { %v1651_v19 = vpop.f32.mrf.mxu3  ;;  %v1386_v34 = vpop.f32.mrf.mxu0 }
 0x26e   :  { %v1387_v31 = vadd.f32 %v1386_v34, %v5983_v54  ;;  %v1652_v21 = vadd.f32 %v1651_v19, %v1563_v1  ;;  %v4564_v1 = vld [vmem:[#allocation5 + $0x138] sm:$0xf0] }
 0x26f   :  { %v1475_v14 = vpop.f32.mrf.mxu1  ;;  %v4567_v19 = vor.u32 %v5211_v45, %v4564_v1  ;;  %v4818_v1 = vld [vmem:[#allocation5 + $0x318] sm:$0xf] }
 0x270   :  { %v1476_v46 = vadd.f32 %v1475_v14, %v1387_v31  ;;  %v2567_v34 = vmax.f32 %v1652_v21, 0.0  ;;  %v4562_v31 = vld [vmem:[#allocation5 + $0x118] sm:$0xf] }
 0x271   :  { %v5215_v14 = vld [vmem:[#allocation5 + $0x134] sm:$0xf0]  ;;  %2213 = vmatpush.bf16.msrb.mxu2 %v4567_v19 }
 0x272   :  { %v2574_v6 = vmax.f32 %v1476_v46, 0.0  ;;  %v5275_v46 = vld [vmem:[#allocation5 + $0x31c] sm:$0xf] }
 0x273   :  { %v1564_v37 = vpop.f32.mrf.mxu2 }
 0x274   :  { %v6131_v18 = vpack.c.bf16 %v2574_v6, %v2566_v57  ;;  %v1565_v4 = vadd.f32 %v1564_v37, %v5992_v41  ;;  %v4563_v37 = vor.u32 %v5215_v14, %v4562_v31 }
 0x275   :  { %v1653_v62 = vpop.f32.mrf.mxu3  ;;  %v1389_v35 = vpop.f32.mrf.mxu0 }
 0x276   :  { %7396 = vst [vmem:[#allocation61_spill] sm:$0xff] %v6131_v18  ;;  %v1390_v29 = vadd.f32 %v1389_v35, %v5983_v54  ;;  %v1654_v20 = vadd.f32 %v1653_v62, %v1565_v4  ;;  %v4820_v4 = vld [vmem:[#allocation5 + $0x338] sm:$0xf0]  ;;  %2035 = vmatpush.bf16.msrb.mxu0 %v4563_v37 }
 0x277   :  { %v1478_v30 = vpop.f32.mrf.mxu1 }
 0x278   :  { %v1479_v39 = vadd.f32 %v1478_v30, %v1390_v29  ;;  %1704 = vmatmul.bf16.gmra.mxu0 %v5728_v32  ;;  %v2575_v11 = vmax.f32 %v1654_v20, 0.0  ;;  %1882 = vmatmul.bf16.gmra.mxu2 %v5728_v32  ;;  %v4823_v29 = vor.u32 %v5275_v46, %v4820_v4 }
 0x27a   :  { %1793 = vmatmul.bf16.gmra.mxu1 %v5730_v33  ;;  %1971 = vmatmul.bf16.gmra.mxu3 %v5730_v33  ;;  %v6139_v57 = vpack.c.bf16 %v2575_v11, %v2567_v34  ;;  %v2582_v11 = vmax.f32 %v1479_v39, 0.0 }
 0x27b   :  { %v1567_v6 = vpop.f32.mrf.mxu2  ;;  %2302 = vmatpush.bf16.msrb.mxu3 %v4823_v29 }
 0x27c   :  { %7397 = vst [vmem:[#allocation62_spill] sm:$0xff] %v6139_v57  ;;  %v1568_v21 = vadd.f32 %v1567_v6, %v5992_v41  ;;  %v4819_v57 = vor.u32 %v5279_v36, %v4818_v1 }
 0x27d   :  { %v1656_v62 = vpop.f32.mrf.mxu3  ;;  %v1391_v35 = vpop.f32.mrf.mxu0 }
 0x27e   :  { %v1392_v30 = vadd.f32 %v1391_v35, %v5983_v54  ;;  %v1657_v18 = vadd.f32 %v1656_v62, %v1568_v21  ;;  %2124 = vmatpush.bf16.msrb.mxu1 %v4819_v57 }
 0x27f   :  { %v1480_v20 = vpop.f32.mrf.mxu1 }
 0x280   :  { %v1481_v45 = vadd.f32 %v1480_v20, %v1392_v30  ;;  %v2583_v62 = vmax.f32 %v1657_v18, 0.0 }
 0x282   :  { %v2590_v34 = vmax.f32 %v1481_v45, 0.0 }
 0x283   :  { %v1569_v31 = vpop.f32.mrf.mxu2 }
 0x284   :  { %v6143_v14 = vpack.c.bf16 %v2590_v34, %v2582_v11  ;;  %v1570_v6 = vadd.f32 %v1569_v31, %v5992_v41 }
 0x285   :  { %v1658_v19 = vpop.f32.mrf.mxu3  ;;  %v1394_v46 = vpop.f32.mrf.mxu0 }
 0x286   :  { %7398 = vst [vmem:[#allocation63_spill] sm:$0xff] %v6143_v14  ;;  %v1395_v4 = vadd.f32 %v1394_v46, %v5983_v54  ;;  %v1659_v37 = vadd.f32 %v1658_v19, %v1570_v6  ;;  %v5271_v14 = vld [vmem:[#allocation5 + $0x2f4] sm:$0xf0] }
 0x287   :  { %v1483_v35 = vpop.f32.mrf.mxu1 }
 0x288   :  { %v1484_v21 = vadd.f32 %v1483_v35, %v1395_v4  ;;  %1709 = vmatmul.bf16.gmra.mxu0 %v5736_v52  ;;  %v2591_v29 = vmax.f32 %v1659_v37, 0.0  ;;  %1887 = vmatmul.bf16.gmra.mxu2 %v5736_v52 }
 0x28a   :  { %1798 = vmatmul.bf16.gmra.mxu1 %v5738_v53  ;;  %1976 = vmatmul.bf16.gmra.mxu3 %v5738_v53  ;;  %v6151_v36 = vpack.c.bf16 %v2591_v29, %v2583_v62  ;;  %v2598_v18 = vmax.f32 %v1484_v21, 0.0  ;;  %v5203_v21 = vld [vmem:[#allocation5 + $0xdc] sm:$0xf] }
 0x28b   :  { %v1572_v39 = vpop.f32.mrf.mxu2 }
 0x28c   :  { %7399 = vst [vmem:[#allocation64_spill] sm:$0xff] %v6151_v36  ;;  %v1573_v57 = vadd.f32 %v1572_v39, %v5992_v41 }
 0x28d   :  { %v1661_v30 = vpop.f32.mrf.mxu3  ;;  %v1396_v20 = vpop.f32.mrf.mxu0 }
 0x28e   :  { %v1397_v45 = vadd.f32 %v1396_v20, %v5983_v54  ;;  %v1662_v11 = vadd.f32 %v1661_v30, %v1573_v57  ;;  %v4532_v57 = vld [vmem:[#allocation5 + $0xf8] sm:$0xf0] }
 0x28f   :  { %v1485_v1 = vpop.f32.mrf.mxu1  ;;  %v4535_v30 = vor.u32 %v5203_v21, %v4532_v57  ;;  %v4786_v57 = vld [vmem:[#allocation5 + $0x2d8] sm:$0xf] }
 0x290   :  { %v1486_v34 = vadd.f32 %v1485_v1, %v1397_v45  ;;  %v2599_v20 = vmax.f32 %v1662_v11, 0.0  ;;  %v4530_v45 = vld [vmem:[#allocation5 + $0xd8] sm:$0xf] }
 0x291   :  { %v5207_v1 = vld [vmem:[#allocation5 + $0xf4] sm:$0xf0]  ;;  %2214 = vmatpush.bf16.msrb.mxu2 %v4535_v30 }
 0x292   :  { %v2606_v31 = vmax.f32 %v1486_v34, 0.0  ;;  %v5267_v34 = vld [vmem:[#allocation5 + $0x2dc] sm:$0xf] }
 0x293   :  { %v1574_v6 = vpop.f32.mrf.mxu2 }
 0x294   :  { %v6155_v19 = vpack.c.bf16 %v2606_v31, %v2598_v18  ;;  %v1575_v46 = vadd.f32 %v1574_v6, %v5992_v41  ;;  %v4531_v6 = vor.u32 %v5207_v1, %v4530_v45 }
 0x295   :  { %v1663_v4 = vpop.f32.mrf.mxu3  ;;  %v1399_v35 = vpop.f32.mrf.mxu0 }
 0x296   :  { %7400 = vst [vmem:[#allocation65_spill] sm:$0xff] %v6155_v19  ;;  %v1400_v37 = vadd.f32 %v1399_v35, %v5983_v54  ;;  %v1664_v29 = vadd.f32 %v1663_v4, %v1575_v46  ;;  %v4788_v46 = vld [vmem:[#allocation5 + $0x2f8] sm:$0xf0]  ;;  %2036 = vmatpush.bf16.msrb.mxu0 %v4531_v6 }
 0x297   :  { %v1488_v62 = vpop.f32.mrf.mxu1 }
 0x298   :  { %v1489_v39 = vadd.f32 %v1488_v62, %v1400_v37  ;;  %1714 = vmatmul.bf16.gmra.mxu0 %v5744_v58  ;;  %v2607_v36 = vmax.f32 %v1664_v29, 0.0  ;;  %1892 = vmatmul.bf16.gmra.mxu2 %v5744_v58  ;;  %v4791_v37 = vor.u32 %v5267_v34, %v4788_v46 }
 0x29a   :  { %1803 = vmatmul.bf16.gmra.mxu1 %v5746_v59  ;;  %1981 = vmatmul.bf16.gmra.mxu3 %v5746_v59  ;;  %v6163_v18 = vpack.c.bf16 %v2607_v36, %v2599_v20  ;;  %v2614_v36 = vmax.f32 %v1489_v39, 0.0 }
 0x29b   :  { %v1577_v31 = vpop.f32.mrf.mxu2  ;;  %2303 = vmatpush.bf16.msrb.mxu3 %v4791_v37 }
 0x29c   :  { %7401 = vst [vmem:[#allocation66_spill] sm:$0xff] %v6163_v18  ;;  %v1578_v11 = vadd.f32 %v1577_v31, %v5992_v41  ;;  %v4787_v18 = vor.u32 %v5271_v14, %v4786_v57 }
 0x29d   :  { %v1666_v4 = vpop.f32.mrf.mxu3  ;;  %v1401_v35 = vpop.f32.mrf.mxu0 }
 0x29e   :  { %v1402_v62 = vadd.f32 %v1401_v35, %v5983_v54  ;;  %v1667_v19 = vadd.f32 %v1666_v4, %v1578_v11  ;;  %2125 = vmatpush.bf16.msrb.mxu1 %v4787_v18 }
 0x29f   :  { %v1490_v29 = vpop.f32.mrf.mxu1 }
 0x2a0   :  { %v1491_v21 = vadd.f32 %v1490_v29, %v1402_v62  ;;  %v2615_v4 = vmax.f32 %v1667_v19, 0.0 }
 0x2a2   :  { %v2622_v20 = vmax.f32 %v1491_v21, 0.0 }
 0x2a3   :  { %v1579_v45 = vpop.f32.mrf.mxu2 }
 0x2a4   :  { %v6167_v1 = vpack.c.bf16 %v2622_v20, %v2614_v36  ;;  %v1580_v31 = vadd.f32 %v1579_v45, %v5992_v41 }
 0x2a5   :  { %v1668_v30 = vpop.f32.mrf.mxu3  ;;  %v1404_v34 = vpop.f32.mrf.mxu0 }
 0x2a6   :  { %7402 = vst [vmem:[#allocation67_spill] sm:$0xff] %v6167_v1  ;;  %v1405_v46 = vadd.f32 %v1404_v34, %v5983_v54  ;;  %v1669_v6 = vadd.f32 %v1668_v30, %v1580_v31  ;;  %v6179_v31 = vld [vmem:[#allocation7] sm:$0xff] }
 0x2a7   :  { %v1493_v35 = vpop.f32.mrf.mxu1  ;;  %v6182_v30 = vperm.slane %v6179_v31, 4 }
 0x2a8   :  { %v1494_v11 = vadd.f32 %v1493_v35, %v1405_v46  ;;  %1719 = vmatmul.bf16.gmra.mxu0 %v5752_v16  ;;  %v2623_v37 = vmax.f32 %v1669_v6, 0.0  ;;  %1897 = vmatmul.bf16.gmra.mxu2 %v5752_v16 }
 0x2aa   :  { %1808 = vmatmul.bf16.gmra.mxu1 %v5754_v17  ;;  %1986 = vmatmul.bf16.gmra.mxu3 %v5754_v17  ;;  %v6175_v14 = vpack.c.bf16 %v2623_v37, %v2615_v4  ;;  %v2630_v19 = vmax.f32 %v1494_v11, 0.0 }
 0x2ab   :  { %v1582_v39 = vpop.f32.mrf.mxu2 }
 0x2ac   :  { %7403 = vst [vmem:[#allocation68_spill] sm:$0xff] %v6175_v14  ;;  %v1583_v18 = vadd.f32 %v1582_v39, %v5992_v41 }
 0x2ad   :  { %v1671_v62 = vpop.f32.mrf.mxu3  ;;  %v1406_v29 = vpop.f32.mrf.mxu0 }
 0x2ae   :  { %v1407_v21 = vadd.f32 %v1406_v29, %v5983_v54  ;;  %v1672_v36 = vadd.f32 %v1671_v62, %v1583_v18  ;;  %v6192_v29 = vperm.slane %v6179_v31, 5 }
 0x2af   :  { %v1495_v57 = vpop.f32.mrf.mxu1 }
 0x2b0   :  { %v1496_v20 = vadd.f32 %v1495_v57, %v1407_v21  ;;  %v2631_v11 = vmax.f32 %v1672_v36, 0.0  ;;  %v4500_v21 = vld [vmem:[#allocation5 + $0xb8] sm:$0xf0] }
 0x2b2   :  { %v2638_v45 = vmax.f32 %v1496_v20, 0.0  ;;  %v4498_v20 = vld [vmem:[#allocation5 + $0x98] sm:$0xf] }
 0x2b3   :  { %v1584_v34 = vpop.f32.mrf.mxu2 }
 0x2b4   :  { %v6184_v46 = vpack.c.bf16 %v2638_v45, %v2630_v19  ;;  %v1585_v35 = vadd.f32 %v1584_v34, %v5992_v41  ;;  %v5195_v41 = vld [vmem:[#allocation5 + $0x9c] sm:$0xf]  ;;  %v5199_v19 = vld [vmem:[#allocation5 + $0xb4] sm:$0xf0] }
 0x2b5   :  { %v1673_v6 = vpop.f32.mrf.mxu3  ;;  %v1685_v4 = vpop.f32.mrf.mxu0  ;;  %v4503_v57 = vor.u32 %v5195_v41, %v4500_v21  ;;  %v5259_v45 = vld [vmem:[#allocation5 + $0x29c] sm:$0xf]  ;;  %v4499_v36 = vor.u32 %v5199_v19, %v4498_v20  ;;  %v4754_v21 = vld [vmem:[#allocation5 + $0x298] sm:$0xf] }
 0x2b6   :  { %7404 = vst [vmem:[#allocation69_spill] sm:$0xff] %v6184_v46  ;;  %v1686_v37 = vadd.f32 %v1685_v4, %v6182_v30  ;;  %v1674_v39 = vadd.f32 %v1673_v6, %v1585_v35  ;;  %v4756_v6 = vld [vmem:[#allocation5 + $0x2b8] sm:$0xf0] }
 0x2b7   :  { %v1774_v54 = vpop.f32.mrf.mxu1  ;;  %2215 = vmatpush.bf16.msrb.mxu2 %v4503_v57  ;;  %2037 = vmatpush.bf16.msrb.mxu0 %v4499_v36 }
 0x2b8   :  { %v1775_v18 = vadd.f32 %v1774_v54, %v1686_v37  ;;  %1724 = vmatmul.bf16.gmra.mxu0 %v5762_v24  ;;  %v2639_v62 = vmax.f32 %v1674_v39, 0.0  ;;  %1902 = vmatmul.bf16.gmra.mxu2 %v5762_v24  ;;  %v4759_v39 = vor.u32 %v5259_v45, %v4756_v6 }
 0x2ba   :  { %1813 = vmatmul.bf16.gmra.mxu1 %v5764_v28  ;;  %1991 = vmatmul.bf16.gmra.mxu3 %v5764_v28  ;;  %v6195_v34 = vpack.c.bf16 %v2639_v62, %v2631_v11  ;;  %v2392_v11 = vmax.f32 %v1775_v18, 0.0 }
 0x2bb   :  { %v1863_v35 = vpop.f32.mrf.mxu2  ;;  %2304 = vmatpush.bf16.msrb.mxu3 %v4759_v39 }
 0x2bc   :  { %7405 = vst [vmem:[#allocation70_spill] sm:$0xff] %v6195_v34  ;;  %v1864_v4 = vadd.f32 %v1863_v35, %v6192_v29  ;;  %v4755_v34 = vor.u32 %v5263_v51, %v4754_v21 }
 0x2bd   :  { %v1952_v37 = vpop.f32.mrf.mxu3  ;;  %v1687_v54 = vpop.f32.mrf.mxu0 }
 0x2be   :  { %v1688_v46 = vadd.f32 %v1687_v54, %v6182_v30  ;;  %v1953_v1 = vadd.f32 %v1952_v37, %v1864_v4  ;;  %2126 = vmatpush.bf16.msrb.mxu1 %v4755_v34 }
 0x2bf   :  { %v1776_v14 = vpop.f32.mrf.mxu1 }
 0x2c0   :  { %v1777_v41 = vadd.f32 %v1776_v14, %v1688_v46  ;;  %v2393_v14 = vmax.f32 %v1953_v1, 0.0 }
 0x2c2   :  { %v2400_v62 = vmax.f32 %v1777_v41, 0.0 }
 0x2c3   :  { %v1865_v19 = vpop.f32.mrf.mxu2 }
 0x2c4   :  { %v6199_v20 = vpack.c.bf16 %v2400_v62, %v2392_v11  ;;  %v1866_v35 = vadd.f32 %v1865_v19, %v6192_v29 }
 0x2c5   :  { %v1954_v57 = vpop.f32.mrf.mxu3  ;;  %v1690_v45 = vpop.f32.mrf.mxu0 }
 0x2c6   :  { %7406 = vst [vmem:[#allocation71_spill] sm:$0xff] %v6199_v20  ;;  %v1691_v6 = vadd.f32 %v1690_v45, %v6182_v30  ;;  %v1955_v36 = vadd.f32 %v1954_v57, %v1866_v35  ;;  %v5255_v20 = vld [vmem:[#allocation5 + $0x274] sm:$0xf0] }
 0x2c7   :  { %v1779_v54 = vpop.f32.mrf.mxu1 }
 0x2c8   :  { %v1780_v4 = vadd.f32 %v1779_v54, %v1691_v6  ;;  %1729 = vmatmul.bf16.gmra.mxu0 %v5777_v7  ;;  %v2401_v46 = vmax.f32 %v1955_v36, 0.0  ;;  %1907 = vmatmul.bf16.gmra.mxu2 %v5777_v7 }
 0x2ca   :  { %1818 = vmatmul.bf16.gmra.mxu1 %v5780_v13  ;;  %1996 = vmatmul.bf16.gmra.mxu3 %v5780_v13  ;;  %v6207_v51 = vpack.c.bf16 %v2401_v46, %v2393_v14  ;;  %v2408_v1 = vmax.f32 %v1780_v4, 0.0  ;;  %v5187_v4 = vld [vmem:[#allocation5 + $0x5c] sm:$0xf] }
 0x2cb   :  { %v1868_v18 = vpop.f32.mrf.mxu2 }
 0x2cc   :  { %7407 = vst [vmem:[#allocation72_spill] sm:$0xff] %v6207_v51  ;;  %v1869_v34 = vadd.f32 %v1868_v18, %v6192_v29 }
 0x2cd   :  { %v1957_v37 = vpop.f32.mrf.mxu3  ;;  %v1692_v39 = vpop.f32.mrf.mxu0 }
 0x2ce   :  { %v1693_v41 = vadd.f32 %v1692_v39, %v6182_v30  ;;  %v1958_v11 = vadd.f32 %v1957_v37, %v1869_v34  ;;  %v4468_v34 = vld [vmem:[#allocation5 + $0x78] sm:$0xf0] }
 0x2cf   :  { %v1781_v21 = vpop.f32.mrf.mxu1  ;;  %v4471_v37 = vor.u32 %v5187_v4, %v4468_v34  ;;  %v4722_v34 = vld [vmem:[#allocation5 + $0x258] sm:$0xf] }
 0x2d0   :  { %v1782_v62 = vadd.f32 %v1781_v21, %v1693_v41  ;;  %v2409_v39 = vmax.f32 %v1958_v11, 0.0  ;;  %v4466_v41 = vld [vmem:[#allocation5 + $0x58] sm:$0xf] }
 0x2d1   :  { %v5191_v21 = vld [vmem:[#allocation5 + $0x74] sm:$0xf0]  ;;  %2216 = vmatpush.bf16.msrb.mxu2 %v4471_v37 }
 0x2d2   :  { %v2416_v19 = vmax.f32 %v1782_v62, 0.0  ;;  %v5251_v62 = vld [vmem:[#allocation5 + $0x25c] sm:$0xf] }
 0x2d3   :  { %v1870_v35 = vpop.f32.mrf.mxu2 }
 0x2d4   :  { %v6211_v57 = vpack.c.bf16 %v2416_v19, %v2408_v1  ;;  %v1871_v45 = vadd.f32 %v1870_v35, %v6192_v29  ;;  %v4467_v35 = vor.u32 %v5191_v21, %v4466_v41 }
 0x2d5   :  { %v1959_v6 = vpop.f32.mrf.mxu3  ;;  %v1695_v54 = vpop.f32.mrf.mxu0 }
 0x2d6   :  { %7408 = vst [vmem:[#allocation73_spill] sm:$0xff] %v6211_v57  ;;  %v1696_v36 = vadd.f32 %v1695_v54, %v6182_v30  ;;  %v1960_v46 = vadd.f32 %v1959_v6, %v1871_v45  ;;  %v4724_v45 = vld [vmem:[#allocation5 + $0x278] sm:$0xf0]  ;;  %2038 = vmatpush.bf16.msrb.mxu0 %v4467_v35 }
 0x2d7   :  { %v1784_v14 = vpop.f32.mrf.mxu1 }
 0x2d8   :  { %v1785_v18 = vadd.f32 %v1784_v14, %v1696_v36  ;;  %1734 = vmatmul.bf16.gmra.mxu0 %v5791_v48  ;;  %v2417_v51 = vmax.f32 %v1960_v46, 0.0  ;;  %1912 = vmatmul.bf16.gmra.mxu2 %v5791_v48  ;;  %v4727_v36 = vor.u32 %v5251_v62, %v4724_v45 }
 0x2da   :  { %1823 = vmatmul.bf16.gmra.mxu1 %v5796_v55  ;;  %2001 = vmatmul.bf16.gmra.mxu3 %v5796_v55  ;;  %v6219_v1 = vpack.c.bf16 %v2417_v51, %v2409_v39  ;;  %v2424_v51 = vmax.f32 %v1785_v18, 0.0 }
 0x2db   :  { %v1873_v19 = vpop.f32.mrf.mxu2  ;;  %2305 = vmatpush.bf16.msrb.mxu3 %v4727_v36 }
 0x2dc   :  { %7409 = vst [vmem:[#allocation74_spill] sm:$0xff] %v6219_v1  ;;  %v1874_v11 = vadd.f32 %v1873_v19, %v6192_v29  ;;  %v4723_v1 = vor.u32 %v5255_v20, %v4722_v34 }
 0x2dd   :  { %v1962_v6 = vpop.f32.mrf.mxu3  ;;  %v1697_v54 = vpop.f32.mrf.mxu0 }
 0x2de   :  { %v1698_v14 = vadd.f32 %v1697_v54, %v6182_v30  ;;  %v1963_v57 = vadd.f32 %v1962_v6, %v1874_v11  ;;  %2127 = vmatpush.bf16.msrb.mxu1 %v4723_v1 }
 0x2df   :  { %v1786_v46 = vpop.f32.mrf.mxu1 }
 0x2e0   :  { %v1787_v4 = vadd.f32 %v1786_v46, %v1698_v14  ;;  %v2425_v6 = vmax.f32 %v1963_v57, 0.0 }
 0x2e2   :  { %v2432_v39 = vmax.f32 %v1787_v4, 0.0 }
 0x2e3   :  { %v1875_v41 = vpop.f32.mrf.mxu2 }
 0x2e4   :  { %v6223_v21 = vpack.c.bf16 %v2432_v39, %v2424_v51  ;;  %v1876_v19 = vadd.f32 %v1875_v41, %v6192_v29 }
 0x2e5   :  { %v1964_v37 = vpop.f32.mrf.mxu3  ;;  %v1700_v62 = vpop.f32.mrf.mxu0 }
 0x2e6   :  { %7410 = vst [vmem:[#allocation75_spill] sm:$0xff] %v6223_v21  ;;  %v1701_v45 = vadd.f32 %v1700_v62, %v6182_v30  ;;  %v1965_v35 = vadd.f32 %v1964_v37, %v1876_v19  ;;  %v5247_v21 = vld [vmem:[#allocation5 + $0x234] sm:$0xf0] }
 0x2e7   :  { %v1789_v54 = vpop.f32.mrf.mxu1 }
 0x2e8   :  { %v1790_v11 = vadd.f32 %v1789_v54, %v1701_v45  ;;  %1739 = vmatmul.bf16.gmra.mxu0 %v5807_v50  ;;  %v2433_v36 = vmax.f32 %v1965_v35, 0.0  ;;  %1917 = vmatmul.bf16.gmra.mxu2 %v5807_v50 }
 0x2ea   :  { %1828 = vmatmul.bf16.gmra.mxu1 %v5812_v60  ;;  %2006 = vmatmul.bf16.gmra.mxu3 %v5812_v60  ;;  %v6231_v20 = vpack.c.bf16 %v2433_v36, %v2425_v6  ;;  %v2440_v57 = vmax.f32 %v1790_v11, 0.0  ;;  %v5179_v11 = vld [vmem:[#allocation5 + $0x1c] sm:$0xf] }
 0x2eb   :  { %v1878_v18 = vpop.f32.mrf.mxu2 }
 0x2ec   :  { %7411 = vst [vmem:[#allocation76_spill] sm:$0xff] %v6231_v20  ;;  %v1879_v1 = vadd.f32 %v1878_v18, %v6192_v29 }
 0x2ed   :  { %v1967_v14 = vpop.f32.mrf.mxu3  ;;  %v1702_v46 = vpop.f32.mrf.mxu0 }
 0x2ee   :  { %v1703_v4 = vadd.f32 %v1702_v46, %v6182_v30  ;;  %v1968_v51 = vadd.f32 %v1967_v14, %v1879_v1  ;;  %v4436_v1 = vld [vmem:[#allocation5 + $0x38] sm:$0xf0] }
 0x2ef   :  { %v1791_v34 = vpop.f32.mrf.mxu1  ;;  %v4439_v14 = vor.u32 %v5179_v11, %v4436_v1  ;;  %v4690_v1 = vld [vmem:[#allocation5 + $0x218] sm:$0xf] }
 0x2f0   :  { %v1792_v39 = vadd.f32 %v1791_v34, %v1703_v4  ;;  %v2441_v46 = vmax.f32 %v1968_v51, 0.0  ;;  %v4434_v4 = vld [vmem:[#allocation5 + $0x18] sm:$0xf] }
 0x2f1   :  { %v5183_v34 = vld [vmem:[#allocation5 + $0x34] sm:$0xf0]  ;;  %2217 = vmatpush.bf16.msrb.mxu2 %v4439_v14 }
 0x2f2   :  { %v2448_v41 = vmax.f32 %v1792_v39, 0.0  ;;  %v5243_v39 = vld [vmem:[#allocation5 + $0x21c] sm:$0xf] }
 0x2f3   :  { %v1880_v19 = vpop.f32.mrf.mxu2 }
 0x2f4   :  { %v6235_v37 = vpack.c.bf16 %v2448_v41, %v2440_v57  ;;  %v1881_v62 = vadd.f32 %v1880_v19, %v6192_v29  ;;  %v4435_v19 = vor.u32 %v5183_v34, %v4434_v4 }
 0x2f5   :  { %v1969_v45 = vpop.f32.mrf.mxu3  ;;  %v1705_v54 = vpop.f32.mrf.mxu0 }
 0x2f6   :  { %7412 = vst [vmem:[#allocation77_spill] sm:$0xff] %v6235_v37  ;;  %v1706_v35 = vadd.f32 %v1705_v54, %v6182_v30  ;;  %v1970_v36 = vadd.f32 %v1969_v45, %v1881_v62  ;;  %v4692_v62 = vld [vmem:[#allocation5 + $0x238] sm:$0xf0]  ;;  %2039 = vmatpush.bf16.msrb.mxu0 %v4435_v19 }
 0x2f7   :  { %v1794_v6 = vpop.f32.mrf.mxu1 }
 0x2f8   :  { %v1795_v18 = vadd.f32 %v1794_v6, %v1706_v35  ;;  %1744 = vmatmul.bf16.gmra.mxu0 %v5823_v38  ;;  %v2449_v20 = vmax.f32 %v1970_v36, 0.0  ;;  %1922 = vmatmul.bf16.gmra.mxu2 %v5823_v38  ;;  %v4695_v35 = vor.u32 %v5243_v39, %v4692_v62 }
 0x2fa   :  { %1833 = vmatmul.bf16.gmra.mxu1 %v5828_v44  ;;  %2011 = vmatmul.bf16.gmra.mxu3 %v5828_v44  ;;  %v6243_v57 = vpack.c.bf16 %v2449_v20, %v2441_v46  ;;  %v2456_v20 = vmax.f32 %v1795_v18, 0.0 }
 0x2fb   :  { %v1883_v41 = vpop.f32.mrf.mxu2  ;;  %2306 = vmatpush.bf16.msrb.mxu3 %v4695_v35 }
 0x2fc   :  { %7413 = vst [vmem:[#allocation78_spill] sm:$0xff] %v6243_v57  ;;  %v1884_v51 = vadd.f32 %v1883_v41, %v6192_v29  ;;  %v4691_v57 = vor.u32 %v5247_v21, %v4690_v1 }
 0x2fd   :  { %v1972_v45 = vpop.f32.mrf.mxu3  ;;  %v1707_v54 = vpop.f32.mrf.mxu0 }
 0x2fe   :  { %v1708_v6 = vadd.f32 %v1707_v54, %v6182_v30  ;;  %v1973_v37 = vadd.f32 %v1972_v45, %v1884_v51  ;;  %2128 = vmatpush.bf16.msrb.mxu1 %v4691_v57 }
 0x2ff   :  { %v1796_v36 = vpop.f32.mrf.mxu1 }
 0x300   :  { %v1797_v11 = vadd.f32 %v1796_v36, %v1708_v6  ;;  %v2457_v45 = vmax.f32 %v1973_v37, 0.0 }
 0x302   :  { %v2464_v46 = vmax.f32 %v1797_v11, 0.0 }
 0x303   :  { %v1885_v4 = vpop.f32.mrf.mxu2 }
 0x304   :  { %v6247_v34 = vpack.c.bf16 %v2464_v46, %v2456_v20  ;;  %v1886_v41 = vadd.f32 %v1885_v4, %v6192_v29 }
 0x305   :  { %v1974_v14 = vpop.f32.mrf.mxu3  ;;  %v1710_v39 = vpop.f32.mrf.mxu0 }
 0x306   :  { %v1711_v62 = vadd.f32 %v1710_v39, %v6182_v30  ;;  %v1975_v19 = vadd.f32 %v1974_v14, %v1886_v41 }
 0x307   :  { %v1799_v54 = vpop.f32.mrf.mxu1 }
 0x308   :  { %v1800_v51 = vadd.f32 %v1799_v54, %v1711_v62  ;;  %1749 = vmatmul.bf16.gmra.mxu0 %v5839_v63  ;;  %v2465_v35 = vmax.f32 %v1975_v19, 0.0  ;;  %1927 = vmatmul.bf16.gmra.mxu2 %v5839_v63 }
 0x30a   :  { %1838 = vmatmul.bf16.gmra.mxu1 %v5844_v10  ;;  %2016 = vmatmul.bf16.gmra.mxu3 %v5844_v10  ;;  %v6255_v21 = vpack.c.bf16 %v2465_v35, %v2457_v45  ;;  %v2472_v37 = vmax.f32 %v1800_v51, 0.0  ;;  %v5327_v51 = vld [vmem:[#allocation8 + $0xb8] sm:$0xff] }
 0x30b   :  { %v1888_v18 = vpop.f32.mrf.mxu2  ;;  %3466 = vmatpush.bf16.msra.mxu2 %v5327_v51 }
 0x30c   :  { %7414 = vst [vmem:[#allocation79_spill] sm:$0xff] %v6255_v21  ;;  %v1889_v57 = vadd.f32 %v1888_v18, %v6192_v29 }
 0x30d   :  { %v1977_v6 = vpop.f32.mrf.mxu3  ;;  %v1712_v36 = vpop.f32.mrf.mxu0 }
 0x30e   :  { %v1713_v11 = vadd.f32 %v1712_v36, %v6182_v30  ;;  %v1978_v20 = vadd.f32 %v1977_v6, %v1889_v57  ;;  %v5311_v57 = vld [vmem:[#allocation8 + $0x38] sm:$0xff] }
 0x30f   :  { %v1801_v1 = vpop.f32.mrf.mxu1  ;;  %v5335_v6 = vld [vmem:[#allocation8 + $0xf8] sm:$0xff]  ;;  %3288 = vmatpush.bf16.msra.mxu0 %v5311_v57 }
 0x310   :  { %v1802_v46 = vadd.f32 %v1801_v1, %v1713_v11  ;;  %v2473_v36 = vmax.f32 %v1978_v20, 0.0  ;;  %3555 = vmatpush.bf16.msra.mxu3 %v5335_v6 }
 0x312   :  { %v2480_v4 = vmax.f32 %v1802_v46, 0.0 }
 0x313   :  { %v1890_v41 = vpop.f32.mrf.mxu2 }
 0x314   :  { %v6259_v14 = vpack.c.bf16 %v2480_v4, %v2472_v37  ;;  %v1891_v39 = vadd.f32 %v1890_v41, %v6192_v29 }
 0x315   :  { %v1979_v62 = vpop.f32.mrf.mxu3  ;;  %v1715_v54 = vpop.f32.mrf.mxu0 }
 0x316   :  { %7415 = vst [vmem:[#allocation80_spill] sm:$0xff] %v6259_v14  ;;  %v1716_v19 = vadd.f32 %v1715_v54, %v6182_v30  ;;  %v1980_v35 = vadd.f32 %v1979_v62, %v1891_v39  ;;  %v5319_v54 = vld [vmem:[#allocation8 + $0x78] sm:$0xff] }
 0x317   :  { %v1804_v45 = vpop.f32.mrf.mxu1  ;;  %3377 = vmatpush.bf16.msra.mxu1 %v5319_v54 }
 0x318   :  { %v1805_v18 = vadd.f32 %v1804_v45, %v1716_v19  ;;  %1754 = vmatmul.bf16.gmra.mxu0 %v5855_v0  ;;  %v2481_v21 = vmax.f32 %v1980_v35, 0.0  ;;  %1932 = vmatmul.bf16.gmra.mxu2 %v5855_v0 }
 0x31a   :  { %1843 = vmatmul.bf16.gmra.mxu1 %v5860_v56  ;;  %2021 = vmatmul.bf16.gmra.mxu3 %v5860_v56  ;;  %v6267_v11 = vpack.c.bf16 %v2481_v21, %v2473_v36  ;;  %v2488_v19 = vmax.f32 %v1805_v18, 0.0 }
 0x31b   :  { %v1893_v1 = vpop.f32.mrf.mxu2 }
 0x31c   :  { %7416 = vst [vmem:[#allocation81_spill] sm:$0xff] %v6267_v11  ;;  %v1894_v46 = vadd.f32 %v1893_v1, %v6192_v29 }
 0x31d   :  { %v1982_v37 = vpop.f32.mrf.mxu3  ;;  %v1717_v4 = vpop.f32.mrf.mxu0 }
 0x31e   :  { %v1718_v20 = vadd.f32 %v1717_v4, %v6182_v30  ;;  %v1983_v39 = vadd.f32 %v1982_v37, %v1894_v46 }
 0x31f   :  { %v1806_v41 = vpop.f32.mrf.mxu1 }
 0x320   :  { %v1807_v62 = vadd.f32 %v1806_v41, %v1718_v20  ;;  %v2489_v46 = vmax.f32 %v1983_v39, 0.0 }
 0x322   :  { %v2496_v45 = vmax.f32 %v1807_v62, 0.0 }
 0x323   :  { %v1895_v35 = vpop.f32.mrf.mxu2 }
 0x324   :  { %v6271_v21 = vpack.c.bf16 %v2496_v45, %v2488_v19  ;;  %v1896_v36 = vadd.f32 %v1895_v35, %v6192_v29 }
 0x325   :  { %v1984_v51 = vpop.f32.mrf.mxu3  ;;  %v1720_v57 = vpop.f32.mrf.mxu0 }
 0x326   :  { %7417 = vst [vmem:[#allocation82_spill] sm:$0xff] %v6271_v21  ;;  %v1721_v1 = vadd.f32 %v1720_v57, %v6182_v30  ;;  %v1985_v6 = vadd.f32 %v1984_v51, %v1896_v36 }
 0x327   :  { %v1809_v11 = vpop.f32.mrf.mxu1 }
 0x328   :  { %v1810_v14 = vadd.f32 %v1809_v11, %v1721_v1  ;;  %1759 = vmatmul.bf16.gmra.mxu0 %v5871_v61  ;;  %v2497_v37 = vmax.f32 %v1985_v6, 0.0  ;;  %1937 = vmatmul.bf16.gmra.mxu2 %v5871_v61 }
 0x32a   :  { %1848 = vmatmul.bf16.gmra.mxu1 %v5876_v40  ;;  %2026 = vmatmul.bf16.gmra.mxu3 %v5876_v40  ;;  %v6279_v18 = vpack.c.bf16 %v2497_v37, %v2489_v46  ;;  %v2504_v39 = vmax.f32 %v1810_v14, 0.0  ;;  %v5326_v14 = vld [vmem:[#allocation8 + $0xb0] sm:$0xff] }
 0x32b   :  { %v1898_v4 = vpop.f32.mrf.mxu2  ;;  %3467 = vmatpush.bf16.msra.mxu2 %v5326_v14 }
 0x32c   :  { %7418 = vst [vmem:[#allocation83_spill] sm:$0xff] %v6279_v18  ;;  %v1899_v20 = vadd.f32 %v1898_v4, %v6192_v29 }
 0x32d   :  { %v1987_v41 = vpop.f32.mrf.mxu3  ;;  %v1722_v62 = vpop.f32.mrf.mxu0 }
 0x32e   :  { %v1723_v54 = vadd.f32 %v1722_v62, %v6182_v30  ;;  %v1988_v19 = vadd.f32 %v1987_v41, %v1899_v20  ;;  %v5310_v20 = vld [vmem:[#allocation8 + $0x30] sm:$0xff] }
 0x32f   :  { %v1811_v11 = vpop.f32.mrf.mxu1  ;;  %v5334_v41 = vld [vmem:[#allocation8 + $0xf0] sm:$0xff]  ;;  %3289 = vmatpush.bf16.msra.mxu0 %v5310_v20 }
 0x330   :  { %v1812_v45 = vadd.f32 %v1811_v11, %v1723_v54  ;;  %v2505_v62 = vmax.f32 %v1988_v19, 0.0  ;;  %3556 = vmatpush.bf16.msra.mxu3 %v5334_v41 }
 0x332   :  { %v2512_v35 = vmax.f32 %v1812_v45, 0.0 }
 0x333   :  { %v1900_v36 = vpop.f32.mrf.mxu2 }
 0x334   :  { %v6283_v51 = vpack.c.bf16 %v2512_v35, %v2504_v39  ;;  %v1901_v57 = vadd.f32 %v1900_v36, %v6192_v29 }
 0x335   :  { %v1989_v1 = vpop.f32.mrf.mxu3  ;;  %v1725_v6 = vpop.f32.mrf.mxu0 }
 0x336   :  { %v1726_v46 = vadd.f32 %v1725_v6, %v6182_v30  ;;  %v1990_v4 = vadd.f32 %v1989_v1, %v1901_v57  ;;  %v5318_v1 = vld [vmem:[#allocation8 + $0x70] sm:$0xff] }
 0x337   :  { %v1814_v37 = vpop.f32.mrf.mxu1  ;;  %3378 = vmatpush.bf16.msra.mxu1 %v5318_v1 }
 0x338   :  { %v1815_v18 = vadd.f32 %v1814_v37, %v1726_v46  ;;  %2040 = vmatmul.bf16.vlgmr.msrb.gmra.mxu0 %v5696_v43  ;;  %v2513_v21 = vmax.f32 %v1990_v4, 0.0  ;;  %2218 = vmatmul.bf16.vlgmr.msrb.gmra.mxu2 %v5696_v43 }
 0x33a   :  { %2129 = vmatmul.bf16.vlgmr.msrb.gmra.mxu1 %v5698_v47  ;;  %2307 = vmatmul.bf16.vlgmr.msrb.gmra.mxu3 %v5698_v47  ;;  %v6291_v54 = vpack.c.bf16 %v2513_v21, %v2505_v62  ;;  %v2520_v47 = vmax.f32 %v1815_v18, 0.0 }
 0x33b   :  { %v1903_v11 = vpop.f32.mrf.mxu2 }
 0x33c   :  { %v1904_v45 = vadd.f32 %v1903_v11, %v6192_v29 }
 0x33d   :  { %v1992_v39 = vpop.f32.mrf.mxu3  ;;  %v1727_v35 = vpop.f32.mrf.mxu0 }
 0x33e   :  { %v1728_v19 = vadd.f32 %v1727_v35, %v6182_v30  ;;  %v1993_v57 = vadd.f32 %v1992_v39, %v1904_v45 }
 0x33f   :  { %v1816_v36 = vpop.f32.mrf.mxu1 }
 0x340   :  { %v1817_v43 = vadd.f32 %v1816_v36, %v1728_v19  ;;  %v2521_v45 = vmax.f32 %v1993_v57, 0.0 }
 0x342   :  { %v2528_v6 = vmax.f32 %v1817_v43, 0.0 }
 0x343   :  { %v1905_v46 = vpop.f32.mrf.mxu2 }
 0x344   :  { %v6295_v21 = vpack.c.bf16 %v2528_v6, %v2520_v47  ;;  %v1906_v37 = vadd.f32 %v1905_v46, %v6192_v29 }
 0x345   :  { %v1994_v4 = vpop.f32.mrf.mxu3  ;;  %v1730_v62 = vpop.f32.mrf.mxu0 }
 0x346   :  { %v1731_v14 = vadd.f32 %v1730_v62, %v6182_v30  ;;  %v1995_v41 = vadd.f32 %v1994_v4, %v1906_v37 }
 0x347   :  { %v1819_v20 = vpop.f32.mrf.mxu1 }
 0x348   :  { %v1820_v11 = vadd.f32 %v1819_v20, %v1731_v14  ;;  %2045 = vmatmul.bf16.gmra.mxu0 %v5704_v2  ;;  %v2529_v39 = vmax.f32 %v1995_v41, 0.0  ;;  %2223 = vmatmul.bf16.gmra.mxu2 %v5704_v2 }
 0x34a   :  { %2134 = vmatmul.bf16.gmra.mxu1 %v5706_v3  ;;  %2312 = vmatmul.bf16.gmra.mxu3 %v5706_v3  ;;  %v6303_v18 = vpack.c.bf16 %v2529_v39, %v2521_v45  ;;  %v2536_v57 = vmax.f32 %v1820_v11, 0.0  ;;  %v5325_v11 = vld [vmem:[#allocation8 + $0xa8] sm:$0xff] }
 0x34b   :  { %v1908_v35 = vpop.f32.mrf.mxu2  ;;  %3468 = vmatpush.bf16.msra.mxu2 %v5325_v11 }
 0x34c   :  { %v1909_v19 = vadd.f32 %v1908_v35, %v6192_v29 }
 0x34d   :  { %v1997_v36 = vpop.f32.mrf.mxu3  ;;  %v1732_v43 = vpop.f32.mrf.mxu0 }
 0x34e   :  { %v1733_v1 = vadd.f32 %v1732_v43, %v6182_v30  ;;  %v1998_v6 = vadd.f32 %v1997_v36, %v1909_v19  ;;  %v5309_v19 = vld [vmem:[#allocation8 + $0x28] sm:$0xff] }
 0x34f   :  { %v1821_v47 = vpop.f32.mrf.mxu1  ;;  %v5333_v36 = vld [vmem:[#allocation8 + $0xe8] sm:$0xff]  ;;  %3290 = vmatpush.bf16.msra.mxu0 %v5309_v19 }
 0x350   :  { %v1822_v46 = vadd.f32 %v1821_v47, %v1733_v1  ;;  %v2537_v35 = vmax.f32 %v1998_v6, 0.0  ;;  %3557 = vmatpush.bf16.msra.mxu3 %v5333_v36 }
 0x352   :  { %v2544_v37 = vmax.f32 %v1822_v46, 0.0 }
 0x353   :  { %v1910_v4 = vpop.f32.mrf.mxu2 }
 0x354   :  { %v6307_v62 = vpack.c.bf16 %v2544_v37, %v2536_v57  ;;  %v1911_v2 = vadd.f32 %v1910_v4, %v6192_v29 }
 0x355   :  { %v1999_v3 = vpop.f32.mrf.mxu3  ;;  %v1735_v14 = vpop.f32.mrf.mxu0 }
 0x356   :  { %v1736_v20 = vadd.f32 %v1735_v14, %v6182_v30  ;;  %v2000_v45 = vadd.f32 %v1999_v3, %v1911_v2  ;;  %v5317_v3 = vld [vmem:[#allocation8 + $0x68] sm:$0xff] }
 0x357   :  { %v1824_v41 = vpop.f32.mrf.mxu1  ;;  %3379 = vmatpush.bf16.msra.mxu1 %v5317_v3 }
 0x358   :  { %v1825_v39 = vadd.f32 %v1824_v41, %v1736_v20  ;;  %2050 = vmatmul.bf16.gmra.mxu0 %v5712_v8  ;;  %v2545_v43 = vmax.f32 %v2000_v45, 0.0  ;;  %2228 = vmatmul.bf16.gmra.mxu2 %v5712_v8 }
 0x35a   :  { %2139 = vmatmul.bf16.gmra.mxu1 %v5714_v9  ;;  %2317 = vmatmul.bf16.gmra.mxu3 %v5714_v9  ;;  %v6315_v1 = vpack.c.bf16 %v2545_v43, %v2537_v35  ;;  %v2552_v9 = vmax.f32 %v1825_v39, 0.0 }
 0x35b   :  { %v1913_v47 = vpop.f32.mrf.mxu2 }
 0x35c   :  { %v1914_v46 = vadd.f32 %v1913_v47, %v6192_v29 }
 0x35d   :  { %v2002_v57 = vpop.f32.mrf.mxu3  ;;  %v1737_v37 = vpop.f32.mrf.mxu0 }
 0x35e   :  { %v1738_v6 = vadd.f32 %v1737_v37, %v6182_v30  ;;  %v2003_v2 = vadd.f32 %v2002_v57, %v1914_v46 }
 0x35f   :  { %v1826_v4 = vpop.f32.mrf.mxu1 }
 0x360   :  { %v1827_v8 = vadd.f32 %v1826_v4, %v1738_v6  ;;  %v2553_v46 = vmax.f32 %v2003_v2, 0.0 }
 0x362   :  { %v2560_v14 = vmax.f32 %v1827_v8, 0.0 }
 0x363   :  { %v1915_v20 = vpop.f32.mrf.mxu2 }
 0x364   :  { %v6319_v41 = vpack.c.bf16 %v2560_v14, %v2552_v9  ;;  %v1916_v45 = vadd.f32 %v1915_v20, %v6192_v29 }
 0x365   :  { %v2004_v35 = vpop.f32.mrf.mxu3  ;;  %v1740_v43 = vpop.f32.mrf.mxu0 }
 0x366   :  { %v1741_v11 = vadd.f32 %v1740_v43, %v6182_v30  ;;  %v2005_v36 = vadd.f32 %v2004_v35, %v1916_v45 }
 0x367   :  { %v1829_v19 = vpop.f32.mrf.mxu1 }
 0x368   :  { %v1830_v47 = vadd.f32 %v1829_v19, %v1741_v11  ;;  %2055 = vmatmul.bf16.gmra.mxu0 %v5720_v26  ;;  %v2561_v57 = vmax.f32 %v2005_v36, 0.0  ;;  %2233 = vmatmul.bf16.gmra.mxu2 %v5720_v26 }
 0x36a   :  { %2144 = vmatmul.bf16.gmra.mxu1 %v5722_v27  ;;  %2322 = vmatmul.bf16.gmra.mxu3 %v5722_v27  ;;  %v6327_v39 = vpack.c.bf16 %v2561_v57, %v2553_v46  ;;  %v2568_v2 = vmax.f32 %v1830_v47, 0.0  ;;  %v5324_v47 = vld [vmem:[#allocation8 + $0xa0] sm:$0xff] }
 0x36b   :  { %v1918_v37 = vpop.f32.mrf.mxu2  ;;  %3469 = vmatpush.bf16.msra.mxu2 %v5324_v47 }
 0x36c   :  { %v1919_v6 = vadd.f32 %v1918_v37, %v6192_v29 }
 0x36d   :  { %v2007_v4 = vpop.f32.mrf.mxu3  ;;  %v1742_v8 = vpop.f32.mrf.mxu0 }
 0x36e   :  { %v1743_v3 = vadd.f32 %v1742_v8, %v6182_v30  ;;  %v2008_v14 = vadd.f32 %v2007_v4, %v1919_v6  ;;  %v5308_v6 = vld [vmem:[#allocation8 + $0x20] sm:$0xff] }
 0x36f   :  { %v1831_v9 = vpop.f32.mrf.mxu1  ;;  %v5332_v4 = vld [vmem:[#allocation8 + $0xe0] sm:$0xff]  ;;  %3291 = vmatpush.bf16.msra.mxu0 %v5308_v6 }
 0x370   :  { %v1832_v20 = vadd.f32 %v1831_v9, %v1743_v3  ;;  %v2569_v37 = vmax.f32 %v2008_v14, 0.0  ;;  %3558 = vmatpush.bf16.msra.mxu3 %v5332_v4 }
 0x372   :  { %v2576_v45 = vmax.f32 %v1832_v20, 0.0 }
 0x373   :  { %v1920_v35 = vpop.f32.mrf.mxu2 }
 0x374   :  { %v6331_v43 = vpack.c.bf16 %v2576_v45, %v2568_v2  ;;  %v1921_v26 = vadd.f32 %v1920_v35, %v6192_v29 }
 0x375   :  { %v2009_v27 = vpop.f32.mrf.mxu3  ;;  %v1745_v11 = vpop.f32.mrf.mxu0 }
 0x376   :  { %v1746_v19 = vadd.f32 %v1745_v11, %v6182_v30  ;;  %v2010_v46 = vadd.f32 %v2009_v27, %v1921_v26  ;;  %v5316_v27 = vld [vmem:[#allocation8 + $0x60] sm:$0xff] }
 0x377   :  { %v1834_v36 = vpop.f32.mrf.mxu1  ;;  %3380 = vmatpush.bf16.msra.mxu1 %v5316_v27 }
 0x378   :  { %v1835_v57 = vadd.f32 %v1834_v36, %v1746_v19  ;;  %2060 = vmatmul.bf16.gmra.mxu0 %v5728_v32  ;;  %v2577_v8 = vmax.f32 %v2010_v46, 0.0  ;;  %2238 = vmatmul.bf16.gmra.mxu2 %v5728_v32 }
 0x37a   :  { %2149 = vmatmul.bf16.gmra.mxu1 %v5730_v33  ;;  %2327 = vmatmul.bf16.gmra.mxu3 %v5730_v33  ;;  %v6339_v3 = vpack.c.bf16 %v2577_v8, %v2569_v37  ;;  %v2584_v33 = vmax.f32 %v1835_v57, 0.0 }
 0x37b   :  { %v1923_v9 = vpop.f32.mrf.mxu2 }
 0x37c   :  { %v1924_v20 = vadd.f32 %v1923_v9, %v6192_v29 }
 0x37d   :  { %v2012_v2 = vpop.f32.mrf.mxu3  ;;  %v1747_v45 = vpop.f32.mrf.mxu0 }
 0x37e   :  { %v1748_v14 = vadd.f32 %v1747_v45, %v6182_v30  ;;  %v2013_v26 = vadd.f32 %v2012_v2, %v1924_v20 }
 0x37f   :  { %v1836_v35 = vpop.f32.mrf.mxu1 }
 0x380   :  { %v1837_v32 = vadd.f32 %v1836_v35, %v1748_v14  ;;  %v2585_v20 = vmax.f32 %v2013_v26, 0.0 }
 0x382   :  { %v2592_v11 = vmax.f32 %v1837_v32, 0.0 }
 0x383   :  { %v1925_v19 = vpop.f32.mrf.mxu2 }
 0x384   :  { %v6343_v36 = vpack.c.bf16 %v2592_v11, %v2584_v33  ;;  %v1926_v46 = vadd.f32 %v1925_v19, %v6192_v29 }
 0x385   :  { %v2014_v37 = vpop.f32.mrf.mxu3  ;;  %v1750_v8 = vpop.f32.mrf.mxu0 }
 0x386   :  { %v1751_v47 = vadd.f32 %v1750_v8, %v6182_v30  ;;  %v2015_v4 = vadd.f32 %v2014_v37, %v1926_v46 }
 0x387   :  { %v1839_v6 = vpop.f32.mrf.mxu1 }
 0x388   :  { %v1840_v9 = vadd.f32 %v1839_v6, %v1751_v47  ;;  %2065 = vmatmul.bf16.gmra.mxu0 %v5736_v52  ;;  %v2593_v2 = vmax.f32 %v2015_v4, 0.0  ;;  %2243 = vmatmul.bf16.gmra.mxu2 %v5736_v52 }
 0x38a   :  { %2154 = vmatmul.bf16.gmra.mxu1 %v5738_v53  ;;  %2332 = vmatmul.bf16.gmra.mxu3 %v5738_v53  ;;  %v6351_v57 = vpack.c.bf16 %v2593_v2, %v2585_v20  ;;  %v2600_v26 = vmax.f32 %v1840_v9, 0.0  ;;  %v5323_v9 = vld [vmem:[#allocation8 + $0x98] sm:$0xff] }
 0x38b   :  { %v1928_v45 = vpop.f32.mrf.mxu2  ;;  %3470 = vmatpush.bf16.msra.mxu2 %v5323_v9 }
 0x38c   :  { %7419 = vst [vmem:[#allocation84_spill] sm:$0xff] %v6351_v57  ;;  %v1929_v14 = vadd.f32 %v1928_v45, %v6192_v29  ;;  %v7485_v57 = vld [vmem:[#allocation39_spill] sm:$0xff] }
 0x38d   :  { %v2017_v35 = vpop.f32.mrf.mxu3  ;;  %v1752_v32 = vpop.f32.mrf.mxu0 }
 0x38e   :  { %v1753_v27 = vadd.f32 %v1752_v32, %v6182_v30  ;;  %v2018_v11 = vadd.f32 %v2017_v35, %v1929_v14  ;;  %v5307_v14 = vld [vmem:[#allocation8 + $0x18] sm:$0xff] }
 0x38f   :  { %v1841_v33 = vpop.f32.mrf.mxu1  ;;  %v5331_v35 = vld [vmem:[#allocation8 + $0xd8] sm:$0xff]  ;;  %3292 = vmatpush.bf16.msra.mxu0 %v5307_v14 }
 0x390   :  { %v1842_v19 = vadd.f32 %v1841_v33, %v1753_v27  ;;  %v2601_v45 = vmax.f32 %v2018_v11, 0.0  ;;  %3559 = vmatpush.bf16.msra.mxu3 %v5331_v35 }
 0x392   :  { %v2608_v46 = vmax.f32 %v1842_v19, 0.0 }
 0x393   :  { %v1930_v37 = vpop.f32.mrf.mxu2 }
 0x394   :  { %v6355_v8 = vpack.c.bf16 %v2608_v46, %v2600_v26  ;;  %v1931_v52 = vadd.f32 %v1930_v37, %v6192_v29 }
 0x395   :  { %v2019_v53 = vpop.f32.mrf.mxu3  ;;  %v1755_v47 = vpop.f32.mrf.mxu0 }
 0x396   :  { %7420 = vst [vmem:[#allocation85_spill] sm:$0xff] %v6355_v8  ;;  %v1756_v6 = vadd.f32 %v1755_v47, %v6182_v30  ;;  %v2020_v20 = vadd.f32 %v2019_v53, %v1931_v52  ;;  %v5315_v53 = vld [vmem:[#allocation8 + $0x58] sm:$0xff]  ;;  %v7474_v8 = vld [vmem:[#allocation35_spill] sm:$0xff] }
 0x397   :  { %v1844_v4 = vpop.f32.mrf.mxu1  ;;  %3381 = vmatpush.bf16.msra.mxu1 %v5315_v53 }
 0x398   :  { %v1845_v2 = vadd.f32 %v1844_v4, %v1756_v6  ;;  %2070 = vmatmul.bf16.gmra.mxu0 %v5744_v58  ;;  %v2609_v32 = vmax.f32 %v2020_v20, 0.0  ;;  %2248 = vmatmul.bf16.gmra.mxu2 %v5744_v58 }
 0x39a   :  { %2159 = vmatmul.bf16.gmra.mxu1 %v5746_v59  ;;  %2337 = vmatmul.bf16.gmra.mxu3 %v5746_v59  ;;  %v6363_v27 = vpack.c.bf16 %v2609_v32, %v2601_v45  ;;  %v2616_v59 = vmax.f32 %v1845_v2, 0.0 }
 0x39b   :  { %v1933_v33 = vpop.f32.mrf.mxu2 }
 0x39c   :  { %7421 = vst [vmem:[#allocation86_spill] sm:$0xff] %v6363_v27  ;;  %v1934_v19 = vadd.f32 %v1933_v33, %v6192_v29 }
 0x39d   :  { %v2022_v26 = vpop.f32.mrf.mxu3  ;;  %v1757_v46 = vpop.f32.mrf.mxu0 }
 0x39e   :  { %v1758_v11 = vadd.f32 %v1757_v46, %v6182_v30  ;;  %v2023_v52 = vadd.f32 %v2022_v26, %v1934_v19 }
 0x39f   :  { %v1846_v37 = vpop.f32.mrf.mxu1 }
 0x3a0   :  { %v1847_v58 = vadd.f32 %v1846_v37, %v1758_v11  ;;  %v2617_v19 = vmax.f32 %v2023_v52, 0.0 }
 0x3a2   :  { %v2624_v47 = vmax.f32 %v1847_v58, 0.0 }
 0x3a3   :  { %v1935_v6 = vpop.f32.mrf.mxu2 }
 0x3a4   :  { %v6367_v4 = vpack.c.bf16 %v2624_v47, %v2616_v59  ;;  %v1936_v20 = vadd.f32 %v1935_v6, %v6192_v29 }
 0x3a5   :  { %v2024_v45 = vpop.f32.mrf.mxu3  ;;  %v1760_v32 = vpop.f32.mrf.mxu0 }
 0x3a6   :  { %7422 = vst [vmem:[#allocation87_spill] sm:$0xff] %v6367_v4  ;;  %v1761_v9 = vadd.f32 %v1760_v32, %v6182_v30  ;;  %v2025_v35 = vadd.f32 %v2024_v45, %v1936_v20  ;;  %v6380_v45 = vperm.slane %v6179_v31, 6  ;;  %v5512_v31 = vld [vmem:[#allocation7] sm:$0xff] }
 0x3a7   :  { %v1849_v14 = vpop.f32.mrf.mxu1 }
 0x3a8   :  { %v1850_v33 = vadd.f32 %v1849_v14, %v1761_v9  ;;  %2075 = vmatmul.bf16.gmra.mxu0 %v5752_v16  ;;  %v2625_v26 = vmax.f32 %v2025_v35, 0.0  ;;  %2253 = vmatmul.bf16.gmra.mxu2 %v5752_v16 }
 0x3aa   :  { %2164 = vmatmul.bf16.gmra.mxu1 %v5754_v17  ;;  %2342 = vmatmul.bf16.gmra.mxu3 %v5754_v17  ;;  %v6375_v2 = vpack.c.bf16 %v2625_v26, %v2617_v19  ;;  %v2632_v52 = vmax.f32 %v1850_v33, 0.0 }
 0x3ab   :  { %v1938_v46 = vpop.f32.mrf.mxu2 }
 0x3ac   :  { %7423 = vst [vmem:[#allocation88_spill] sm:$0xff] %v6375_v2  ;;  %v1939_v11 = vadd.f32 %v1938_v46, %v6192_v29  ;;  %v7445_v2 = vld [vmem:[#allocation23_spill] sm:$0xff] }
 0x3ad   :  { %v2027_v37 = vpop.f32.mrf.mxu3  ;;  %v1762_v58 = vpop.f32.mrf.mxu0 }
 0x3ae   :  { %v1763_v53 = vadd.f32 %v1762_v58, %v6182_v30  ;;  %v2028_v47 = vadd.f32 %v2027_v37, %v1939_v11  ;;  %v6389_v11 = vperm.slane %v5512_v31, 7  ;;  %v5306_v37 = vld [vmem:[#allocation8 + $0x10] sm:$0xff] }
 0x3af   :  { %v1851_v59 = vpop.f32.mrf.mxu1  ;;  %v5330_v58 = vld [vmem:[#allocation8 + $0xd0] sm:$0xff]  ;;  %3293 = vmatpush.bf16.msra.mxu0 %v5306_v37 }
 0x3b0   :  { %v1852_v6 = vadd.f32 %v1851_v59, %v1763_v53  ;;  %v2633_v46 = vmax.f32 %v2028_v47, 0.0  ;;  %3560 = vmatpush.bf16.msra.mxu3 %v5330_v58 }
 0x3b2   :  { %v2640_v20 = vmax.f32 %v1852_v6, 0.0 }
 0x3b3   :  { %v1940_v16 = vpop.f32.mrf.mxu2 }
 0x3b4   :  { %v6382_v32 = vpack.c.bf16 %v2640_v20, %v2632_v52  ;;  %v1941_v17 = vadd.f32 %v1940_v16, %v6192_v29  ;;  %v5322_v29 = vld [vmem:[#allocation8 + $0x90] sm:$0xff] }
 0x3b5   :  { %v2029_v9 = vpop.f32.mrf.mxu3  ;;  %v2041_v14 = vpop.f32.mrf.mxu0  ;;  %3471 = vmatpush.bf16.msra.mxu2 %v5322_v29 }
 0x3b6   :  { %7424 = vst [vmem:[#allocation89_spill] sm:$0xff] %v6382_v32  ;;  %v2042_v35 = vadd.f32 %v2041_v14, %v6380_v45  ;;  %v2030_v26 = vadd.f32 %v2029_v9, %v1941_v17  ;;  %v5314_v9 = vld [vmem:[#allocation8 + $0x50] sm:$0xff] }
 0x3b7   :  { %v2130_v19 = vpop.f32.mrf.mxu1  ;;  %3382 = vmatpush.bf16.msra.mxu1 %v5314_v9 }
 0x3b8   :  { %v2131_v30 = vadd.f32 %v2130_v19, %v2042_v35  ;;  %2080 = vmatmul.bf16.gmra.mxu0 %v5762_v24  ;;  %v2641_v33 = vmax.f32 %v2030_v26, 0.0  ;;  %2258 = vmatmul.bf16.gmra.mxu2 %v5762_v24 }
 0x3ba   :  { %2169 = vmatmul.bf16.gmra.mxu1 %v5764_v28  ;;  %2347 = vmatmul.bf16.gmra.mxu3 %v5764_v28  ;;  %v6392_v53 = vpack.c.bf16 %v2641_v33, %v2633_v46  ;;  %v2394_v28 = vmax.f32 %v2131_v30, 0.0 }
 0x3bb   :  { %v2219_v59 = vpop.f32.mrf.mxu2 }
 0x3bc   :  { %7425 = vst [vmem:[#allocation90_spill] sm:$0xff] %v6392_v53  ;;  %v2220_v47 = vadd.f32 %v2219_v59, %v6389_v11 }
 0x3bd   :  { %v2308_v6 = vpop.f32.mrf.mxu3  ;;  %v2043_v52 = vpop.f32.mrf.mxu0 }
 0x3be   :  { %v2044_v24 = vadd.f32 %v2043_v52, %v6380_v45  ;;  %v2309_v16 = vadd.f32 %v2308_v6, %v2220_v47 }
 0x3bf   :  { %v2132_v20 = vpop.f32.mrf.mxu1 }
 0x3c0   :  { %v2133_v17 = vadd.f32 %v2132_v20, %v2044_v24  ;;  %v2395_v59 = vmax.f32 %v2309_v16, 0.0 }
 0x3c2   :  { %v2402_v14 = vmax.f32 %v2133_v17, 0.0 }
 0x3c3   :  { %v2221_v19 = vpop.f32.mrf.mxu2 }
 0x3c4   :  { %v6396_v35 = vpack.c.bf16 %v2402_v14, %v2394_v28  ;;  %v2222_v26 = vadd.f32 %v2221_v19, %v6389_v11 }
 0x3c5   :  { %v2310_v46 = vpop.f32.mrf.mxu3  ;;  %v2046_v33 = vpop.f32.mrf.mxu0 }
 0x3c6   :  { %v2047_v31 = vadd.f32 %v2046_v33, %v6380_v45  ;;  %v2311_v37 = vadd.f32 %v2310_v46, %v2222_v26 }
 0x3c7   :  { %v2135_v29 = vpop.f32.mrf.mxu1 }
 0x3c8   :  { %v2136_v58 = vadd.f32 %v2135_v29, %v2047_v31  ;;  %2085 = vmatmul.bf16.gmra.mxu0 %v5777_v7  ;;  %v2403_v47 = vmax.f32 %v2311_v37, 0.0  ;;  %2263 = vmatmul.bf16.gmra.mxu2 %v5777_v7 }
 0x3ca   :  { %2174 = vmatmul.bf16.gmra.mxu1 %v5780_v13  ;;  %2352 = vmatmul.bf16.gmra.mxu3 %v5780_v13  ;;  %v6404_v30 = vpack.c.bf16 %v2403_v47, %v2395_v59  ;;  %v2410_v16 = vmax.f32 %v2136_v58, 0.0  ;;  %v5321_v58 = vld [vmem:[#allocation8 + $0x88] sm:$0xff] }
 0x3cb   :  { %v2224_v6 = vpop.f32.mrf.mxu2  ;;  %3472 = vmatpush.bf16.msra.mxu2 %v5321_v58 }
 0x3cc   :  { %v2225_v52 = vadd.f32 %v2224_v6, %v6389_v11 }
 0x3cd   :  { %v2313_v24 = vpop.f32.mrf.mxu3  ;;  %v2048_v20 = vpop.f32.mrf.mxu0 }
 0x3ce   :  { %v2049_v17 = vadd.f32 %v2048_v20, %v6380_v45  ;;  %v2314_v28 = vadd.f32 %v2313_v24, %v2225_v52  ;;  %v5305_v52 = vld [vmem:[#allocation8 + $0x8] sm:$0xff] }
 0x3cf   :  { %v2137_v9 = vpop.f32.mrf.mxu1  ;;  %v5329_v24 = vld [vmem:[#allocation8 + $0xc8] sm:$0xff]  ;;  %3294 = vmatpush.bf16.msra.mxu0 %v5305_v52 }
 0x3d0   :  { %v2138_v14 = vadd.f32 %v2137_v9, %v2049_v17  ;;  %v2411_v47 = vmax.f32 %v2314_v28, 0.0  ;;  %3561 = vmatpush.bf16.msra.mxu3 %v5329_v24 }
 0x3d2   :  { %v2418_v19 = vmax.f32 %v2138_v14, 0.0 }
 0x3d3   :  { %v2226_v26 = vpop.f32.mrf.mxu2 }
 0x3d4   :  { %v6408_v46 = vpack.c.bf16 %v2418_v19, %v2410_v16  ;;  %v2227_v7 = vadd.f32 %v2226_v26, %v6389_v11 }
 0x3d5   :  { %v2315_v13 = vpop.f32.mrf.mxu3  ;;  %v2051_v33 = vpop.f32.mrf.mxu0 }
 0x3d6   :  { %v2052_v31 = vadd.f32 %v2051_v33, %v6380_v45  ;;  %v2316_v37 = vadd.f32 %v2315_v13, %v2227_v7  ;;  %v5313_v7 = vld [vmem:[#allocation8 + $0x48] sm:$0xff] }
 0x3d7   :  { %v2140_v29 = vpop.f32.mrf.mxu1  ;;  %3383 = vmatpush.bf16.msra.mxu1 %v5313_v7 }
 0x3d8   :  { %v2141_v59 = vadd.f32 %v2140_v29, %v2052_v31  ;;  %2090 = vmatmul.bf16.gmra.mxu0 %v5791_v48  ;;  %v2419_v6 = vmax.f32 %v2316_v37, 0.0  ;;  %2268 = vmatmul.bf16.gmra.mxu2 %v5791_v48 }
 0x3da   :  { %2179 = vmatmul.bf16.gmra.mxu1 %v5796_v55  ;;  %2357 = vmatmul.bf16.gmra.mxu3 %v5796_v55  ;;  %v6416_v20 = vpack.c.bf16 %v2419_v6, %v2411_v47  ;;  %v2426_v55 = vmax.f32 %v2141_v59, 0.0 }
 0x3db   :  { %v2229_v17 = vpop.f32.mrf.mxu2 }
 0x3dc   :  { %v2230_v9 = vadd.f32 %v2229_v17, %v6389_v11 }
 0x3dd   :  { %v2318_v14 = vpop.f32.mrf.mxu3  ;;  %v2053_v16 = vpop.f32.mrf.mxu0 }
 0x3de   :  { %v2054_v28 = vadd.f32 %v2053_v16, %v6380_v45  ;;  %v2319_v26 = vadd.f32 %v2318_v14, %v2230_v9 }
 0x3df   :  { %v2142_v19 = vpop.f32.mrf.mxu1 }
 0x3e0   :  { %v2143_v48 = vadd.f32 %v2142_v19, %v2054_v28  ;;  %v2427_v17 = vmax.f32 %v2319_v26, 0.0 }
 0x3e2   :  { %v2434_v13 = vmax.f32 %v2143_v48, 0.0 }
 0x3e3   :  { %v2231_v33 = vpop.f32.mrf.mxu2 }
 0x3e4   :  { %v6420_v31 = vpack.c.bf16 %v2434_v13, %v2426_v55  ;;  %v2232_v29 = vadd.f32 %v2231_v33, %v6389_v11 }
 0x3e5   :  { %v2320_v37 = vpop.f32.mrf.mxu3  ;;  %v2056_v47 = vpop.f32.mrf.mxu0 }
 0x3e6   :  { %v2057_v6 = vadd.f32 %v2056_v47, %v6380_v45  ;;  %v2321_v52 = vadd.f32 %v2320_v37, %v2232_v29 }
 0x3e7   :  { %v2145_v58 = vpop.f32.mrf.mxu1 }
 0x3e8   :  { %v2146_v24 = vadd.f32 %v2145_v58, %v2057_v6  ;;  %2095 = vmatmul.bf16.gmra.mxu0 %v5807_v50  ;;  %v2435_v9 = vmax.f32 %v2321_v52, 0.0  ;;  %2273 = vmatmul.bf16.gmra.mxu2 %v5807_v50 }
 0x3ea   :  { %2184 = vmatmul.bf16.gmra.mxu1 %v5812_v60  ;;  %2362 = vmatmul.bf16.gmra.mxu3 %v5812_v60  ;;  %v6428_v59 = vpack.c.bf16 %v2435_v9, %v2427_v17  ;;  %v2442_v26 = vmax.f32 %v2146_v24, 0.0  ;;  %v5320_v24 = vld [vmem:[#allocation8 + $0x80] sm:$0xff] }
 0x3eb   :  { %v2234_v14 = vpop.f32.mrf.mxu2  ;;  %3473 = vmatpush.bf16.msra.mxu2 %v5320_v24 }
 0x3ec   :  { %v2235_v16 = vadd.f32 %v2234_v14, %v6389_v11 }
 0x3ed   :  { %v2323_v28 = vpop.f32.mrf.mxu3  ;;  %v2058_v19 = vpop.f32.mrf.mxu0 }
 0x3ee   :  { %v2059_v48 = vadd.f32 %v2058_v19, %v6380_v45  ;;  %v2324_v55 = vadd.f32 %v2323_v28, %v2235_v16  ;;  %v5304_v16 = vld [vmem:[#allocation8] sm:$0xff] }
 0x3ef   :  { %v2147_v7 = vpop.f32.mrf.mxu1  ;;  %v5328_v28 = vld [vmem:[#allocation8 + $0xc0] sm:$0xff]  ;;  %3295 = vmatpush.bf16.msra.mxu0 %v5304_v16 }
 0x3f0   :  { %v2148_v13 = vadd.f32 %v2147_v7, %v2059_v48  ;;  %v2443_v9 = vmax.f32 %v2324_v55, 0.0  ;;  %3562 = vmatpush.bf16.msra.mxu3 %v5328_v28 }
 0x3f2   :  { %v2450_v33 = vmax.f32 %v2148_v13, 0.0 }
 0x3f3   :  { %v2236_v29 = vpop.f32.mrf.mxu2 }
 0x3f4   :  { %v6432_v37 = vpack.c.bf16 %v2450_v33, %v2442_v26  ;;  %v2237_v50 = vadd.f32 %v2236_v29, %v6389_v11 }
 0x3f5   :  { %v2325_v60 = vpop.f32.mrf.mxu3  ;;  %v2061_v47 = vpop.f32.mrf.mxu0 }
 0x3f6   :  { %v2062_v6 = vadd.f32 %v2061_v47, %v6380_v45  ;;  %v2326_v52 = vadd.f32 %v2325_v60, %v2237_v50  ;;  %v5312_v50 = vld [vmem:[#allocation8 + $0x40] sm:$0xff] }
 0x3f7   :  { %v2150_v58 = vpop.f32.mrf.mxu1  ;;  %3384 = vmatpush.bf16.msra.mxu1 %v5312_v50 }
 0x3f8   :  { %v2151_v17 = vadd.f32 %v2150_v58, %v2062_v6  ;;  %2100 = vmatmul.bf16.gmra.mxu0 %v5823_v38  ;;  %v2451_v14 = vmax.f32 %v2326_v52, 0.0  ;;  %2278 = vmatmul.bf16.gmra.mxu2 %v5823_v38 }
 0x3fa   :  { %2189 = vmatmul.bf16.gmra.mxu1 %v5828_v44  ;;  %2367 = vmatmul.bf16.gmra.mxu3 %v5828_v44  ;;  %v6440_v19 = vpack.c.bf16 %v2451_v14, %v2443_v9  ;;  %v2458_v44 = vmax.f32 %v2151_v17, 0.0 }
 0x3fb   :  { %v2239_v48 = vpop.f32.mrf.mxu2 }
 0x3fc   :  { %v2240_v7 = vadd.f32 %v2239_v48, %v6389_v11 }
 0x3fd   :  { %v2328_v13 = vpop.f32.mrf.mxu3  ;;  %v2063_v26 = vpop.f32.mrf.mxu0 }
 0x3fe   :  { %v2064_v55 = vadd.f32 %v2063_v26, %v6380_v45  ;;  %v2329_v29 = vadd.f32 %v2328_v13, %v2240_v7 }
 0x3ff   :  { %v2152_v33 = vpop.f32.mrf.mxu1 }
 0x400   :  { %v2153_v38 = vadd.f32 %v2152_v33, %v2064_v55  ;;  %v2459_v48 = vmax.f32 %v2329_v29, 0.0 }
 0x402   :  { %v2466_v60 = vmax.f32 %v2153_v38, 0.0 }
 0x403   :  { %v2241_v47 = vpop.f32.mrf.mxu2 }
 0x404   :  { %v6444_v6 = vpack.c.bf16 %v2466_v60, %v2458_v44  ;;  %v2242_v58 = vadd.f32 %v2241_v47, %v6389_v11 }
 0x405   :  { %v2330_v52 = vpop.f32.mrf.mxu3  ;;  %v2066_v9 = vpop.f32.mrf.mxu0 }
 0x406   :  { %v2067_v14 = vadd.f32 %v2066_v9, %v6380_v45  ;;  %v2331_v16 = vadd.f32 %v2330_v52, %v2242_v58 }
 0x407   :  { %v2155_v24 = vpop.f32.mrf.mxu1 }
 0x408   :  { %v2156_v28 = vadd.f32 %v2155_v24, %v2067_v14  ;;  %2105 = vmatmul.bf16.gmra.mxu0 %v5839_v63  ;;  %v2467_v7 = vmax.f32 %v2331_v16, 0.0  ;;  %2283 = vmatmul.bf16.gmra.mxu2 %v5839_v63 }
 0x40a   :  { %2194 = vmatmul.bf16.gmra.mxu1 %v5844_v10  ;;  %2372 = vmatmul.bf16.gmra.mxu3 %v5844_v10  ;;  %v6452_v17 = vpack.c.bf16 %v2467_v7, %v2459_v48  ;;  %v2474_v29 = vmax.f32 %v2156_v28, 0.0  ;;  %v5359_v28 = vld [vmem:[#allocation8 + $0x1b8] sm:$0xff] }
 0x40b   :  { %v2244_v13 = vpop.f32.mrf.mxu2  ;;  %3822 = vmatpush.bf16.msrb.mxu2 %v5359_v28 }
 0x40c   :  { %v2245_v26 = vadd.f32 %v2244_v13, %v6389_v11 }
 0x40d   :  { %v2333_v55 = vpop.f32.mrf.mxu3  ;;  %v2068_v33 = vpop.f32.mrf.mxu0 }
 0x40e   :  { %v2069_v38 = vadd.f32 %v2068_v33, %v6380_v45  ;;  %v2334_v44 = vadd.f32 %v2333_v55, %v2245_v26  ;;  %v5343_v26 = vld [vmem:[#allocation8 + $0x138] sm:$0xff] }
 0x40f   :  { %v2157_v50 = vpop.f32.mrf.mxu1  ;;  %v5367_v55 = vld [vmem:[#allocation8 + $0x1f8] sm:$0xff]  ;;  %3644 = vmatpush.bf16.msrb.mxu0 %v5343_v26 }
 0x410   :  { %v2158_v60 = vadd.f32 %v2157_v50, %v2069_v38  ;;  %v2475_v7 = vmax.f32 %v2334_v44, 0.0  ;;  %3911 = vmatpush.bf16.msrb.mxu3 %v5367_v55 }
 0x412   :  { %v2482_v47 = vmax.f32 %v2158_v60, 0.0 }
 0x413   :  { %v2246_v58 = vpop.f32.mrf.mxu2 }
 0x414   :  { %v6456_v52 = vpack.c.bf16 %v2482_v47, %v2474_v29  ;;  %v2247_v63 = vadd.f32 %v2246_v58, %v6389_v11 }
 0x415   :  { %v2335_v10 = vpop.f32.mrf.mxu3  ;;  %v2071_v9 = vpop.f32.mrf.mxu0 }
 0x416   :  { %v2072_v14 = vadd.f32 %v2071_v9, %v6380_v45  ;;  %v2336_v16 = vadd.f32 %v2335_v10, %v2247_v63  ;;  %v5351_v63 = vld [vmem:[#allocation8 + $0x178] sm:$0xff] }
 0x417   :  { %v2160_v24 = vpop.f32.mrf.mxu1  ;;  %3733 = vmatpush.bf16.msrb.mxu1 %v5351_v63 }
 0x418   :  { %v2161_v48 = vadd.f32 %v2160_v24, %v2072_v14  ;;  %2110 = vmatmul.bf16.gmra.mxu0 %v5855_v0  ;;  %v2483_v13 = vmax.f32 %v2336_v16, 0.0  ;;  %2288 = vmatmul.bf16.gmra.mxu2 %v5855_v0 }
 0x41a   :  { %2199 = vmatmul.bf16.gmra.mxu1 %v5860_v56  ;;  %2377 = vmatmul.bf16.gmra.mxu3 %v5860_v56  ;;  %v6464_v33 = vpack.c.bf16 %v2483_v13, %v2475_v7  ;;  %v2490_v56 = vmax.f32 %v2161_v48, 0.0 }
 0x41b   :  { %v2249_v38 = vpop.f32.mrf.mxu2 }
 0x41c   :  { %v2250_v50 = vadd.f32 %v2249_v38, %v6389_v11 }
 0x41d   :  { %v2338_v60 = vpop.f32.mrf.mxu3  ;;  %v2073_v29 = vpop.f32.mrf.mxu0 }
 0x41e   :  { %v2074_v44 = vadd.f32 %v2073_v29, %v6380_v45  ;;  %v2339_v58 = vadd.f32 %v2338_v60, %v2250_v50 }
 0x41f   :  { %v2162_v47 = vpop.f32.mrf.mxu1 }
 0x420   :  { %v2163_v0 = vadd.f32 %v2162_v47, %v2074_v44  ;;  %v2491_v38 = vmax.f32 %v2339_v58, 0.0 }
 0x422   :  { %v2498_v10 = vmax.f32 %v2163_v0, 0.0 }
 0x423   :  { %v2251_v9 = vpop.f32.mrf.mxu2 }
 0x424   :  { %v6468_v14 = vpack.c.bf16 %v2498_v10, %v2490_v56  ;;  %v2252_v24 = vadd.f32 %v2251_v9, %v6389_v11 }
 0x425   :  { %v2340_v16 = vpop.f32.mrf.mxu3  ;;  %v2076_v7 = vpop.f32.mrf.mxu0 }
 0x426   :  { %v2077_v13 = vadd.f32 %v2076_v7, %v6380_v45  ;;  %v2341_v26 = vadd.f32 %v2340_v16, %v2252_v24 }
 0x427   :  { %v2165_v28 = vpop.f32.mrf.mxu1 }
 0x428   :  { %v2166_v55 = vadd.f32 %v2165_v28, %v2077_v13  ;;  %2115 = vmatmul.bf16.gmra.mxu0 %v5871_v61  ;;  %v2499_v50 = vmax.f32 %v2341_v26, 0.0  ;;  %2293 = vmatmul.bf16.gmra.mxu2 %v5871_v61 }
 0x42a   :  { %2204 = vmatmul.bf16.gmra.mxu1 %v5876_v40  ;;  %2382 = vmatmul.bf16.gmra.mxu3 %v5876_v40  ;;  %v6476_v48 = vpack.c.bf16 %v2499_v50, %v2491_v38  ;;  %v2506_v58 = vmax.f32 %v2166_v55, 0.0  ;;  %v5358_v55 = vld [vmem:[#allocation8 + $0x1b0] sm:$0xff] }
 0x42b   :  { %v2254_v60 = vpop.f32.mrf.mxu2  ;;  %3823 = vmatpush.bf16.msrb.mxu2 %v5358_v55 }
 0x42c   :  { %v2255_v29 = vadd.f32 %v2254_v60, %v6389_v11 }
 0x42d   :  { %v2343_v44 = vpop.f32.mrf.mxu3  ;;  %v2078_v47 = vpop.f32.mrf.mxu0 }
 0x42e   :  { %v2079_v0 = vadd.f32 %v2078_v47, %v6380_v45  ;;  %v2344_v56 = vadd.f32 %v2343_v44, %v2255_v29  ;;  %v5342_v29 = vld [vmem:[#allocation8 + $0x130] sm:$0xff] }
 0x42f   :  { %v2167_v63 = vpop.f32.mrf.mxu1  ;;  %v5366_v44 = vld [vmem:[#allocation8 + $0x1f0] sm:$0xff]  ;;  %3645 = vmatpush.bf16.msrb.mxu0 %v5342_v29 }
 0x430   :  { %v2168_v10 = vadd.f32 %v2167_v63, %v2079_v0  ;;  %v2507_v50 = vmax.f32 %v2344_v56, 0.0  ;;  %3912 = vmatpush.bf16.msrb.mxu3 %v5366_v44 }
 0x432   :  { %v2514_v9 = vmax.f32 %v2168_v10, 0.0 }
 0x433   :  { %v2256_v24 = vpop.f32.mrf.mxu2 }
 0x434   :  { %v6480_v16 = vpack.c.bf16 %v2514_v9, %v2506_v58  ;;  %v2257_v61 = vadd.f32 %v2256_v24, %v6389_v11  ;;  %v5350_v9 = vld [vmem:[#allocation8 + $0x170] sm:$0xff] }
 0x435   :  { %v2345_v40 = vpop.f32.mrf.mxu3  ;;  %v2081_v7 = vpop.f32.mrf.mxu0  ;;  %3734 = vmatpush.bf16.msrb.mxu1 %v5350_v9 }
 0x436   :  { %v2082_v13 = vadd.f32 %v2081_v7, %v6380_v45  ;;  %v2346_v26 = vadd.f32 %v2345_v40, %v2257_v61 }
 0x437   :  { %v2170_v28 = vpop.f32.mrf.mxu1 }
 0x438   :  { %v2171_v38 = vadd.f32 %v2170_v28, %v2082_v13  ;;  %3296 = vmatmul.bf16.vlgmr.msra.gmra.mxu0 %v5775_v5  ;;  %v2515_v60 = vmax.f32 %v2346_v26, 0.0  ;;  %3474 = vmatmul.bf16.vlgmr.msra.gmra.mxu2 %v5999_v25 }
 0x43a   :  { %3385 = vmatmul.bf16.vlgmr.msra.gmra.mxu1 %v5787_v23  ;;  %3563 = vmatmul.bf16.vlgmr.msra.gmra.mxu3 %v6007_v42  ;;  %v6488_v47 = vpack.c.bf16 %v2515_v60, %v2507_v50  ;;  %v2522_v42 = vmax.f32 %v2171_v38, 0.0 }
 0x43b   :  { %v2259_v0 = vpop.f32.mrf.mxu2 }
 0x43c   :  { %v2260_v63 = vadd.f32 %v2259_v0, %v6389_v11 }
 0x43d   :  { %v2348_v10 = vpop.f32.mrf.mxu3  ;;  %v2083_v5 = vpop.f32.mrf.mxu0 }
 0x43e   :  { %v2084_v56 = vadd.f32 %v2083_v5, %v6380_v45  ;;  %v2349_v58 = vadd.f32 %v2348_v10, %v2260_v63 }
 0x43f   :  { %v2172_v23 = vpop.f32.mrf.mxu1 }
 0x440   :  { %v2173_v25 = vadd.f32 %v2172_v23, %v2084_v56  ;;  %v2523_v29 = vmax.f32 %v2349_v58, 0.0 }
 0x442   :  { %v2530_v24 = vmax.f32 %v2173_v25, 0.0 }
 0x443   :  { %v2261_v61 = vpop.f32.mrf.mxu2 }
 0x444   :  { %v6492_v40 = vpack.c.bf16 %v2530_v24, %v2522_v42  ;;  %v2262_v7 = vadd.f32 %v2261_v61, %v6389_v11 }
 0x445   :  { %v2350_v13 = vpop.f32.mrf.mxu3  ;;  %v2086_v28 = vpop.f32.mrf.mxu0 }
 0x446   :  { %v2087_v26 = vadd.f32 %v2086_v28, %v6380_v45  ;;  %v2351_v60 = vadd.f32 %v2350_v13, %v2262_v7 }
 0x447   :  { %v2175_v50 = vpop.f32.mrf.mxu1 }
 0x448   :  { %v2176_v55 = vadd.f32 %v2175_v50, %v2087_v26  ;;  %3301 = vmatmul.bf16.gmra.mxu0 %v5793_v49  ;;  %v2531_v44 = vmax.f32 %v2351_v60, 0.0  ;;  %3479 = vmatmul.bf16.gmra.mxu2 %v6011_v22  ;;  %v7426_v26 = vld [vmem:[#allocation15_spill] sm:$0xff] }
 0x44a   :  { %3390 = vmatmul.bf16.gmra.mxu1 %v5803_v12  ;;  %3568 = vmatmul.bf16.gmra.mxu3 %v6019_v15  ;;  %v6500_v38 = vpack.c.bf16 %v2531_v44, %v2523_v29  ;;  %v2538_v58 = vmax.f32 %v2176_v55, 0.0  ;;  %v7427_v29 = vld [vmem:[#allocation16_spill] sm:$0xff]  ;;  %v7428_v55 = vld [vmem:[#allocation43_spill] sm:$0xff] }
 0x44b   :  { %v2264_v0 = vpop.f32.mrf.mxu2  ;;  %v7429_v44 = vld [vmem:[#allocation44_spill] sm:$0xff] }
 0x44c   :  { %v2265_v63 = vadd.f32 %v2264_v0, %v6389_v11  ;;  %v5357_v0 = vld [vmem:[#allocation8 + $0x1a8] sm:$0xff] }
 0x44d   :  { %v2353_v10 = vpop.f32.mrf.mxu3  ;;  %v2088_v5 = vpop.f32.mrf.mxu0  ;;  %3824 = vmatpush.bf16.msrb.mxu2 %v5357_v0 }
 0x44e   :  { %v2089_v56 = vadd.f32 %v2088_v5, %v6380_v45  ;;  %v2354_v25 = vadd.f32 %v2353_v10, %v2265_v63  ;;  %v5341_v63 = vld [vmem:[#allocation8 + $0x128] sm:$0xff] }
 0x44f   :  { %v2177_v23 = vpop.f32.mrf.mxu1  ;;  %v5365_v10 = vld [vmem:[#allocation8 + $0x1e8] sm:$0xff]  ;;  %3646 = vmatpush.bf16.msrb.mxu0 %v5341_v63  ;;  %v7430_v63 = vld [vmem:[#allocation17_spill] sm:$0xff] }
 0x450   :  { %v2178_v49 = vadd.f32 %v2177_v23, %v2089_v56  ;;  %v2539_v50 = vmax.f32 %v2354_v25, 0.0  ;;  %3913 = vmatpush.bf16.msrb.mxu3 %v5365_v10 }
 0x452   :  { %v2546_v9 = vmax.f32 %v2178_v49, 0.0 }
 0x453   :  { %v2266_v42 = vpop.f32.mrf.mxu2 }
 0x454   :  { %v6504_v12 = vpack.c.bf16 %v2546_v9, %v2538_v58  ;;  %v2267_v22 = vadd.f32 %v2266_v42, %v6389_v11 }
 0x455   :  { %v2355_v15 = vpop.f32.mrf.mxu3  ;;  %v2091_v24 = vpop.f32.mrf.mxu0 }
 0x456   :  { %v2092_v61 = vadd.f32 %v2091_v24, %v6380_v45  ;;  %v2356_v13 = vadd.f32 %v2355_v15, %v2267_v22  ;;  %v5349_v15 = vld [vmem:[#allocation8 + $0x168] sm:$0xff] }
 0x457   :  { %v2180_v7 = vpop.f32.mrf.mxu1  ;;  %3735 = vmatpush.bf16.msrb.mxu1 %v5349_v15 }
 0x458   :  { %v2181_v28 = vadd.f32 %v2180_v7, %v2092_v61  ;;  %3306 = vmatmul.bf16.gmra.mxu0 %v7426_v26  ;;  %v2547_v60 = vmax.f32 %v2356_v13, 0.0  ;;  %3484 = vmatmul.bf16.gmra.mxu2 %v7428_v55 }
 0x45a   :  { %3395 = vmatmul.bf16.gmra.mxu1 %v7427_v29  ;;  %3573 = vmatmul.bf16.gmra.mxu3 %v7429_v44  ;;  %v6512_v5 = vpack.c.bf16 %v2547_v60, %v2539_v50  ;;  %v2554_v24 = vmax.f32 %v2181_v28, 0.0  ;;  %v7432_v28 = vld [vmem:[#allocation45_spill] sm:$0xff] }
 0x45b   :  { %v2269_v56 = vpop.f32.mrf.mxu2 }
 0x45c   :  { %v2270_v23 = vadd.f32 %v2269_v56, %v6389_v11 }
 0x45d   :  { %v2358_v49 = vpop.f32.mrf.mxu3  ;;  %v2093_v58 = vpop.f32.mrf.mxu0 }
 0x45e   :  { %v2094_v25 = vadd.f32 %v2093_v58, %v6380_v45  ;;  %v2359_v42 = vadd.f32 %v2358_v49, %v2270_v23  ;;  %v7431_v23 = vld [vmem:[#allocation18_spill] sm:$0xff] }
 0x45f   :  { %v2182_v9 = vpop.f32.mrf.mxu1  ;;  %v7433_v49 = vld [vmem:[#allocation46_spill] sm:$0xff] }
 0x460   :  { %v2183_v22 = vadd.f32 %v2182_v9, %v2094_v25  ;;  %v2555_v10 = vmax.f32 %v2359_v42, 0.0 }
 0x462   :  { %v2562_v61 = vmax.f32 %v2183_v22, 0.0 }
 0x463   :  { %v2271_v7 = vpop.f32.mrf.mxu2 }
 0x464   :  { %v6516_v13 = vpack.c.bf16 %v2562_v61, %v2554_v24  ;;  %v2272_v26 = vadd.f32 %v2271_v7, %v6389_v11 }
 0x465   :  { %v2360_v50 = vpop.f32.mrf.mxu3  ;;  %v2096_v60 = vpop.f32.mrf.mxu0 }
 0x466   :  { %v2097_v29 = vadd.f32 %v2096_v60, %v6380_v45  ;;  %v2361_v44 = vadd.f32 %v2360_v50, %v2272_v26 }
 0x467   :  { %v2185_v55 = vpop.f32.mrf.mxu1 }
 0x468   :  { %v2186_v0 = vadd.f32 %v2185_v55, %v2097_v29  ;;  %3311 = vmatmul.bf16.gmra.mxu0 %v7430_v63  ;;  %v2563_v56 = vmax.f32 %v2361_v44, 0.0  ;;  %3489 = vmatmul.bf16.gmra.mxu2 %v7432_v28 }
 0x46a   :  { %3400 = vmatmul.bf16.gmra.mxu1 %v7431_v23  ;;  %3578 = vmatmul.bf16.gmra.mxu3 %v7433_v49  ;;  %v6524_v58 = vpack.c.bf16 %v2563_v56, %v2555_v10  ;;  %v2570_v42 = vmax.f32 %v2186_v0, 0.0  ;;  %v7434_v49 = vld [vmem:[#allocation19_spill] sm:$0xff] }
 0x46b   :  { %v2274_v25 = vpop.f32.mrf.mxu2  ;;  %v7436_v0 = vld [vmem:[#allocation47_spill] sm:$0xff] }
 0x46c   :  { %v2275_v9 = vadd.f32 %v2274_v25, %v6389_v11 }
 0x46d   :  { %v2363_v22 = vpop.f32.mrf.mxu3  ;;  %v2098_v15 = vpop.f32.mrf.mxu0 }
 0x46e   :  { %v2099_v24 = vadd.f32 %v2098_v15, %v6380_v45  ;;  %v2364_v7 = vadd.f32 %v2363_v22, %v2275_v9  ;;  %v7435_v9 = vld [vmem:[#allocation20_spill] sm:$0xff] }
 0x46f   :  { %v2187_v61 = vpop.f32.mrf.mxu1  ;;  %v7437_v22 = vld [vmem:[#allocation48_spill] sm:$0xff] }
 0x470   :  { %v2188_v26 = vadd.f32 %v2187_v61, %v2099_v24  ;;  %v2571_v25 = vmax.f32 %v2364_v7, 0.0  ;;  %v5356_v24 = vld [vmem:[#allocation8 + $0x1a0] sm:$0xff] }
 0x471   :  { %v5340_v61 = vld [vmem:[#allocation8 + $0x120] sm:$0xff]  ;;  %3825 = vmatpush.bf16.msrb.mxu2 %v5356_v24 }
 0x472   :  { %v2578_v50 = vmax.f32 %v2188_v26, 0.0  ;;  %v5364_v26 = vld [vmem:[#allocation8 + $0x1e0] sm:$0xff]  ;;  %3647 = vmatpush.bf16.msrb.mxu0 %v5340_v61 }
 0x473   :  { %v2276_v60 = vpop.f32.mrf.mxu2  ;;  %3914 = vmatpush.bf16.msrb.mxu3 %v5364_v26 }
 0x474   :  { %v6528_v29 = vpack.c.bf16 %v2578_v50, %v2570_v42  ;;  %v2277_v55 = vadd.f32 %v2276_v60, %v6389_v11 }
 0x475   :  { %v2365_v44 = vpop.f32.mrf.mxu3  ;;  %v2101_v63 = vpop.f32.mrf.mxu0 }
 0x476   :  { %v2102_v10 = vadd.f32 %v2101_v63, %v6380_v45  ;;  %v2366_v23 = vadd.f32 %v2365_v44, %v2277_v55 }
 0x477   :  { %v2190_v56 = vpop.f32.mrf.mxu1 }
 0x478   :  { %v2191_v28 = vadd.f32 %v2190_v56, %v2102_v10  ;;  %3316 = vmatmul.bf16.gmra.mxu0 %v7434_v49  ;;  %v2579_v15 = vmax.f32 %v2366_v23, 0.0  ;;  %3494 = vmatmul.bf16.gmra.mxu2 %v7436_v0  ;;  %v5348_v23 = vld [vmem:[#allocation8 + $0x160] sm:$0xff] }
 0x479   :  { %3736 = vmatpush.bf16.msrb.mxu1 %v5348_v23 }
 0x47a   :  { %3405 = vmatmul.bf16.gmra.mxu1 %v7435_v9  ;;  %3583 = vmatmul.bf16.gmra.mxu3 %v7437_v22  ;;  %v6536_v42 = vpack.c.bf16 %v2579_v15, %v2571_v25  ;;  %v2586_v49 = vmax.f32 %v2191_v28, 0.0  ;;  %v7441_v28 = vld [vmem:[#allocation49_spill] sm:$0xff] }
 0x47b   :  { %v2279_v50 = vpop.f32.mrf.mxu2 }
 0x47c   :  { %v2280_v60 = vadd.f32 %v2279_v50, %v6389_v11 }
 0x47d   :  { %v2368_v55 = vpop.f32.mrf.mxu3  ;;  %v2103_v44 = vpop.f32.mrf.mxu0 }
 0x47e   :  { %v2104_v7 = vadd.f32 %v2103_v44, %v6380_v45  ;;  %v2369_v10 = vadd.f32 %v2368_v55, %v2280_v60  ;;  %v7439_v44 = vld [vmem:[#allocation21_spill] sm:$0xff] }
 0x47f   :  { %v2192_v63 = vpop.f32.mrf.mxu1 }
 0x480   :  { %v2193_v56 = vadd.f32 %v2192_v63, %v2104_v7  ;;  %v2587_v60 = vmax.f32 %v2369_v10, 0.0  ;;  %v7440_v7 = vld [vmem:[#allocation22_spill] sm:$0xff] }
 0x481   :  { %v7442_v63 = vld [vmem:[#allocation50_spill] sm:$0xff] }
 0x482   :  { %v2594_v9 = vmax.f32 %v2193_v56, 0.0 }
 0x483   :  { %v2281_v0 = vpop.f32.mrf.mxu2 }
 0x484   :  { %v6540_v25 = vpack.c.bf16 %v2594_v9, %v2586_v49  ;;  %v2282_v15 = vadd.f32 %v2281_v0, %v6389_v11 }
 0x485   :  { %v2370_v22 = vpop.f32.mrf.mxu3  ;;  %v2106_v24 = vpop.f32.mrf.mxu0 }
 0x486   :  { %7438 = vst [vmem:[#allocation15_spill] sm:$0xff] %v6540_v25  ;;  %v2107_v61 = vadd.f32 %v2106_v24, %v6380_v45  ;;  %v2371_v26 = vadd.f32 %v2370_v22, %v2282_v15 }
 0x487   :  { %v2195_v50 = vpop.f32.mrf.mxu1 }
 0x488   :  { %v2196_v53 = vadd.f32 %v2195_v50, %v2107_v61  ;;  %3321 = vmatmul.bf16.gmra.mxu0 %v7439_v44  ;;  %v2595_v55 = vmax.f32 %v2371_v26, 0.0  ;;  %3499 = vmatmul.bf16.gmra.mxu2 %v7441_v28 }
 0x48a   :  { %3410 = vmatmul.bf16.gmra.mxu1 %v7440_v7  ;;  %3588 = vmatmul.bf16.gmra.mxu3 %v7442_v63  ;;  %v6548_v56 = vpack.c.bf16 %v2595_v55, %v2587_v60  ;;  %v2602_v10 = vmax.f32 %v2196_v53, 0.0  ;;  %v7447_v53 = vld [vmem:[#allocation51_spill] sm:$0xff] }
 0x48b   :  { %v2284_v23 = vpop.f32.mrf.mxu2 }
 0x48c   :  { %7443 = vst [vmem:[#allocation16_spill] sm:$0xff] %v6548_v56  ;;  %v2285_v49 = vadd.f32 %v2284_v23, %v6389_v11 }
 0x48d   :  { %v2373_v9 = vpop.f32.mrf.mxu3  ;;  %v2108_v0 = vpop.f32.mrf.mxu0 }
 0x48e   :  { %v2109_v15 = vadd.f32 %v2108_v0, %v6380_v45  ;;  %v2374_v24 = vadd.f32 %v2373_v9, %v2285_v49  ;;  %v7446_v49 = vld [vmem:[#allocation24_spill] sm:$0xff] }
 0x48f   :  { %v2197_v22 = vpop.f32.mrf.mxu1  ;;  %v7448_v9 = vld [vmem:[#allocation52_spill] sm:$0xff] }
 0x490   :  { %v2198_v61 = vadd.f32 %v2197_v22, %v2109_v15  ;;  %v2603_v0 = vmax.f32 %v2374_v24, 0.0  ;;  %v5355_v15 = vld [vmem:[#allocation8 + $0x198] sm:$0xff] }
 0x491   :  { %v5339_v22 = vld [vmem:[#allocation8 + $0x118] sm:$0xff]  ;;  %3826 = vmatpush.bf16.msrb.mxu2 %v5355_v15 }
 0x492   :  { %v2610_v50 = vmax.f32 %v2198_v61, 0.0  ;;  %v5363_v61 = vld [vmem:[#allocation8 + $0x1d8] sm:$0xff]  ;;  %3648 = vmatpush.bf16.msrb.mxu0 %v5339_v22 }
 0x493   :  { %v2286_v26 = vpop.f32.mrf.mxu2  ;;  %3915 = vmatpush.bf16.msrb.mxu3 %v5363_v61 }
 0x494   :  { %v6552_v44 = vpack.c.bf16 %v2610_v50, %v2602_v10  ;;  %v2287_v7 = vadd.f32 %v2286_v26, %v6389_v11 }
 0x495   :  { %v2375_v28 = vpop.f32.mrf.mxu3  ;;  %v2111_v60 = vpop.f32.mrf.mxu0 }
 0x496   :  { %7444 = vst [vmem:[#allocation43_spill] sm:$0xff] %v6552_v44  ;;  %v2112_v55 = vadd.f32 %v2111_v60, %v6380_v45  ;;  %v2376_v23 = vadd.f32 %v2375_v28, %v2287_v7 }
 0x497   :  { %v2200_v63 = vpop.f32.mrf.mxu1 }
 0x498   :  { %v2201_v32 = vadd.f32 %v2200_v63, %v2112_v55  ;;  %3326 = vmatmul.bf16.gmra.mxu0 %v7445_v2  ;;  %v2611_v4 = vmax.f32 %v2376_v23, 0.0  ;;  %3504 = vmatmul.bf16.gmra.mxu2 %v7447_v53  ;;  %v5347_v55 = vld [vmem:[#allocation8 + $0x158] sm:$0xff] }
 0x499   :  { %3737 = vmatpush.bf16.msrb.mxu1 %v5347_v55 }
 0x49a   :  { %3415 = vmatmul.bf16.gmra.mxu1 %v7446_v49  ;;  %3593 = vmatmul.bf16.gmra.mxu3 %v7448_v9  ;;  %v6560_v10 = vpack.c.bf16 %v2611_v4, %v2603_v0  ;;  %v2618_v23 = vmax.f32 %v2201_v32, 0.0  ;;  %v7453_v32 = vld [vmem:[#allocation53_spill] sm:$0xff] }
 0x49b   :  { %v2289_v50 = vpop.f32.mrf.mxu2 }
 0x49c   :  { %7449 = vst [vmem:[#allocation44_spill] sm:$0xff] %v6560_v10  ;;  %v2290_v26 = vadd.f32 %v2289_v50, %v6389_v11 }
 0x49d   :  { %v2378_v7 = vpop.f32.mrf.mxu3  ;;  %v2113_v2 = vpop.f32.mrf.mxu0 }
 0x49e   :  { %v2114_v24 = vadd.f32 %v2113_v2, %v6380_v45  ;;  %v2379_v60 = vadd.f32 %v2378_v7, %v2290_v26  ;;  %v7451_v2 = vld [vmem:[#allocation25_spill] sm:$0xff] }
 0x49f   :  { %v2202_v28 = vpop.f32.mrf.mxu1 }
 0x4a0   :  { %v2203_v63 = vadd.f32 %v2202_v28, %v2114_v24  ;;  %v2619_v26 = vmax.f32 %v2379_v60, 0.0  ;;  %v7452_v24 = vld [vmem:[#allocation26_spill] sm:$0xff] }
 0x4a1   :  { %v7454_v28 = vld [vmem:[#allocation54_spill] sm:$0xff] }
 0x4a2   :  { %v2626_v49 = vmax.f32 %v2203_v63, 0.0 }
 0x4a3   :  { %v2291_v53 = vpop.f32.mrf.mxu2 }
 0x4a4   :  { %v6564_v4 = vpack.c.bf16 %v2626_v49, %v2618_v23  ;;  %v2292_v0 = vadd.f32 %v2291_v53, %v6389_v11 }
 0x4a5   :  { %v2380_v9 = vpop.f32.mrf.mxu3  ;;  %v2116_v15 = vpop.f32.mrf.mxu0 }
 0x4a6   :  { %7450 = vst [vmem:[#allocation17_spill] sm:$0xff] %v6564_v4  ;;  %v2117_v22 = vadd.f32 %v2116_v15, %v6380_v45  ;;  %v2381_v61 = vadd.f32 %v2380_v9, %v2292_v0 }
 0x4a7   :  { %v2205_v50 = vpop.f32.mrf.mxu1 }
 0x4a8   :  { %v2206_v10 = vadd.f32 %v2205_v50, %v2117_v22  ;;  %3331 = vmatmul.bf16.gmra.mxu0 %v7451_v2  ;;  %v2627_v7 = vmax.f32 %v2381_v61, 0.0  ;;  %3509 = vmatmul.bf16.gmra.mxu2 %v7453_v32  ;;  %v6579_v61 = vld [vmem:[%s7332_s4] ss:$0 sm:$0xff]  ;;  %s5651_s4 = smov [#allocation10]  }
 0x4a9   :  { %s4391_s17 = sshll.u32 %s5651_s4, 4  ;;  %s4392_s17 = int_to_ptr.vmem [resolvable:$true] %s4391_s17 }
 0x4aa   :  { %3420 = vmatmul.bf16.gmra.mxu1 %v7452_v24  ;;  %3598 = vmatmul.bf16.gmra.mxu3 %v7454_v28  ;;  %v6572_v55 = vpack.c.bf16 %v2627_v7, %v2619_v26  ;;  %v2634_v60 = vmax.f32 %v2206_v10, 0.0 }
 0x4ab   :  { %v2294_v63 = vpop.f32.mrf.mxu2 }
 0x4ac   :  { %7455 = vst [vmem:[#allocation18_spill] sm:$0xff] %v6572_v55  ;;  %v2295_v23 = vadd.f32 %v2294_v63, %v6389_v11  ;;  %v7466_v55 = vld [vmem:[#allocation31_spill] sm:$0xff] }
 0x4ad   :  { %v2383_v49 = vpop.f32.mrf.mxu3  ;;  %v2118_v53 = vpop.f32.mrf.mxu0 }
 0x4ae   :  { %v2119_v0 = vadd.f32 %v2118_v53, %v6380_v45  ;;  %v2384_v15 = vadd.f32 %v2383_v49, %v2295_v23  ;;  %v7457_v49 = vld [vmem:[#allocation27_spill] sm:$0xff] }
 0x4af   :  { %v2207_v9 = vpop.f32.mrf.mxu1 }
 0x4b0   :  { %v2208_v22 = vadd.f32 %v2207_v9, %v2119_v0  ;;  %v2635_v10 = vmax.f32 %v2384_v15, 0.0  ;;  %v7458_v0 = vld [vmem:[#allocation28_spill] sm:$0xff]  ;;  %v7459_v9 = vld [vmem:[#allocation55_spill] sm:$0xff] }
 0x4b2   :  { %v2642_v50 = vmax.f32 %v2208_v22, 0.0  ;;  %v7460_v22 = vld [vmem:[#allocation56_spill] sm:$0xff] }
 0x4b3   :  { %v2296_v2 = vpop.f32.mrf.mxu2 }
 0x4b4   :  { %v6581_v26 = vpack.c.bf16 %v2642_v50, %v2634_v60  ;;  %v2297_v7 = vadd.f32 %v2296_v2, %v6389_v11  ;;  %v5354_v60 = vld [vmem:[#allocation8 + $0x190] sm:$0xff] }
 0x4b5   :  { %v2385_v24 = vpop.f32.mrf.mxu3  ;;  %v3297_v32 = vpop.f32.mrf.mxu0  ;;  %v5338_v50 = vld [vmem:[#allocation8 + $0x110] sm:$0xff]  ;;  %3827 = vmatpush.bf16.msrb.mxu2 %v5354_v60 }
 0x4b6   :  { %7456 = vst [vmem:[#allocation45_spill] sm:$0xff] %v6581_v26  ;;  %v3298_v28 = vadd.f32 %v6579_v61, %v3297_v32  ;;  %v2386_v63 = vadd.f32 %v2385_v24, %v2297_v7  ;;  %v5362_v11 = vld [vmem:[#allocation8 + $0x1d0] sm:$0xff]  ;;  %3649 = vmatpush.bf16.msrb.mxu0 %v5338_v50 }
 0x4b7   :  { %v3386_v45 = vpop.f32.mrf.mxu1  ;;  %3916 = vmatpush.bf16.msrb.mxu3 %v5362_v11  ;;  %v7463_v11 = vld [vmem:[#allocation30_spill] sm:$0xff] }
 0x4b8   :  { %v3387_v23 = vadd.f32 %v3386_v45, %v3298_v28  ;;  %3336 = vmatmul.bf16.gmra.mxu0 %v7457_v49  ;;  %v2643_v53 = vmax.f32 %v2386_v63, 0.0  ;;  %3514 = vmatmul.bf16.gmra.mxu2 %v7459_v9  ;;  %v5346_v63 = vld [vmem:[#allocation8 + $0x150] sm:$0xff] }
 0x4b9   :  { %3738 = vmatpush.bf16.msrb.mxu1 %v5346_v63 }
 0x4ba   :  { %3425 = vmatmul.bf16.gmra.mxu1 %v7458_v0  ;;  %3603 = vmatmul.bf16.gmra.mxu3 %v7460_v22  ;;  %v6589_v2 = vpack.c.bf16 %v2643_v53, %v2635_v10 }
 0x4bb   :  { %v3475_v26 = vpop.f32.mrf.mxu2 }
 0x4bc   :  { %7461 = vst [vmem:[#allocation46_spill] sm:$0xff] %v6589_v2  ;;  %v3476_v7 = vadd.f32 %v3475_v26, %v3387_v23  ;;  %v7462_v23 = vld [vmem:[#allocation29_spill] sm:$0xff] }
 0x4bd   :  { %v3564_v24 = vpop.f32.mrf.mxu3  ;;  %v3299_v32 = vpop.f32.mrf.mxu0 }
 0x4be   :  { %v3300_v15 = vadd.f32 %v6579_v61, %v3299_v32  ;;  %v6592_v45 = vadd.f32 %v3564_v24, %v3476_v7  ;;  %v7464_v32 = vld [vmem:[#allocation57_spill] sm:$0xff]  ;;  %v7465_v7 = vld [vmem:[#allocation58_spill] sm:$0xff] }
 0x4bf   :  { %v3388_v28 = vpop.f32.mrf.mxu1 }
 0x4c0   :  { %v3389_v49 = vadd.f32 %v3388_v28, %v3300_v15 }
 0x4c3   :  { %v3477_v0 = vpop.f32.mrf.mxu2 }
 0x4c4   :  { %v3478_v9 = vadd.f32 %v3477_v0, %v3389_v49 }
 0x4c5   :  { %v3566_v22 = vpop.f32.mrf.mxu3  ;;  %v3302_v10 = vpop.f32.mrf.mxu0 }
 0x4c6   :  { %v3303_v53 = vadd.f32 %v6579_v61, %v3302_v10  ;;  %v6595_v50 = vadd.f32 %v3566_v22, %v3478_v9 }
 0x4c7   :  { %v3391_v60 = vpop.f32.mrf.mxu1 }
 0x4c8   :  { %v3392_v26 = vadd.f32 %v3391_v60, %v3303_v53  ;;  %3341 = vmatmul.bf16.gmra.mxu0 %v7462_v23  ;;  %3519 = vmatmul.bf16.gmra.mxu2 %v7464_v32 }
 0x4ca   :  { %3430 = vmatmul.bf16.gmra.mxu1 %v7463_v11  ;;  %3608 = vmatmul.bf16.gmra.mxu3 %v7465_v7 }
 0x4cb   :  { %v3480_v24 = vpop.f32.mrf.mxu2 }
 0x4cc   :  { %v3481_v15 = vadd.f32 %v3480_v24, %v3392_v26  ;;  %v7467_v26 = vld [vmem:[#allocation32_spill] sm:$0xff]  ;;  %v7468_v24 = vld [vmem:[#allocation59_spill] sm:$0xff] }
 0x4cd   :  { %v3569_v28 = vpop.f32.mrf.mxu3  ;;  %v3304_v63 = vpop.f32.mrf.mxu0 }
 0x4ce   :  { %v3305_v49 = vadd.f32 %v6579_v61, %v3304_v63  ;;  %v6602_v10 = vadd.f32 %v3569_v28, %v3481_v15  ;;  %v7469_v63 = vld [vmem:[#allocation60_spill] sm:$0xff] }
 0x4cf   :  { %v3393_v0 = vpop.f32.mrf.mxu1  ;;  %v5353_v15 = vld [vmem:[#allocation8 + $0x188] sm:$0xff] }
 0x4d0   :  { %v3394_v9 = vadd.f32 %v3393_v0, %v3305_v49  ;;  %v5337_v28 = vld [vmem:[#allocation8 + $0x108] sm:$0xff]  ;;  %3828 = vmatpush.bf16.msrb.mxu2 %v5353_v15 }
 0x4d1   :  { %v5361_v49 = vld [vmem:[#allocation8 + $0x1c8] sm:$0xff]  ;;  %3650 = vmatpush.bf16.msrb.mxu0 %v5337_v28 }
 0x4d2   :  { %3917 = vmatpush.bf16.msrb.mxu3 %v5361_v49  ;;  %v7471_v49 = vld [vmem:[#allocation34_spill] sm:$0xff] }
 0x4d3   :  { %v3482_v22 = vpop.f32.mrf.mxu2 }
 0x4d4   :  { %v3483_v53 = vadd.f32 %v3482_v22, %v3394_v9 }
 0x4d5   :  { %v3571_v60 = vpop.f32.mrf.mxu3  ;;  %v3307_v23 = vpop.f32.mrf.mxu0 }
 0x4d6   :  { %v3308_v11 = vadd.f32 %v6579_v61, %v3307_v23  ;;  %v6605_v32 = vadd.f32 %v3571_v60, %v3483_v53  ;;  %v5345_v60 = vld [vmem:[#allocation8 + $0x148] sm:$0xff] }
 0x4d7   :  { %v3396_v2 = vpop.f32.mrf.mxu1  ;;  %3739 = vmatpush.bf16.msrb.mxu1 %v5345_v60 }
 0x4d8   :  { %v3397_v7 = vadd.f32 %v3396_v2, %v3308_v11  ;;  %3346 = vmatmul.bf16.gmra.mxu0 %v7466_v55  ;;  %3524 = vmatmul.bf16.gmra.mxu2 %v7468_v24 }
 0x4da   :  { %3435 = vmatmul.bf16.gmra.mxu1 %v7467_v26  ;;  %3613 = vmatmul.bf16.gmra.mxu3 %v7469_v63 }
 0x4db   :  { %v3485_v0 = vpop.f32.mrf.mxu2 }
 0x4dc   :  { %v3486_v9 = vadd.f32 %v3485_v0, %v3397_v7  ;;  %v7470_v0 = vld [vmem:[#allocation33_spill] sm:$0xff] }
 0x4dd   :  { %v3574_v22 = vpop.f32.mrf.mxu3  ;;  %v3309_v23 = vpop.f32.mrf.mxu0 }
 0x4de   :  { %v3310_v2 = vadd.f32 %v6579_v61, %v3309_v23  ;;  %v6612_v55 = vadd.f32 %v3574_v22, %v3486_v9  ;;  %v7472_v23 = vld [vmem:[#allocation61_spill] sm:$0xff]  ;;  %v7473_v9 = vld [vmem:[#allocation62_spill] sm:$0xff] }
 0x4df   :  { %v3398_v53 = vpop.f32.mrf.mxu1 }
 0x4e0   :  { %v3399_v11 = vadd.f32 %v3398_v53, %v3310_v2 }
 0x4e3   :  { %v3487_v26 = vpop.f32.mrf.mxu2 }
 0x4e4   :  { %v3488_v24 = vadd.f32 %v3487_v26, %v3399_v11 }
 0x4e5   :  { %v3576_v63 = vpop.f32.mrf.mxu3  ;;  %v3312_v4 = vpop.f32.mrf.mxu0 }
 0x4e6   :  { %v3313_v44 = vadd.f32 %v6579_v61, %v3312_v4  ;;  %v6615_v28 = vadd.f32 %v3576_v63, %v3488_v24 }
 0x4e7   :  { %v3401_v15 = vpop.f32.mrf.mxu1 }
 0x4e8   :  { %v3402_v7 = vadd.f32 %v3401_v15, %v3313_v44  ;;  %3351 = vmatmul.bf16.gmra.mxu0 %v7470_v0  ;;  %3529 = vmatmul.bf16.gmra.mxu2 %v7472_v23 }
 0x4ea   :  { %3440 = vmatmul.bf16.gmra.mxu1 %v7471_v49  ;;  %3618 = vmatmul.bf16.gmra.mxu3 %v7473_v9 }
 0x4eb   :  { %v3490_v22 = vpop.f32.mrf.mxu2 }
 0x4ec   :  { %v3491_v2 = vadd.f32 %v3490_v22, %v3402_v7  ;;  %v7475_v7 = vld [vmem:[#allocation36_spill] sm:$0xff]  ;;  %v7476_v22 = vld [vmem:[#allocation63_spill] sm:$0xff] }
 0x4ed   :  { %v3579_v53 = vpop.f32.mrf.mxu3  ;;  %v3314_v60 = vpop.f32.mrf.mxu0 }
 0x4ee   :  { %v3315_v11 = vadd.f32 %v6579_v61, %v3314_v60  ;;  %v6622_v4 = vadd.f32 %v3579_v53, %v3491_v2  ;;  %v7477_v60 = vld [vmem:[#allocation64_spill] sm:$0xff]  ;;  %v5352_v2 = vld [vmem:[#allocation8 + $0x180] sm:$0xff] }
 0x4ef   :  { %v3403_v26 = vpop.f32.mrf.mxu1  ;;  %v5336_v53 = vld [vmem:[#allocation8 + $0x100] sm:$0xff]  ;;  %3829 = vmatpush.bf16.msrb.mxu2 %v5352_v2 }
 0x4f0   :  { %v3404_v24 = vadd.f32 %v3403_v26, %v3315_v11  ;;  %v5360_v11 = vld [vmem:[#allocation8 + $0x1c0] sm:$0xff]  ;;  %3651 = vmatpush.bf16.msrb.mxu0 %v5336_v53 }
 0x4f1   :  { %3918 = vmatpush.bf16.msrb.mxu3 %v5360_v11  ;;  %v7480_v11 = vld [vmem:[#allocation38_spill] sm:$0xff] }
 0x4f3   :  { %v3492_v63 = vpop.f32.mrf.mxu2 }
 0x4f4   :  { %v3493_v44 = vadd.f32 %v3492_v63, %v3404_v24 }
 0x4f5   :  { %v3581_v15 = vpop.f32.mrf.mxu3  ;;  %v3317_v0 = vpop.f32.mrf.mxu0 }
 0x4f6   :  { %v3318_v49 = vadd.f32 %v6579_v61, %v3317_v0  ;;  %v6625_v23 = vadd.f32 %v3581_v15, %v3493_v44  ;;  %v5344_v15 = vld [vmem:[#allocation8 + $0x140] sm:$0xff] }
 0x4f7   :  { %v3406_v27 = vpop.f32.mrf.mxu1  ;;  %3740 = vmatpush.bf16.msrb.mxu1 %v5344_v15 }
 0x4f8   :  { %v3407_v9 = vadd.f32 %v3406_v27, %v3318_v49  ;;  %3356 = vmatmul.bf16.gmra.mxu0 %v7474_v8  ;;  %3534 = vmatmul.bf16.gmra.mxu2 %v7476_v22 }
 0x4fa   :  { %3445 = vmatmul.bf16.gmra.mxu1 %v7475_v7  ;;  %3623 = vmatmul.bf16.gmra.mxu3 %v7477_v60 }
 0x4fb   :  { %v3495_v26 = vpop.f32.mrf.mxu2 }
 0x4fc   :  { %v3496_v24 = vadd.f32 %v3495_v26, %v3407_v9  ;;  %v7479_v26 = vld [vmem:[#allocation37_spill] sm:$0xff] }
 0x4fd   :  { %v3584_v63 = vpop.f32.mrf.mxu3  ;;  %v3319_v0 = vpop.f32.mrf.mxu0 }
 0x4fe   :  { %v3320_v27 = vadd.f32 %v6579_v61, %v3319_v0  ;;  %v6632_v8 = vadd.f32 %v3584_v63, %v3496_v24  ;;  %v7481_v0 = vld [vmem:[#allocation65_spill] sm:$0xff]  ;;  %v7482_v24 = vld [vmem:[#allocation66_spill] sm:$0xff] }
 0x4ff   :  { %v3408_v44 = vpop.f32.mrf.mxu1 }
 0x500   :  { %v3409_v49 = vadd.f32 %v3408_v44, %v3320_v27 }
 0x503   :  { %v3497_v7 = vpop.f32.mrf.mxu2 }
 0x504   :  { %v3498_v22 = vadd.f32 %v3497_v7, %v3409_v49 }
 0x505   :  { %v3586_v60 = vpop.f32.mrf.mxu3  ;;  %v3322_v56 = vpop.f32.mrf.mxu0 }
 0x506   :  { %v3323_v25 = vadd.f32 %v6579_v61, %v3322_v56  ;;  %v6635_v53 = vadd.f32 %v3586_v60, %v3498_v22 }
 0x507   :  { %v3411_v2 = vpop.f32.mrf.mxu1 }
 0x508   :  { %7478 = vst [vmem:[#allocation19_spill] sm:$0xff] %v6635_v53  ;;  %v3412_v9 = vadd.f32 %v3411_v2, %v3323_v25  ;;  %3361 = vmatmul.bf16.gmra.mxu0 %v7479_v26  ;;  %3539 = vmatmul.bf16.gmra.mxu2 %v7481_v0 }
 0x50a   :  { %3450 = vmatmul.bf16.gmra.mxu1 %v7480_v11  ;;  %3628 = vmatmul.bf16.gmra.mxu3 %v7482_v24 }
 0x50b   :  { %v3500_v63 = vpop.f32.mrf.mxu2 }
 0x50c   :  { %v3501_v27 = vadd.f32 %v3500_v63, %v3412_v9  ;;  %v7486_v9 = vld [vmem:[#allocation40_spill] sm:$0xff]  ;;  %v7487_v63 = vld [vmem:[#allocation67_spill] sm:$0xff] }
 0x50d   :  { %v3589_v44 = vpop.f32.mrf.mxu3  ;;  %v3324_v15 = vpop.f32.mrf.mxu0 }
 0x50e   :  { %v3325_v49 = vadd.f32 %v6579_v61, %v3324_v15  ;;  %v6642_v56 = vadd.f32 %v3589_v44, %v3501_v27  ;;  %v7488_v15 = vld [vmem:[#allocation68_spill] sm:$0xff] }
 0x50f   :  { %v3413_v7 = vpop.f32.mrf.mxu1 }
 0x510   :  { %7483 = vst [vmem:[#allocation20_spill] sm:$0xff] %v6642_v56  ;;  %v3414_v22 = vadd.f32 %v3413_v7, %v3325_v49  ;;  %v7491_v56 = vld [vmem:[#allocation41_spill] sm:$0xff] }
 0x513   :  { %v3502_v60 = vpop.f32.mrf.mxu2 }
 0x514   :  { %v3503_v25 = vadd.f32 %v3502_v60, %v3414_v22 }
 0x515   :  { %v3591_v2 = vpop.f32.mrf.mxu3  ;;  %v3327_v26 = vpop.f32.mrf.mxu0 }
 0x516   :  { %v3328_v11 = vadd.f32 %v6579_v61, %v3327_v26  ;;  %v6645_v0 = vadd.f32 %v3591_v2, %v3503_v25 }
 0x517   :  { %v3416_v53 = vpop.f32.mrf.mxu1 }
 0x518   :  { %7484 = vst [vmem:[#allocation47_spill] sm:$0xff] %v6645_v0  ;;  %v3417_v24 = vadd.f32 %v3416_v53, %v3328_v11  ;;  %3366 = vmatmul.bf16.gmra.mxu0 %v7485_v57  ;;  %3544 = vmatmul.bf16.gmra.mxu2 %v7487_v63 }
 0x51a   :  { %3455 = vmatmul.bf16.gmra.mxu1 %v7486_v9  ;;  %3633 = vmatmul.bf16.gmra.mxu3 %v7488_v15 }
 0x51b   :  { %v3505_v27 = vpop.f32.mrf.mxu2 }
 0x51c   :  { %v3506_v44 = vadd.f32 %v3505_v27, %v3417_v24  ;;  %v7492_v24 = vld [vmem:[#allocation42_spill] sm:$0xff]  ;;  %v7493_v27 = vld [vmem:[#allocation69_spill] sm:$0xff] }
 0x51d   :  { %v3594_v49 = vpop.f32.mrf.mxu3  ;;  %v3329_v7 = vpop.f32.mrf.mxu0 }
 0x51e   :  { %v3330_v22 = vadd.f32 %v6579_v61, %v3329_v7  ;;  %v6652_v26 = vadd.f32 %v3594_v49, %v3506_v44  ;;  %v7494_v7 = vld [vmem:[#allocation70_spill] sm:$0xff] }
 0x51f   :  { %v3418_v60 = vpop.f32.mrf.mxu1 }
 0x520   :  { %7489 = vst [vmem:[#allocation48_spill] sm:$0xff] %v6652_v26  ;;  %v3419_v25 = vadd.f32 %v3418_v60, %v3330_v22  ;;  %v7495_v26 = vld [vmem:[#allocation71_spill] sm:$0xff] }
 0x523   :  { %v3507_v2 = vpop.f32.mrf.mxu2 }
 0x524   :  { %v3508_v53 = vadd.f32 %v3507_v2, %v3419_v25 }
 0x525   :  { %v3596_v11 = vpop.f32.mrf.mxu3  ;;  %v3332_v57 = vpop.f32.mrf.mxu0 }
 0x526   :  { %v3333_v9 = vadd.f32 %v6579_v61, %v3332_v57  ;;  %v6655_v63 = vadd.f32 %v3596_v11, %v3508_v53 }
 0x527   :  { %v3421_v0 = vpop.f32.mrf.mxu1 }
 0x528   :  { %7490 = vst [vmem:[#allocation21_spill] sm:$0xff] %v6655_v63  ;;  %v3422_v15 = vadd.f32 %v3421_v0, %v3333_v9  ;;  %3371 = vmatmul.bf16.gmra.mxu0 %v7491_v56  ;;  %3549 = vmatmul.bf16.gmra.mxu2 %v7493_v27 }
 0x52a   :  { %3460 = vmatmul.bf16.gmra.mxu1 %v7492_v24  ;;  %3638 = vmatmul.bf16.gmra.mxu3 %v7494_v7 }
 0x52b   :  { %v3510_v44 = vpop.f32.mrf.mxu2 }
 0x52c   :  { %v3511_v49 = vadd.f32 %v3510_v44, %v3422_v15  ;;  %v7496_v15 = vld [vmem:[#allocation72_spill] sm:$0xff] }
 0x52d   :  { %v3599_v22 = vpop.f32.mrf.mxu3  ;;  %v3334_v60 = vpop.f32.mrf.mxu0 }
 0x52e   :  { %v3335_v25 = vadd.f32 %v6579_v61, %v3334_v60  ;;  %v6662_v57 = vadd.f32 %v3599_v22, %v3511_v49 }
 0x52f   :  { %v3423_v2 = vpop.f32.mrf.mxu1 }
 0x530   :  { %v3424_v53 = vadd.f32 %v3423_v2, %v3335_v25 }
 0x533   :  { %v3512_v11 = vpop.f32.mrf.mxu2 }
 0x534   :  { %v3513_v0 = vadd.f32 %v3512_v11, %v3424_v53 }
 0x535   :  { %v3601_v9 = vpop.f32.mrf.mxu3  ;;  %v3337_v56 = vpop.f32.mrf.mxu0 }
 0x536   :  { %v3338_v24 = vadd.f32 %v6579_v61, %v3337_v56  ;;  %v6665_v27 = vadd.f32 %v3601_v9, %v3513_v0 }
 0x537   :  { %v3426_v63 = vpop.f32.mrf.mxu1 }
 0x538   :  { %v3427_v7 = vadd.f32 %v3426_v63, %v3338_v24  ;;  %3652 = vmatmul.bf16.vlgmr.msrb.gmra.mxu0 %v7495_v26  ;;  %3830 = vmatmul.bf16.vlgmr.msrb.gmra.mxu2 %v6396_v35 }
 0x53a   :  { %3741 = vmatmul.bf16.vlgmr.msrb.gmra.mxu1 %v7496_v15  ;;  %3919 = vmatmul.bf16.vlgmr.msrb.gmra.mxu3 %v6404_v30  ;;  %v7497_v15 = vld [vmem:[#allocation73_spill] sm:$0xff] }
 0x53b   :  { %v3515_v44 = vpop.f32.mrf.mxu2 }
 0x53c   :  { %v3516_v49 = vadd.f32 %v3515_v44, %v3427_v7  ;;  %v7498_v7 = vld [vmem:[#allocation74_spill] sm:$0xff] }
 0x53d   :  { %v3604_v22 = vpop.f32.mrf.mxu3  ;;  %v3339_v60 = vpop.f32.mrf.mxu0 }
 0x53e   :  { %v3340_v25 = vadd.f32 %v6579_v61, %v3339_v60  ;;  %v6672_v53 = vadd.f32 %v3604_v22, %v3516_v49 }
 0x53f   :  { %v3428_v2 = vpop.f32.mrf.mxu1 }
 0x540   :  { %v3429_v11 = vadd.f32 %v3428_v2, %v3340_v25 }
 0x543   :  { %v3517_v0 = vpop.f32.mrf.mxu2 }
 0x544   :  { %v3518_v63 = vadd.f32 %v3517_v0, %v3429_v11 }
 0x545   :  { %v3606_v9 = vpop.f32.mrf.mxu3  ;;  %v3342_v26 = vpop.f32.mrf.mxu0 }
 0x546   :  { %v3343_v56 = vadd.f32 %v6579_v61, %v3342_v26  ;;  %v6675_v35 = vadd.f32 %v3606_v9, %v3518_v63 }
 0x547   :  { %v3431_v24 = vpop.f32.mrf.mxu1 }
 0x548   :  { %v3432_v30 = vadd.f32 %v3431_v24, %v3343_v56  ;;  %3657 = vmatmul.bf16.gmra.mxu0 %v7497_v15  ;;  %3835 = vmatmul.bf16.gmra.mxu2 %v6408_v46 }
 0x54a   :  { %3746 = vmatmul.bf16.gmra.mxu1 %v7498_v7  ;;  %3924 = vmatmul.bf16.gmra.mxu3 %v6416_v20  ;;  %v7499_v7 = vld [vmem:[#allocation75_spill] sm:$0xff] }
 0x54b   :  { %v3520_v44 = vpop.f32.mrf.mxu2 }
 0x54c   :  { %v3521_v49 = vadd.f32 %v3520_v44, %v3432_v30  ;;  %v7500_v30 = vld [vmem:[#allocation76_spill] sm:$0xff] }
 0x54d   :  { %v3609_v22 = vpop.f32.mrf.mxu3  ;;  %v3344_v60 = vpop.f32.mrf.mxu0 }
 0x54e   :  { %v3345_v25 = vadd.f32 %v6579_v61, %v3344_v60  ;;  %v6682_v11 = vadd.f32 %v3609_v22, %v3521_v49 }
 0x54f   :  { %v3433_v2 = vpop.f32.mrf.mxu1 }
 0x550   :  { %v3434_v0 = vadd.f32 %v3433_v2, %v3345_v25 }
 0x553   :  { %v3522_v63 = vpop.f32.mrf.mxu2 }
 0x554   :  { %v3523_v9 = vadd.f32 %v3522_v63, %v3434_v0 }
 0x555   :  { %v3611_v26 = vpop.f32.mrf.mxu3  ;;  %v3347_v56 = vpop.f32.mrf.mxu0 }
 0x556   :  { %v3348_v24 = vadd.f32 %v6579_v61, %v3347_v56  ;;  %v6685_v46 = vadd.f32 %v3611_v26, %v3523_v9 }
 0x557   :  { %v3436_v15 = vpop.f32.mrf.mxu1 }
 0x558   :  { %v3437_v20 = vadd.f32 %v3436_v15, %v3348_v24  ;;  %3662 = vmatmul.bf16.gmra.mxu0 %v7499_v7  ;;  %3840 = vmatmul.bf16.gmra.mxu2 %v6420_v31 }
 0x55a   :  { %3751 = vmatmul.bf16.gmra.mxu1 %v7500_v30  ;;  %3929 = vmatmul.bf16.gmra.mxu3 %v6428_v59  ;;  %v7501_v30 = vld [vmem:[#allocation77_spill] sm:$0xff] }
 0x55b   :  { %v3525_v44 = vpop.f32.mrf.mxu2 }
 0x55c   :  { %v3526_v49 = vadd.f32 %v3525_v44, %v3437_v20  ;;  %v7502_v20 = vld [vmem:[#allocation78_spill] sm:$0xff] }
 0x55d   :  { %v3614_v22 = vpop.f32.mrf.mxu3  ;;  %v3349_v60 = vpop.f32.mrf.mxu0 }
 0x55e   :  { %v3350_v25 = vadd.f32 %v6579_v61, %v3349_v60  ;;  %v6692_v0 = vadd.f32 %v3614_v22, %v3526_v49 }
 0x55f   :  { %v3438_v2 = vpop.f32.mrf.mxu1 }
 0x560   :  { %v3439_v63 = vadd.f32 %v3438_v2, %v3350_v25 }
 0x563   :  { %v3527_v9 = vpop.f32.mrf.mxu2 }
 0x564   :  { %v3528_v26 = vadd.f32 %v3527_v9, %v3439_v63 }
 0x565   :  { %v3616_v56 = vpop.f32.mrf.mxu3  ;;  %v3352_v24 = vpop.f32.mrf.mxu0 }
 0x566   :  { %v3353_v15 = vadd.f32 %v6579_v61, %v3352_v24  ;;  %v6695_v31 = vadd.f32 %v3616_v56, %v3528_v26 }
 0x567   :  { %v3441_v7 = vpop.f32.mrf.mxu1 }
 0x568   :  { %v3442_v59 = vadd.f32 %v3441_v7, %v3353_v15  ;;  %3667 = vmatmul.bf16.gmra.mxu0 %v7501_v30  ;;  %3845 = vmatmul.bf16.gmra.mxu2 %v6432_v37 }
 0x56a   :  { %3756 = vmatmul.bf16.gmra.mxu1 %v7502_v20  ;;  %3934 = vmatmul.bf16.gmra.mxu3 %v6440_v19 }
 0x56b   :  { %v3530_v44 = vpop.f32.mrf.mxu2 }
 0x56c   :  { %v3531_v49 = vadd.f32 %v3530_v44, %v3442_v59  ;;  %v7503_v59 = vld [vmem:[#allocation79_spill] sm:$0xff] }
 0x56d   :  { %v3619_v22 = vpop.f32.mrf.mxu3  ;;  %v3354_v60 = vpop.f32.mrf.mxu0 }
 0x56e   :  { %v3355_v25 = vadd.f32 %v6579_v61, %v3354_v60  ;;  %v6702_v63 = vadd.f32 %v3619_v22, %v3531_v49 }
 0x56f   :  { %v3443_v2 = vpop.f32.mrf.mxu1 }
 0x570   :  { %v3444_v9 = vadd.f32 %v3443_v2, %v3355_v25 }
 0x573   :  { %v3532_v26 = vpop.f32.mrf.mxu2 }
 0x574   :  { %v3533_v56 = vadd.f32 %v3532_v26, %v3444_v9 }
 0x575   :  { %v3621_v24 = vpop.f32.mrf.mxu3  ;;  %v3357_v15 = vpop.f32.mrf.mxu0 }
 0x576   :  { %v3358_v7 = vadd.f32 %v6579_v61, %v3357_v15  ;;  %v6705_v37 = vadd.f32 %v3621_v24, %v3533_v56 }
 0x577   :  { %v3446_v30 = vpop.f32.mrf.mxu1 }
 0x578   :  { %v3447_v19 = vadd.f32 %v3446_v30, %v3358_v7  ;;  %3672 = vmatmul.bf16.gmra.mxu0 %v6247_v34  ;;  %3850 = vmatmul.bf16.gmra.mxu2 %v6444_v6  ;;  %v7504_v30 = vld [vmem:[#allocation80_spill] sm:$0xff] }
 0x57a   :  { %3761 = vmatmul.bf16.gmra.mxu1 %v7503_v59  ;;  %3939 = vmatmul.bf16.gmra.mxu3 %v6452_v17 }
 0x57b   :  { %v3535_v20 = vpop.f32.mrf.mxu2 }
 0x57c   :  { %v3536_v44 = vadd.f32 %v3535_v20, %v3447_v19  ;;  %v7505_v19 = vld [vmem:[#allocation81_spill] sm:$0xff] }
 0x57d   :  { %v3624_v49 = vpop.f32.mrf.mxu3  ;;  %v3359_v22 = vpop.f32.mrf.mxu0 }
 0x57e   :  { %v3360_v60 = vadd.f32 %v6579_v61, %v3359_v22  ;;  %v6712_v2 = vadd.f32 %v3624_v49, %v3536_v44 }
 0x57f   :  { %v3448_v25 = vpop.f32.mrf.mxu1 }
 0x580   :  { %v3449_v9 = vadd.f32 %v3448_v25, %v3360_v60 }
 0x583   :  { %v3537_v26 = vpop.f32.mrf.mxu2 }
 0x584   :  { %v3538_v56 = vadd.f32 %v3537_v26, %v3449_v9 }
 0x585   :  { %v3626_v24 = vpop.f32.mrf.mxu3  ;;  %v3362_v34 = vpop.f32.mrf.mxu0 }
 0x586   :  { %v3363_v15 = vadd.f32 %v6579_v61, %v3362_v34  ;;  %v6715_v6 = vadd.f32 %v3626_v24, %v3538_v56 }
 0x587   :  { %v3451_v7 = vpop.f32.mrf.mxu1 }
 0x588   :  { %v3452_v17 = vadd.f32 %v3451_v7, %v3363_v15  ;;  %3677 = vmatmul.bf16.gmra.mxu0 %v7504_v30  ;;  %3855 = vmatmul.bf16.gmra.mxu2 %v6456_v52  ;;  %v7506_v30 = vld [vmem:[#allocation82_spill] sm:$0xff] }
 0x58a   :  { %3766 = vmatmul.bf16.gmra.mxu1 %v7505_v19  ;;  %3944 = vmatmul.bf16.gmra.mxu3 %v6464_v33 }
 0x58b   :  { %v3540_v59 = vpop.f32.mrf.mxu2 }
 0x58c   :  { %v3541_v20 = vadd.f32 %v3540_v59, %v3452_v17  ;;  %v7507_v17 = vld [vmem:[#allocation83_spill] sm:$0xff] }
 0x58d   :  { %v3629_v44 = vpop.f32.mrf.mxu3  ;;  %v3364_v49 = vpop.f32.mrf.mxu0 }
 0x58e   :  { %v3365_v22 = vadd.f32 %v6579_v61, %v3364_v49  ;;  %v6722_v25 = vadd.f32 %v3629_v44, %v3541_v20 }
 0x58f   :  { %v3453_v60 = vpop.f32.mrf.mxu1 }
 0x590   :  { %v3454_v9 = vadd.f32 %v3453_v60, %v3365_v22 }
 0x593   :  { %v3542_v26 = vpop.f32.mrf.mxu2 }
 0x594   :  { %v3543_v56 = vadd.f32 %v3542_v26, %v3454_v9 }
 0x595   :  { %v3631_v24 = vpop.f32.mrf.mxu3  ;;  %v3367_v34 = vpop.f32.mrf.mxu0 }
 0x596   :  { %v3368_v15 = vadd.f32 %v6579_v61, %v3367_v34  ;;  %v6725_v52 = vadd.f32 %v3631_v24, %v3543_v56 }
 0x597   :  { %v3456_v7 = vpop.f32.mrf.mxu1 }
 0x598   :  { %v3457_v33 = vadd.f32 %v3456_v7, %v3368_v15  ;;  %3682 = vmatmul.bf16.gmra.mxu0 %v7506_v30  ;;  %3860 = vmatmul.bf16.gmra.mxu2 %v6468_v14 }
 0x59a   :  { %3771 = vmatmul.bf16.gmra.mxu1 %v7507_v17  ;;  %3949 = vmatmul.bf16.gmra.mxu3 %v6476_v48 }
 0x59b   :  { %v3545_v19 = vpop.f32.mrf.mxu2 }
 0x59c   :  { %v3546_v59 = vadd.f32 %v3545_v19, %v3457_v33 }
 0x59d   :  { %v3634_v20 = vpop.f32.mrf.mxu3  ;;  %v3369_v44 = vpop.f32.mrf.mxu0 }
 0x59e   :  { %v3370_v49 = vadd.f32 %v6579_v61, %v3369_v44  ;;  %v6732_v60 = vadd.f32 %v3634_v20, %v3546_v59 }
 0x59f   :  { %v3458_v22 = vpop.f32.mrf.mxu1 }
 0x5a0   :  { %v3459_v9 = vadd.f32 %v3458_v22, %v3370_v49 }
 0x5a3   :  { %v3547_v26 = vpop.f32.mrf.mxu2 }
 0x5a4   :  { %v3548_v56 = vadd.f32 %v3547_v26, %v3459_v9 }
 0x5a5   :  { %v3636_v24 = vpop.f32.mrf.mxu3  ;;  %v3372_v34 = vpop.f32.mrf.mxu0 }
 0x5a6   :  { %v3373_v15 = vadd.f32 %v6579_v61, %v3372_v34  ;;  %v6735_v14 = vadd.f32 %v3636_v24, %v3548_v56 }
 0x5a7   :  { %v3461_v7 = vpop.f32.mrf.mxu1 }
 0x5a8   :  { %v3462_v48 = vadd.f32 %v3461_v7, %v3373_v15  ;;  %3687 = vmatmul.bf16.gmra.mxu0 %v6283_v51  ;;  %3865 = vmatmul.bf16.gmra.mxu2 %v6480_v16 }
 0x5aa   :  { %3776 = vmatmul.bf16.gmra.mxu1 %v6291_v54  ;;  %3954 = vmatmul.bf16.gmra.mxu3 %v6488_v47  ;;  %v4000_v54 = vlaneseq }
 0x5ab   :  { %v3550_v33 = vpop.f32.mrf.mxu2 }
 0x5ac   :  { %v3551_v30 = vadd.f32 %v3550_v33, %v3462_v48  ;;  %v6751_v47 = vand.u32 127, %v4000_v54 }
 0x5ad   :  { %v3639_v17 = vpop.f32.mrf.mxu3  ;;  %v3374_v19 = vpop.f32.mrf.mxu0 }
 0x5ae   :  { %v3375_v59 = vadd.f32 %v6579_v61, %v3374_v19  ;;  %v6742_v44 = vadd.f32 %v3639_v17, %v3551_v30  ;;  %vm4002_vm0 = vcmp.lt.s32.totalorder %v6751_v47, 8 }
 0x5af   :  { %v3463_v20 = vpop.f32.mrf.mxu1 }
 0x5b0   :  { %v3464_v49 = vadd.f32 %v3463_v20, %v3375_v59 }
 0x5b3   :  { %v3552_v22 = vpop.f32.mrf.mxu2 }
 0x5b4   :  { %v3553_v9 = vadd.f32 %v3552_v22, %v3464_v49 }
 0x5b5   :  { %v3641_v26 = vpop.f32.mrf.mxu3  ;;  %v3653_v51 = vpop.f32.mrf.mxu0 }
 0x5b6   :  { %v6744_v24 = vadd.f32 %v3641_v26, %v3553_v9  ;;  %v3654_v16 = vadd.f32 %v3653_v51, %v6592_v45 }
 0x5b7   :  { %v3742_v56 = vpop.f32.mrf.mxu1 }
 0x5b8   :  { %3692 = vmatmul.bf16.gmra.mxu0 %v6295_v21  ;;  %3870 = vmatmul.bf16.gmra.mxu2 %v6492_v40  ;;  %v3743_v61 = vadd.f32 %v3742_v56, %v3654_v16 }
 0x5ba   :  { %3781 = vmatmul.bf16.gmra.mxu1 %v6303_v18  ;;  %3959 = vmatmul.bf16.gmra.mxu3 %v6500_v38 }
 0x5bb   :  { %v3831_v34 = vpop.f32.mrf.mxu2 }
 0x5bc   :  { %v3832_v15 = vadd.f32 %v3831_v34, %v3743_v61 }
 0x5bd   :  { %v3920_v7 = vpop.f32.mrf.mxu3  ;;  %v3655_v48 = vpop.f32.mrf.mxu0 }
 0x5be   :  { %v6754_v30 = vadd.f32 %v3920_v7, %v3832_v15  ;;  %v3656_v21 = vadd.f32 %v3655_v48, %v6595_v50 }
 0x5bf   :  { %v3744_v33 = vpop.f32.mrf.mxu1 }
 0x5c0   :  { %v6760_v18 = vsel %vm4002_vm0, %v6754_v30, -inf  ;;  %v3745_v40 = vadd.f32 %v3744_v33, %v3656_v21 }
 0x5c1   :  { %4035 = vmax.xlane.f32.xlu0 %v6760_v18 }
 0x5c3   :  { %v3833_v38 = vpop.f32.mrf.mxu2 }
 0x5c4   :  { %v3834_v45 = vadd.f32 %v3833_v38, %v3745_v40 }
 0x5c5   :  { %v3922_v17 = vpop.f32.mrf.mxu3  ;;  %v3658_v19 = vpop.f32.mrf.mxu0 }
 0x5c6   :  { %v6763_v20 = vadd.f32 %v3922_v17, %v3834_v45  ;;  %v3659_v49 = vadd.f32 %v3658_v19, %v6602_v10 }
 0x5c7   :  { %v3747_v59 = vpop.f32.mrf.mxu1 }
 0x5c8   :  { %3697 = vmatmul.bf16.gmra.mxu0 %v6307_v62  ;;  %3875 = vmatmul.bf16.gmra.mxu2 %v6504_v12  ;;  %v6772_v50 = vsel %vm4002_vm0, %v6763_v20, -inf  ;;  %v3748_v22 = vadd.f32 %v3747_v59, %v3659_v49 }
 0x5c9   :  { %4037 = vmax.xlane.f32.xlu0 %v6772_v50 }
 0x5ca   :  { %3786 = vmatmul.bf16.gmra.mxu1 %v6315_v1  ;;  %3964 = vmatmul.bf16.gmra.mxu3 %v6512_v5 }
 0x5cb   :  { %v3836_v9 = vpop.f32.mrf.mxu2 }
 0x5cc   :  { %v3837_v26 = vadd.f32 %v3836_v9, %v3748_v22 }
 0x5cd   :  { %v3925_v51 = vpop.f32.mrf.mxu3  ;;  %v3660_v10 = vpop.f32.mrf.mxu0 }
 0x5ce   :  { %v6776_v62 = vadd.f32 %v3925_v51, %v3837_v26  ;;  %v3661_v1 = vadd.f32 %v3660_v10, %v6605_v32 }
 0x5cf   :  { %v3749_v56 = vpop.f32.mrf.mxu1 }
 0x5d0   :  { %v6782_v12 = vsel %vm4002_vm0, %v6776_v62, -inf  ;;  %v3750_v5 = vadd.f32 %v3749_v56, %v3661_v1 }
 0x5d1   :  { %4039 = vmax.xlane.f32.xlu1 %v6782_v12 }
 0x5d3   :  { %v3838_v54 = vpop.f32.mrf.mxu2 }
 0x5d4   :  { %v3839_v16 = vadd.f32 %v3838_v54, %v3750_v5 }
 0x5d5   :  { %v3927_v61 = vpop.f32.mrf.mxu3  ;;  %v3663_v34 = vpop.f32.mrf.mxu0 }
 0x5d6   :  { %v6785_v7 = vadd.f32 %v3927_v61, %v3839_v16  ;;  %v3664_v48 = vadd.f32 %v3663_v34, %v6612_v55 }
 0x5d7   :  { %v3752_v15 = vpop.f32.mrf.mxu1 }
 0x5d8   :  { %3702 = vmatmul.bf16.gmra.mxu0 %v6319_v41  ;;  %3880 = vmatmul.bf16.gmra.mxu2 %v6516_v13  ;;  %v6794_v32 = vsel %vm4002_vm0, %v6785_v7, -inf  ;;  %v3753_v33 = vadd.f32 %v3752_v15, %v3664_v48 }
 0x5d9   :  { %4041 = vmax.xlane.f32.xlu1 %v6794_v32 }
 0x5da   :  { %3791 = vmatmul.bf16.gmra.mxu1 %v6327_v39  ;;  %3969 = vmatmul.bf16.gmra.mxu3 %v6524_v58 }
 0x5db   :  { %v3841_v21 = vpop.f32.mrf.mxu2 }
 0x5dc   :  { %v3842_v40 = vadd.f32 %v3841_v21, %v3753_v33  ;;  %v7509_v21 = vld [vmem:[#allocation15_spill] sm:$0xff] }
 0x5dd   :  { %v3930_v38 = vpop.f32.mrf.mxu3  ;;  %v3665_v55 = vpop.f32.mrf.mxu0 }
 0x5de   :  { %v6798_v41 = vadd.f32 %v3930_v38, %v3842_v40  ;;  %v3666_v39 = vadd.f32 %v3665_v55, %v6615_v28  ;;  %v7510_v38 = vld [vmem:[#allocation16_spill] sm:$0xff] }
 0x5df   :  { %v3754_v45 = vpop.f32.mrf.mxu1 }
 0x5e0   :  { %v6804_v13 = vsel %vm4002_vm0, %v6798_v41, -inf  ;;  %v3755_v58 = vadd.f32 %v3754_v45, %v3666_v39 }
 0x5e1   :  { %4043 = vmax.xlane.f32.xlu2 %v6804_v13 }
 0x5e3   :  { %v3843_v17 = vpop.f32.mrf.mxu2 }
 0x5e4   :  { %v3844_v19 = vadd.f32 %v3843_v17, %v3755_v58 }
 0x5e5   :  { %v3932_v59 = vpop.f32.mrf.mxu3  ;;  %v3668_v49 = vpop.f32.mrf.mxu0 }
 0x5e6   :  { %v6807_v9 = vadd.f32 %v3932_v59, %v3844_v19  ;;  %v3669_v26 = vadd.f32 %v3668_v49, %v6622_v4  ;;  %v7511_v19 = vld [vmem:[#allocation19_spill] sm:$0xff] }
 0x5e7   :  { %v3757_v22 = vpop.f32.mrf.mxu1 }
 0x5e8   :  { %3707 = vmatmul.bf16.gmra.mxu0 %v6331_v43  ;;  %3885 = vmatmul.bf16.gmra.mxu2 %v6528_v29  ;;  %v6816_v28 = vsel %vm4002_vm0, %v6807_v9, -inf  ;;  %v3758_v51 = vadd.f32 %v3757_v22, %v3669_v26 }
 0x5e9   :  { %4045 = vmax.xlane.f32.xlu2 %v6816_v28 }
 0x5ea   :  { %3796 = vmatmul.bf16.gmra.mxu1 %v6339_v3  ;;  %3974 = vmatmul.bf16.gmra.mxu3 %v6536_v42 }
 0x5eb   :  { %v3846_v10 = vpop.f32.mrf.mxu2 }
 0x5ec   :  { %v3847_v56 = vadd.f32 %v3846_v10, %v3758_v51 }
 0x5ed   :  { %v3935_v1 = vpop.f32.mrf.mxu3  ;;  %v3670_v4 = vpop.f32.mrf.mxu0 }
 0x5ee   :  { %v6820_v43 = vadd.f32 %v3935_v1, %v3847_v56  ;;  %v3671_v3 = vadd.f32 %v3670_v4, %v6625_v23  ;;  %v7508_v23 = vld [vmem:[#allocation84_spill] sm:$0xff] }
 0x5ef   :  { %v3759_v5 = vpop.f32.mrf.mxu1 }
 0x5f0   :  { %v6826_v29 = vsel %vm4002_vm0, %v6820_v43, -inf  ;;  %v3760_v42 = vadd.f32 %v3759_v5, %v3671_v3  ;;  %v7512_v5 = vld [vmem:[#allocation20_spill] sm:$0xff] }
 0x5f1   :  { %4047 = vmax.xlane.f32.xlu0 %v6826_v29 }
 0x5f3   :  { %v3848_v54 = vpop.f32.mrf.mxu2 }
 0x5f4   :  { %v3849_v16 = vadd.f32 %v3848_v54, %v3760_v42  ;;  %v7513_v42 = vld [vmem:[#allocation85_spill] sm:$0xff]  ;;  %v7514_v54 = vld [vmem:[#allocation86_spill] sm:$0xff] }
 0x5f5   :  { %v3937_v61 = vpop.f32.mrf.mxu3  ;;  %v3673_v34 = vpop.f32.mrf.mxu0 }
 0x5f6   :  { %v6829_v48 = vadd.f32 %v3937_v61, %v3849_v16  ;;  %v3674_v33 = vadd.f32 %v3673_v34, %v6632_v8  ;;  %v7515_v16 = vld [vmem:[#allocation43_spill] sm:$0xff]  ;;  %v7516_v34 = vld [vmem:[#allocation44_spill] sm:$0xff] }
 0x5f7   :  { %v3762_v15 = vpop.f32.mrf.mxu1 }
 0x5f8   :  { %3712 = vmatmul.bf16.gmra.mxu0 %v6343_v36  ;;  %3890 = vmatmul.bf16.gmra.mxu2 %v7509_v21  ;;  %v6838_v40 = vsel %vm4002_vm0, %v6829_v48, -inf  ;;  %v3763_v55 = vadd.f32 %v3762_v15, %v3674_v33 }
 0x5f9   :  { %4049 = vmax.xlane.f32.xlu1 %v6838_v40 }
 0x5fa   :  { %3801 = vmatmul.bf16.gmra.mxu1 %v7508_v23  ;;  %3979 = vmatmul.bf16.gmra.mxu3 %v7510_v38 }
 0x5fb   :  { %v3851_v45 = vpop.f32.mrf.mxu2 }
 0x5fc   :  { %v3852_v39 = vadd.f32 %v3851_v45, %v3763_v55 }
 0x5fd   :  { %v3940_v58 = vpop.f32.mrf.mxu3  ;;  %v3675_v8 = vpop.f32.mrf.mxu0 }
 0x5fe   :  { %v6842_v36 = vadd.f32 %v3940_v58, %v3852_v39  ;;  %v3676_v59 = vadd.f32 %v3675_v8, %v7511_v19  ;;  %v7517_v39 = vld [vmem:[#allocation47_spill] sm:$0xff] }
 0x5ff   :  { %v3764_v17 = vpop.f32.mrf.mxu1 }
 0x600   :  { %v6848_v49 = vsel %vm4002_vm0, %v6842_v36, -inf  ;;  %v3765_v22 = vadd.f32 %v3764_v17, %v3676_v59 }
 0x601   :  { %4051 = vmax.xlane.f32.xlu2 %v6848_v49 }
 0x603   :  { %v3853_v26 = vpop.f32.mrf.mxu2 }
 0x604   :  { %v3854_v51 = vadd.f32 %v3853_v26, %v3765_v22 }
 0x605   :  { %v3942_v10 = vpop.f32.mrf.mxu3  ;;  %v3678_v56 = vpop.f32.mrf.mxu0 }
 0x606   :  { %v6851_v4 = vadd.f32 %v3942_v10, %v3854_v51  ;;  %v3679_v3 = vadd.f32 %v3678_v56, %v7512_v5  ;;  %v7519_v56 = vld [vmem:[#allocation48_spill] sm:$0xff]  ;;  %v7520_v5 = vld [vmem:[#allocation87_spill] sm:$0xff] }
 0x607   :  { %v3767_v1 = vpop.f32.mrf.mxu1 }
 0x608   :  { %3717 = vmatmul.bf16.gmra.mxu0 %v7513_v42  ;;  %3895 = vmatmul.bf16.gmra.mxu2 %v7515_v16  ;;  %v6860_v61 = vsel %vm4002_vm0, %v6851_v4, -inf  ;;  %v3768_v15 = vadd.f32 %v3767_v1, %v3679_v3  ;;  %v7521_v3 = vld [vmem:[#allocation88_spill] sm:$0xff]  ;;  %v7522_v42 = vld [vmem:[#allocation17_spill] sm:$0xff]  ;;  %v7523_v16 = vld [vmem:[#allocation18_spill] sm:$0xff] }
 0x609   :  { %4053 = vmax.xlane.f32.xlu0 %v6860_v61 }
 0x60a   :  { %3806 = vmatmul.bf16.gmra.mxu1 %v7514_v54  ;;  %3984 = vmatmul.bf16.gmra.mxu3 %v7516_v34 }
 0x60b   :  { %v3856_v33 = vpop.f32.mrf.mxu2 }
 0x60c   :  { %v3857_v23 = vadd.f32 %v3856_v33, %v3768_v15 }
 0x60d   :  { %v3945_v21 = vpop.f32.mrf.mxu3  ;;  %v3680_v38 = vpop.f32.mrf.mxu0 }
 0x60e   :  { %v6864_v45 = vadd.f32 %v3945_v21, %v3857_v23  ;;  %v3681_v58 = vadd.f32 %v3680_v38, %v7517_v39  ;;  %v7524_v39 = vld [vmem:[#allocation21_spill] sm:$0xff] }
 0x60f   :  { %v3769_v55 = vpop.f32.mrf.mxu1 }
 0x610   :  { %v6870_v8 = vsel %vm4002_vm0, %v6864_v45, -inf  ;;  %v3770_v17 = vadd.f32 %v3769_v55, %v3681_v58 }
 0x611   :  { %4055 = vmax.xlane.f32.xlu1 %v6870_v8 }
 0x613   :  { %v3858_v19 = vpop.f32.mrf.mxu2 }
 0x614   :  { %v3859_v59 = vadd.f32 %v3858_v19, %v3770_v17 }
 0x615   :  { %v3947_v22 = vpop.f32.mrf.mxu3  ;;  %v3683_v26 = vpop.f32.mrf.mxu0 }
 0x616   :  { %v6873_v10 = vadd.f32 %v3947_v22, %v3859_v59  ;;  %v3684_v1 = vadd.f32 %v3683_v26, %v7519_v56 }
 0x617   :  { %v3772_v51 = vpop.f32.mrf.mxu1 }
 0x618   :  { %7518 = vst [vmem:[#allocation22_spill] sm:$0xff] %v6873_v10  ;;  %3722 = vmatmul.bf16.gmra.mxu0 %v7520_v5  ;;  %3900 = vmatmul.bf16.gmra.mxu2 %v7522_v42  ;;  %v6882_v54 = vsel %vm4002_vm0, %v6873_v10, -inf  ;;  %v3773_v34 = vadd.f32 %v3772_v51, %v3684_v1  ;;  %v7526_v42 = vld [vmem:[#allocation90_spill] sm:$0xff] }
 0x619   :  { %4057 = vmax.xlane.f32.xlu2 %v6882_v54 }
 0x61a   :  { %3811 = vmatmul.bf16.gmra.mxu1 %v7521_v3  ;;  %3989 = vmatmul.bf16.gmra.mxu3 %v7523_v16  ;;  %v7525_v3 = vld [vmem:[#allocation89_spill] sm:$0xff] }
 0x61b   :  { %v3861_v15 = vpop.f32.mrf.mxu2  ;;  %v7527_v16 = vld [vmem:[#allocation45_spill] sm:$0xff] }
 0x61c   :  { %v3862_v33 = vadd.f32 %v3861_v15, %v3773_v34  ;;  %v7528_v15 = vld [vmem:[#allocation46_spill] sm:$0xff] }
 0x61d   :  { %v3950_v23 = vpop.f32.mrf.mxu3  ;;  %v3685_v21 = vpop.f32.mrf.mxu0 }
 0x61e   :  { %v6886_v55 = vadd.f32 %v3950_v23, %v3862_v33  ;;  %v3686_v58 = vadd.f32 %v3685_v21, %v7524_v39 }
 0x61f   :  { %v3774_v38 = vpop.f32.mrf.mxu1 }
 0x620   :  { %v6892_v17 = vsel %vm4002_vm0, %v6886_v55, -inf  ;;  %v3775_v19 = vadd.f32 %v3774_v38, %v3686_v58 }
 0x621   :  { %4059 = vmax.xlane.f32.xlu0 %v6892_v17 }
 0x623   :  { %v3863_v59 = vpop.f32.mrf.mxu2 }
 0x624   :  { %v3864_v22 = vadd.f32 %v3863_v59, %v3775_v19 }
 0x625   :  { %v3952_v26 = vpop.f32.mrf.mxu3  ;;  %v3688_v51 = vpop.f32.mrf.mxu0 }
 0x626   :  { %v6895_v1 = vadd.f32 %v3952_v26, %v3864_v22  ;;  %v3689_v5 = vadd.f32 %v3688_v51, %v6662_v57 }
 0x627   :  { %v3777_v56 = vpop.f32.mrf.mxu1 }
 0x628   :  { %3727 = vmatmul.bf16.gmra.mxu0 %v7525_v3  ;;  %3905 = vmatmul.bf16.gmra.mxu2 %v7527_v16  ;;  %v6904_v34 = vsel %vm4002_vm0, %v6895_v1, -inf  ;;  %v3778_v33 = vadd.f32 %v3777_v56, %v3689_v5 }
 0x629   :  { %4061 = vmax.xlane.f32.xlu1 %v6904_v34 }
 0x62a   :  { %3816 = vmatmul.bf16.gmra.mxu1 %v7526_v42  ;;  %3994 = vmatmul.bf16.gmra.mxu3 %v7528_v15 }
 0x62b   :  { %v3866_v23 = vpop.f32.mrf.mxu2 }
 0x62c   :  { %v3867_v21 = vadd.f32 %v3866_v23, %v3778_v33 }
 0x62d   :  { %v3955_v38 = vpop.f32.mrf.mxu3  ;;  %v3690_v57 = vpop.f32.mrf.mxu0 }
 0x62e   :  { %v6908_v58 = vadd.f32 %v3955_v38, %v3867_v21  ;;  %v3691_v19 = vadd.f32 %v3690_v57, %v6665_v27 }
 0x62f   :  { %v3779_v39 = vpop.f32.mrf.mxu1 }
 0x630   :  { %7529 = vst [vmem:[#allocation49_spill] sm:$0xff] %v6908_v58  ;;  %v6914_v59 = vsel %vm4002_vm0, %v6908_v58, -inf  ;;  %v3780_v22 = vadd.f32 %v3779_v39, %v3691_v19 }
 0x631   :  { %4063 = vmax.xlane.f32.xlu2 %v6914_v59 }
 0x633   :  { %v3868_v26 = vpop.f32.mrf.mxu2 }
 0x634   :  { %v3869_v51 = vadd.f32 %v3868_v26, %v3780_v22  ;;  %v4036_v5 = vpop.xlane.xlu0 %4035 }
 0x635   :  { %v3957_v56 = vpop.f32.mrf.mxu3  ;;  %v4099_v3 = vsub.f32 %v6760_v18, %v4036_v5  ;;  %v3693_v42 = vpop.f32.mrf.mxu0 }
 0x636   :  { %v6918_v15 = vadd.f32 %v3957_v56, %v3869_v51  ;;  %v3694_v27 = vadd.f32 %v3693_v42, %v6672_v53 }
 0x637   :  { %v3782_v16 = vpop.f32.mrf.mxu1  ;;  %v4131_v33 = vmul.f32 1.442695, %v4099_v3 }
 0x638   :  { %v6924_v23 = vsel %vm4002_vm0, %v6918_v15, -inf  ;;  %v3783_v21 = vadd.f32 %v3782_v16, %v3694_v27 }
 0x639   :  { %5382 = vpow2.f32 %v4131_v33  ;;  %4065 = vmax.xlane.f32.xlu0 %v6924_v23 }
 0x63b   :  { %v3871_v38 = vpop.f32.mrf.mxu2 }
 0x63c   :  { %v3872_v57 = vadd.f32 %v3871_v38, %v3783_v21  ;;  %v4038_v18 = vpop.xlane.xlu0 %4037 }
 0x63d   :  { %v3960_v39 = vpop.f32.mrf.mxu3  ;;  %v4100_v19 = vsub.f32 %v6772_v50, %v4038_v18  ;;  %v3695_v22 = vpop.f32.mrf.mxu0 }
 0x63e   :  { %v6928_v51 = vadd.f32 %v3960_v39, %v3872_v57  ;;  %v3696_v53 = vadd.f32 %v3695_v22, %v6675_v35 }
 0x63f   :  { %v3784_v26 = vpop.f32.mrf.mxu1  ;;  %v6931_v56 = vpop.eup %5382  ;;  %v4133_v5 = vmul.f32 1.442695, %v4100_v19 }
 0x640   :  { %7530 = vst [vmem:[#allocation50_spill] sm:$0xff] %v6928_v51  ;;  %4195 = vadd.xlane.f32.xlu2 %v6931_v56  ;;  %v6937_v3 = vsel %vm4002_vm0, %v6928_v51, -inf  ;;  %v3785_v50 = vadd.f32 %v3784_v26, %v3696_v53 }
 0x641   :  { %5384 = vpow2.f32 %v4133_v5  ;;  %4067 = vmax.xlane.f32.xlu1 %v6937_v3 }
 0x643   :  { %v3873_v42 = vpop.f32.mrf.mxu2 }
 0x644   :  { %v3874_v16 = vadd.f32 %v3873_v42, %v3785_v50  ;;  %v4040_v33 = vpop.xlane.xlu1 %4039 }
 0x645   :  { %v3962_v27 = vpop.f32.mrf.mxu3  ;;  %v4101_v35 = vsub.f32 %v6782_v12, %v4040_v33  ;;  %v3698_v21 = vpop.f32.mrf.mxu0 }
 0x646   :  { %v6941_v57 = vadd.f32 %v3962_v27, %v3874_v16  ;;  %v3699_v39 = vadd.f32 %v3698_v21, %v6682_v11 }
 0x647   :  { %v3787_v38 = vpop.f32.mrf.mxu1  ;;  %v6944_v18 = vpop.eup %5384  ;;  %v4135_v19 = vmul.f32 1.442695, %v4101_v35 }
 0x648   :  { %7531 = vst [vmem:[#allocation23_spill] sm:$0xff] %v6941_v57  ;;  %4197 = vadd.xlane.f32.xlu0 %v6944_v18  ;;  %v6950_v22 = vsel %vm4002_vm0, %v6941_v57, -inf  ;;  %v3788_v12 = vadd.f32 %v3787_v38, %v3699_v39 }
 0x649   :  { %5386 = vpow2.f32 %v4135_v19  ;;  %4069 = vmax.xlane.f32.xlu2 %v6950_v22 }
 0x64b   :  { %v3876_v26 = vpop.f32.mrf.mxu2 }
 0x64c   :  { %v3877_v53 = vadd.f32 %v3876_v26, %v3788_v12  ;;  %v4042_v50 = vpop.xlane.xlu1 %4041 }
 0x64d   :  { %v3965_v5 = vpop.f32.mrf.mxu3  ;;  %v4102_v11 = vsub.f32 %v6794_v32, %v4042_v50  ;;  %v3700_v42 = vpop.f32.mrf.mxu0 }
 0x64e   :  { %v6954_v27 = vadd.f32 %v3965_v5, %v3877_v53  ;;  %v3701_v33 = vadd.f32 %v3700_v42, %v6685_v46 }
 0x64f   :  { %v3789_v16 = vpop.f32.mrf.mxu1  ;;  %v6957_v35 = vpop.eup %5386  ;;  %v4137_v21 = vmul.f32 1.442695, %v4102_v11 }
 0x650   :  { %7532 = vst [vmem:[#allocation24_spill] sm:$0xff] %v6954_v27  ;;  %4199 = vadd.xlane.f32.xlu1 %v6957_v35  ;;  %v6963_v38 = vsel %vm4002_vm0, %v6954_v27, -inf  ;;  %v3790_v32 = vadd.f32 %v3789_v16, %v3701_v33 }
 0x651   :  { %5388 = vpow2.f32 %v4137_v21  ;;  %4071 = vmax.xlane.f32.xlu0 %v6963_v38 }
 0x653   :  { %v3878_v39 = vpop.f32.mrf.mxu2 }
 0x654   :  { %v3879_v19 = vadd.f32 %v3878_v39, %v3790_v32  ;;  %v4044_v26 = vpop.xlane.xlu2 %4043 }
 0x655   :  { %v3967_v12 = vpop.f32.mrf.mxu3  ;;  %v4103_v46 = vsub.f32 %v6804_v13, %v4044_v26  ;;  %v3703_v53 = vpop.f32.mrf.mxu0 }
 0x656   :  { %v6967_v50 = vadd.f32 %v3967_v12, %v3879_v19  ;;  %v3704_v11 = vadd.f32 %v3703_v53, %v6692_v0 }
 0x657   :  { %v3792_v5 = vpop.f32.mrf.mxu1  ;;  %v6970_v42 = vpop.eup %5388  ;;  %v4139_v57 = vmul.f32 1.442695, %v4103_v46 }
 0x658   :  { %7533 = vst [vmem:[#allocation51_spill] sm:$0xff] %v6967_v50  ;;  %4201 = vadd.xlane.f32.xlu2 %v6970_v42  ;;  %v6976_v16 = vsel %vm4002_vm0, %v6967_v50, -inf  ;;  %v3793_v13 = vadd.f32 %v3792_v5, %v3704_v11 }
 0x659   :  { %5390 = vpow2.f32 %v4139_v57  ;;  %4073 = vmax.xlane.f32.xlu1 %v6976_v16 }
 0x65b   :  { %v3881_v33 = vpop.f32.mrf.mxu2 }
 0x65c   :  { %v3882_v21 = vadd.f32 %v3881_v33, %v3793_v13  ;;  %v4046_v39 = vpop.xlane.xlu2 %4045 }
 0x65d   :  { %v3970_v32 = vpop.f32.mrf.mxu3  ;;  %v4104_v0 = vsub.f32 %v6816_v28, %v4046_v39  ;;  %v3705_v19 = vpop.f32.mrf.mxu0 }
 0x65e   :  { %v6980_v26 = vadd.f32 %v3970_v32, %v3882_v21  ;;  %v3706_v46 = vadd.f32 %v3705_v19, %v6695_v31 }
 0x65f   :  { %v3794_v12 = vpop.f32.mrf.mxu1  ;;  %v6983_v53 = vpop.eup %5390  ;;  %v4141_v50 = vmul.f32 1.442695, %v4104_v0 }
 0x660   :  { %7534 = vst [vmem:[#allocation52_spill] sm:$0xff] %v6980_v26  ;;  %4203 = vadd.xlane.f32.xlu0 %v6983_v53  ;;  %v6989_v57 = vsel %vm4002_vm0, %v6980_v26, -inf  ;;  %v3795_v28 = vadd.f32 %v3794_v12, %v3706_v46 }
 0x661   :  { %5392 = vpow2.f32 %v4141_v50  ;;  %4075 = vmax.xlane.f32.xlu2 %v6989_v57 }
 0x663   :  { %v3883_v5 = vpop.f32.mrf.mxu2 }
 0x664   :  { %v3884_v11 = vadd.f32 %v3883_v5, %v3795_v28  ;;  %v4048_v33 = vpop.xlane.xlu0 %4047 }
 0x665   :  { %v3972_v13 = vpop.f32.mrf.mxu3  ;;  %v4105_v31 = vsub.f32 %v6826_v29, %v4048_v33  ;;  %v3708_v21 = vpop.f32.mrf.mxu0 }
 0x666   :  { %v6993_v39 = vadd.f32 %v3972_v13, %v3884_v11  ;;  %v3709_v0 = vadd.f32 %v3708_v21, %v6702_v63 }
 0x667   :  { %v3797_v32 = vpop.f32.mrf.mxu1  ;;  %v6996_v19 = vpop.eup %5392  ;;  %v4143_v26 = vmul.f32 1.442695, %v4105_v31 }
 0x668   :  { %7535 = vst [vmem:[#allocation25_spill] sm:$0xff] %v6993_v39  ;;  %4205 = vadd.xlane.f32.xlu1 %v6996_v19  ;;  %v7002_v50 = vsel %vm4002_vm0, %v6993_v39, -inf  ;;  %v3798_v29 = vadd.f32 %v3797_v32, %v3709_v0 }
 0x669   :  { %5394 = vpow2.f32 %v4143_v26  ;;  %4077 = vmax.xlane.f32.xlu0 %v7002_v50 }
 0x66b   :  { %v3886_v12 = vpop.f32.mrf.mxu2 }
 0x66c   :  { %v3887_v46 = vadd.f32 %v3886_v12, %v3798_v29  ;;  %v4050_v5 = vpop.xlane.xlu1 %4049 }
 0x66d   :  { %v3975_v28 = vpop.f32.mrf.mxu3  ;;  %v4106_v63 = vsub.f32 %v6838_v40, %v4050_v5  ;;  %v3710_v11 = vpop.f32.mrf.mxu0 }
 0x66e   :  { %v7006_v33 = vadd.f32 %v3975_v28, %v3887_v46  ;;  %v3711_v31 = vadd.f32 %v3710_v11, %v6705_v37 }
 0x66f   :  { %v3799_v13 = vpop.f32.mrf.mxu1  ;;  %v7009_v21 = vpop.eup %5394  ;;  %v4145_v39 = vmul.f32 1.442695, %v4106_v63 }
 0x670   :  { %7536 = vst [vmem:[#allocation26_spill] sm:$0xff] %v7006_v33  ;;  %4207 = vadd.xlane.f32.xlu2 %v7009_v21  ;;  %v7015_v26 = vsel %vm4002_vm0, %v7006_v33, -inf  ;;  %v3800_v40 = vadd.f32 %v3799_v13, %v3711_v31 }
 0x671   :  { %5396 = vpow2.f32 %v4145_v39  ;;  %4079 = vmax.xlane.f32.xlu1 %v7015_v26 }
 0x673   :  { %v3888_v32 = vpop.f32.mrf.mxu2 }
 0x674   :  { %v3889_v0 = vadd.f32 %v3888_v32, %v3800_v40  ;;  %v4052_v12 = vpop.xlane.xlu2 %4051 }
 0x675   :  { %v3977_v29 = vpop.f32.mrf.mxu3  ;;  %v4107_v37 = vsub.f32 %v6848_v49, %v4052_v12  ;;  %v3713_v46 = vpop.f32.mrf.mxu0 }
 0x676   :  { %v7019_v5 = vadd.f32 %v3977_v29, %v3889_v0  ;;  %v3714_v63 = vadd.f32 %v3713_v46, %v6712_v2 }
 0x677   :  { %v3802_v28 = vpop.f32.mrf.mxu1  ;;  %v7022_v11 = vpop.eup %5396  ;;  %v4147_v33 = vmul.f32 1.442695, %v4107_v37 }
 0x678   :  { %7537 = vst [vmem:[#allocation53_spill] sm:$0xff] %v7019_v5  ;;  %4209 = vadd.xlane.f32.xlu0 %v7022_v11  ;;  %v7028_v39 = vsel %vm4002_vm0, %v7019_v5, -inf  ;;  %v3803_v49 = vadd.f32 %v3802_v28, %v3714_v63 }
 0x679   :  { %5398 = vpow2.f32 %v4147_v33  ;;  %4081 = vmax.xlane.f32.xlu2 %v7028_v39 }
 0x67b   :  { %v3891_v13 = vpop.f32.mrf.mxu2 }
 0x67c   :  { %v3892_v31 = vadd.f32 %v3891_v13, %v3803_v49  ;;  %v4054_v32 = vpop.xlane.xlu0 %4053 }
 0x67d   :  { %v3980_v40 = vpop.f32.mrf.mxu3  ;;  %v4108_v2 = vsub.f32 %v6860_v61, %v4054_v32  ;;  %v3715_v0 = vpop.f32.mrf.mxu0 }
 0x67e   :  { %v7032_v12 = vadd.f32 %v3980_v40, %v3892_v31  ;;  %v3716_v37 = vadd.f32 %v3715_v0, %v6715_v6 }
 0x67f   :  { %v3804_v29 = vpop.f32.mrf.mxu1  ;;  %v7035_v46 = vpop.eup %5398  ;;  %v4149_v5 = vmul.f32 1.442695, %v4108_v2 }
 0x680   :  { %7538 = vst [vmem:[#allocation54_spill] sm:$0xff] %v7032_v12  ;;  %4211 = vadd.xlane.f32.xlu1 %v7035_v46  ;;  %v7041_v33 = vsel %vm4002_vm0, %v7032_v12, -inf  ;;  %v3805_v61 = vadd.f32 %v3804_v29, %v3716_v37 }
 0x681   :  { %5400 = vpow2.f32 %v4149_v5  ;;  %4083 = vmax.xlane.f32.xlu0 %v7041_v33 }
 0x683   :  { %v3893_v28 = vpop.f32.mrf.mxu2 }
 0x684   :  { %v3894_v63 = vadd.f32 %v3893_v28, %v3805_v61  ;;  %v4056_v13 = vpop.xlane.xlu1 %4055 }
 0x685   :  { %v3982_v49 = vpop.f32.mrf.mxu3  ;;  %v4109_v6 = vsub.f32 %v6870_v8, %v4056_v13  ;;  %v3718_v31 = vpop.f32.mrf.mxu0 }
 0x686   :  { %v7045_v32 = vadd.f32 %v3982_v49, %v3894_v63  ;;  %v3719_v2 = vadd.f32 %v3718_v31, %v6722_v25 }
 0x687   :  { %v3807_v40 = vpop.f32.mrf.mxu1  ;;  %v7048_v0 = vpop.eup %5400  ;;  %v4151_v12 = vmul.f32 1.442695, %v4109_v6 }
 0x688   :  { %7539 = vst [vmem:[#allocation27_spill] sm:$0xff] %v7045_v32  ;;  %4213 = vadd.xlane.f32.xlu2 %v7048_v0  ;;  %v7054_v5 = vsel %vm4002_vm0, %v7045_v32, -inf  ;;  %v3808_v8 = vadd.f32 %v3807_v40, %v3719_v2 }
 0x689   :  { %5402 = vpow2.f32 %v4151_v12  ;;  %4085 = vmax.xlane.f32.xlu1 %v7054_v5 }
 0x68b   :  { %v3896_v29 = vpop.f32.mrf.mxu2 }
 0x68c   :  { %v3897_v37 = vadd.f32 %v3896_v29, %v3808_v8 }
 0x68d   :  { %v3985_v61 = vpop.f32.mrf.mxu3  ;;  %v3720_v28 = vpop.f32.mrf.mxu0 }
 0x68e   :  { %v7057_v25 = vadd.f32 %v3985_v61, %v3897_v37  ;;  %v3721_v49 = vadd.f32 %v3720_v28, %v6725_v52 }
 0x68f   :  { %v3809_v63 = vpop.f32.mrf.mxu1  ;;  %v7060_v13 = vpop.eup %5402 }
 0x690   :  { %7540 = vst [vmem:[#allocation28_spill] sm:$0xff] %v7057_v25  ;;  %4215 = vadd.xlane.f32.xlu0 %v7060_v13  ;;  %v7066_v12 = vsel %vm4002_vm0, %v7057_v25, -inf  ;;  %v3810_v6 = vadd.f32 %v3809_v63, %v3721_v49 }
 0x691   :  { %4087 = vmax.xlane.f32.xlu2 %v7066_v12 }
 0x693   :  { %v3898_v31 = vpop.f32.mrf.mxu2 }
 0x694   :  { %v3899_v40 = vadd.f32 %v3898_v31, %v3810_v6 }
 0x695   :  { %v3987_v2 = vpop.f32.mrf.mxu3  ;;  %v3723_v8 = vpop.f32.mrf.mxu0 }
 0x696   :  { %v7069_v37 = vadd.f32 %v3987_v2, %v3899_v40  ;;  %v3724_v52 = vadd.f32 %v3723_v8, %v6732_v60  ;;  %v4060_v2 = vpop.xlane.xlu0 %4059 }
 0x697   :  { %v3812_v29 = vpop.f32.mrf.mxu1  ;;  %v4111_v8 = vsub.f32 %v6892_v17, %v4060_v2 }
 0x698   :  { %7541 = vst [vmem:[#allocation55_spill] sm:$0xff] %v7069_v37  ;;  %v7075_v61 = vsel %vm4002_vm0, %v7069_v37, -inf  ;;  %v3813_v28 = vadd.f32 %v3812_v29, %v3724_v52  ;;  %v4058_v52 = vpop.xlane.xlu2 %4057 }
 0x699   :  { %4089 = vmax.xlane.f32.xlu0 %v7075_v61 }
 0x69b   :  { %v3901_v25 = vpop.f32.mrf.mxu2 }
 0x69c   :  { %v3902_v32 = vadd.f32 %v3901_v25, %v3813_v28 }
 0x69d   :  { %v3990_v63 = vpop.f32.mrf.mxu3  ;;  %v3725_v49 = vpop.f32.mrf.mxu0 }
 0x69e   :  { %v7078_v31 = vadd.f32 %v3990_v63, %v3902_v32  ;;  %v3726_v40 = vadd.f32 %v3725_v49, %v6735_v14  ;;  %v4155_v32 = vmul.f32 1.442695, %v4111_v8  ;;  %v4062_v49 = vpop.xlane.xlu1 %4061 }
 0x69f   :  { %v3814_v6 = vpop.f32.mrf.mxu1  ;;  %v4112_v17 = vsub.f32 %v6904_v34, %v4062_v49 }
 0x6a0   :  { %7542 = vst [vmem:[#allocation56_spill] sm:$0xff] %v7078_v31  ;;  %v7084_v60 = vsel %vm4002_vm0, %v7078_v31, -inf  ;;  %v3815_v29 = vadd.f32 %v3814_v6, %v3726_v40  ;;  %5404 = vpow2.f32 %v4155_v32 }
 0x6a1   :  { %4091 = vmax.xlane.f32.xlu1 %v7084_v60 }
 0x6a3   :  { %v3903_v25 = vpop.f32.mrf.mxu2 }
 0x6a4   :  { %v3904_v28 = vadd.f32 %v3903_v25, %v3815_v29  ;;  %v4064_v40 = vpop.xlane.xlu2 %4063  ;;  %v4157_v25 = vmul.f32 1.442695, %v4112_v17 }
 0x6a5   :  { %v3992_v37 = vpop.f32.mrf.mxu3  ;;  %v3728_v27 = vpop.f32.mrf.mxu0 }
 0x6a6   :  { %v7088_v63 = vadd.f32 %v3992_v37, %v3904_v28  ;;  %v3729_v14 = vadd.f32 %v3728_v27, %v6742_v44  ;;  %v7102_v10 = vpop.eup %5404 }
 0x6a7   :  { %v3817_v58 = vpop.f32.mrf.mxu1 }
 0x6a8   :  { %7543 = vst [vmem:[#allocation29_spill] sm:$0xff] %v7088_v63  ;;  %v7094_v31 = vsel %vm4002_vm0, %v7088_v63, -inf  ;;  %v3818_v6 = vadd.f32 %v3817_v58, %v3729_v14 }
 0x6a9   :  { %4093 = vmax.xlane.f32.xlu2 %v7094_v31 }
 0x6ab   :  { %v3906_v2 = vpop.f32.mrf.mxu2 }
 0x6ac   :  { %v3907_v8 = vadd.f32 %v3906_v2, %v3818_v6  ;;  %v4066_v29 = vpop.xlane.xlu0 %4065 }
 0x6ad   :  { %v3995_v37 = vpop.f32.mrf.mxu3  ;;  %v4114_v44 = vsub.f32 %v6924_v23, %v4066_v29  ;;  %v3730_v27 = vpop.f32.mrf.mxu0  ;;  %v4110_v23 = vsub.f32 %v6882_v54, %v4058_v52 }
 0x6ae   :  { %v7099_v28 = vadd.f32 %v3995_v37, %v3907_v8  ;;  %v3731_v63 = vadd.f32 %v3730_v27, %v6744_v24 }
 0x6af   :  { %v4161_v51 = vmul.f32 1.442695, %v4114_v44  ;;  %v3819_v58 = vpop.f32.mrf.mxu1  ;;  %v4153_v8 = vmul.f32 1.442695, %v4110_v23 }
 0x6b0   :  { %v7107_v34 = vsel %vm4002_vm0, %v7099_v28, -inf  ;;  %v3820_v32 = vadd.f32 %v3819_v58, %v3731_v63 }
 0x6b1   :  { %5406 = vpow2.f32 %v4161_v51  ;;  %4095 = vmax.xlane.f32.xlu0 %v7107_v34  ;;  %4219 = vadd.xlane.f32.xlu2 %v7102_v10 }
 0x6b2   :  { %5408 = vpow2.f32 %v4157_v25 }
 0x6b3   :  { %v3908_v14 = vpop.f32.mrf.mxu2  ;;  %v4196_v24 = vpop.xlane.xlu2 %4195 }
 0x6b4   :  { %v3909_v49 = vadd.f32 %v3908_v14, %v3820_v32  ;;  %5410 = vrcp.f32 %v4196_v24  ;;  %v4068_v17 = vpop.xlane.xlu1 %4067 }
 0x6b5   :  { %v3997_v6 = vpop.f32.mrf.mxu3  ;;  %v4115_v2 = vsub.f32 %v6937_v3, %v4068_v17  ;;  %v4113_v3 = vsub.f32 %v6914_v59, %v4064_v40 }
 0x6b6   :  { %v7113_v37 = vadd.f32 %v3997_v6, %v3909_v49 }
 0x6b7   :  { %v7115_v51 = vpop.eup %5406  ;;  %v4163_v29 = vmul.f32 1.442695, %v4115_v2  ;;  %v4159_v58 = vmul.f32 1.442695, %v4113_v3 }
 0x6b8   :  { %v7117_v44 = vpop.eup %5408  ;;  %v7122_v54 = vsel %vm4002_vm0, %v7113_v37, -inf }
 0x6b9   :  { %5412 = vpow2.f32 %v4163_v29  ;;  %4097 = vmax.xlane.f32.xlu1 %v7122_v54  ;;  %4221 = vadd.xlane.f32.xlu0 %v7117_v44 }
 0x6ba   :  { %v5411_v52 = vpop.eup %5410  ;;  %5414 = vpow2.f32 %v4153_v8  ;;  %4225 = vadd.xlane.f32.xlu2 %v7115_v51 }
 0x6bb   :  { %v4291_v63 = vmul.f32 %v5411_v52, %v6931_v56  ;;  %v4198_v27 = vpop.xlane.xlu0 %4197 }
 0x6bc   :  { %5416 = vrcp.f32 %v4198_v27  ;;  %v4070_v32 = vpop.xlane.xlu2 %4069 }
 0x6bd   :  { %v4323_v25 = vsel %vm4002_vm0, %v4291_v63, %v6754_v30  ;;  %5418 = vpow2.f32 %v4159_v58  ;;  %v4116_v56 = vsub.f32 %v6950_v22, %v4070_v32 }
 0x6be   :  { %4355 = vst [vmem:[#allocation10] sm:$0xff] %v4323_v25 }
 0x6bf   :  { %v7132_v23 = vpop.eup %5412  ;;  %v4165_v6 = vmul.f32 1.442695, %v4116_v56 }
 0x6c0   :  { %v7134_v14 = vpop.eup %5414 }
 0x6c1   :  { %4217 = vadd.xlane.f32.xlu1 %v7134_v14  ;;  %4227 = vadd.xlane.f32.xlu0 %v7132_v23 }
 0x6c2   :  { %v5417_v59 = vpop.eup %5416 }
 0x6c3   :  { %v4292_v40 = vmul.f32 %v5417_v59, %v6944_v18  ;;  %v4200_v24 = vpop.xlane.xlu1 %4199  ;;  %v7144_v8 = vpop.eup %5418 }
 0x6c4   :  { %5420 = vrcp.f32 %v4200_v24  ;;  %v4072_v30 = vpop.xlane.xlu0 %4071 }
 0x6c5   :  { %v4324_v49 = vsel %vm4002_vm0, %v4292_v40, %v6763_v20  ;;  %v4117_v17 = vsub.f32 %v6963_v38, %v4072_v30 }
 0x6c6   :  { %4356 = vst [vmem:[#allocation10 + $0x8] sm:$0xff] %v4324_v49 }
 0x6c7   :  { %v4167_v2 = vmul.f32 1.442695, %v4117_v17 }
 0x6c9   :  { %5422 = vpow2.f32 %v4167_v2  ;;  %4223 = vadd.xlane.f32.xlu1 %v7144_v8 }
 0x6ca   :  { %v5421_v22 = vpop.eup %5420  ;;  %5424 = vpow2.f32 %v4165_v6 }
 0x6cb   :  { %v4293_v18 = vmul.f32 %v5421_v22, %v6957_v35  ;;  %v4202_v29 = vpop.xlane.xlu2 %4201 }
 0x6cc   :  { %5426 = vrcp.f32 %v4202_v29  ;;  %v4074_v52 = vpop.xlane.xlu1 %4073 }
 0x6cd   :  { %v4325_v20 = vsel %vm4002_vm0, %v4293_v18, %v6776_v62  ;;  %v4118_v38 = vsub.f32 %v6976_v16, %v4074_v52 }
 0x6ce   :  { %4357 = vst [vmem:[#allocation10 + $0x10] sm:$0xff] %v4325_v20 }
 0x6cf   :  { %v7152_v3 = vpop.eup %5422  ;;  %v4169_v63 = vmul.f32 1.442695, %v4118_v38 }
 0x6d0   :  { %v7154_v27 = vpop.eup %5424  ;;  %4231 = vadd.xlane.f32.xlu2 %v7152_v3 }
 0x6d1   :  { %5428 = vpow2.f32 %v4169_v63  ;;  %4229 = vadd.xlane.f32.xlu1 %v7154_v27 }
 0x6d2   :  { %v5427_v35 = vpop.eup %5426 }
 0x6d3   :  { %v4294_v25 = vmul.f32 %v5427_v35, %v6970_v42  ;;  %v4204_v58 = vpop.xlane.xlu0 %4203 }
 0x6d4   :  { %5430 = vrcp.f32 %v4204_v58  ;;  %v4076_v32 = vpop.xlane.xlu2 %4075 }
 0x6d5   :  { %v4326_v62 = vsel %vm4002_vm0, %v4294_v25, %v6785_v7  ;;  %v4119_v16 = vsub.f32 %v6989_v57, %v4076_v32 }
 0x6d6   :  { %4358 = vst [vmem:[#allocation10 + $0x18] sm:$0xff] %v4326_v62 }
 0x6d7   :  { %v7163_v59 = vpop.eup %5428  ;;  %v4171_v56 = vmul.f32 1.442695, %v4119_v16 }
 0x6d8   :  { %4233 = vadd.xlane.f32.xlu0 %v7163_v59 }
 0x6d9   :  { %5432 = vpow2.f32 %v4171_v56 }
 0x6da   :  { %v5431_v40 = vpop.eup %5430 }
 0x6db   :  { %v4295_v24 = vmul.f32 %v5431_v40, %v6983_v53  ;;  %v4206_v42 = vpop.xlane.xlu1 %4205 }
 0x6dc   :  { %5434 = vrcp.f32 %v4206_v42  ;;  %v4078_v30 = vpop.xlane.xlu0 %4077 }
 0x6dd   :  { %v4327_v49 = vsel %vm4002_vm0, %v4295_v24, %v6798_v41  ;;  %v4120_v7 = vsub.f32 %v7002_v50, %v4078_v30 }
 0x6de   :  { %4359 = vst [vmem:[#allocation10 + $0x20] sm:$0xff] %v4327_v49 }
 0x6df   :  { %v7171_v57 = vpop.eup %5432  ;;  %v4173_v17 = vmul.f32 1.442695, %v4120_v7 }
 0x6e0   :  { %4235 = vadd.xlane.f32.xlu1 %v7171_v57 }
 0x6e1   :  { %5436 = vpow2.f32 %v4173_v17 }
 0x6e2   :  { %v5435_v6 = vpop.eup %5434 }
 0x6e3   :  { %v4296_v2 = vmul.f32 %v5435_v6, %v6996_v19  ;;  %v4208_v53 = vpop.xlane.xlu2 %4207 }
 0x6e4   :  { %5438 = vrcp.f32 %v4208_v53  ;;  %v4080_v22 = vpop.xlane.xlu1 %4079 }
 0x6e5   :  { %v4328_v18 = vsel %vm4002_vm0, %v4296_v2, %v6807_v9  ;;  %v4121_v41 = vsub.f32 %v7015_v26, %v4080_v22 }
 0x6e6   :  { %4360 = vst [vmem:[#allocation10 + $0x28] sm:$0xff] %v4328_v18 }
 0x6e7   :  { %v7179_v50 = vpop.eup %5436  ;;  %v4175_v29 = vmul.f32 1.442695, %v4121_v41 }
 0x6e8   :  { %4237 = vadd.xlane.f32.xlu2 %v7179_v50 }
 0x6e9   :  { %5440 = vpow2.f32 %v4175_v29 }
 0x6ea   :  { %v5439_v52 = vpop.eup %5438 }
 0x6eb   :  { %v4297_v20 = vmul.f32 %v5439_v52, %v7009_v21  ;;  %v4210_v19 = vpop.xlane.xlu0 %4209 }
 0x6ec   :  { %5442 = vrcp.f32 %v4210_v19  ;;  %v4082_v38 = vpop.xlane.xlu2 %4081 }
 0x6ed   :  { %v4329_v63 = vsel %vm4002_vm0, %v4297_v20, %v6820_v43  ;;  %v4122_v9 = vsub.f32 %v7028_v39, %v4082_v38 }
 0x6ee   :  { %4361 = vst [vmem:[#allocation10 + $0x30] sm:$0xff] %v4329_v63 }
 0x6ef   :  { %v7187_v26 = vpop.eup %5440  ;;  %v4177_v35 = vmul.f32 1.442695, %v4122_v9 }
 0x6f0   :  { %4239 = vadd.xlane.f32.xlu0 %v7187_v26 }
 0x6f1   :  { %5444 = vpow2.f32 %v4177_v35 }
 0x6f2   :  { %v5443_v25 = vpop.eup %5442 }
 0x6f3   :  { %v4298_v58 = vmul.f32 %v5443_v25, %v7022_v11  ;;  %v4212_v21 = vpop.xlane.xlu1 %4211 }
 0x6f4   :  { %5446 = vrcp.f32 %v4212_v21  ;;  %v4084_v32 = vpop.xlane.xlu0 %4083 }
 0x6f5   :  { %v4330_v62 = vsel %vm4002_vm0, %v4298_v58, %v6829_v48  ;;  %v4123_v43 = vsub.f32 %v7041_v33, %v4084_v32 }
 0x6f6   :  { %4362 = vst [vmem:[#allocation10 + $0x38] sm:$0xff] %v4330_v62 }
 0x6f7   :  { %v7195_v39 = vpop.eup %5444  ;;  %v4179_v16 = vmul.f32 1.442695, %v4123_v43 }
 0x6f8   :  { %4241 = vadd.xlane.f32.xlu1 %v7195_v39 }
 0x6f9   :  { %5448 = vpow2.f32 %v4179_v16 }
 0x6fa   :  { %v5447_v56 = vpop.eup %5446 }
 0x6fb   :  { %v4299_v40 = vmul.f32 %v5447_v56, %v7035_v46  ;;  %v4214_v11 = vpop.xlane.xlu2 %4213 }
 0x6fc   :  { %5450 = vrcp.f32 %v4214_v11  ;;  %v4086_v24 = vpop.xlane.xlu1 %4085 }
 0x6fd   :  { %v4331_v42 = vsel %vm4002_vm0, %v4299_v40, %v6842_v36  ;;  %v4124_v48 = vsub.f32 %v7054_v5, %v4086_v24 }
 0x6fe   :  { %4363 = vst [vmem:[#allocation10 + $0x40] sm:$0xff] %v4331_v42 }
 0x6ff   :  { %v7203_v33 = vpop.eup %5448  ;;  %v4181_v30 = vmul.f32 1.442695, %v4124_v48 }
 0x700   :  { %4243 = vadd.xlane.f32.xlu2 %v7203_v33 }
 0x701   :  { %5452 = vpow2.f32 %v4181_v30 }
 0x702   :  { %v5451_v49 = vpop.eup %5450 }
 0x703   :  { %v4300_v7 = vmul.f32 %v5451_v49, %v7048_v0  ;;  %v4216_v46 = vpop.xlane.xlu0 %4215 }
 0x704   :  { %5454 = vrcp.f32 %v4216_v46  ;;  %v4088_v17 = vpop.xlane.xlu2 %4087 }
 0x705   :  { %v4332_v6 = vsel %vm4002_vm0, %v4300_v7, %v6851_v4  ;;  %v4125_v36 = vsub.f32 %v7066_v12, %v4088_v17 }
 0x706   :  { %4364 = vst [vmem:[#allocation10 + $0x48] sm:$0xff] %v4332_v6  ;;  %v7545_v6 = vld [vmem:[#allocation50_spill] sm:$0xff] }
 0x707   :  { %v7211_v5 = vpop.eup %5452  ;;  %v4183_v2 = vmul.f32 1.442695, %v4125_v36 }
 0x708   :  { %4245 = vadd.xlane.f32.xlu0 %v7211_v5 }
 0x709   :  { %5456 = vpow2.f32 %v4183_v2 }
 0x70a   :  { %v5455_v53 = vpop.eup %5454 }
 0x70b   :  { %v4301_v22 = vmul.f32 %v5455_v53, %v7060_v13 }
 0x70c   :  { %v4090_v0 = vpop.xlane.xlu0 %4089 }
 0x70d   :  { %v4333_v18 = vsel %vm4002_vm0, %v4301_v22, %v6864_v45  ;;  %v4126_v41 = vsub.f32 %v7075_v61, %v4090_v0  ;;  %v7546_v22 = vld [vmem:[#allocation49_spill] sm:$0xff] }
 0x70e   :  { %4365 = vst [vmem:[#allocation10 + $0x50] sm:$0xff] %v4333_v18 }
 0x70f   :  { %v7219_v4 = vpop.eup %5456  ;;  %v4185_v12 = vmul.f32 1.442695, %v4126_v41 }
 0x710   :  { %4247 = vadd.xlane.f32.xlu1 %v7219_v4 }
 0x711   :  { %5458 = vpow2.f32 %v4185_v12 }
 0x714   :  { %v4092_v29 = vpop.xlane.xlu1 %4091 }
 0x715   :  { %v4127_v52 = vsub.f32 %v7084_v60, %v4092_v29 }
 0x717   :  { %v7223_v20 = vpop.eup %5458  ;;  %v4187_v13 = vmul.f32 1.442695, %v4127_v52  ;;  %v7547_v52 = vld [vmem:[#allocation24_spill] sm:$0xff] }
 0x718   :  { %4249 = vadd.xlane.f32.xlu2 %v7223_v20 }
 0x719   :  { %5460 = vpow2.f32 %v4187_v13  ;;  %v7548_v13 = vld [vmem:[#allocation23_spill] sm:$0xff] }
 0x71c   :  { %v4094_v19 = vpop.xlane.xlu2 %4093 }
 0x71d   :  { %v4128_v45 = vsub.f32 %v7094_v31, %v4094_v19 }
 0x71f   :  { %v7227_v61 = vpop.eup %5460  ;;  %v4189_v38 = vmul.f32 1.442695, %v4128_v45 }
 0x720   :  { %4251 = vadd.xlane.f32.xlu0 %v7227_v61 }
 0x721   :  { %5462 = vpow2.f32 %v4189_v38 }
 0x724   :  { %v4220_v63 = vpop.xlane.xlu2 %4219  ;;  %v4096_v9 = vpop.xlane.xlu0 %4095 }
 0x725   :  { %5464 = vrcp.f32 %v4220_v63  ;;  %v4129_v60 = vsub.f32 %v7107_v34, %v4096_v9 }
 0x727   :  { %v7231_v35 = vpop.eup %5462  ;;  %v4191_v25 = vmul.f32 1.442695, %v4129_v60 }
 0x728   :  { %4253 = vadd.xlane.f32.xlu1 %v7231_v35 }
 0x729   :  { %5466 = vpow2.f32 %v4191_v25 }
 0x72b   :  { %v5465_v58 = vpop.eup %5464 }
 0x72c   :  { %v4303_v31 = vmul.f32 %v5465_v58, %v7102_v10  ;;  %v4098_v21 = vpop.xlane.xlu1 %4097  ;;  %v4222_v32 = vpop.xlane.xlu0 %4221  ;;  %v7550_v58 = vld [vmem:[#allocation52_spill] sm:$0xff] }
 0x72d   :  { %v4130_v62 = vsub.f32 %v7122_v54, %v4098_v21  ;;  %v4226_v43 = vpop.xlane.xlu2 %4225  ;;  %5468 = vrcp.f32 %v4222_v32 }
 0x72e   :  { %v4335_v16 = vsel %vm4002_vm0, %v4303_v31, %v6886_v55  ;;  %5470 = vrcp.f32 %v4226_v43 }
 0x72f   :  { %v7239_v34 = vpop.eup %5466  ;;  %4367 = vst [vmem:[#allocation10 + $0x60] sm:$0xff] %v4335_v16  ;;  %v4193_v56 = vmul.f32 1.442695, %v4130_v62  ;;  %v7551_v62 = vld [vmem:[#allocation25_spill] sm:$0xff] }
 0x730   :  { %4255 = vadd.xlane.f32.xlu2 %v7239_v34 }
 0x731   :  { %5472 = vpow2.f32 %v4193_v56 }
 0x733   :  { %v5469_v40 = vpop.eup %5468 }
 0x734   :  { %v5471_v10 = vpop.eup %5470  ;;  %v4304_v11 = vmul.f32 %v5469_v40, %v7117_v44  ;;  %v4218_v24 = vpop.xlane.xlu1 %4217  ;;  %v7552_v40 = vld [vmem:[#allocation26_spill] sm:$0xff] }
 0x735   :  { %v4228_v54 = vpop.xlane.xlu0 %4227  ;;  %v4306_v42 = vmul.f32 %v5471_v10, %v7115_v51  ;;  %5474 = vrcp.f32 %v4218_v24 }
 0x736   :  { %v4336_v55 = vsel %vm4002_vm0, %v4304_v11, %v6895_v1  ;;  %5476 = vrcp.f32 %v4228_v54  ;;  %v7544_v1 = vld [vmem:[#allocation22_spill] sm:$0xff]  ;;  %v7553_v54 = vld [vmem:[#allocation53_spill] sm:$0xff] }
 0x737   :  { %v7247_v48 = vpop.eup %5472  ;;  %v4338_v30 = vsel %vm4002_vm0, %v4306_v42, %v6918_v15  ;;  %4368 = vst [vmem:[#allocation10 + $0x68] sm:$0xff] %v4336_v55 }
 0x738   :  { %4370 = vst [vmem:[#allocation10 + $0x78] sm:$0xff] %v4338_v30  ;;  %4257 = vadd.xlane.f32.xlu0 %v7247_v48 }
 0x73b   :  { %v5475_v44 = vpop.eup %5474 }
 0x73c   :  { %v5477_v49 = vpop.eup %5476  ;;  %v4302_v51 = vmul.f32 %v5475_v44, %v7134_v14  ;;  %v4224_v7 = vpop.xlane.xlu1 %4223  ;;  %v7554_v44 = vld [vmem:[#allocation54_spill] sm:$0xff] }
 0x73d   :  { %v4307_v46 = vmul.f32 %v5477_v49, %v7132_v23  ;;  %5478 = vrcp.f32 %v4224_v7 }
 0x73e   :  { %v4334_v17 = vsel %vm4002_vm0, %v4302_v51, %v7544_v1 }
 0x73f   :  { %4366 = vst [vmem:[#allocation10 + $0x58] sm:$0xff] %v4334_v17  ;;  %v4339_v15 = vsel %vm4002_vm0, %v4307_v46, %v7545_v6  ;;  %v7555_v46 = vld [vmem:[#allocation27_spill] sm:$0xff] }
 0x740   :  { %4371 = vst [vmem:[#allocation10 + $0x80] sm:$0xff] %v4339_v15  ;;  %v7556_v15 = vld [vmem:[#allocation28_spill] sm:$0xff] }
 0x743   :  { %v5479_v36 = vpop.eup %5478  ;;  %v4232_v2 = vpop.xlane.xlu2 %4231 }
 0x744   :  { %v4305_v53 = vmul.f32 %v5479_v36, %v7144_v8  ;;  %5480 = vrcp.f32 %v4232_v2  ;;  %v4230_v14 = vpop.xlane.xlu1 %4229 }
 0x745   :  { %5482 = vrcp.f32 %v4230_v14  ;;  %v7557_v14 = vld [vmem:[#allocation55_spill] sm:$0xff] }
 0x746   :  { %v4337_v23 = vsel %vm4002_vm0, %v4305_v53, %v7546_v22 }
 0x747   :  { %4369 = vst [vmem:[#allocation10 + $0x70] sm:$0xff] %v4337_v23 }
 0x74a   :  { %v5481_v0 = vpop.eup %5480 }
 0x74b   :  { %v5483_v18 = vpop.eup %5482  ;;  %v4309_v41 = vmul.f32 %v5481_v0, %v7152_v3  ;;  %v4234_v12 = vpop.xlane.xlu0 %4233  ;;  %v7549_v3 = vld [vmem:[#allocation51_spill] sm:$0xff] }
 0x74c   :  { %v4308_v29 = vmul.f32 %v5483_v18, %v7154_v27  ;;  %5484 = vrcp.f32 %v4234_v12  ;;  %v7558_v18 = vld [vmem:[#allocation56_spill] sm:$0xff] }
 0x74d   :  { %v4341_v8 = vsel %vm4002_vm0, %v4309_v41, %v7547_v52  ;;  %v7559_v52 = vld [vmem:[#allocation29_spill] sm:$0xff] }
 0x74e   :  { %4373 = vst [vmem:[#allocation10 + $0x90] sm:$0xff] %v4341_v8  ;;  %v4340_v19 = vsel %vm4002_vm0, %v4308_v29, %v7548_v13 }
 0x74f   :  { %4372 = vst [vmem:[#allocation10 + $0x88] sm:$0xff] %v4340_v19 }
 0x752   :  { %v5485_v45 = vpop.eup %5484 }
 0x753   :  { %v4310_v38 = vmul.f32 %v5485_v45, %v7163_v59  ;;  %v4236_v63 = vpop.xlane.xlu1 %4235 }
 0x754   :  { %5486 = vrcp.f32 %v4236_v63 }
 0x755   :  { %v4342_v27 = vsel %vm4002_vm0, %v4310_v38, %v7549_v3 }
 0x756   :  { %4374 = vst [vmem:[#allocation10 + $0x98] sm:$0xff] %v4342_v27 }
 0x75a   :  { %v5487_v9 = vpop.eup %5486 }
 0x75b   :  { %v4311_v60 = vmul.f32 %v5487_v9, %v7171_v57  ;;  %v4238_v25 = vpop.xlane.xlu2 %4237 }
 0x75c   :  { %5488 = vrcp.f32 %v4238_v25 }
 0x75d   :  { %v4343_v31 = vsel %vm4002_vm0, %v4311_v60, %v7550_v58 }
 0x75e   :  { %4375 = vst [vmem:[#allocation10 + $0xa0] sm:$0xff] %v4343_v31 }
 0x762   :  { %v5489_v21 = vpop.eup %5488 }
 0x763   :  { %v4312_v59 = vmul.f32 %v5489_v21, %v7179_v50  ;;  %v4240_v32 = vpop.xlane.xlu0 %4239 }
 0x764   :  { %5490 = vrcp.f32 %v4240_v32 }
 0x765   :  { %v4344_v43 = vsel %vm4002_vm0, %v4312_v59, %v7551_v62 }
 0x766   :  { %4376 = vst [vmem:[#allocation10 + $0xa8] sm:$0xff] %v4344_v43 }
 0x76a   :  { %v5491_v16 = vpop.eup %5490 }
 0x76b   :  { %v4313_v57 = vmul.f32 %v5491_v16, %v7187_v26  ;;  %v4242_v56 = vpop.xlane.xlu1 %4241 }
 0x76c   :  { %5492 = vrcp.f32 %v4242_v56 }
 0x76d   :  { %v4345_v10 = vsel %vm4002_vm0, %v4313_v57, %v7552_v40 }
 0x76e   :  { %4377 = vst [vmem:[#allocation10 + $0xb0] sm:$0xff] %v4345_v10 }
 0x772   :  { %v5493_v11 = vpop.eup %5492 }
 0x773   :  { %v4314_v50 = vmul.f32 %v5493_v11, %v7195_v39  ;;  %v4244_v24 = vpop.xlane.xlu2 %4243 }
 0x774   :  { %5494 = vrcp.f32 %v4244_v24 }
 0x775   :  { %v4346_v42 = vsel %vm4002_vm0, %v4314_v50, %v7553_v54 }
 0x776   :  { %4378 = vst [vmem:[#allocation10 + $0xb8] sm:$0xff] %v4346_v42 }
 0x77a   :  { %v5495_v55 = vpop.eup %5494 }
 0x77b   :  { %v4315_v26 = vmul.f32 %v5495_v55, %v7203_v33  ;;  %v4246_v30 = vpop.xlane.xlu0 %4245 }
 0x77c   :  { %5496 = vrcp.f32 %v4246_v30 }
 0x77d   :  { %v4347_v49 = vsel %vm4002_vm0, %v4315_v26, %v7554_v44 }
 0x77e   :  { %4379 = vst [vmem:[#allocation10 + $0xc0] sm:$0xff] %v4347_v49 }
 0x782   :  { %v5497_v51 = vpop.eup %5496 }
 0x783   :  { %v4316_v39 = vmul.f32 %v5497_v51, %v7211_v5  ;;  %v4248_v7 = vpop.xlane.xlu1 %4247 }
 0x784   :  { %5498 = vrcp.f32 %v4248_v7 }
 0x785   :  { %v4348_v1 = vsel %vm4002_vm0, %v4316_v39, %v7555_v46 }
 0x786   :  { %4380 = vst [vmem:[#allocation10 + $0xc8] sm:$0xff] %v4348_v1 }
 0x78a   :  { %v5499_v17 = vpop.eup %5498 }
 0x78b   :  { %v4317_v33 = vmul.f32 %v5499_v17, %v7219_v4  ;;  %v4250_v6 = vpop.xlane.xlu2 %4249 }
 0x78c   :  { %5500 = vrcp.f32 %v4250_v6 }
 0x78d   :  { %v4349_v36 = vsel %vm4002_vm0, %v4317_v33, %v7556_v15 }
 0x78e   :  { %4381 = vst [vmem:[#allocation10 + $0xd0] sm:$0xff] %v4349_v36 }
 0x792   :  { %v5501_v2 = vpop.eup %5500 }
 0x793   :  { %v4318_v5 = vmul.f32 %v5501_v2, %v7223_v20  ;;  %v4252_v53 = vpop.xlane.xlu0 %4251 }
 0x794   :  { %5502 = vrcp.f32 %v4252_v53 }
 0x795   :  { %v4350_v22 = vsel %vm4002_vm0, %v4318_v5, %v7557_v14 }
 0x796   :  { %4382 = vst [vmem:[#allocation10 + $0xd8] sm:$0xff] %v4350_v22 }
 0x79a   :  { %v5503_v23 = vpop.eup %5502 }
 0x79b   :  { %v4319_v4 = vmul.f32 %v5503_v23, %v7227_v61  ;;  %v4254_v0 = vpop.xlane.xlu1 %4253 }
 0x79c   :  { %5504 = vrcp.f32 %v4254_v0 }
 0x79d   :  { %v4351_v41 = vsel %vm4002_vm0, %v4319_v4, %v7558_v18 }
 0x79e   :  { %4383 = vst [vmem:[#allocation10 + $0xe0] sm:$0xff] %v4351_v41 }
 0x7a2   :  { %v5505_v12 = vpop.eup %5504 }
 0x7a3   :  { %v4320_v20 = vmul.f32 %v5505_v12, %v7231_v35  ;;  %v4256_v29 = vpop.xlane.xlu2 %4255 }
 0x7a4   :  { %5506 = vrcp.f32 %v4256_v29 }
 0x7a5   :  { %v4352_v8 = vsel %vm4002_vm0, %v4320_v20, %v7559_v52 }
 0x7a6   :  { %4384 = vst [vmem:[#allocation10 + $0xe8] sm:$0xff] %v4352_v8 }
 0x7aa   :  { %v5507_v13 = vpop.eup %5506 }
 0x7ab   :  { %v4321_v61 = vmul.f32 %v5507_v13, %v7239_v34  ;;  %v4258_v19 = vpop.xlane.xlu0 %4257 }
 0x7ac   :  { %5508 = vrcp.f32 %v4258_v19 }
 0x7ad   :  { %v4353_v45 = vsel %vm4002_vm0, %v4321_v61, %v7099_v28 }
 0x7ae   :  { %4385 = vst [vmem:[#allocation10 + $0xf0] sm:$0xff] %v4353_v45 }
 0x7b2   :  { %v5509_v35 = vpop.eup %5508 }
 0x7b3   :  { %v4322_v38 = vmul.f32 %v5509_v35, %v7247_v48 }
 0x7b5   :  { %v4354_v34 = vsel %vm4002_vm0, %v4322_v38, %v7113_v37 }
 0x7b6   :  { %4386 = vst [vmem:[#allocation10 + $0xf8] sm:$0xff] %v4354_v34 }
 0x7b7   :  { %4399 = dma.vmem_to_hbm [thread:$0]  %s4392_s17, 4096, %s4394_s20, [#allocation4], %s5652_s21, %s5652_s21, %s5653_s22  }
 0x7b8   :  { %5639 = dma.done.wait [#allocation4], 4096  }
 0x7b9   :  { %5640 = vsyncadd [#allocation4], 4294963200 }
 0x7ba   :  { %4404 = vsyncpa [#allocation3], 1 }
 0x7bb   :  { %4405 = vsyncpa [#allocation6], 1 }
 0x7bc   :  { %4406 = vsyncpa [#allocation9], 1 }
 0x7bd   :  { %4407 = vsyncpa [#allocation4], 1 }

// kernel: tpu_custom_call.1
= control target key start
LH: loop header
LB: loop body
LE: loop exit
PB: predicated region body
PF: predicated region fallthrough
CT: control target
= control target key end

     0   :  { %10 = vsyncpa [#allocation3], 0  ;;  %s7328_s0 = inlined_call_operand.hbm [shape: f32[256,256], index: 0, kind: input, shape index: {}]   ;;  %s7329_s1 = inlined_call_operand.hbm [shape: bf16[256,1024], index: 1, kind: input, shape index: {}]   ;;  %s7330_s2 = inlined_call_operand.hbm [shape: f32[1,1024], index: 2, kind: input, shape index: {}]   ;;  %s7331_s3 = inlined_call_operand.hbm [shape: bf16[1024,128], index: 3, kind: input, shape index: {}]   ;;  %s7332_s4 = inlined_call_operand.vmem [shape: f32[1,128], index: 4, kind: input, shape index: {}]   ;;  %s7333_s5 = inlined_call_operand.hbm [shape: f32[256,128], index: 5, kind: output, shape index: {}]  }
   0x1   :  { %11 = vsyncpa [#allocation6], 0 }
   0x2   :  { %12 = vsyncpa [#allocation9], 0  ;;  %s31_s20 = sshll.u32 %s7329_s1, 4  ;;  %s32_s20 = int_to_ptr.hbm [resolvable:$true] %s31_s20 }
   0x3   :  { %13 = vsyncpa [#allocation4], 0  ;;  %s5641_s21 = smov [#allocation5]   ;;  %s18_s25 = sshll.u32 %s7328_s0, 4  ;;  %s19_s25 = int_to_ptr.hbm [resolvable:$true] %s18_s25 }
   0x4   :  { %s33_s22 = sshll.u32 %s5641_s21, 4  ;;  %s5642_s26 = smov 512   ;;  %s34_s22 = int_to_ptr.vmem [resolvable:$true] %s33_s22 }
   0x5   :  { %s5643_s27 = smov 32   ;;  %s5644_s28 = smov [#allocation2]  }
   0x6   :  { %39 = dma.hbm_to_vmem [thread:$0]  %s32_s20, 16384, %s34_s22, [#allocation6], %s5642_s26, %s5642_s26, %s5643_s27  }
   0x7   :  { %s20_s29 = sshll.u32 %s5644_s28, 4  ;;  %s5645_s30 = smov 256   ;;  %s21_s29 = int_to_ptr.vmem [resolvable:$true] %s20_s29 }
   0x8   :  { %s5646_s6 = smov 16   ;;  %s45_s8 = sshll.u32 %s7330_s2, 4  ;;  %s46_s8 = int_to_ptr.hbm [resolvable:$true] %s45_s8 }
   0x9   :  { %26 = dma.hbm_to_vmem [thread:$0]  %s19_s25, 8192, %s21_s29, [#allocation3], %s5645_s30, %s5645_s30, %s5646_s6  }
   0xa   :  { %s5647_s9 = smov [#allocation7]   ;;  %s55_s12 = sshll.u32 %s7331_s3, 4  ;;  %s56_s12 = int_to_ptr.hbm [resolvable:$true] %s55_s12 }
   0xb   :  { %s47_s10 = sshll.u32 %s5647_s9, 4  ;;  %s5648_s13 = smov [#allocation8]   ;;  %s48_s10 = int_to_ptr.vmem [resolvable:$true] %s47_s10 }
   0xc   :  { %50 = dma.hbm_to_vmem [thread:$0]  %s46_s8, 128, %s48_s10, [#allocation6]  }
   0xd   :  { %s57_s14 = sshll.u32 %s5648_s13, 4  ;;  %s5649_s15 = smov 64   ;;  %s58_s14 = int_to_ptr.vmem [resolvable:$true] %s57_s14 }
   0xe   :  { %s5650_s16 = smov 4  }
   0xf   :  { %63 = dma.hbm_to_vmem [thread:$0]  %s56_s12, 8192, %s58_s14, [#allocation9], %s5649_s15, %s5649_s15, %s5650_s16  }
  0x10   :  { %5633 = dma.done.wait [#allocation3], 8192  }
  0x11   :  { %5634 = vsyncadd [#allocation3], 4294959104 }
  0x12   :  { %5635 = dma.done.wait [#allocation6], 16512  }
  0x13   :  { %5636 = vsyncadd [#allocation6], 4294950784 }
  0x14   :  { %5637 = dma.done.wait [#allocation9], 8192  }
  0x15   :  { %5638 = vsyncadd [#allocation9], 4294959104  ;;  %v4634_v0 = vld [vmem:[#allocation5 + $0x1c0] sm:$0xf]  ;;  %v5232_v5 = vld [vmem:[#allocation5 + $0x1c4] sm:$0xf] }
  0x16   :  { %v5236_v1 = vld [vmem:[#allocation5 + $0x1dc] sm:$0xf0]  ;;  %v4636_v6 = vld [vmem:[#allocation5 + $0x1e0] sm:$0xf0]  ;;  %s4393_s20 = sshll.u32 %s7333_s5, 4  ;;  %s5652_s21 = smov 128   ;;  %s4394_s20 = int_to_ptr.hbm [resolvable:$true] %s4393_s20 }
  0x17   :  { %v4890_v2 = vld [vmem:[#allocation5 + $0x3c0] sm:$0xf]  ;;  %v4635_v3 = vor.u32 %v5236_v1, %v4634_v0  ;;  %v4639_v8 = vor.u32 %v5232_v5, %v4636_v6  ;;  %v5296_v9 = vld [vmem:[#allocation5 + $0x3c4] sm:$0xf]  ;;  %s5653_s22 = smov 8  }
  0x18   :  { %v5300_v4 = vld [vmem:[#allocation5 + $0x3dc] sm:$0xf0]  ;;  %v4892_v10 = vld [vmem:[#allocation5 + $0x3e0] sm:$0xf0] }
  0x19   :  { %v4891_v7 = vor.u32 %v5300_v4, %v4890_v2  ;;  %v4602_v11 = vld [vmem:[#allocation5 + $0x180] sm:$0xf]  ;;  %964 = vmatpush.bf16.msra.mxu0 %v4635_v3  ;;  %v4895_v12 = vor.u32 %v5296_v9, %v4892_v10  ;;  %1142 = vmatpush.bf16.msra.mxu2 %v4639_v8  ;;  %v5224_v18 = vld [vmem:[#allocation5 + $0x184] sm:$0xf] }
  0x1a   :  { %v5228_v13 = vld [vmem:[#allocation5 + $0x19c] sm:$0xf0]  ;;  %v4604_v19 = vld [vmem:[#allocation5 + $0x1a0] sm:$0xf0] }
  0x1b   :  { %v4858_v14 = vld [vmem:[#allocation5 + $0x380] sm:$0xf]  ;;  %1053 = vmatpush.bf16.msra.mxu1 %v4891_v7  ;;  %v4603_v16 = vor.u32 %v5228_v13, %v4602_v11  ;;  %v5288_v20 = vld [vmem:[#allocation5 + $0x384] sm:$0xf]  ;;  %1231 = vmatpush.bf16.msra.mxu3 %v4895_v12  ;;  %v4607_v21 = vor.u32 %v5224_v18, %v4604_v19 }
  0x1c   :  { %v5292_v15 = vld [vmem:[#allocation5 + $0x39c] sm:$0xf0]  ;;  %v4860_v22 = vld [vmem:[#allocation5 + $0x3a0] sm:$0xf0] }
  0x1d   :  { %v4859_v17 = vor.u32 %v5292_v15, %v4858_v14  ;;  %v4570_v23 = vld [vmem:[#allocation5 + $0x140] sm:$0xf]  ;;  %v4863_v25 = vor.u32 %v5288_v20, %v4860_v22  ;;  %v5216_v28 = vld [vmem:[#allocation5 + $0x144] sm:$0xf]  ;;  %965 = vmatpush.bf16.msra.mxu0 %v4603_v16  ;;  %1143 = vmatpush.bf16.msra.mxu2 %v4607_v21 }
  0x1e   :  { %v5220_v24 = vld [vmem:[#allocation5 + $0x15c] sm:$0xf0]  ;;  %v4572_v30 = vld [vmem:[#allocation5 + $0x160] sm:$0xf0] }
  0x1f   :  { %v4826_v26 = vld [vmem:[#allocation5 + $0x340] sm:$0xf]  ;;  %v4571_v29 = vor.u32 %v5220_v24, %v4570_v23  ;;  %v5280_v31 = vld [vmem:[#allocation5 + $0x344] sm:$0xf]  ;;  %1054 = vmatpush.bf16.msra.mxu1 %v4859_v17  ;;  %v4575_v34 = vor.u32 %v5216_v28, %v4572_v30  ;;  %1232 = vmatpush.bf16.msra.mxu3 %v4863_v25  ;;  %v5233_v30 = vld [vmem:[#allocation5 + $0x1cc] sm:$0xf] }
  0x20   :  { %v5284_v27 = vld [vmem:[#allocation5 + $0x35c] sm:$0xf0]  ;;  %v4828_v32 = vld [vmem:[#allocation5 + $0x360] sm:$0xf0] }
  0x21   :  { %v4827_v33 = vor.u32 %v5284_v27, %v4826_v26  ;;  %v4538_v35 = vld [vmem:[#allocation5 + $0x100] sm:$0xf]  ;;  %v4831_v38 = vor.u32 %v5280_v31, %v4828_v32  ;;  %v5208_v40 = vld [vmem:[#allocation5 + $0x104] sm:$0xf]  ;;  %966 = vmatpush.bf16.msra.mxu0 %v4571_v29  ;;  %1144 = vmatpush.bf16.msra.mxu2 %v4575_v34  ;;  %v84_v29 = vld [vmem:[#allocation2 + $0x10] sm:$0xff] }
  0x22   :  { %v5212_v36 = vld [vmem:[#allocation5 + $0x11c] sm:$0xf0]  ;;  %v4540_v41 = vld [vmem:[#allocation5 + $0x120] sm:$0xf0]  ;;  %v4644_v31 = vld [vmem:[#allocation5 + $0x1e8] sm:$0xf0] }
  0x23   :  { %v4794_v37 = vld [vmem:[#allocation5 + $0x300] sm:$0xf]  ;;  %v5272_v42 = vld [vmem:[#allocation5 + $0x304] sm:$0xf]  ;;  %v4539_v44 = vor.u32 %v5212_v36, %v4538_v35  ;;  %1055 = vmatpush.bf16.msra.mxu1 %v4827_v33  ;;  %v4543_v46 = vor.u32 %v5208_v40, %v4540_v41  ;;  %1233 = vmatpush.bf16.msra.mxu3 %v4831_v38  ;;  %v5297_v33 = vld [vmem:[#allocation5 + $0x3cc] sm:$0xf]  ;;  %v4647_v40 = vor.u32 %v5233_v30, %v4644_v31 }
  0x24   :  { %v5276_v39 = vld [vmem:[#allocation5 + $0x31c] sm:$0xf0]  ;;  %v4796_v43 = vld [vmem:[#allocation5 + $0x320] sm:$0xf0]  ;;  %v4900_v34 = vld [vmem:[#allocation5 + $0x3e8] sm:$0xf0] }
  0x25   :  { %v4795_v45 = vor.u32 %v5276_v39, %v4794_v37  ;;  %v4506_v47 = vld [vmem:[#allocation5 + $0xc0] sm:$0xf]  ;;  %v4799_v50 = vor.u32 %v5272_v42, %v4796_v43  ;;  %v5200_v52 = vld [vmem:[#allocation5 + $0xc4] sm:$0xf]  ;;  %967 = vmatpush.bf16.msra.mxu0 %v4539_v44  ;;  %1145 = vmatpush.bf16.msra.mxu2 %v4543_v46  ;;  %v83_v37 = vld [vmem:[#allocation2 + $0x8] sm:$0xff]  ;;  %v4903_v44 = vor.u32 %v5297_v33, %v4900_v34 }
  0x26   :  { %v5204_v48 = vld [vmem:[#allocation5 + $0xdc] sm:$0xf0]  ;;  %v4508_v53 = vld [vmem:[#allocation5 + $0xe0] sm:$0xf0]  ;;  %v85_v38 = vld [vmem:[#allocation2 + $0x18] sm:$0xff] }
  0x27   :  { %v4762_v49 = vld [vmem:[#allocation5 + $0x2c0] sm:$0xf]  ;;  %v5264_v54 = vld [vmem:[#allocation5 + $0x2c4] sm:$0xf]  ;;  %v4507_v56 = vor.u32 %v5204_v48, %v4506_v47  ;;  %1056 = vmatpush.bf16.msra.mxu1 %v4795_v45  ;;  %v4511_v58 = vor.u32 %v5200_v52, %v4508_v53  ;;  %1234 = vmatpush.bf16.msra.mxu3 %v4799_v50  ;;  %v4642_v41 = vld [vmem:[#allocation5 + $0x1c8] sm:$0xf]  ;;  %v5698_v47 = vpack.c.bf16 %v85_v38, %v83_v37 }
  0x28   :  { %v5268_v51 = vld [vmem:[#allocation5 + $0x2dc] sm:$0xf0]  ;;  %v4764_v55 = vld [vmem:[#allocation5 + $0x2e0] sm:$0xf0]  ;;  %v5237_v42 = vld [vmem:[#allocation5 + $0x1e4] sm:$0xf0] }
  0x29   :  { %v4763_v57 = vor.u32 %v5268_v51, %v4762_v49  ;;  %v4474_v59 = vld [vmem:[#allocation5 + $0x80] sm:$0xf]  ;;  %v4767_v62 = vor.u32 %v5264_v54, %v4764_v55  ;;  %v5192_v0 = vld [vmem:[#allocation5 + $0x84] sm:$0xf]  ;;  %968 = vmatpush.bf16.msra.mxu0 %v4507_v56  ;;  %1146 = vmatpush.bf16.msra.mxu2 %v4511_v58  ;;  %v4898_v45 = vld [vmem:[#allocation5 + $0x3c8] sm:$0xf]  ;;  %v4643_v48 = vor.u32 %v5237_v42, %v4642_v41 }
  0x2a   :  { %v5196_v60 = vld [vmem:[#allocation5 + $0x9c] sm:$0xf0]  ;;  %v4476_v1 = vld [vmem:[#allocation5 + $0xa0] sm:$0xf0]  ;;  %v5301_v46 = vld [vmem:[#allocation5 + $0x3e4] sm:$0xf0] }
  0x2b   :  { %v4730_v61 = vld [vmem:[#allocation5 + $0x280] sm:$0xf]  ;;  %v5256_v2 = vld [vmem:[#allocation5 + $0x284] sm:$0xf]  ;;  %v4475_v4 = vor.u32 %v5196_v60, %v4474_v59  ;;  %1057 = vmatpush.bf16.msra.mxu1 %v4763_v57  ;;  %v4479_v6 = vor.u32 %v5192_v0, %v4476_v1  ;;  %1235 = vmatpush.bf16.msra.mxu3 %v4767_v62  ;;  %v4899_v49 = vor.u32 %v5301_v46, %v4898_v45  ;;  %v5225_v50 = vld [vmem:[#allocation5 + $0x18c] sm:$0xf] }
  0x2c   :  { %v5260_v63 = vld [vmem:[#allocation5 + $0x29c] sm:$0xf0]  ;;  %v4732_v3 = vld [vmem:[#allocation5 + $0x2a0] sm:$0xf0]  ;;  %v4612_v51 = vld [vmem:[#allocation5 + $0x1a8] sm:$0xf0] }
  0x2d   :  { %v4731_v5 = vor.u32 %v5260_v63, %v4730_v61  ;;  %v4442_v7 = vld [vmem:[#allocation5 + $0x40] sm:$0xf]  ;;  %v4735_v10 = vor.u32 %v5256_v2, %v4732_v3  ;;  %v5184_v12 = vld [vmem:[#allocation5 + $0x44] sm:$0xf]  ;;  %969 = vmatpush.bf16.msra.mxu0 %v4475_v4  ;;  %1147 = vmatpush.bf16.msra.mxu2 %v4479_v6  ;;  %v4610_v52 = vld [vmem:[#allocation5 + $0x188] sm:$0xf]  ;;  %v4615_v53 = vor.u32 %v5225_v50, %v4612_v51 }
  0x2e   :  { %v5188_v8 = vld [vmem:[#allocation5 + $0x5c] sm:$0xf0]  ;;  %v4444_v13 = vld [vmem:[#allocation5 + $0x60] sm:$0xf0]  ;;  %v5229_v54 = vld [vmem:[#allocation5 + $0x1a4] sm:$0xf0] }
  0x2f   :  { %v4698_v9 = vld [vmem:[#allocation5 + $0x240] sm:$0xf]  ;;  %v5248_v14 = vld [vmem:[#allocation5 + $0x244] sm:$0xf]  ;;  %v4443_v16 = vor.u32 %v5188_v8, %v4442_v7  ;;  %1058 = vmatpush.bf16.msra.mxu1 %v4731_v5  ;;  %v4447_v21 = vor.u32 %v5184_v12, %v4444_v13  ;;  %1236 = vmatpush.bf16.msra.mxu3 %v4735_v10  ;;  %v5289_v55 = vld [vmem:[#allocation5 + $0x38c] sm:$0xf]  ;;  %v4611_v57 = vor.u32 %v5229_v54, %v4610_v52 }
  0x30   :  { %v5252_v11 = vld [vmem:[#allocation5 + $0x25c] sm:$0xf0]  ;;  %v4700_v15 = vld [vmem:[#allocation5 + $0x260] sm:$0xf0]  ;;  %v4868_v56 = vld [vmem:[#allocation5 + $0x3a8] sm:$0xf0] }
  0x31   :  { %v4410_v17 = vld [vmem:[#allocation5] sm:$0xf]  ;;  %v4699_v20 = vor.u32 %v5252_v11, %v4698_v9  ;;  %v5176_v23 = vld [vmem:[#allocation5 + $0x4] sm:$0xf]  ;;  %v4703_v25 = vor.u32 %v5248_v14, %v4700_v15  ;;  %970 = vmatpush.bf16.msra.mxu0 %v4443_v16  ;;  %1148 = vmatpush.bf16.msra.mxu2 %v4447_v21  ;;  %v4871_v58 = vor.u32 %v5289_v55, %v4868_v56  ;;  %v4866_v59 = vld [vmem:[#allocation5 + $0x388] sm:$0xf] }
  0x32   :  { %v5180_v18 = vld [vmem:[#allocation5 + $0x1c] sm:$0xf0]  ;;  %v4412_v24 = vld [vmem:[#allocation5 + $0x20] sm:$0xf0]  ;;  %v5293_v60 = vld [vmem:[#allocation5 + $0x3a4] sm:$0xf0] }
  0x33   :  { %v4666_v19 = vld [vmem:[#allocation5 + $0x200] sm:$0xf]  ;;  %v5240_v26 = vld [vmem:[#allocation5 + $0x204] sm:$0xf]  ;;  %v4411_v32 = vor.u32 %v5180_v18, %v4410_v17  ;;  %1059 = vmatpush.bf16.msra.mxu1 %v4699_v20  ;;  %v4415_v36 = vor.u32 %v5176_v23, %v4412_v24  ;;  %1237 = vmatpush.bf16.msra.mxu3 %v4703_v25  ;;  %v4867_v61 = vor.u32 %v5293_v60, %v4866_v59  ;;  %v88_v63 = vld [vmem:[#allocation2 + $0x30] sm:$0xff] }
  0x34   :  { %v5244_v22 = vld [vmem:[#allocation5 + $0x21c] sm:$0xf0]  ;;  %v4668_v27 = vld [vmem:[#allocation5 + $0x220] sm:$0xf0]  ;;  %v87_v0 = vld [vmem:[#allocation2 + $0x28] sm:$0xff] }
  0x35   :  { %v82_v28 = vld [vmem:[#allocation2] sm:$0xff]  ;;  %v4667_v35 = vor.u32 %v5244_v22, %v4666_v19  ;;  %v4671_v39 = vor.u32 %v5240_v26, %v4668_v27  ;;  %971 = vmatpush.bf16.msra.mxu0 %v4411_v32  ;;  %1149 = vmatpush.bf16.msra.mxu2 %v4415_v36  ;;  %v89_v1 = vld [vmem:[#allocation2 + $0x38] sm:$0xff]  ;;  %v92_v5 = vld [vmem:[#allocation2 + $0x50] sm:$0xff] }
  0x36   :  { %v5696_v43 = vpack.c.bf16 %v84_v29, %v82_v28  ;;  %v86_v62 = vld [vmem:[#allocation2 + $0x20] sm:$0xff]  ;;  %v5706_v3 = vpack.c.bf16 %v89_v1, %v87_v0  ;;  %v91_v6 = vld [vmem:[#allocation2 + $0x48] sm:$0xff]  ;;  %v93_v7 = vld [vmem:[#allocation2 + $0x58] sm:$0xff] }
  0x37   :  { %1060 = vmatpush.bf16.msra.mxu1 %v4667_v35  ;;  %1238 = vmatpush.bf16.msra.mxu3 %v4671_v39  ;;  %v5704_v2 = vpack.c.bf16 %v88_v63, %v86_v62  ;;  %v90_v4 = vld [vmem:[#allocation2 + $0x40] sm:$0xff]  ;;  %v5714_v9 = vpack.c.bf16 %v93_v7, %v91_v6  ;;  %v5217_v10 = vld [vmem:[#allocation5 + $0x14c] sm:$0xf]  ;;  %v4578_v12 = vld [vmem:[#allocation5 + $0x148] sm:$0xf] }
  0x38   :  { %972 = vmatmul.bf16.vlgmr.msra.gmra.mxu0 %v5696_v43  ;;  %1150 = vmatmul.bf16.vlgmr.msra.gmra.mxu2 %v5696_v43  ;;  %v5712_v8 = vpack.c.bf16 %v92_v5, %v90_v4  ;;  %v4580_v11 = vld [vmem:[#allocation5 + $0x168] sm:$0xf0]  ;;  %v5221_v14 = vld [vmem:[#allocation5 + $0x164] sm:$0xf0]  ;;  %v94_v22 = vld [vmem:[#allocation2 + $0x60] sm:$0xff] }
  0x39   :  { %1498 = vmatpush.bf16.msrb.mxu2 %v4647_v40  ;;  %1320 = vmatpush.bf16.msrb.mxu0 %v4643_v48  ;;  %v4583_v13 = vor.u32 %v5217_v10, %v4580_v11  ;;  %v5281_v15 = vld [vmem:[#allocation5 + $0x34c] sm:$0xf]  ;;  %v4579_v17 = vor.u32 %v5221_v14, %v4578_v12  ;;  %v4834_v19 = vld [vmem:[#allocation5 + $0x348] sm:$0xf]  ;;  %v96_v23 = vld [vmem:[#allocation2 + $0x70] sm:$0xff] }
  0x3a   :  { %1061 = vmatmul.bf16.vlgmr.msra.gmra.mxu1 %v5698_v47  ;;  %1239 = vmatmul.bf16.vlgmr.msra.gmra.mxu3 %v5698_v47  ;;  %v4836_v16 = vld [vmem:[#allocation5 + $0x368] sm:$0xf0]  ;;  %v5285_v20 = vld [vmem:[#allocation5 + $0x364] sm:$0xf0]  ;;  %v97_v25 = vld [vmem:[#allocation2 + $0x78] sm:$0xff]  ;;  %v5720_v26 = vpack.c.bf16 %v96_v23, %v94_v22 }
  0x3b   :  { %1587 = vmatpush.bf16.msrb.mxu3 %v4903_v44  ;;  %1409 = vmatpush.bf16.msrb.mxu1 %v4899_v49  ;;  %v4839_v18 = vor.u32 %v5281_v15, %v4836_v16  ;;  %v4835_v21 = vor.u32 %v5285_v20, %v4834_v19  ;;  %v95_v24 = vld [vmem:[#allocation2 + $0x68] sm:$0xff]  ;;  %v98_v28 = vld [vmem:[#allocation2 + $0x80] sm:$0xff]  ;;  %v100_v29 = vld [vmem:[#allocation2 + $0x90] sm:$0xff] }
  0x3c   :  { %v5722_v27 = vpack.c.bf16 %v97_v25, %v95_v24  ;;  %v99_v30 = vld [vmem:[#allocation2 + $0x88] sm:$0xff]  ;;  %v101_v31 = vld [vmem:[#allocation2 + $0x98] sm:$0xff]  ;;  %v5728_v32 = vpack.c.bf16 %v100_v29, %v98_v28  ;;  %v102_v48 = vld [vmem:[#allocation2 + $0xa0] sm:$0xff] }
  0x3d   :  { %1499 = vmatpush.bf16.msrb.mxu2 %v4615_v53  ;;  %1321 = vmatpush.bf16.msrb.mxu0 %v4611_v57  ;;  %v5730_v33 = vpack.c.bf16 %v101_v31, %v99_v30  ;;  %v5209_v34 = vld [vmem:[#allocation5 + $0x10c] sm:$0xf]  ;;  %v4546_v36 = vld [vmem:[#allocation5 + $0x108] sm:$0xf]  ;;  %v104_v49 = vld [vmem:[#allocation2 + $0xb0] sm:$0xff] }
  0x3e   :  { %v4548_v35 = vld [vmem:[#allocation5 + $0x128] sm:$0xf0]  ;;  %v5213_v38 = vld [vmem:[#allocation5 + $0x124] sm:$0xf0]  ;;  %v105_v51 = vld [vmem:[#allocation2 + $0xb8] sm:$0xff]  ;;  %v5736_v52 = vpack.c.bf16 %v104_v49, %v102_v48 }
  0x3f   :  { %1588 = vmatpush.bf16.msrb.mxu3 %v4871_v58  ;;  %1410 = vmatpush.bf16.msrb.mxu1 %v4867_v61  ;;  %v4551_v37 = vor.u32 %v5209_v34, %v4548_v35  ;;  %v5273_v39 = vld [vmem:[#allocation5 + $0x30c] sm:$0xf]  ;;  %v4547_v41 = vor.u32 %v5213_v38, %v4546_v36  ;;  %v4802_v44 = vld [vmem:[#allocation5 + $0x308] sm:$0xf]  ;;  %v106_v54 = vld [vmem:[#allocation2 + $0xc0] sm:$0xff] }
  0x40   :  { %v4804_v40 = vld [vmem:[#allocation5 + $0x328] sm:$0xf0]  ;;  %v5277_v45 = vld [vmem:[#allocation5 + $0x324] sm:$0xf0]  ;;  %v108_v55 = vld [vmem:[#allocation2 + $0xd0] sm:$0xff] }
  0x41   :  { %1500 = vmatpush.bf16.msrb.mxu2 %v4583_v13  ;;  %1322 = vmatpush.bf16.msrb.mxu0 %v4579_v17  ;;  %v4807_v42 = vor.u32 %v5273_v39, %v4804_v40  ;;  %v4803_v46 = vor.u32 %v5277_v45, %v4802_v44  ;;  %v103_v50 = vld [vmem:[#allocation2 + $0xa8] sm:$0xff]  ;;  %v109_v57 = vld [vmem:[#allocation2 + $0xd8] sm:$0xff]  ;;  %v5744_v58 = vpack.c.bf16 %v108_v55, %v106_v54  ;;  %v110_v7 = vld [vmem:[#allocation2 + $0xe0] sm:$0xff] }
  0x42   :  { %v5738_v53 = vpack.c.bf16 %v105_v51, %v103_v50  ;;  %v107_v56 = vld [vmem:[#allocation2 + $0xc8] sm:$0xff]  ;;  %v112_v10 = vld [vmem:[#allocation2 + $0xf0] sm:$0xff]  ;;  %v113_v14 = vld [vmem:[#allocation2 + $0xf8] sm:$0xff] }
  0x43   :  { %1589 = vmatpush.bf16.msrb.mxu3 %v4839_v18  ;;  %1411 = vmatpush.bf16.msrb.mxu1 %v4835_v21  ;;  %v5746_v59 = vpack.c.bf16 %v109_v57, %v107_v56  ;;  %v5201_v60 = vld [vmem:[#allocation5 + $0xcc] sm:$0xf]  ;;  %v4514_v62 = vld [vmem:[#allocation5 + $0xc8] sm:$0xf]  ;;  %v5752_v16 = vpack.c.bf16 %v112_v10, %v110_v7  ;;  %v306_v18 = vld [vmem:[#allocation7] sm:$0xff] }
  0x44   :  { %v4516_v61 = vld [vmem:[#allocation5 + $0xe8] sm:$0xf0]  ;;  %v5205_v0 = vld [vmem:[#allocation5 + $0xe4] sm:$0xf0]  ;;  %v114_v19 = vld [vmem:[#allocation2 + $0x100] sm:$0xff]  ;;  %v5760_v21 = vperm.slane %v306_v18, 0 }
  0x45   :  { %1501 = vmatpush.bf16.msrb.mxu2 %v4551_v37  ;;  %1323 = vmatpush.bf16.msrb.mxu0 %v4547_v41  ;;  %v4519_v63 = vor.u32 %v5201_v60, %v4516_v61  ;;  %v5265_v1 = vld [vmem:[#allocation5 + $0x2cc] sm:$0xf]  ;;  %v4515_v5 = vor.u32 %v5205_v0, %v4514_v62  ;;  %v4770_v11 = vld [vmem:[#allocation5 + $0x2c8] sm:$0xf]  ;;  %v116_v20 = vld [vmem:[#allocation2 + $0x110] sm:$0xff]  ;;  %v5770_v34 = vperm.slane %v306_v18, 1 }
  0x46   :  { %v4772_v4 = vld [vmem:[#allocation5 + $0x2e8] sm:$0xf0]  ;;  %v5269_v12 = vld [vmem:[#allocation5 + $0x2e4] sm:$0xf0]  ;;  %v117_v23 = vld [vmem:[#allocation2 + $0x118] sm:$0xff]  ;;  %v5762_v24 = vpack.c.bf16 %v116_v20, %v114_v19 }
  0x47   :  { %1590 = vmatpush.bf16.msrb.mxu3 %v4807_v42  ;;  %1412 = vmatpush.bf16.msrb.mxu1 %v4803_v46  ;;  %v4775_v6 = vor.u32 %v5265_v1, %v4772_v4  ;;  %v111_v13 = vld [vmem:[#allocation2 + $0xe8] sm:$0xff]  ;;  %v4771_v15 = vor.u32 %v5269_v12, %v4770_v11  ;;  %v118_v56 = vld [vmem:[#allocation2 + $0x120] sm:$0xff]  ;;  %v120_v57 = vld [vmem:[#allocation2 + $0x130] sm:$0xff] }
  0x48   :  { %977 = vmatmul.bf16.gmra.mxu0 %v5704_v2  ;;  %1155 = vmatmul.bf16.gmra.mxu2 %v5704_v2  ;;  %v5754_v17 = vpack.c.bf16 %v113_v14, %v111_v13  ;;  %v115_v22 = vld [vmem:[#allocation2 + $0x108] sm:$0xff]  ;;  %v121_v1 = vld [vmem:[#allocation2 + $0x138] sm:$0xff]  ;;  %v5777_v7 = vpack.c.bf16 %v120_v57, %v118_v56 }
  0x49   :  { %1502 = vmatpush.bf16.msrb.mxu2 %v4519_v63  ;;  %1324 = vmatpush.bf16.msrb.mxu0 %v4515_v5  ;;  %v5764_v28 = vpack.c.bf16 %v117_v23, %v115_v22  ;;  %v5193_v35 = vld [vmem:[#allocation5 + $0x8c] sm:$0xf]  ;;  %v4482_v38 = vld [vmem:[#allocation5 + $0x88] sm:$0xf] }
  0x4a   :  { %1066 = vmatmul.bf16.gmra.mxu1 %v5706_v3  ;;  %1244 = vmatmul.bf16.gmra.mxu3 %v5706_v3  ;;  %v4484_v36 = vld [vmem:[#allocation5 + $0xa8] sm:$0xf0]  ;;  %v5197_v39 = vld [vmem:[#allocation5 + $0xa4] sm:$0xf0] }
  0x4b   :  { %1591 = vmatpush.bf16.msrb.mxu3 %v4775_v6  ;;  %1413 = vmatpush.bf16.msrb.mxu1 %v4771_v15  ;;  %v4487_v37 = vor.u32 %v5193_v35, %v4484_v36  ;;  %v5257_v40 = vld [vmem:[#allocation5 + $0x28c] sm:$0xf]  ;;  %v4483_v42 = vor.u32 %v5197_v39, %v4482_v38  ;;  %v4738_v60 = vld [vmem:[#allocation5 + $0x288] sm:$0xf]  ;;  %v122_v39 = vld [vmem:[#allocation2 + $0x140] sm:$0xff] }
  0x4c   :  { %v4740_v44 = vld [vmem:[#allocation5 + $0x2a8] sm:$0xf0]  ;;  %v5261_v61 = vld [vmem:[#allocation5 + $0x2a4] sm:$0xf0] }
  0x4d   :  { %1503 = vmatpush.bf16.msrb.mxu2 %v4487_v37  ;;  %v4743_v49 = vor.u32 %v5257_v40, %v4740_v44  ;;  %1325 = vmatpush.bf16.msrb.mxu0 %v4483_v42  ;;  %v119_v0 = vld [vmem:[#allocation2 + $0x128] sm:$0xff]  ;;  %v4739_v4 = vor.u32 %v5261_v61, %v4738_v60  ;;  %v124_v40 = vld [vmem:[#allocation2 + $0x150] sm:$0xff] }
  0x4e   :  { %v5780_v13 = vpack.c.bf16 %v121_v1, %v119_v0  ;;  %v123_v44 = vld [vmem:[#allocation2 + $0x148] sm:$0xff] }
  0x4f   :  { %1592 = vmatpush.bf16.msrb.mxu3 %v4743_v49  ;;  %1414 = vmatpush.bf16.msrb.mxu1 %v4739_v4  ;;  %v5185_v0 = vld [vmem:[#allocation5 + $0x4c] sm:$0xf] }
  0x50   :  { %v4452_v1 = vld [vmem:[#allocation5 + $0x68] sm:$0xf0] }
  0x51   :  { %v4455_v4 = vor.u32 %v5185_v0, %v4452_v1 }
  0x53   :  { %1504 = vmatpush.bf16.msrb.mxu2 %v4455_v4 }
  0x58   :  { %982 = vmatmul.bf16.gmra.mxu0 %v5712_v8  ;;  %1160 = vmatmul.bf16.gmra.mxu2 %v5712_v8 }
  0x5a   :  { %1071 = vmatmul.bf16.gmra.mxu1 %v5714_v9  ;;  %1249 = vmatmul.bf16.gmra.mxu3 %v5714_v9 }
  0x68   :  { %987 = vmatmul.bf16.gmra.mxu0 %v5720_v26  ;;  %1165 = vmatmul.bf16.gmra.mxu2 %v5720_v26 }
  0x6a   :  { %1076 = vmatmul.bf16.gmra.mxu1 %v5722_v27  ;;  %1254 = vmatmul.bf16.gmra.mxu3 %v5722_v27 }
  0x78   :  { %992 = vmatmul.bf16.gmra.mxu0 %v5728_v32  ;;  %1170 = vmatmul.bf16.gmra.mxu2 %v5728_v32 }
  0x7a   :  { %1081 = vmatmul.bf16.gmra.mxu1 %v5730_v33  ;;  %1259 = vmatmul.bf16.gmra.mxu3 %v5730_v33 }
  0x88   :  { %997 = vmatmul.bf16.gmra.mxu0 %v5736_v52  ;;  %1175 = vmatmul.bf16.gmra.mxu2 %v5736_v52 }
  0x8a   :  { %1086 = vmatmul.bf16.gmra.mxu1 %v5738_v53  ;;  %1264 = vmatmul.bf16.gmra.mxu3 %v5738_v53 }
  0x98   :  { %1002 = vmatmul.bf16.gmra.mxu0 %v5744_v58  ;;  %1180 = vmatmul.bf16.gmra.mxu2 %v5744_v58 }
  0x9a   :  { %1091 = vmatmul.bf16.gmra.mxu1 %v5746_v59  ;;  %1269 = vmatmul.bf16.gmra.mxu3 %v5746_v59 }
  0xa8   :  { %1007 = vmatmul.bf16.gmra.mxu0 %v5752_v16  ;;  %1185 = vmatmul.bf16.gmra.mxu2 %v5752_v16 }
  0xaa   :  { %1096 = vmatmul.bf16.gmra.mxu1 %v5754_v17  ;;  %1274 = vmatmul.bf16.gmra.mxu3 %v5754_v17 }
  0xb5   :  { %v973_v25 = vpop.f32.mrf.mxu0 }
  0xb6   :  { %v974_v29 = vadd.f32 %v973_v25, %v5760_v21 }
  0xb7   :  { %v1062_v30 = vpop.f32.mrf.mxu1 }
  0xb8   :  { %v1063_v31 = vadd.f32 %v1062_v30, %v974_v29  ;;  %1012 = vmatmul.bf16.gmra.mxu0 %v5762_v24  ;;  %1190 = vmatmul.bf16.gmra.mxu2 %v5762_v24 }
  0xba   :  { %1101 = vmatmul.bf16.gmra.mxu1 %v5764_v28  ;;  %1279 = vmatmul.bf16.gmra.mxu3 %v5764_v28  ;;  %v2388_v62 = vmax.f32 %v1063_v31, 0.0 }
  0xbb   :  { %v1151_v41 = vpop.f32.mrf.mxu2 }
  0xbc   :  { %v1152_v45 = vadd.f32 %v1151_v41, %v5770_v34 }
  0xbd   :  { %v1240_v46 = vpop.f32.mrf.mxu3  ;;  %v975_v48 = vpop.f32.mrf.mxu0 }
  0xbe   :  { %v976_v50 = vadd.f32 %v975_v48, %v5760_v21  ;;  %v1241_v54 = vadd.f32 %v1240_v46, %v1152_v45  ;;  %v125_v45 = vld [vmem:[#allocation2 + $0x158] sm:$0xff]  ;;  %v5791_v48 = vpack.c.bf16 %v124_v40, %v122_v39  ;;  %v5253_v39 = vld [vmem:[#allocation5 + $0x264] sm:$0xf0] }
  0xbf   :  { %v1064_v51 = vpop.f32.mrf.mxu1 }
  0xc0   :  { %v1065_v55 = vadd.f32 %v1064_v51, %v976_v50  ;;  %v2389_v20 = vmax.f32 %v1241_v54, 0.0 }
  0xc2   :  { %v2396_v63 = vmax.f32 %v1065_v55, 0.0  ;;  %v5796_v55 = vpack.c.bf16 %v125_v45, %v123_v44  ;;  %v129_v44 = vld [vmem:[#allocation2 + $0x178] sm:$0xff] }
  0xc3   :  { %v1153_v6 = vpop.f32.mrf.mxu2 }
  0xc4   :  { %v5775_v5 = vpack.c.bf16 %v2396_v63, %v2388_v62  ;;  %v1154_v10 = vadd.f32 %v1153_v6, %v5770_v34  ;;  %v4450_v6 = vld [vmem:[#allocation5 + $0x48] sm:$0xf] }
  0xc5   :  { %v1242_v11 = vpop.f32.mrf.mxu3  ;;  %v978_v12 = vpop.f32.mrf.mxu0 }
  0xc6   :  { %v979_v14 = vadd.f32 %v978_v12, %v5760_v21  ;;  %v1243_v18 = vadd.f32 %v1242_v11, %v1154_v10  ;;  %v5189_v10 = vld [vmem:[#allocation5 + $0x64] sm:$0xf0]  ;;  %v5249_v11 = vld [vmem:[#allocation5 + $0x24c] sm:$0xf] }
  0xc7   :  { %v1067_v15 = vpop.f32.mrf.mxu1 }
  0xc8   :  { %v1068_v19 = vadd.f32 %v1067_v15, %v979_v14  ;;  %1017 = vmatmul.bf16.gmra.mxu0 %v5777_v7  ;;  %v2397_v22 = vmax.f32 %v1243_v18, 0.0  ;;  %1195 = vmatmul.bf16.gmra.mxu2 %v5777_v7  ;;  %v4451_v15 = vor.u32 %v5189_v10, %v4450_v6  ;;  %v4708_v18 = vld [vmem:[#allocation5 + $0x268] sm:$0xf0] }
  0xca   :  { %1106 = vmatmul.bf16.gmra.mxu1 %v5780_v13  ;;  %1284 = vmatmul.bf16.gmra.mxu3 %v5780_v13  ;;  %v5787_v23 = vpack.c.bf16 %v2397_v22, %v2389_v20  ;;  %v2404_v41 = vmax.f32 %v1068_v19, 0.0 }
  0xcb   :  { %v1156_v25 = vpop.f32.mrf.mxu2  ;;  %1326 = vmatpush.bf16.msrb.mxu0 %v4451_v15 }
  0xcc   :  { %v1157_v29 = vadd.f32 %v1156_v25, %v5770_v34  ;;  %v4711_v25 = vor.u32 %v5249_v11, %v4708_v18 }
  0xcd   :  { %v1245_v30 = vpop.f32.mrf.mxu3  ;;  %v980_v31 = vpop.f32.mrf.mxu0 }
  0xce   :  { %v981_v35 = vadd.f32 %v980_v31, %v5760_v21  ;;  %v1246_v37 = vadd.f32 %v1245_v30, %v1157_v29  ;;  %1593 = vmatpush.bf16.msrb.mxu3 %v4711_v25  ;;  %v130_v25 = vld [vmem:[#allocation2 + $0x180] sm:$0xff] }
  0xcf   :  { %v1069_v36 = vpop.f32.mrf.mxu1 }
  0xd0   :  { %v1070_v38 = vadd.f32 %v1069_v36, %v981_v35  ;;  %v2405_v62 = vmax.f32 %v1246_v37, 0.0  ;;  %v126_v36 = vld [vmem:[#allocation2 + $0x160] sm:$0xff]  ;;  %v128_v37 = vld [vmem:[#allocation2 + $0x170] sm:$0xff] }
  0xd2   :  { %v2412_v42 = vmax.f32 %v1070_v38, 0.0  ;;  %v4706_v38 = vld [vmem:[#allocation5 + $0x248] sm:$0xf] }
  0xd3   :  { %v1158_v46 = vpop.f32.mrf.mxu2  ;;  %v4707_v45 = vor.u32 %v5253_v39, %v4706_v38 }
  0xd4   :  { %v5793_v49 = vpack.c.bf16 %v2412_v42, %v2404_v41  ;;  %v1159_v50 = vadd.f32 %v1158_v46, %v5770_v34  ;;  %v127_v42 = vld [vmem:[#allocation2 + $0x168] sm:$0xff] }
  0xd5   :  { %v1247_v51 = vpop.f32.mrf.mxu3  ;;  %v983_v54 = vpop.f32.mrf.mxu0  ;;  %1415 = vmatpush.bf16.msrb.mxu1 %v4707_v45 }
  0xd6   :  { %v984_v56 = vadd.f32 %v983_v54, %v5760_v21  ;;  %v1248_v60 = vadd.f32 %v1247_v51, %v1159_v50  ;;  %v5807_v50 = vpack.c.bf16 %v128_v37, %v126_v36  ;;  %v133_v36 = vld [vmem:[#allocation2 + $0x198] sm:$0xff] }
  0xd7   :  { %v1072_v57 = vpop.f32.mrf.mxu1 }
  0xd8   :  { %v1073_v61 = vadd.f32 %v1072_v57, %v984_v56  ;;  %1022 = vmatmul.bf16.gmra.mxu0 %v5791_v48  ;;  %v2413_v63 = vmax.f32 %v1248_v60, 0.0  ;;  %1200 = vmatmul.bf16.gmra.mxu2 %v5791_v48  ;;  %v5812_v60 = vpack.c.bf16 %v129_v44, %v127_v42 }
  0xda   :  { %1111 = vmatmul.bf16.gmra.mxu1 %v5796_v55  ;;  %1289 = vmatmul.bf16.gmra.mxu3 %v5796_v55  ;;  %v5803_v12 = vpack.c.bf16 %v2413_v63, %v2405_v62  ;;  %v2420_v40 = vmax.f32 %v1073_v61, 0.0 }
  0xdb   :  { %v1161_v14 = vpop.f32.mrf.mxu2 }
  0xdc   :  { %v1162_v19 = vadd.f32 %v1161_v14, %v5770_v34 }
  0xdd   :  { %v1250_v20 = vpop.f32.mrf.mxu3  ;;  %v985_v22 = vpop.f32.mrf.mxu0 }
  0xde   :  { %v986_v29 = vadd.f32 %v985_v22, %v5760_v21  ;;  %v1251_v31 = vadd.f32 %v1250_v20, %v1162_v19 }
  0xdf   :  { %v1074_v30 = vpop.f32.mrf.mxu1 }
  0xe0   :  { %v1075_v35 = vadd.f32 %v1074_v30, %v986_v29  ;;  %v2421_v1 = vmax.f32 %v1251_v31, 0.0  ;;  %v132_v29 = vld [vmem:[#allocation2 + $0x190] sm:$0xff] }
  0xe1   :  { %v5823_v38 = vpack.c.bf16 %v132_v29, %v130_v25 }
  0xe2   :  { %v2428_v41 = vmax.f32 %v1075_v35, 0.0  ;;  %v131_v35 = vld [vmem:[#allocation2 + $0x188] sm:$0xff] }
  0xe3   :  { %v1163_v46 = vpop.f32.mrf.mxu2  ;;  %v5828_v44 = vpack.c.bf16 %v133_v36, %v131_v35  ;;  %v134_v36 = vld [vmem:[#allocation2 + $0x1a0] sm:$0xff] }
  0xe4   :  { %v5809_v51 = vpack.c.bf16 %v2428_v41, %v2420_v40  ;;  %v1164_v54 = vadd.f32 %v1163_v46, %v5770_v34 }
  0xe5   :  { %v1252_v56 = vpop.f32.mrf.mxu3  ;;  %v988_v57 = vpop.f32.mrf.mxu0 }
  0xe6   :  { %7350 = vst [vmem:[#allocation15_spill] sm:$0xff] %v5809_v51  ;;  %v989_v62 = vadd.f32 %v988_v57, %v5760_v21  ;;  %v1253_v61 = vadd.f32 %v1252_v56, %v1164_v54  ;;  %v5263_v51 = vld [vmem:[#allocation5 + $0x2b4] sm:$0xf0] }
  0xe7   :  { %v1077_v63 = vpop.f32.mrf.mxu1 }
  0xe8   :  { %v1078_v0 = vadd.f32 %v1077_v63, %v989_v62  ;;  %1027 = vmatmul.bf16.gmra.mxu0 %v5807_v50  ;;  %v2429_v4 = vmax.f32 %v1253_v61, 0.0  ;;  %1205 = vmatmul.bf16.gmra.mxu2 %v5807_v50  ;;  %v5177_v63 = vld [vmem:[#allocation5 + $0xc] sm:$0xf] }
  0xe9   :  { %v4420_v61 = vld [vmem:[#allocation5 + $0x28] sm:$0xf0] }
  0xea   :  { %1116 = vmatmul.bf16.gmra.mxu1 %v5812_v60  ;;  %1294 = vmatmul.bf16.gmra.mxu3 %v5812_v60  ;;  %v5819_v6 = vpack.c.bf16 %v2429_v4, %v2421_v1  ;;  %v2436_v30 = vmax.f32 %v1078_v0, 0.0  ;;  %v4423_v0 = vor.u32 %v5177_v63, %v4420_v61  ;;  %v4418_v1 = vld [vmem:[#allocation5 + $0x8] sm:$0xf] }
  0xeb   :  { %v1166_v10 = vpop.f32.mrf.mxu2  ;;  %v5181_v4 = vld [vmem:[#allocation5 + $0x24] sm:$0xf0] }
  0xec   :  { %7351 = vst [vmem:[#allocation16_spill] sm:$0xff] %v5819_v6  ;;  %v1167_v11 = vadd.f32 %v1166_v10, %v5770_v34  ;;  %v5241_v10 = vld [vmem:[#allocation5 + $0x20c] sm:$0xf]  ;;  %1505 = vmatpush.bf16.msrb.mxu2 %v4423_v0 }
  0xed   :  { %v1255_v14 = vpop.f32.mrf.mxu3  ;;  %v990_v15 = vpop.f32.mrf.mxu0 }
  0xee   :  { %v991_v18 = vadd.f32 %v990_v15, %v5760_v21  ;;  %v1256_v20 = vadd.f32 %v1255_v14, %v1167_v11  ;;  %v4419_v15 = vor.u32 %v5181_v4, %v4418_v1 }
  0xef   :  { %v1079_v19 = vpop.f32.mrf.mxu1 }
  0xf0   :  { %v1080_v22 = vadd.f32 %v1079_v19, %v991_v18  ;;  %v2437_v57 = vmax.f32 %v1256_v20, 0.0  ;;  %v4676_v18 = vld [vmem:[#allocation5 + $0x228] sm:$0xf0]  ;;  %1327 = vmatpush.bf16.msrb.mxu0 %v4419_v15 }
  0xf1   :  { %v4679_v25 = vor.u32 %v5241_v10, %v4676_v18 }
  0xf2   :  { %v2444_v31 = vmax.f32 %v1080_v22, 0.0 }
  0xf3   :  { %v1168_v37 = vpop.f32.mrf.mxu2  ;;  %1594 = vmatpush.bf16.msrb.mxu3 %v4679_v25 }
  0xf4   :  { %v5825_v39 = vpack.c.bf16 %v2444_v31, %v2436_v30  ;;  %v1169_v40 = vadd.f32 %v1168_v37, %v5770_v34  ;;  %v136_v37 = vld [vmem:[#allocation2 + $0x1b0] sm:$0xff] }
  0xf5   :  { %v1257_v41 = vpop.f32.mrf.mxu3  ;;  %v993_v42 = vpop.f32.mrf.mxu0  ;;  %v5839_v63 = vpack.c.bf16 %v136_v37, %v134_v36 }
  0xf6   :  { %7352 = vst [vmem:[#allocation17_spill] sm:$0xff] %v5825_v39  ;;  %v994_v45 = vadd.f32 %v993_v42, %v5760_v21  ;;  %v1258_v54 = vadd.f32 %v1257_v41, %v1169_v40  ;;  %v4674_v40 = vld [vmem:[#allocation5 + $0x208] sm:$0xf]  ;;  %v5254_v39 = vld [vmem:[#allocation5 + $0x26c] sm:$0xf0] }
  0xf7   :  { %v1082_v46 = vpop.f32.mrf.mxu1  ;;  %v5245_v41 = vld [vmem:[#allocation5 + $0x224] sm:$0xf0] }
  0xf8   :  { %v1083_v56 = vadd.f32 %v1082_v46, %v994_v45  ;;  %1032 = vmatmul.bf16.gmra.mxu0 %v5823_v38  ;;  %v2445_v62 = vmax.f32 %v1258_v54, 0.0  ;;  %1210 = vmatmul.bf16.gmra.mxu2 %v5823_v38  ;;  %v135_v46 = vld [vmem:[#allocation2 + $0x1a8] sm:$0xff]  ;;  %v137_v54 = vld [vmem:[#allocation2 + $0x1b8] sm:$0xff] }
  0xf9   :  { %v5844_v10 = vpack.c.bf16 %v137_v54, %v135_v46  ;;  %v139_v54 = vld [vmem:[#allocation2 + $0x1c8] sm:$0xff] }
  0xfa   :  { %1121 = vmatmul.bf16.gmra.mxu1 %v5828_v44  ;;  %1299 = vmatmul.bf16.gmra.mxu3 %v5828_v44  ;;  %v5835_v11 = vpack.c.bf16 %v2445_v62, %v2437_v57  ;;  %v2452_v42 = vmax.f32 %v1083_v56, 0.0  ;;  %v4675_v57 = vor.u32 %v5245_v41, %v4674_v40 }
  0xfb   :  { %v1171_v14 = vpop.f32.mrf.mxu2 }
  0xfc   :  { %7353 = vst [vmem:[#allocation18_spill] sm:$0xff] %v5835_v11  ;;  %v1172_v19 = vadd.f32 %v1171_v14, %v5770_v34  ;;  %1416 = vmatpush.bf16.msrb.mxu1 %v4675_v57  ;;  %v141_v57 = vld [vmem:[#allocation2 + $0x1d8] sm:$0xff] }
  0xfd   :  { %v1260_v20 = vpop.f32.mrf.mxu3  ;;  %v995_v22 = vpop.f32.mrf.mxu0 }
  0xfe   :  { %v996_v29 = vadd.f32 %v995_v22, %v5760_v21  ;;  %v1261_v31 = vadd.f32 %v1260_v20, %v1172_v19 }
  0xff   :  { %v1084_v30 = vpop.f32.mrf.mxu1 }
 0x100   :  { %v1085_v35 = vadd.f32 %v1084_v30, %v996_v29  ;;  %v2453_v19 = vmax.f32 %v1261_v31, 0.0  ;;  %v138_v31 = vld [vmem:[#allocation2 + $0x1c0] sm:$0xff] }
 0x102   :  { %v2460_v45 = vmax.f32 %v1085_v35, 0.0 }
 0x103   :  { %v1173_v62 = vpop.f32.mrf.mxu2 }
 0x104   :  { %v5841_v61 = vpack.c.bf16 %v2460_v45, %v2452_v42  ;;  %v1174_v0 = vadd.f32 %v1173_v62, %v5770_v34  ;;  %v140_v42 = vld [vmem:[#allocation2 + $0x1d0] sm:$0xff] }
 0x105   :  { %v1262_v1 = vpop.f32.mrf.mxu3  ;;  %v998_v4 = vpop.f32.mrf.mxu0 }
 0x106   :  { %7354 = vst [vmem:[#allocation19_spill] sm:$0xff] %v5841_v61  ;;  %v999_v14 = vadd.f32 %v998_v4, %v5760_v21  ;;  %v1263_v56 = vadd.f32 %v1262_v1, %v1174_v0  ;;  %v5855_v0 = vpack.c.bf16 %v140_v42, %v138_v31  ;;  %v5238_v31 = vld [vmem:[#allocation5 + $0x1ec] sm:$0xf0]  ;;  %v5298_v42 = vld [vmem:[#allocation5 + $0x3d4] sm:$0xf] }
 0x107   :  { %v1087_v15 = vpop.f32.mrf.mxu1 }
 0x108   :  { %v1088_v18 = vadd.f32 %v1087_v15, %v999_v14  ;;  %1037 = vmatmul.bf16.gmra.mxu0 %v5839_v63  ;;  %v2461_v20 = vmax.f32 %v1263_v56, 0.0  ;;  %1215 = vmatmul.bf16.gmra.mxu2 %v5839_v63  ;;  %v5860_v56 = vpack.c.bf16 %v141_v57, %v139_v54  ;;  %v4908_v57 = vld [vmem:[#allocation5 + $0x3f0] sm:$0xf0] }
 0x10a   :  { %1126 = vmatmul.bf16.gmra.mxu1 %v5844_v10  ;;  %1304 = vmatmul.bf16.gmra.mxu3 %v5844_v10  ;;  %v5851_v22 = vpack.c.bf16 %v2461_v20, %v2453_v19  ;;  %v2468_v45 = vmax.f32 %v1088_v18, 0.0 }
 0x10b   :  { %v1176_v25 = vpop.f32.mrf.mxu2 }
 0x10c   :  { %7355 = vst [vmem:[#allocation20_spill] sm:$0xff] %v5851_v22  ;;  %v1177_v29 = vadd.f32 %v1176_v25, %v5770_v34 }
 0x10d   :  { %v1265_v30 = vpop.f32.mrf.mxu3  ;;  %v1000_v35 = vpop.f32.mrf.mxu0 }
 0x10e   :  { %v1001_v36 = vadd.f32 %v1000_v35, %v5760_v21  ;;  %v1266_v40 = vadd.f32 %v1265_v30, %v1177_v29  ;;  %v5234_v35 = vld [vmem:[#allocation5 + $0x1d4] sm:$0xf] }
 0x10f   :  { %v1089_v37 = vpop.f32.mrf.mxu1 }
 0x110   :  { %v1090_v41 = vadd.f32 %v1089_v37, %v1001_v36  ;;  %v2469_v18 = vmax.f32 %v1266_v40, 0.0  ;;  %v4652_v36 = vld [vmem:[#allocation5 + $0x1f0] sm:$0xf0] }
 0x111   :  { %v4655_v37 = vor.u32 %v5234_v35, %v4652_v36  ;;  %v142_v35 = vld [vmem:[#allocation2 + $0x1e0] sm:$0xff]  ;;  %v144_v36 = vld [vmem:[#allocation2 + $0x1f0] sm:$0xff] }
 0x112   :  { %v2476_v46 = vmax.f32 %v1090_v41, 0.0  ;;  %v4650_v41 = vld [vmem:[#allocation5 + $0x1d0] sm:$0xf]  ;;  %v5871_v61 = vpack.c.bf16 %v144_v36, %v142_v35 }
 0x113   :  { %v1178_v62 = vpop.f32.mrf.mxu2  ;;  %v4651_v54 = vor.u32 %v5238_v31, %v4650_v41  ;;  %1854 = vmatpush.bf16.msra.mxu2 %v4655_v37  ;;  %v143_v31 = vld [vmem:[#allocation2 + $0x1e8] sm:$0xff] }
 0x114   :  { %v5857_v1 = vpack.c.bf16 %v2476_v46, %v2468_v45  ;;  %v1179_v4 = vadd.f32 %v1178_v62, %v5770_v34 }
 0x115   :  { %v1267_v14 = vpop.f32.mrf.mxu3  ;;  %v1003_v15 = vpop.f32.mrf.mxu0  ;;  %1676 = vmatpush.bf16.msra.mxu0 %v4651_v54 }
 0x116   :  { %7356 = vst [vmem:[#allocation21_spill] sm:$0xff] %v5857_v1  ;;  %v1004_v19 = vadd.f32 %v1003_v15, %v5760_v21  ;;  %v1268_v25 = vadd.f32 %v1267_v14, %v1179_v4  ;;  %v4911_v14 = vor.u32 %v5298_v42, %v4908_v57  ;;  %v145_v1 = vld [vmem:[#allocation2 + $0x1f8] sm:$0xff] }
 0x117   :  { %v1092_v20 = vpop.f32.mrf.mxu1 }
 0x118   :  { %v1093_v29 = vadd.f32 %v1092_v20, %v1004_v19  ;;  %1042 = vmatmul.bf16.gmra.mxu0 %v5855_v0  ;;  %v2477_v30 = vmax.f32 %v1268_v25, 0.0  ;;  %1220 = vmatmul.bf16.gmra.mxu2 %v5855_v0 }
 0x119   :  { %1943 = vmatpush.bf16.msra.mxu3 %v4911_v14 }
 0x11a   :  { %1131 = vmatmul.bf16.gmra.mxu1 %v5860_v56  ;;  %1309 = vmatmul.bf16.gmra.mxu3 %v5860_v56  ;;  %v5867_v45 = vpack.c.bf16 %v2477_v30, %v2469_v18  ;;  %v4906_v18 = vld [vmem:[#allocation5 + $0x3d0] sm:$0xf] }
 0x11b   :  { %v1181_v46 = vpop.f32.mrf.mxu2  ;;  %v5302_v30 = vld [vmem:[#allocation5 + $0x3ec] sm:$0xf0] }
 0x11c   :  { %7357 = vst [vmem:[#allocation22_spill] sm:$0xff] %v5867_v45  ;;  %v1182_v40 = vadd.f32 %v1181_v46, %v5770_v34  ;;  %v2484_v45 = vmax.f32 %v1093_v29, 0.0  ;;  %v4907_v46 = vor.u32 %v5302_v30, %v4906_v18 }
 0x11d   :  { %v1270_v62 = vpop.f32.mrf.mxu3  ;;  %v1005_v4 = vpop.f32.mrf.mxu0 }
 0x11e   :  { %v1006_v15 = vadd.f32 %v1005_v4, %v5760_v21  ;;  %v1271_v20 = vadd.f32 %v1270_v62, %v1182_v40  ;;  %1765 = vmatpush.bf16.msra.mxu1 %v4907_v46  ;;  %v5876_v40 = vpack.c.bf16 %v145_v1, %v143_v31 }
 0x11f   :  { %v1094_v19 = vpop.f32.mrf.mxu1 }
 0x120   :  { %v1095_v25 = vadd.f32 %v1094_v19, %v1006_v15  ;;  %v2485_v15 = vmax.f32 %v1271_v20, 0.0 }
 0x122   :  { %v2492_v41 = vmax.f32 %v1095_v25, 0.0 }
 0x123   :  { %v1183_v22 = vpop.f32.mrf.mxu2 }
 0x124   :  { %v5873_v37 = vpack.c.bf16 %v2492_v41, %v2484_v45  ;;  %v1184_v42 = vadd.f32 %v1183_v22, %v5770_v34 }
 0x125   :  { %v1272_v54 = vpop.f32.mrf.mxu3  ;;  %v1008_v57 = vpop.f32.mrf.mxu0 }
 0x126   :  { %7358 = vst [vmem:[#allocation23_spill] sm:$0xff] %v5873_v37  ;;  %v1009_v62 = vadd.f32 %v1008_v57, %v5760_v21  ;;  %v1273_v29 = vadd.f32 %v1272_v54, %v1184_v42 }
 0x127   :  { %v1097_v4 = vpop.f32.mrf.mxu1 }
 0x128   :  { %v1098_v14 = vadd.f32 %v1097_v4, %v1009_v62  ;;  %1047 = vmatmul.bf16.gmra.mxu0 %v5871_v61  ;;  %v2493_v19 = vmax.f32 %v1273_v29, 0.0  ;;  %1225 = vmatmul.bf16.gmra.mxu2 %v5871_v61 }
 0x12a   :  { %1136 = vmatmul.bf16.gmra.mxu1 %v5876_v40  ;;  %1314 = vmatmul.bf16.gmra.mxu3 %v5876_v40  ;;  %v5883_v22 = vpack.c.bf16 %v2493_v19, %v2485_v15  ;;  %v2500_v20 = vmax.f32 %v1098_v14, 0.0  ;;  %v5226_v14 = vld [vmem:[#allocation5 + $0x194] sm:$0xf] }
 0x12b   :  { %v1186_v45 = vpop.f32.mrf.mxu2 }
 0x12c   :  { %7359 = vst [vmem:[#allocation24_spill] sm:$0xff] %v5883_v22  ;;  %v1187_v1 = vadd.f32 %v1186_v45, %v5770_v34  ;;  %v5294_v22 = vld [vmem:[#allocation5 + $0x3ac] sm:$0xf0] }
 0x12d   :  { %v1275_v25 = vpop.f32.mrf.mxu3  ;;  %v1010_v35 = vpop.f32.mrf.mxu0 }
 0x12e   :  { %v1011_v36 = vadd.f32 %v1010_v35, %v5760_v21  ;;  %v1276_v30 = vadd.f32 %v1275_v25, %v1187_v1  ;;  %v4620_v1 = vld [vmem:[#allocation5 + $0x1b0] sm:$0xf0] }
 0x12f   :  { %v1099_v18 = vpop.f32.mrf.mxu1  ;;  %v4623_v25 = vor.u32 %v5226_v14, %v4620_v1  ;;  %v4874_v1 = vld [vmem:[#allocation5 + $0x390] sm:$0xf] }
 0x130   :  { %v1100_v41 = vadd.f32 %v1099_v18, %v1011_v36  ;;  %v2501_v45 = vmax.f32 %v1276_v30, 0.0  ;;  %v4618_v36 = vld [vmem:[#allocation5 + $0x190] sm:$0xf] }
 0x131   :  { %v5230_v18 = vld [vmem:[#allocation5 + $0x1ac] sm:$0xf0]  ;;  %1855 = vmatpush.bf16.msra.mxu2 %v4623_v25 }
 0x132   :  { %v2508_v31 = vmax.f32 %v1100_v41, 0.0  ;;  %v5290_v41 = vld [vmem:[#allocation5 + $0x394] sm:$0xf] }
 0x133   :  { %v1188_v46 = vpop.f32.mrf.mxu2 }
 0x134   :  { %v5887_v42 = vpack.c.bf16 %v2508_v31, %v2500_v20  ;;  %v1189_v54 = vadd.f32 %v1188_v46, %v5770_v34  ;;  %v4619_v46 = vor.u32 %v5230_v18, %v4618_v36 }
 0x135   :  { %v1277_v57 = vpop.f32.mrf.mxu3  ;;  %v1013_v62 = vpop.f32.mrf.mxu0 }
 0x136   :  { %7360 = vst [vmem:[#allocation25_spill] sm:$0xff] %v5887_v42  ;;  %v1014_v4 = vadd.f32 %v1013_v62, %v5760_v21  ;;  %v1278_v15 = vadd.f32 %v1277_v57, %v1189_v54  ;;  %v4876_v54 = vld [vmem:[#allocation5 + $0x3b0] sm:$0xf0]  ;;  %1677 = vmatpush.bf16.msra.mxu0 %v4619_v46 }
 0x137   :  { %v1102_v29 = vpop.f32.mrf.mxu1 }
 0x138   :  { %v1103_v19 = vadd.f32 %v1102_v29, %v1014_v4  ;;  %1328 = vmatmul.bf16.vlgmr.msrb.gmra.mxu0 %v5696_v43  ;;  %v2509_v35 = vmax.f32 %v1278_v15, 0.0  ;;  %1506 = vmatmul.bf16.vlgmr.msrb.gmra.mxu2 %v5696_v43  ;;  %v4879_v4 = vor.u32 %v5290_v41, %v4876_v54 }
 0x13a   :  { %1417 = vmatmul.bf16.vlgmr.msrb.gmra.mxu1 %v5698_v47  ;;  %1595 = vmatmul.bf16.vlgmr.msrb.gmra.mxu3 %v5698_v47  ;;  %v5895_v20 = vpack.c.bf16 %v2509_v35, %v2501_v45  ;;  %v2516_v45 = vmax.f32 %v1103_v19, 0.0 }
 0x13b   :  { %v1191_v31 = vpop.f32.mrf.mxu2  ;;  %1944 = vmatpush.bf16.msra.mxu3 %v4879_v4 }
 0x13c   :  { %7361 = vst [vmem:[#allocation26_spill] sm:$0xff] %v5895_v20  ;;  %v1192_v30 = vadd.f32 %v1191_v31, %v5770_v34  ;;  %v4875_v20 = vor.u32 %v5294_v22, %v4874_v1 }
 0x13d   :  { %v1280_v57 = vpop.f32.mrf.mxu3  ;;  %v1015_v62 = vpop.f32.mrf.mxu0 }
 0x13e   :  { %v1016_v29 = vadd.f32 %v1015_v62, %v5760_v21  ;;  %v1281_v42 = vadd.f32 %v1280_v57, %v1192_v30  ;;  %1766 = vmatpush.bf16.msra.mxu1 %v4875_v20 }
 0x13f   :  { %v1104_v15 = vpop.f32.mrf.mxu1 }
 0x140   :  { %v1105_v14 = vadd.f32 %v1104_v15, %v1016_v29  ;;  %v2517_v57 = vmax.f32 %v1281_v42, 0.0 }
 0x142   :  { %v2524_v35 = vmax.f32 %v1105_v14, 0.0 }
 0x143   :  { %v1193_v36 = vpop.f32.mrf.mxu2 }
 0x144   :  { %v5899_v18 = vpack.c.bf16 %v2524_v35, %v2516_v45  ;;  %v1194_v31 = vadd.f32 %v1193_v36, %v5770_v34 }
 0x145   :  { %v1282_v25 = vpop.f32.mrf.mxu3  ;;  %v1018_v41 = vpop.f32.mrf.mxu0 }
 0x146   :  { %7362 = vst [vmem:[#allocation27_spill] sm:$0xff] %v5899_v18  ;;  %v1019_v54 = vadd.f32 %v1018_v41, %v5760_v21  ;;  %v1283_v46 = vadd.f32 %v1282_v25, %v1194_v31  ;;  %v5286_v18 = vld [vmem:[#allocation5 + $0x36c] sm:$0xf0] }
 0x147   :  { %v1107_v62 = vpop.f32.mrf.mxu1 }
 0x148   :  { %v1108_v30 = vadd.f32 %v1107_v62, %v1019_v54  ;;  %1333 = vmatmul.bf16.gmra.mxu0 %v5704_v2  ;;  %v2525_v4 = vmax.f32 %v1283_v46, 0.0  ;;  %1511 = vmatmul.bf16.gmra.mxu2 %v5704_v2 }
 0x14a   :  { %1422 = vmatmul.bf16.gmra.mxu1 %v5706_v3  ;;  %1600 = vmatmul.bf16.gmra.mxu3 %v5706_v3  ;;  %v5907_v22 = vpack.c.bf16 %v2525_v4, %v2517_v57  ;;  %v2532_v42 = vmax.f32 %v1108_v30, 0.0  ;;  %v5218_v30 = vld [vmem:[#allocation5 + $0x154] sm:$0xf] }
 0x14b   :  { %v1196_v19 = vpop.f32.mrf.mxu2 }
 0x14c   :  { %7363 = vst [vmem:[#allocation28_spill] sm:$0xff] %v5907_v22  ;;  %v1197_v20 = vadd.f32 %v1196_v19, %v5770_v34 }
 0x14d   :  { %v1285_v29 = vpop.f32.mrf.mxu3  ;;  %v1020_v15 = vpop.f32.mrf.mxu0 }
 0x14e   :  { %v1021_v14 = vadd.f32 %v1020_v15, %v5760_v21  ;;  %v1286_v45 = vadd.f32 %v1285_v29, %v1197_v20  ;;  %v4588_v20 = vld [vmem:[#allocation5 + $0x170] sm:$0xf0] }
 0x14f   :  { %v1109_v1 = vpop.f32.mrf.mxu1  ;;  %v4591_v29 = vor.u32 %v5218_v30, %v4588_v20  ;;  %v4842_v20 = vld [vmem:[#allocation5 + $0x350] sm:$0xf] }
 0x150   :  { %v1110_v35 = vadd.f32 %v1109_v1, %v1021_v14  ;;  %v2533_v15 = vmax.f32 %v1286_v45, 0.0  ;;  %v4586_v14 = vld [vmem:[#allocation5 + $0x150] sm:$0xf] }
 0x151   :  { %v5222_v1 = vld [vmem:[#allocation5 + $0x16c] sm:$0xf0]  ;;  %1856 = vmatpush.bf16.msra.mxu2 %v4591_v29 }
 0x152   :  { %v2540_v36 = vmax.f32 %v1110_v35, 0.0  ;;  %v5282_v35 = vld [vmem:[#allocation5 + $0x354] sm:$0xf] }
 0x153   :  { %v1198_v31 = vpop.f32.mrf.mxu2 }
 0x154   :  { %v5911_v25 = vpack.c.bf16 %v2540_v36, %v2532_v42  ;;  %v1199_v41 = vadd.f32 %v1198_v31, %v5770_v34  ;;  %v4587_v31 = vor.u32 %v5222_v1, %v4586_v14 }
 0x155   :  { %v1287_v54 = vpop.f32.mrf.mxu3  ;;  %v1023_v62 = vpop.f32.mrf.mxu0 }
 0x156   :  { %7364 = vst [vmem:[#allocation29_spill] sm:$0xff] %v5911_v25  ;;  %v1024_v46 = vadd.f32 %v1023_v62, %v5760_v21  ;;  %v1288_v4 = vadd.f32 %v1287_v54, %v1199_v41  ;;  %v4844_v41 = vld [vmem:[#allocation5 + $0x370] sm:$0xf0]  ;;  %1678 = vmatpush.bf16.msra.mxu0 %v4587_v31 }
 0x157   :  { %v1112_v57 = vpop.f32.mrf.mxu1 }
 0x158   :  { %v1113_v19 = vadd.f32 %v1112_v57, %v1024_v46  ;;  %1338 = vmatmul.bf16.gmra.mxu0 %v5712_v8  ;;  %v2541_v22 = vmax.f32 %v1288_v4, 0.0  ;;  %1516 = vmatmul.bf16.gmra.mxu2 %v5712_v8  ;;  %v4847_v46 = vor.u32 %v5282_v35, %v4844_v41 }
 0x15a   :  { %1427 = vmatmul.bf16.gmra.mxu1 %v5714_v9  ;;  %1605 = vmatmul.bf16.gmra.mxu3 %v5714_v9  ;;  %v5919_v42 = vpack.c.bf16 %v2541_v22, %v2533_v15  ;;  %v2548_v22 = vmax.f32 %v1113_v19, 0.0 }
 0x15b   :  { %v1201_v36 = vpop.f32.mrf.mxu2  ;;  %1945 = vmatpush.bf16.msra.mxu3 %v4847_v46 }
 0x15c   :  { %7365 = vst [vmem:[#allocation30_spill] sm:$0xff] %v5919_v42  ;;  %v1202_v45 = vadd.f32 %v1201_v36, %v5770_v34  ;;  %v4843_v42 = vor.u32 %v5286_v18, %v4842_v20 }
 0x15d   :  { %v1290_v54 = vpop.f32.mrf.mxu3  ;;  %v1025_v62 = vpop.f32.mrf.mxu0 }
 0x15e   :  { %v1026_v57 = vadd.f32 %v1025_v62, %v5760_v21  ;;  %v1291_v25 = vadd.f32 %v1290_v54, %v1202_v45  ;;  %1767 = vmatpush.bf16.msra.mxu1 %v4843_v42 }
 0x15f   :  { %v1114_v4 = vpop.f32.mrf.mxu1 }
 0x160   :  { %v1115_v30 = vadd.f32 %v1114_v4, %v1026_v57  ;;  %v2549_v54 = vmax.f32 %v1291_v25, 0.0 }
 0x162   :  { %v2556_v15 = vmax.f32 %v1115_v30, 0.0 }
 0x163   :  { %v1203_v14 = vpop.f32.mrf.mxu2 }
 0x164   :  { %v5923_v1 = vpack.c.bf16 %v2556_v15, %v2548_v22  ;;  %v1204_v36 = vadd.f32 %v1203_v14, %v5770_v34 }
 0x165   :  { %v1292_v29 = vpop.f32.mrf.mxu3  ;;  %v1028_v35 = vpop.f32.mrf.mxu0 }
 0x166   :  { %7366 = vst [vmem:[#allocation31_spill] sm:$0xff] %v5923_v1  ;;  %v1029_v41 = vadd.f32 %v1028_v35, %v5760_v21  ;;  %v1293_v31 = vadd.f32 %v1292_v29, %v1204_v36  ;;  %v5278_v1 = vld [vmem:[#allocation5 + $0x32c] sm:$0xf0] }
 0x167   :  { %v1117_v62 = vpop.f32.mrf.mxu1 }
 0x168   :  { %v1118_v45 = vadd.f32 %v1117_v62, %v1029_v41  ;;  %1343 = vmatmul.bf16.gmra.mxu0 %v5720_v26  ;;  %v2557_v46 = vmax.f32 %v1293_v31, 0.0  ;;  %1521 = vmatmul.bf16.gmra.mxu2 %v5720_v26 }
 0x16a   :  { %1432 = vmatmul.bf16.gmra.mxu1 %v5722_v27  ;;  %1610 = vmatmul.bf16.gmra.mxu3 %v5722_v27  ;;  %v5931_v18 = vpack.c.bf16 %v2557_v46, %v2549_v54  ;;  %v2564_v25 = vmax.f32 %v1118_v45, 0.0  ;;  %v5210_v45 = vld [vmem:[#allocation5 + $0x114] sm:$0xf] }
 0x16b   :  { %v1206_v19 = vpop.f32.mrf.mxu2 }
 0x16c   :  { %7367 = vst [vmem:[#allocation32_spill] sm:$0xff] %v5931_v18  ;;  %v1207_v42 = vadd.f32 %v1206_v19, %v5770_v34 }
 0x16d   :  { %v1295_v57 = vpop.f32.mrf.mxu3  ;;  %v1030_v4 = vpop.f32.mrf.mxu0 }
 0x16e   :  { %v1031_v30 = vadd.f32 %v1030_v4, %v5760_v21  ;;  %v1296_v22 = vadd.f32 %v1295_v57, %v1207_v42  ;;  %v4556_v42 = vld [vmem:[#allocation5 + $0x130] sm:$0xf0] }
 0x16f   :  { %v1119_v20 = vpop.f32.mrf.mxu1  ;;  %v4559_v57 = vor.u32 %v5210_v45, %v4556_v42  ;;  %v4810_v42 = vld [vmem:[#allocation5 + $0x310] sm:$0xf] }
 0x170   :  { %v1120_v15 = vadd.f32 %v1119_v20, %v1031_v30  ;;  %v2565_v4 = vmax.f32 %v1296_v22, 0.0  ;;  %v4554_v30 = vld [vmem:[#allocation5 + $0x110] sm:$0xf] }
 0x171   :  { %v5214_v20 = vld [vmem:[#allocation5 + $0x12c] sm:$0xf0]  ;;  %1857 = vmatpush.bf16.msra.mxu2 %v4559_v57 }
 0x172   :  { %v2572_v14 = vmax.f32 %v1120_v15, 0.0  ;;  %v5274_v15 = vld [vmem:[#allocation5 + $0x314] sm:$0xf] }
 0x173   :  { %v1208_v36 = vpop.f32.mrf.mxu2 }
 0x174   :  { %v5935_v29 = vpack.c.bf16 %v2572_v14, %v2564_v25  ;;  %v1209_v35 = vadd.f32 %v1208_v36, %v5770_v34  ;;  %v4555_v36 = vor.u32 %v5214_v20, %v4554_v30 }
 0x175   :  { %v1297_v41 = vpop.f32.mrf.mxu3  ;;  %v1033_v62 = vpop.f32.mrf.mxu0 }
 0x176   :  { %7368 = vst [vmem:[#allocation33_spill] sm:$0xff] %v5935_v29  ;;  %v1034_v31 = vadd.f32 %v1033_v62, %v5760_v21  ;;  %v1298_v46 = vadd.f32 %v1297_v41, %v1209_v35  ;;  %v4812_v35 = vld [vmem:[#allocation5 + $0x330] sm:$0xf0]  ;;  %1679 = vmatpush.bf16.msra.mxu0 %v4555_v36 }
 0x177   :  { %v1122_v54 = vpop.f32.mrf.mxu1 }
 0x178   :  { %v1123_v19 = vadd.f32 %v1122_v54, %v1034_v31  ;;  %1348 = vmatmul.bf16.gmra.mxu0 %v5728_v32  ;;  %v2573_v18 = vmax.f32 %v1298_v46, 0.0  ;;  %1526 = vmatmul.bf16.gmra.mxu2 %v5728_v32  ;;  %v4815_v31 = vor.u32 %v5274_v15, %v4812_v35 }
 0x17a   :  { %1437 = vmatmul.bf16.gmra.mxu1 %v5730_v33  ;;  %1615 = vmatmul.bf16.gmra.mxu3 %v5730_v33  ;;  %v5943_v25 = vpack.c.bf16 %v2573_v18, %v2565_v4  ;;  %v2580_v18 = vmax.f32 %v1123_v19, 0.0 }
 0x17b   :  { %v1211_v14 = vpop.f32.mrf.mxu2  ;;  %1946 = vmatpush.bf16.msra.mxu3 %v4815_v31 }
 0x17c   :  { %7369 = vst [vmem:[#allocation34_spill] sm:$0xff] %v5943_v25  ;;  %v1212_v22 = vadd.f32 %v1211_v14, %v5770_v34  ;;  %v4811_v25 = vor.u32 %v5278_v1, %v4810_v42 }
 0x17d   :  { %v1300_v41 = vpop.f32.mrf.mxu3  ;;  %v1035_v62 = vpop.f32.mrf.mxu0 }
 0x17e   :  { %v1036_v54 = vadd.f32 %v1035_v62, %v5760_v21  ;;  %v1301_v29 = vadd.f32 %v1300_v41, %v1212_v22  ;;  %1768 = vmatpush.bf16.msra.mxu1 %v4811_v25 }
 0x17f   :  { %v1124_v46 = vpop.f32.mrf.mxu1 }
 0x180   :  { %v1125_v45 = vadd.f32 %v1124_v46, %v1036_v54  ;;  %v2581_v41 = vmax.f32 %v1301_v29, 0.0 }
 0x182   :  { %v2588_v4 = vmax.f32 %v1125_v45, 0.0 }
 0x183   :  { %v1213_v30 = vpop.f32.mrf.mxu2 }
 0x184   :  { %v5947_v20 = vpack.c.bf16 %v2588_v4, %v2580_v18  ;;  %v1214_v14 = vadd.f32 %v1213_v30, %v5770_v34 }
 0x185   :  { %v1302_v57 = vpop.f32.mrf.mxu3  ;;  %v1038_v15 = vpop.f32.mrf.mxu0 }
 0x186   :  { %7370 = vst [vmem:[#allocation35_spill] sm:$0xff] %v5947_v20  ;;  %v1039_v35 = vadd.f32 %v1038_v15, %v5760_v21  ;;  %v1303_v36 = vadd.f32 %v1302_v57, %v1214_v14  ;;  %v5270_v20 = vld [vmem:[#allocation5 + $0x2ec] sm:$0xf0] }
 0x187   :  { %v1127_v62 = vpop.f32.mrf.mxu1 }
 0x188   :  { %v1128_v22 = vadd.f32 %v1127_v62, %v1039_v35  ;;  %1353 = vmatmul.bf16.gmra.mxu0 %v5736_v52  ;;  %v2589_v31 = vmax.f32 %v1303_v36, 0.0  ;;  %1531 = vmatmul.bf16.gmra.mxu2 %v5736_v52 }
 0x18a   :  { %1442 = vmatmul.bf16.gmra.mxu1 %v5738_v53  ;;  %1620 = vmatmul.bf16.gmra.mxu3 %v5738_v53  ;;  %v5955_v1 = vpack.c.bf16 %v2589_v31, %v2581_v41  ;;  %v2596_v29 = vmax.f32 %v1128_v22, 0.0  ;;  %v5202_v22 = vld [vmem:[#allocation5 + $0xd4] sm:$0xf] }
 0x18b   :  { %v1216_v19 = vpop.f32.mrf.mxu2 }
 0x18c   :  { %7371 = vst [vmem:[#allocation36_spill] sm:$0xff] %v5955_v1  ;;  %v1217_v25 = vadd.f32 %v1216_v19, %v5770_v34 }
 0x18d   :  { %v1305_v54 = vpop.f32.mrf.mxu3  ;;  %v1040_v46 = vpop.f32.mrf.mxu0 }
 0x18e   :  { %v1041_v45 = vadd.f32 %v1040_v46, %v5760_v21  ;;  %v1306_v18 = vadd.f32 %v1305_v54, %v1217_v25  ;;  %v4524_v25 = vld [vmem:[#allocation5 + $0xf0] sm:$0xf0] }
 0x18f   :  { %v1129_v42 = vpop.f32.mrf.mxu1  ;;  %v4527_v54 = vor.u32 %v5202_v22, %v4524_v25  ;;  %v4778_v25 = vld [vmem:[#allocation5 + $0x2d0] sm:$0xf] }
 0x190   :  { %v1130_v4 = vadd.f32 %v1129_v42, %v1041_v45  ;;  %v2597_v46 = vmax.f32 %v1306_v18, 0.0  ;;  %v4522_v45 = vld [vmem:[#allocation5 + $0xd0] sm:$0xf] }
 0x191   :  { %v5206_v42 = vld [vmem:[#allocation5 + $0xec] sm:$0xf0]  ;;  %1858 = vmatpush.bf16.msra.mxu2 %v4527_v54 }
 0x192   :  { %v2604_v30 = vmax.f32 %v1130_v4, 0.0  ;;  %v5266_v4 = vld [vmem:[#allocation5 + $0x2d4] sm:$0xf] }
 0x193   :  { %v1218_v14 = vpop.f32.mrf.mxu2 }
 0x194   :  { %v5959_v57 = vpack.c.bf16 %v2604_v30, %v2596_v29  ;;  %v1219_v15 = vadd.f32 %v1218_v14, %v5770_v34  ;;  %v4523_v14 = vor.u32 %v5206_v42, %v4522_v45 }
 0x195   :  { %v1307_v35 = vpop.f32.mrf.mxu3  ;;  %v1043_v62 = vpop.f32.mrf.mxu0 }
 0x196   :  { %7372 = vst [vmem:[#allocation37_spill] sm:$0xff] %v5959_v57  ;;  %v1044_v36 = vadd.f32 %v1043_v62, %v5760_v21  ;;  %v1308_v31 = vadd.f32 %v1307_v35, %v1219_v15  ;;  %v4780_v15 = vld [vmem:[#allocation5 + $0x2f0] sm:$0xf0]  ;;  %1680 = vmatpush.bf16.msra.mxu0 %v4523_v14 }
 0x197   :  { %v1132_v41 = vpop.f32.mrf.mxu1 }
 0x198   :  { %v1133_v19 = vadd.f32 %v1132_v41, %v1044_v36  ;;  %1358 = vmatmul.bf16.gmra.mxu0 %v5744_v58  ;;  %v2605_v1 = vmax.f32 %v1308_v31, 0.0  ;;  %1536 = vmatmul.bf16.gmra.mxu2 %v5744_v58  ;;  %v4783_v36 = vor.u32 %v5266_v4, %v4780_v15 }
 0x19a   :  { %1447 = vmatmul.bf16.gmra.mxu1 %v5746_v59  ;;  %1625 = vmatmul.bf16.gmra.mxu3 %v5746_v59  ;;  %v5967_v29 = vpack.c.bf16 %v2605_v1, %v2597_v46  ;;  %v2612_v1 = vmax.f32 %v1133_v19, 0.0 }
 0x19b   :  { %v1221_v30 = vpop.f32.mrf.mxu2  ;;  %1947 = vmatpush.bf16.msra.mxu3 %v4783_v36 }
 0x19c   :  { %7373 = vst [vmem:[#allocation38_spill] sm:$0xff] %v5967_v29  ;;  %v1222_v18 = vadd.f32 %v1221_v30, %v5770_v34  ;;  %v4779_v29 = vor.u32 %v5270_v20, %v4778_v25 }
 0x19d   :  { %v1310_v35 = vpop.f32.mrf.mxu3  ;;  %v1045_v62 = vpop.f32.mrf.mxu0 }
 0x19e   :  { %v1046_v41 = vadd.f32 %v1045_v62, %v5760_v21  ;;  %v1311_v57 = vadd.f32 %v1310_v35, %v1222_v18  ;;  %1769 = vmatpush.bf16.msra.mxu1 %v4779_v29 }
 0x19f   :  { %v1134_v31 = vpop.f32.mrf.mxu1 }
 0x1a0   :  { %v1135_v22 = vadd.f32 %v1134_v31, %v1046_v41  ;;  %v2613_v35 = vmax.f32 %v1311_v57, 0.0 }
 0x1a2   :  { %v2620_v46 = vmax.f32 %v1135_v22, 0.0 }
 0x1a3   :  { %v1223_v45 = vpop.f32.mrf.mxu2 }
 0x1a4   :  { %v5971_v42 = vpack.c.bf16 %v2620_v46, %v2612_v1  ;;  %v1224_v30 = vadd.f32 %v1223_v45, %v5770_v34 }
 0x1a5   :  { %v1312_v54 = vpop.f32.mrf.mxu3  ;;  %v1048_v4 = vpop.f32.mrf.mxu0 }
 0x1a6   :  { %7374 = vst [vmem:[#allocation39_spill] sm:$0xff] %v5971_v42  ;;  %v1049_v15 = vadd.f32 %v1048_v4, %v5760_v21  ;;  %v1313_v14 = vadd.f32 %v1312_v54, %v1224_v30  ;;  %v5510_v30 = vld [vmem:[#allocation7] sm:$0xff]  ;;  %v5262_v42 = vld [vmem:[#allocation5 + $0x2ac] sm:$0xf0] }
 0x1a7   :  { %v1137_v62 = vpop.f32.mrf.mxu1  ;;  %v5983_v54 = vperm.slane %v5510_v30, 2 }
 0x1a8   :  { %v1138_v18 = vadd.f32 %v1137_v62, %v1049_v15  ;;  %1363 = vmatmul.bf16.gmra.mxu0 %v5752_v16  ;;  %v2621_v36 = vmax.f32 %v1313_v14, 0.0  ;;  %1541 = vmatmul.bf16.gmra.mxu2 %v5752_v16 }
 0x1aa   :  { %1452 = vmatmul.bf16.gmra.mxu1 %v5754_v17  ;;  %1630 = vmatmul.bf16.gmra.mxu3 %v5754_v17  ;;  %v5979_v20 = vpack.c.bf16 %v2621_v36, %v2613_v35  ;;  %v2628_v57 = vmax.f32 %v1138_v18, 0.0 }
 0x1ab   :  { %v1226_v19 = vpop.f32.mrf.mxu2 }
 0x1ac   :  { %7375 = vst [vmem:[#allocation40_spill] sm:$0xff] %v5979_v20  ;;  %v1227_v29 = vadd.f32 %v1226_v19, %v5770_v34 }
 0x1ad   :  { %v1315_v41 = vpop.f32.mrf.mxu3  ;;  %v1050_v31 = vpop.f32.mrf.mxu0 }
 0x1ae   :  { %v1051_v22 = vadd.f32 %v1050_v31, %v5760_v21  ;;  %v1316_v1 = vadd.f32 %v1315_v41, %v1227_v29  ;;  %v5992_v41 = vperm.slane %v5510_v30, 3  ;;  %v4492_v31 = vld [vmem:[#allocation5 + $0xb0] sm:$0xf0] }
 0x1af   :  { %v1139_v25 = vpop.f32.mrf.mxu1 }
 0x1b0   :  { %v1140_v46 = vadd.f32 %v1139_v25, %v1051_v22  ;;  %v2629_v29 = vmax.f32 %v1316_v1, 0.0  ;;  %v4490_v25 = vld [vmem:[#allocation5 + $0x90] sm:$0xf]  ;;  %v4748_v1 = vld [vmem:[#allocation5 + $0x2b0] sm:$0xf0] }
 0x1b2   :  { %v2636_v45 = vmax.f32 %v1140_v46, 0.0  ;;  %v5198_v46 = vld [vmem:[#allocation5 + $0xac] sm:$0xf0] }
 0x1b3   :  { %v1228_v4 = vpop.f32.mrf.mxu2 }
 0x1b4   :  { %v5985_v15 = vpack.c.bf16 %v2636_v45, %v2628_v57  ;;  %v1229_v62 = vadd.f32 %v1228_v4, %v5770_v34  ;;  %v5194_v34 = vld [vmem:[#allocation5 + $0x94] sm:$0xf] }
 0x1b5   :  { %v1317_v14 = vpop.f32.mrf.mxu3  ;;  %v1329_v35 = vpop.f32.mrf.mxu0  ;;  %v4495_v22 = vor.u32 %v5194_v34, %v4492_v31  ;;  %v5258_v57 = vld [vmem:[#allocation5 + $0x294] sm:$0xf]  ;;  %v4746_v31 = vld [vmem:[#allocation5 + $0x290] sm:$0xf] }
 0x1b6   :  { %7376 = vst [vmem:[#allocation41_spill] sm:$0xff] %v5985_v15  ;;  %v1330_v36 = vadd.f32 %v1329_v35, %v5983_v54  ;;  %v1318_v20 = vadd.f32 %v1317_v14, %v1229_v62  ;;  %v4491_v62 = vor.u32 %v5198_v46, %v4490_v25  ;;  %v4751_v30 = vor.u32 %v5258_v57, %v4748_v1 }
 0x1b7   :  { %v1418_v19 = vpop.f32.mrf.mxu1  ;;  %1859 = vmatpush.bf16.msra.mxu2 %v4495_v22 }
 0x1b8   :  { %v1419_v21 = vadd.f32 %v1418_v19, %v1330_v36  ;;  %1368 = vmatmul.bf16.gmra.mxu0 %v5762_v24  ;;  %v2637_v18 = vmax.f32 %v1318_v20, 0.0  ;;  %1546 = vmatmul.bf16.gmra.mxu2 %v5762_v24 }
 0x1b9   :  { %1681 = vmatpush.bf16.msra.mxu0 %v4491_v62  ;;  %1948 = vmatpush.bf16.msra.mxu3 %v4751_v30 }
 0x1ba   :  { %1457 = vmatmul.bf16.gmra.mxu1 %v5764_v28  ;;  %1635 = vmatmul.bf16.gmra.mxu3 %v5764_v28  ;;  %v5995_v45 = vpack.c.bf16 %v2637_v18, %v2629_v29  ;;  %v2390_v29 = vmax.f32 %v1419_v21, 0.0 }
 0x1bb   :  { %v1507_v4 = vpop.f32.mrf.mxu2 }
 0x1bc   :  { %7377 = vst [vmem:[#allocation42_spill] sm:$0xff] %v5995_v45  ;;  %v1508_v20 = vadd.f32 %v1507_v4, %v5992_v41  ;;  %v4747_v45 = vor.u32 %v5262_v42, %v4746_v31 }
 0x1bd   :  { %v1596_v14 = vpop.f32.mrf.mxu3  ;;  %v1331_v35 = vpop.f32.mrf.mxu0 }
 0x1be   :  { %v1332_v36 = vadd.f32 %v1331_v35, %v5983_v54  ;;  %v1597_v15 = vadd.f32 %v1596_v14, %v1508_v20  ;;  %1770 = vmatpush.bf16.msra.mxu1 %v4747_v45 }
 0x1bf   :  { %v1420_v19 = vpop.f32.mrf.mxu1 }
 0x1c0   :  { %v1421_v34 = vadd.f32 %v1420_v19, %v1332_v36  ;;  %v2391_v14 = vmax.f32 %v1597_v15, 0.0 }
 0x1c2   :  { %v2398_v18 = vmax.f32 %v1421_v34, 0.0 }
 0x1c3   :  { %v1509_v46 = vpop.f32.mrf.mxu2 }
 0x1c4   :  { %v5999_v25 = vpack.c.bf16 %v2398_v18, %v2390_v29  ;;  %v1510_v4 = vadd.f32 %v1509_v46, %v5992_v41 }
 0x1c5   :  { %v1598_v22 = vpop.f32.mrf.mxu3  ;;  %v1334_v57 = vpop.f32.mrf.mxu0 }
 0x1c6   :  { %v1335_v1 = vadd.f32 %v1334_v57, %v5983_v54  ;;  %v1599_v62 = vadd.f32 %v1598_v22, %v1510_v4 }
 0x1c7   :  { %v1423_v35 = vpop.f32.mrf.mxu1 }
 0x1c8   :  { %v1424_v20 = vadd.f32 %v1423_v35, %v1335_v1  ;;  %1373 = vmatmul.bf16.gmra.mxu0 %v5777_v7  ;;  %v2399_v30 = vmax.f32 %v1599_v62, 0.0  ;;  %1551 = vmatmul.bf16.gmra.mxu2 %v5777_v7 }
 0x1ca   :  { %1462 = vmatmul.bf16.gmra.mxu1 %v5780_v13  ;;  %1640 = vmatmul.bf16.gmra.mxu3 %v5780_v13  ;;  %v6007_v42 = vpack.c.bf16 %v2399_v30, %v2391_v14  ;;  %v2406_v15 = vmax.f32 %v1424_v20, 0.0  ;;  %v5186_v20 = vld [vmem:[#allocation5 + $0x54] sm:$0xf] }
 0x1cb   :  { %v1512_v21 = vpop.f32.mrf.mxu2 }
 0x1cc   :  { %v1513_v45 = vadd.f32 %v1512_v21, %v5992_v41 }
 0x1cd   :  { %v1601_v36 = vpop.f32.mrf.mxu3  ;;  %v1336_v19 = vpop.f32.mrf.mxu0 }
 0x1ce   :  { %v1337_v34 = vadd.f32 %v1336_v19, %v5983_v54  ;;  %v1602_v29 = vadd.f32 %v1601_v36, %v1513_v45  ;;  %v4460_v45 = vld [vmem:[#allocation5 + $0x70] sm:$0xf0] }
 0x1cf   :  { %v1425_v31 = vpop.f32.mrf.mxu1  ;;  %v4463_v36 = vor.u32 %v5186_v20, %v4460_v45  ;;  %v4714_v45 = vld [vmem:[#allocation5 + $0x250] sm:$0xf] }
 0x1d0   :  { %v1426_v18 = vadd.f32 %v1425_v31, %v1337_v34  ;;  %v2407_v19 = vmax.f32 %v1602_v29, 0.0  ;;  %v4458_v34 = vld [vmem:[#allocation5 + $0x50] sm:$0xf]  ;;  %v4715_v6 = vor.u32 %v5254_v39, %v4714_v45 }
 0x1d1   :  { %v5190_v31 = vld [vmem:[#allocation5 + $0x6c] sm:$0xf0]  ;;  %1860 = vmatpush.bf16.msra.mxu2 %v4463_v36 }
 0x1d2   :  { %v2414_v46 = vmax.f32 %v1426_v18, 0.0  ;;  %v5250_v18 = vld [vmem:[#allocation5 + $0x254] sm:$0xf]  ;;  %1771 = vmatpush.bf16.msra.mxu1 %v4715_v6 }
 0x1d3   :  { %v1514_v4 = vpop.f32.mrf.mxu2 }
 0x1d4   :  { %v6011_v22 = vpack.c.bf16 %v2414_v46, %v2406_v15  ;;  %v1515_v57 = vadd.f32 %v1514_v4, %v5992_v41  ;;  %v4459_v4 = vor.u32 %v5190_v31, %v4458_v34 }
 0x1d5   :  { %v1603_v1 = vpop.f32.mrf.mxu3  ;;  %v1339_v35 = vpop.f32.mrf.mxu0 }
 0x1d6   :  { %v1340_v62 = vadd.f32 %v1339_v35, %v5983_v54  ;;  %v1604_v30 = vadd.f32 %v1603_v1, %v1515_v57  ;;  %v4716_v57 = vld [vmem:[#allocation5 + $0x270] sm:$0xf0]  ;;  %1682 = vmatpush.bf16.msra.mxu0 %v4459_v4 }
 0x1d7   :  { %v1428_v14 = vpop.f32.mrf.mxu1 }
 0x1d8   :  { %v1429_v21 = vadd.f32 %v1428_v14, %v1340_v62  ;;  %1378 = vmatmul.bf16.gmra.mxu0 %v5791_v48  ;;  %v2415_v37 = vmax.f32 %v1604_v30, 0.0  ;;  %1556 = vmatmul.bf16.gmra.mxu2 %v5791_v48  ;;  %v4719_v62 = vor.u32 %v5250_v18, %v4716_v57 }
 0x1da   :  { %1467 = vmatmul.bf16.gmra.mxu1 %v5796_v55  ;;  %1645 = vmatmul.bf16.gmra.mxu3 %v5796_v55  ;;  %v6019_v15 = vpack.c.bf16 %v2415_v37, %v2407_v19  ;;  %v2422_v37 = vmax.f32 %v1429_v21, 0.0 }
 0x1db   :  { %v1517_v46 = vpop.f32.mrf.mxu2  ;;  %1949 = vmatpush.bf16.msra.mxu3 %v4719_v62 }
 0x1dc   :  { %v1518_v29 = vadd.f32 %v1517_v46, %v5992_v41 }
 0x1dd   :  { %v1606_v1 = vpop.f32.mrf.mxu3  ;;  %v1341_v35 = vpop.f32.mrf.mxu0 }
 0x1de   :  { %v1342_v14 = vadd.f32 %v1341_v35, %v5983_v54  ;;  %v1607_v11 = vadd.f32 %v1606_v1, %v1518_v29 }
 0x1df   :  { %v1430_v30 = vpop.f32.mrf.mxu1 }
 0x1e0   :  { %v1431_v20 = vadd.f32 %v1430_v30, %v1342_v14  ;;  %v2423_v1 = vmax.f32 %v1607_v11, 0.0 }
 0x1e2   :  { %v2430_v19 = vmax.f32 %v1431_v20, 0.0 }
 0x1e3   :  { %v1519_v34 = vpop.f32.mrf.mxu2 }
 0x1e4   :  { %v6023_v31 = vpack.c.bf16 %v2430_v19, %v2422_v37  ;;  %v1520_v46 = vadd.f32 %v1519_v34, %v5992_v41 }
 0x1e5   :  { %v1608_v36 = vpop.f32.mrf.mxu3  ;;  %v1344_v18 = vpop.f32.mrf.mxu0 }
 0x1e6   :  { %7378 = vst [vmem:[#allocation43_spill] sm:$0xff] %v6023_v31  ;;  %v1345_v57 = vadd.f32 %v1344_v18, %v5983_v54  ;;  %v1609_v4 = vadd.f32 %v1608_v36, %v1520_v46  ;;  %v5246_v31 = vld [vmem:[#allocation5 + $0x22c] sm:$0xf0] }
 0x1e7   :  { %v1433_v35 = vpop.f32.mrf.mxu1 }
 0x1e8   :  { %v1434_v29 = vadd.f32 %v1433_v35, %v1345_v57  ;;  %1383 = vmatmul.bf16.gmra.mxu0 %v5807_v50  ;;  %v2431_v62 = vmax.f32 %v1609_v4, 0.0  ;;  %1561 = vmatmul.bf16.gmra.mxu2 %v5807_v50 }
 0x1ea   :  { %1472 = vmatmul.bf16.gmra.mxu1 %v5812_v60  ;;  %1650 = vmatmul.bf16.gmra.mxu3 %v5812_v60  ;;  %v6031_v6 = vpack.c.bf16 %v2431_v62, %v2423_v1  ;;  %v2438_v11 = vmax.f32 %v1434_v29, 0.0  ;;  %v5178_v29 = vld [vmem:[#allocation5 + $0x14] sm:$0xf] }
 0x1eb   :  { %v1522_v39 = vpop.f32.mrf.mxu2 }
 0x1ec   :  { %7379 = vst [vmem:[#allocation44_spill] sm:$0xff] %v6031_v6  ;;  %v1523_v21 = vadd.f32 %v1522_v39, %v5992_v41 }
 0x1ed   :  { %v1611_v14 = vpop.f32.mrf.mxu3  ;;  %v1346_v30 = vpop.f32.mrf.mxu0 }
 0x1ee   :  { %v1347_v20 = vadd.f32 %v1346_v30, %v5983_v54  ;;  %v1612_v37 = vadd.f32 %v1611_v14, %v1523_v21  ;;  %v4428_v21 = vld [vmem:[#allocation5 + $0x30] sm:$0xf0] }
 0x1ef   :  { %v1435_v45 = vpop.f32.mrf.mxu1  ;;  %v4431_v14 = vor.u32 %v5178_v29, %v4428_v21  ;;  %v4682_v21 = vld [vmem:[#allocation5 + $0x210] sm:$0xf] }
 0x1f0   :  { %v1436_v19 = vadd.f32 %v1435_v45, %v1347_v20  ;;  %v2439_v30 = vmax.f32 %v1612_v37, 0.0  ;;  %v4426_v20 = vld [vmem:[#allocation5 + $0x10] sm:$0xf] }
 0x1f1   :  { %v5182_v45 = vld [vmem:[#allocation5 + $0x2c] sm:$0xf0]  ;;  %1861 = vmatpush.bf16.msra.mxu2 %v4431_v14 }
 0x1f2   :  { %v2446_v34 = vmax.f32 %v1436_v19, 0.0  ;;  %v5242_v19 = vld [vmem:[#allocation5 + $0x214] sm:$0xf] }
 0x1f3   :  { %v1524_v46 = vpop.f32.mrf.mxu2 }
 0x1f4   :  { %v6035_v36 = vpack.c.bf16 %v2446_v34, %v2438_v11  ;;  %v1525_v18 = vadd.f32 %v1524_v46, %v5992_v41  ;;  %v4427_v46 = vor.u32 %v5182_v45, %v4426_v20 }
 0x1f5   :  { %v1613_v57 = vpop.f32.mrf.mxu3  ;;  %v1349_v35 = vpop.f32.mrf.mxu0 }
 0x1f6   :  { %7380 = vst [vmem:[#allocation45_spill] sm:$0xff] %v6035_v36  ;;  %v1350_v4 = vadd.f32 %v1349_v35, %v5983_v54  ;;  %v1614_v62 = vadd.f32 %v1613_v57, %v1525_v18  ;;  %v4684_v18 = vld [vmem:[#allocation5 + $0x230] sm:$0xf0]  ;;  %1683 = vmatpush.bf16.msra.mxu0 %v4427_v46 }
 0x1f7   :  { %v1438_v1 = vpop.f32.mrf.mxu1 }
 0x1f8   :  { %v1439_v39 = vadd.f32 %v1438_v1, %v1350_v4  ;;  %1388 = vmatmul.bf16.gmra.mxu0 %v5823_v38  ;;  %v2447_v6 = vmax.f32 %v1614_v62, 0.0  ;;  %1566 = vmatmul.bf16.gmra.mxu2 %v5823_v38  ;;  %v4687_v4 = vor.u32 %v5242_v19, %v4684_v18 }
 0x1fa   :  { %1477 = vmatmul.bf16.gmra.mxu1 %v5828_v44  ;;  %1655 = vmatmul.bf16.gmra.mxu3 %v5828_v44  ;;  %v6043_v11 = vpack.c.bf16 %v2447_v6, %v2439_v30  ;;  %v2454_v6 = vmax.f32 %v1439_v39, 0.0 }
 0x1fb   :  { %v1527_v34 = vpop.f32.mrf.mxu2  ;;  %1950 = vmatpush.bf16.msra.mxu3 %v4687_v4 }
 0x1fc   :  { %7381 = vst [vmem:[#allocation46_spill] sm:$0xff] %v6043_v11  ;;  %v1528_v37 = vadd.f32 %v1527_v34, %v5992_v41  ;;  %v4683_v11 = vor.u32 %v5246_v31, %v4682_v21 }
 0x1fd   :  { %v1616_v57 = vpop.f32.mrf.mxu3  ;;  %v1351_v35 = vpop.f32.mrf.mxu0 }
 0x1fe   :  { %v1352_v1 = vadd.f32 %v1351_v35, %v5983_v54  ;;  %v1617_v36 = vadd.f32 %v1616_v57, %v1528_v37  ;;  %1772 = vmatpush.bf16.msra.mxu1 %v4683_v11 }
 0x1ff   :  { %v1440_v62 = vpop.f32.mrf.mxu1 }
 0x200   :  { %v1441_v29 = vadd.f32 %v1440_v62, %v1352_v1  ;;  %v2455_v57 = vmax.f32 %v1617_v36, 0.0 }
 0x202   :  { %v2462_v30 = vmax.f32 %v1441_v29, 0.0 }
 0x203   :  { %v1529_v20 = vpop.f32.mrf.mxu2 }
 0x204   :  { %v6047_v45 = vpack.c.bf16 %v2462_v30, %v2454_v6  ;;  %v1530_v34 = vadd.f32 %v1529_v20, %v5992_v41 }
 0x205   :  { %v1618_v14 = vpop.f32.mrf.mxu3  ;;  %v1354_v19 = vpop.f32.mrf.mxu0 }
 0x206   :  { %7382 = vst [vmem:[#allocation47_spill] sm:$0xff] %v6047_v45  ;;  %v1355_v18 = vadd.f32 %v1354_v19, %v5983_v54  ;;  %v1619_v46 = vadd.f32 %v1618_v14, %v1530_v34  ;;  %v5303_v45 = vld [vmem:[#allocation5 + $0x3f4] sm:$0xf0] }
 0x207   :  { %v1443_v35 = vpop.f32.mrf.mxu1 }
 0x208   :  { %v1444_v37 = vadd.f32 %v1443_v35, %v1355_v18  ;;  %1393 = vmatmul.bf16.gmra.mxu0 %v5839_v63  ;;  %v2463_v4 = vmax.f32 %v1619_v46, 0.0  ;;  %1571 = vmatmul.bf16.gmra.mxu2 %v5839_v63 }
 0x20a   :  { %1482 = vmatmul.bf16.gmra.mxu1 %v5844_v10  ;;  %1660 = vmatmul.bf16.gmra.mxu3 %v5844_v10  ;;  %v6055_v31 = vpack.c.bf16 %v2463_v4, %v2455_v57  ;;  %v2470_v36 = vmax.f32 %v1444_v37, 0.0  ;;  %v5235_v37 = vld [vmem:[#allocation5 + $0x1dc] sm:$0xf] }
 0x20b   :  { %v1532_v39 = vpop.f32.mrf.mxu2 }
 0x20c   :  { %7383 = vst [vmem:[#allocation48_spill] sm:$0xff] %v6055_v31  ;;  %v1533_v11 = vadd.f32 %v1532_v39, %v5992_v41 }
 0x20d   :  { %v1621_v1 = vpop.f32.mrf.mxu3  ;;  %v1356_v62 = vpop.f32.mrf.mxu0 }
 0x20e   :  { %v1357_v29 = vadd.f32 %v1356_v62, %v5983_v54  ;;  %v1622_v6 = vadd.f32 %v1621_v1, %v1533_v11  ;;  %v4660_v11 = vld [vmem:[#allocation5 + $0x1f8] sm:$0xf0] }
 0x20f   :  { %v1445_v21 = vpop.f32.mrf.mxu1  ;;  %v4663_v1 = vor.u32 %v5235_v37, %v4660_v11  ;;  %v4914_v11 = vld [vmem:[#allocation5 + $0x3d8] sm:$0xf] }
 0x210   :  { %v1446_v30 = vadd.f32 %v1445_v21, %v1357_v29  ;;  %v2471_v62 = vmax.f32 %v1622_v6, 0.0  ;;  %v4658_v29 = vld [vmem:[#allocation5 + $0x1d8] sm:$0xf] }
 0x211   :  { %v5239_v21 = vld [vmem:[#allocation5 + $0x1f4] sm:$0xf0]  ;;  %2210 = vmatpush.bf16.msrb.mxu2 %v4663_v1 }
 0x212   :  { %v2478_v20 = vmax.f32 %v1446_v30, 0.0  ;;  %v5299_v30 = vld [vmem:[#allocation5 + $0x3dc] sm:$0xf] }
 0x213   :  { %v1534_v34 = vpop.f32.mrf.mxu2 }
 0x214   :  { %v6059_v14 = vpack.c.bf16 %v2478_v20, %v2470_v36  ;;  %v1535_v19 = vadd.f32 %v1534_v34, %v5992_v41  ;;  %v4659_v34 = vor.u32 %v5239_v21, %v4658_v29 }
 0x215   :  { %v1623_v18 = vpop.f32.mrf.mxu3  ;;  %v1359_v35 = vpop.f32.mrf.mxu0 }
 0x216   :  { %7384 = vst [vmem:[#allocation49_spill] sm:$0xff] %v6059_v14  ;;  %v1360_v46 = vadd.f32 %v1359_v35, %v5983_v54  ;;  %v1624_v4 = vadd.f32 %v1623_v18, %v1535_v19  ;;  %v4916_v19 = vld [vmem:[#allocation5 + $0x3f8] sm:$0xf0]  ;;  %2032 = vmatpush.bf16.msrb.mxu0 %v4659_v34 }
 0x217   :  { %v1448_v57 = vpop.f32.mrf.mxu1 }
 0x218   :  { %v1449_v39 = vadd.f32 %v1448_v57, %v1360_v46  ;;  %1398 = vmatmul.bf16.gmra.mxu0 %v5855_v0  ;;  %v2479_v31 = vmax.f32 %v1624_v4, 0.0  ;;  %1576 = vmatmul.bf16.gmra.mxu2 %v5855_v0  ;;  %v4919_v46 = vor.u32 %v5299_v30, %v4916_v19 }
 0x21a   :  { %1487 = vmatmul.bf16.gmra.mxu1 %v5860_v56  ;;  %1665 = vmatmul.bf16.gmra.mxu3 %v5860_v56  ;;  %v6067_v36 = vpack.c.bf16 %v2479_v31, %v2471_v62  ;;  %v2486_v31 = vmax.f32 %v1449_v39, 0.0 }
 0x21b   :  { %v1537_v20 = vpop.f32.mrf.mxu2  ;;  %2299 = vmatpush.bf16.msrb.mxu3 %v4919_v46 }
 0x21c   :  { %7385 = vst [vmem:[#allocation50_spill] sm:$0xff] %v6067_v36  ;;  %v1538_v6 = vadd.f32 %v1537_v20, %v5992_v41  ;;  %v4915_v36 = vor.u32 %v5303_v45, %v4914_v11 }
 0x21d   :  { %v1626_v18 = vpop.f32.mrf.mxu3  ;;  %v1361_v35 = vpop.f32.mrf.mxu0 }
 0x21e   :  { %v1362_v57 = vadd.f32 %v1361_v35, %v5983_v54  ;;  %v1627_v14 = vadd.f32 %v1626_v18, %v1538_v6  ;;  %2121 = vmatpush.bf16.msrb.mxu1 %v4915_v36 }
 0x21f   :  { %v1450_v4 = vpop.f32.mrf.mxu1 }
 0x220   :  { %v1451_v37 = vadd.f32 %v1450_v4, %v1362_v57  ;;  %v2487_v18 = vmax.f32 %v1627_v14, 0.0 }
 0x222   :  { %v2494_v62 = vmax.f32 %v1451_v37, 0.0 }
 0x223   :  { %v1539_v29 = vpop.f32.mrf.mxu2 }
 0x224   :  { %v6071_v21 = vpack.c.bf16 %v2494_v62, %v2486_v31  ;;  %v1540_v20 = vadd.f32 %v1539_v29, %v5992_v41 }
 0x225   :  { %v1628_v1 = vpop.f32.mrf.mxu3  ;;  %v1364_v30 = vpop.f32.mrf.mxu0 }
 0x226   :  { %7386 = vst [vmem:[#allocation51_spill] sm:$0xff] %v6071_v21  ;;  %v1365_v19 = vadd.f32 %v1364_v30, %v5983_v54  ;;  %v1629_v34 = vadd.f32 %v1628_v1, %v1540_v20  ;;  %v5295_v21 = vld [vmem:[#allocation5 + $0x3b4] sm:$0xf0] }
 0x227   :  { %v1453_v35 = vpop.f32.mrf.mxu1 }
 0x228   :  { %v1454_v6 = vadd.f32 %v1453_v35, %v1365_v19  ;;  %1403 = vmatmul.bf16.gmra.mxu0 %v5871_v61  ;;  %v2495_v46 = vmax.f32 %v1629_v34, 0.0  ;;  %1581 = vmatmul.bf16.gmra.mxu2 %v5871_v61 }
 0x22a   :  { %1492 = vmatmul.bf16.gmra.mxu1 %v5876_v40  ;;  %1670 = vmatmul.bf16.gmra.mxu3 %v5876_v40  ;;  %v6079_v45 = vpack.c.bf16 %v2495_v46, %v2487_v18  ;;  %v2502_v14 = vmax.f32 %v1454_v6, 0.0  ;;  %v5227_v6 = vld [vmem:[#allocation5 + $0x19c] sm:$0xf] }
 0x22b   :  { %v1542_v39 = vpop.f32.mrf.mxu2 }
 0x22c   :  { %7387 = vst [vmem:[#allocation52_spill] sm:$0xff] %v6079_v45  ;;  %v1543_v36 = vadd.f32 %v1542_v39, %v5992_v41 }
 0x22d   :  { %v1631_v57 = vpop.f32.mrf.mxu3  ;;  %v1366_v4 = vpop.f32.mrf.mxu0 }
 0x22e   :  { %v1367_v37 = vadd.f32 %v1366_v4, %v5983_v54  ;;  %v1632_v31 = vadd.f32 %v1631_v57, %v1543_v36  ;;  %v4628_v36 = vld [vmem:[#allocation5 + $0x1b8] sm:$0xf0] }
 0x22f   :  { %v1455_v11 = vpop.f32.mrf.mxu1  ;;  %v4631_v57 = vor.u32 %v5227_v6, %v4628_v36  ;;  %v4882_v36 = vld [vmem:[#allocation5 + $0x398] sm:$0xf] }
 0x230   :  { %v1456_v62 = vadd.f32 %v1455_v11, %v1367_v37  ;;  %v2503_v4 = vmax.f32 %v1632_v31, 0.0  ;;  %v4626_v37 = vld [vmem:[#allocation5 + $0x198] sm:$0xf] }
 0x231   :  { %v5231_v11 = vld [vmem:[#allocation5 + $0x1b4] sm:$0xf0]  ;;  %2211 = vmatpush.bf16.msrb.mxu2 %v4631_v57 }
 0x232   :  { %v2510_v29 = vmax.f32 %v1456_v62, 0.0  ;;  %v5291_v62 = vld [vmem:[#allocation5 + $0x39c] sm:$0xf] }
 0x233   :  { %v1544_v20 = vpop.f32.mrf.mxu2 }
 0x234   :  { %v6083_v1 = vpack.c.bf16 %v2510_v29, %v2502_v14  ;;  %v1545_v30 = vadd.f32 %v1544_v20, %v5992_v41  ;;  %v4627_v20 = vor.u32 %v5231_v11, %v4626_v37 }
 0x235   :  { %v1633_v19 = vpop.f32.mrf.mxu3  ;;  %v1369_v35 = vpop.f32.mrf.mxu0 }
 0x236   :  { %7388 = vst [vmem:[#allocation53_spill] sm:$0xff] %v6083_v1  ;;  %v1370_v34 = vadd.f32 %v1369_v35, %v5983_v54  ;;  %v1634_v46 = vadd.f32 %v1633_v19, %v1545_v30  ;;  %v4884_v30 = vld [vmem:[#allocation5 + $0x3b8] sm:$0xf0]  ;;  %2033 = vmatpush.bf16.msrb.mxu0 %v4627_v20 }
 0x237   :  { %v1458_v18 = vpop.f32.mrf.mxu1 }
 0x238   :  { %v1459_v39 = vadd.f32 %v1458_v18, %v1370_v34  ;;  %1684 = vmatmul.bf16.vlgmr.msra.gmra.mxu0 %v5696_v43  ;;  %v2511_v45 = vmax.f32 %v1634_v46, 0.0  ;;  %1862 = vmatmul.bf16.vlgmr.msra.gmra.mxu2 %v5696_v43  ;;  %v4887_v34 = vor.u32 %v5291_v62, %v4884_v30 }
 0x23a   :  { %1773 = vmatmul.bf16.vlgmr.msra.gmra.mxu1 %v5698_v47  ;;  %1951 = vmatmul.bf16.vlgmr.msra.gmra.mxu3 %v5698_v47  ;;  %v6091_v14 = vpack.c.bf16 %v2511_v45, %v2503_v4  ;;  %v2518_v45 = vmax.f32 %v1459_v39, 0.0 }
 0x23b   :  { %v1547_v29 = vpop.f32.mrf.mxu2  ;;  %2300 = vmatpush.bf16.msrb.mxu3 %v4887_v34 }
 0x23c   :  { %7389 = vst [vmem:[#allocation54_spill] sm:$0xff] %v6091_v14  ;;  %v1548_v31 = vadd.f32 %v1547_v29, %v5992_v41  ;;  %v4883_v14 = vor.u32 %v5295_v21, %v4882_v36 }
 0x23d   :  { %v1636_v19 = vpop.f32.mrf.mxu3  ;;  %v1371_v35 = vpop.f32.mrf.mxu0 }
 0x23e   :  { %v1372_v18 = vadd.f32 %v1371_v35, %v5983_v54  ;;  %v1637_v1 = vadd.f32 %v1636_v19, %v1548_v31  ;;  %2122 = vmatpush.bf16.msrb.mxu1 %v4883_v14 }
 0x23f   :  { %v1460_v46 = vpop.f32.mrf.mxu1 }
 0x240   :  { %v1461_v6 = vadd.f32 %v1460_v46, %v1372_v18  ;;  %v2519_v19 = vmax.f32 %v1637_v1, 0.0 }
 0x242   :  { %v2526_v4 = vmax.f32 %v1461_v6, 0.0 }
 0x243   :  { %v1549_v37 = vpop.f32.mrf.mxu2 }
 0x244   :  { %v6095_v11 = vpack.c.bf16 %v2526_v4, %v2518_v45  ;;  %v1550_v29 = vadd.f32 %v1549_v37, %v5992_v41 }
 0x245   :  { %v1638_v57 = vpop.f32.mrf.mxu3  ;;  %v1374_v62 = vpop.f32.mrf.mxu0 }
 0x246   :  { %7390 = vst [vmem:[#allocation55_spill] sm:$0xff] %v6095_v11  ;;  %v1375_v30 = vadd.f32 %v1374_v62, %v5983_v54  ;;  %v1639_v20 = vadd.f32 %v1638_v57, %v1550_v29  ;;  %v5287_v11 = vld [vmem:[#allocation5 + $0x374] sm:$0xf0] }
 0x247   :  { %v1463_v35 = vpop.f32.mrf.mxu1 }
 0x248   :  { %v1464_v31 = vadd.f32 %v1463_v35, %v1375_v30  ;;  %1689 = vmatmul.bf16.gmra.mxu0 %v5704_v2  ;;  %v2527_v34 = vmax.f32 %v1639_v20, 0.0  ;;  %1867 = vmatmul.bf16.gmra.mxu2 %v5704_v2 }
 0x24a   :  { %1778 = vmatmul.bf16.gmra.mxu1 %v5706_v3  ;;  %1956 = vmatmul.bf16.gmra.mxu3 %v5706_v3  ;;  %v6103_v21 = vpack.c.bf16 %v2527_v34, %v2519_v19  ;;  %v2534_v1 = vmax.f32 %v1464_v31, 0.0  ;;  %v5219_v31 = vld [vmem:[#allocation5 + $0x15c] sm:$0xf] }
 0x24b   :  { %v1552_v39 = vpop.f32.mrf.mxu2 }
 0x24c   :  { %7391 = vst [vmem:[#allocation56_spill] sm:$0xff] %v6103_v21  ;;  %v1553_v14 = vadd.f32 %v1552_v39, %v5992_v41 }
 0x24d   :  { %v1641_v18 = vpop.f32.mrf.mxu3  ;;  %v1376_v46 = vpop.f32.mrf.mxu0 }
 0x24e   :  { %v1377_v6 = vadd.f32 %v1376_v46, %v5983_v54  ;;  %v1642_v45 = vadd.f32 %v1641_v18, %v1553_v14  ;;  %v4596_v14 = vld [vmem:[#allocation5 + $0x178] sm:$0xf0] }
 0x24f   :  { %v1465_v36 = vpop.f32.mrf.mxu1  ;;  %v4599_v18 = vor.u32 %v5219_v31, %v4596_v14  ;;  %v4850_v14 = vld [vmem:[#allocation5 + $0x358] sm:$0xf] }
 0x250   :  { %v1466_v4 = vadd.f32 %v1465_v36, %v1377_v6  ;;  %v2535_v46 = vmax.f32 %v1642_v45, 0.0  ;;  %v4594_v6 = vld [vmem:[#allocation5 + $0x158] sm:$0xf] }
 0x251   :  { %v5223_v36 = vld [vmem:[#allocation5 + $0x174] sm:$0xf0]  ;;  %2212 = vmatpush.bf16.msrb.mxu2 %v4599_v18 }
 0x252   :  { %v2542_v37 = vmax.f32 %v1466_v4, 0.0  ;;  %v5283_v4 = vld [vmem:[#allocation5 + $0x35c] sm:$0xf] }
 0x253   :  { %v1554_v29 = vpop.f32.mrf.mxu2 }
 0x254   :  { %v6107_v57 = vpack.c.bf16 %v2542_v37, %v2534_v1  ;;  %v1555_v62 = vadd.f32 %v1554_v29, %v5992_v41  ;;  %v4595_v29 = vor.u32 %v5223_v36, %v4594_v6 }
 0x255   :  { %v1643_v30 = vpop.f32.mrf.mxu3  ;;  %v1379_v35 = vpop.f32.mrf.mxu0 }
 0x256   :  { %7392 = vst [vmem:[#allocation57_spill] sm:$0xff] %v6107_v57  ;;  %v1380_v20 = vadd.f32 %v1379_v35, %v5983_v54  ;;  %v1644_v34 = vadd.f32 %v1643_v30, %v1555_v62  ;;  %v4852_v62 = vld [vmem:[#allocation5 + $0x378] sm:$0xf0]  ;;  %2034 = vmatpush.bf16.msrb.mxu0 %v4595_v29 }
 0x257   :  { %v1468_v19 = vpop.f32.mrf.mxu1 }
 0x258   :  { %v1469_v39 = vadd.f32 %v1468_v19, %v1380_v20  ;;  %1694 = vmatmul.bf16.gmra.mxu0 %v5712_v8  ;;  %v2543_v21 = vmax.f32 %v1644_v34, 0.0  ;;  %1872 = vmatmul.bf16.gmra.mxu2 %v5712_v8  ;;  %v4855_v20 = vor.u32 %v5283_v4, %v4852_v62 }
 0x25a   :  { %1783 = vmatmul.bf16.gmra.mxu1 %v5714_v9  ;;  %1961 = vmatmul.bf16.gmra.mxu3 %v5714_v9  ;;  %v6115_v1 = vpack.c.bf16 %v2543_v21, %v2535_v46  ;;  %v2550_v21 = vmax.f32 %v1469_v39, 0.0 }
 0x25b   :  { %v1557_v37 = vpop.f32.mrf.mxu2  ;;  %2301 = vmatpush.bf16.msrb.mxu3 %v4855_v20 }
 0x25c   :  { %7393 = vst [vmem:[#allocation58_spill] sm:$0xff] %v6115_v1  ;;  %v1558_v45 = vadd.f32 %v1557_v37, %v5992_v41  ;;  %v4851_v1 = vor.u32 %v5287_v11, %v4850_v14 }
 0x25d   :  { %v1646_v30 = vpop.f32.mrf.mxu3  ;;  %v1381_v35 = vpop.f32.mrf.mxu0 }
 0x25e   :  { %v1382_v19 = vadd.f32 %v1381_v35, %v5983_v54  ;;  %v1647_v57 = vadd.f32 %v1646_v30, %v1558_v45  ;;  %2123 = vmatpush.bf16.msrb.mxu1 %v4851_v1 }
 0x25f   :  { %v1470_v34 = vpop.f32.mrf.mxu1 }
 0x260   :  { %v1471_v31 = vadd.f32 %v1470_v34, %v1382_v19  ;;  %v2551_v30 = vmax.f32 %v1647_v57, 0.0 }
 0x262   :  { %v2558_v46 = vmax.f32 %v1471_v31, 0.0 }
 0x263   :  { %v1559_v6 = vpop.f32.mrf.mxu2 }
 0x264   :  { %v6119_v36 = vpack.c.bf16 %v2558_v46, %v2550_v21  ;;  %v1560_v37 = vadd.f32 %v1559_v6, %v5992_v41 }
 0x265   :  { %v1648_v18 = vpop.f32.mrf.mxu3  ;;  %v1384_v4 = vpop.f32.mrf.mxu0 }
 0x266   :  { %7394 = vst [vmem:[#allocation59_spill] sm:$0xff] %v6119_v36  ;;  %v1385_v62 = vadd.f32 %v1384_v4, %v5983_v54  ;;  %v1649_v29 = vadd.f32 %v1648_v18, %v1560_v37  ;;  %v5279_v36 = vld [vmem:[#allocation5 + $0x334] sm:$0xf0] }
 0x267   :  { %v1473_v35 = vpop.f32.mrf.mxu1 }
 0x268   :  { %v1474_v45 = vadd.f32 %v1473_v35, %v1385_v62  ;;  %1699 = vmatmul.bf16.gmra.mxu0 %v5720_v26  ;;  %v2559_v20 = vmax.f32 %v1649_v29, 0.0  ;;  %1877 = vmatmul.bf16.gmra.mxu2 %v5720_v26 }
 0x26a   :  { %1788 = vmatmul.bf16.gmra.mxu1 %v5722_v27  ;;  %1966 = vmatmul.bf16.gmra.mxu3 %v5722_v27  ;;  %v6127_v11 = vpack.c.bf16 %v2559_v20, %v2551_v30  ;;  %v2566_v57 = vmax.f32 %v1474_v45, 0.0  ;;  %v5211_v45 = vld [vmem:[#allocation5 + $0x11c] sm:$0xf] }
 0x26b   :  { %v1562_v39 = vpop.f32.mrf.mxu2 }
 0x26c   :  { %7395 = vst [vmem:[#allocation60_spill] sm:$0xff] %v6127_v11  ;;  %v1563_v1 = vadd.f32 %v1562_v39, %v5992_v41 }
 0x26d   :  { %v1651_v19 = vpop.f32.mrf.mxu3  ;;  %v1386_v34 = vpop.f32.mrf.mxu0 }
 0x26e   :  { %v1387_v31 = vadd.f32 %v1386_v34, %v5983_v54  ;;  %v1652_v21 = vadd.f32 %v1651_v19, %v1563_v1  ;;  %v4564_v1 = vld [vmem:[#allocation5 + $0x138] sm:$0xf0] }
 0x26f   :  { %v1475_v14 = vpop.f32.mrf.mxu1  ;;  %v4567_v19 = vor.u32 %v5211_v45, %v4564_v1  ;;  %v4818_v1 = vld [vmem:[#allocation5 + $0x318] sm:$0xf] }
 0x270   :  { %v1476_v46 = vadd.f32 %v1475_v14, %v1387_v31  ;;  %v2567_v34 = vmax.f32 %v1652_v21, 0.0  ;;  %v4562_v31 = vld [vmem:[#allocation5 + $0x118] sm:$0xf] }
 0x271   :  { %v5215_v14 = vld [vmem:[#allocation5 + $0x134] sm:$0xf0]  ;;  %2213 = vmatpush.bf16.msrb.mxu2 %v4567_v19 }
 0x272   :  { %v2574_v6 = vmax.f32 %v1476_v46, 0.0  ;;  %v5275_v46 = vld [vmem:[#allocation5 + $0x31c] sm:$0xf] }
 0x273   :  { %v1564_v37 = vpop.f32.mrf.mxu2 }
 0x274   :  { %v6131_v18 = vpack.c.bf16 %v2574_v6, %v2566_v57  ;;  %v1565_v4 = vadd.f32 %v1564_v37, %v5992_v41  ;;  %v4563_v37 = vor.u32 %v5215_v14, %v4562_v31 }
 0x275   :  { %v1653_v62 = vpop.f32.mrf.mxu3  ;;  %v1389_v35 = vpop.f32.mrf.mxu0 }
 0x276   :  { %7396 = vst [vmem:[#allocation61_spill] sm:$0xff] %v6131_v18  ;;  %v1390_v29 = vadd.f32 %v1389_v35, %v5983_v54  ;;  %v1654_v20 = vadd.f32 %v1653_v62, %v1565_v4  ;;  %v4820_v4 = vld [vmem:[#allocation5 + $0x338] sm:$0xf0]  ;;  %2035 = vmatpush.bf16.msrb.mxu0 %v4563_v37 }
 0x277   :  { %v1478_v30 = vpop.f32.mrf.mxu1 }
 0x278   :  { %v1479_v39 = vadd.f32 %v1478_v30, %v1390_v29  ;;  %1704 = vmatmul.bf16.gmra.mxu0 %v5728_v32  ;;  %v2575_v11 = vmax.f32 %v1654_v20, 0.0  ;;  %1882 = vmatmul.bf16.gmra.mxu2 %v5728_v32  ;;  %v4823_v29 = vor.u32 %v5275_v46, %v4820_v4 }
 0x27a   :  { %1793 = vmatmul.bf16.gmra.mxu1 %v5730_v33  ;;  %1971 = vmatmul.bf16.gmra.mxu3 %v5730_v33  ;;  %v6139_v57 = vpack.c.bf16 %v2575_v11, %v2567_v34  ;;  %v2582_v11 = vmax.f32 %v1479_v39, 0.0 }
 0x27b   :  { %v1567_v6 = vpop.f32.mrf.mxu2  ;;  %2302 = vmatpush.bf16.msrb.mxu3 %v4823_v29 }
 0x27c   :  { %7397 = vst [vmem:[#allocation62_spill] sm:$0xff] %v6139_v57  ;;  %v1568_v21 = vadd.f32 %v1567_v6, %v5992_v41  ;;  %v4819_v57 = vor.u32 %v5279_v36, %v4818_v1 }
 0x27d   :  { %v1656_v62 = vpop.f32.mrf.mxu3  ;;  %v1391_v35 = vpop.f32.mrf.mxu0 }
 0x27e   :  { %v1392_v30 = vadd.f32 %v1391_v35, %v5983_v54  ;;  %v1657_v18 = vadd.f32 %v1656_v62, %v1568_v21  ;;  %2124 = vmatpush.bf16.msrb.mxu1 %v4819_v57 }
 0x27f   :  { %v1480_v20 = vpop.f32.mrf.mxu1 }
 0x280   :  { %v1481_v45 = vadd.f32 %v1480_v20, %v1392_v30  ;;  %v2583_v62 = vmax.f32 %v1657_v18, 0.0 }
 0x282   :  { %v2590_v34 = vmax.f32 %v1481_v45, 0.0 }
 0x283   :  { %v1569_v31 = vpop.f32.mrf.mxu2 }
 0x284   :  { %v6143_v14 = vpack.c.bf16 %v2590_v34, %v2582_v11  ;;  %v1570_v6 = vadd.f32 %v1569_v31, %v5992_v41 }
 0x285   :  { %v1658_v19 = vpop.f32.mrf.mxu3  ;;  %v1394_v46 = vpop.f32.mrf.mxu0 }
 0x286   :  { %7398 = vst [vmem:[#allocation63_spill] sm:$0xff] %v6143_v14  ;;  %v1395_v4 = vadd.f32 %v1394_v46, %v5983_v54  ;;  %v1659_v37 = vadd.f32 %v1658_v19, %v1570_v6  ;;  %v5271_v14 = vld [vmem:[#allocation5 + $0x2f4] sm:$0xf0] }
 0x287   :  { %v1483_v35 = vpop.f32.mrf.mxu1 }
 0x288   :  { %v1484_v21 = vadd.f32 %v1483_v35, %v1395_v4  ;;  %1709 = vmatmul.bf16.gmra.mxu0 %v5736_v52  ;;  %v2591_v29 = vmax.f32 %v1659_v37, 0.0  ;;  %1887 = vmatmul.bf16.gmra.mxu2 %v5736_v52 }
 0x28a   :  { %1798 = vmatmul.bf16.gmra.mxu1 %v5738_v53  ;;  %1976 = vmatmul.bf16.gmra.mxu3 %v5738_v53  ;;  %v6151_v36 = vpack.c.bf16 %v2591_v29, %v2583_v62  ;;  %v2598_v18 = vmax.f32 %v1484_v21, 0.0  ;;  %v5203_v21 = vld [vmem:[#allocation5 + $0xdc] sm:$0xf] }
 0x28b   :  { %v1572_v39 = vpop.f32.mrf.mxu2 }
 0x28c   :  { %7399 = vst [vmem:[#allocation64_spill] sm:$0xff] %v6151_v36  ;;  %v1573_v57 = vadd.f32 %v1572_v39, %v5992_v41 }
 0x28d   :  { %v1661_v30 = vpop.f32.mrf.mxu3  ;;  %v1396_v20 = vpop.f32.mrf.mxu0 }
 0x28e   :  { %v1397_v45 = vadd.f32 %v1396_v20, %v5983_v54  ;;  %v1662_v11 = vadd.f32 %v1661_v30, %v1573_v57  ;;  %v4532_v57 = vld [vmem:[#allocation5 + $0xf8] sm:$0xf0] }
 0x28f   :  { %v1485_v1 = vpop.f32.mrf.mxu1  ;;  %v4535_v30 = vor.u32 %v5203_v21, %v4532_v57  ;;  %v4786_v57 = vld [vmem:[#allocation5 + $0x2d8] sm:$0xf] }
 0x290   :  { %v1486_v34 = vadd.f32 %v1485_v1, %v1397_v45  ;;  %v2599_v20 = vmax.f32 %v1662_v11, 0.0  ;;  %v4530_v45 = vld [vmem:[#allocation5 + $0xd8] sm:$0xf] }
 0x291   :  { %v5207_v1 = vld [vmem:[#allocation5 + $0xf4] sm:$0xf0]  ;;  %2214 = vmatpush.bf16.msrb.mxu2 %v4535_v30 }
 0x292   :  { %v2606_v31 = vmax.f32 %v1486_v34, 0.0  ;;  %v5267_v34 = vld [vmem:[#allocation5 + $0x2dc] sm:$0xf] }
 0x293   :  { %v1574_v6 = vpop.f32.mrf.mxu2 }
 0x294   :  { %v6155_v19 = vpack.c.bf16 %v2606_v31, %v2598_v18  ;;  %v1575_v46 = vadd.f32 %v1574_v6, %v5992_v41  ;;  %v4531_v6 = vor.u32 %v5207_v1, %v4530_v45 }
 0x295   :  { %v1663_v4 = vpop.f32.mrf.mxu3  ;;  %v1399_v35 = vpop.f32.mrf.mxu0 }
 0x296   :  { %7400 = vst [vmem:[#allocation65_spill] sm:$0xff] %v6155_v19  ;;  %v1400_v37 = vadd.f32 %v1399_v35, %v5983_v54  ;;  %v1664_v29 = vadd.f32 %v1663_v4, %v1575_v46  ;;  %v4788_v46 = vld [vmem:[#allocation5 + $0x2f8] sm:$0xf0]  ;;  %2036 = vmatpush.bf16.msrb.mxu0 %v4531_v6 }
 0x297   :  { %v1488_v62 = vpop.f32.mrf.mxu1 }
 0x298   :  { %v1489_v39 = vadd.f32 %v1488_v62, %v1400_v37  ;;  %1714 = vmatmul.bf16.gmra.mxu0 %v5744_v58  ;;  %v2607_v36 = vmax.f32 %v1664_v29, 0.0  ;;  %1892 = vmatmul.bf16.gmra.mxu2 %v5744_v58  ;;  %v4791_v37 = vor.u32 %v5267_v34, %v4788_v46 }
 0x29a   :  { %1803 = vmatmul.bf16.gmra.mxu1 %v5746_v59  ;;  %1981 = vmatmul.bf16.gmra.mxu3 %v5746_v59  ;;  %v6163_v18 = vpack.c.bf16 %v2607_v36, %v2599_v20  ;;  %v2614_v36 = vmax.f32 %v1489_v39, 0.0 }
 0x29b   :  { %v1577_v31 = vpop.f32.mrf.mxu2  ;;  %2303 = vmatpush.bf16.msrb.mxu3 %v4791_v37 }
 0x29c   :  { %7401 = vst [vmem:[#allocation66_spill] sm:$0xff] %v6163_v18  ;;  %v1578_v11 = vadd.f32 %v1577_v31, %v5992_v41  ;;  %v4787_v18 = vor.u32 %v5271_v14, %v4786_v57 }
 0x29d   :  { %v1666_v4 = vpop.f32.mrf.mxu3  ;;  %v1401_v35 = vpop.f32.mrf.mxu0 }
 0x29e   :  { %v1402_v62 = vadd.f32 %v1401_v35, %v5983_v54  ;;  %v1667_v19 = vadd.f32 %v1666_v4, %v1578_v11  ;;  %2125 = vmatpush.bf16.msrb.mxu1 %v4787_v18 }
 0x29f   :  { %v1490_v29 = vpop.f32.mrf.mxu1 }
 0x2a0   :  { %v1491_v21 = vadd.f32 %v1490_v29, %v1402_v62  ;;  %v2615_v4 = vmax.f32 %v1667_v19, 0.0 }
 0x2a2   :  { %v2622_v20 = vmax.f32 %v1491_v21, 0.0 }
 0x2a3   :  { %v1579_v45 = vpop.f32.mrf.mxu2 }
 0x2a4   :  { %v6167_v1 = vpack.c.bf16 %v2622_v20, %v2614_v36  ;;  %v1580_v31 = vadd.f32 %v1579_v45, %v5992_v41 }
 0x2a5   :  { %v1668_v30 = vpop.f32.mrf.mxu3  ;;  %v1404_v34 = vpop.f32.mrf.mxu0 }
 0x2a6   :  { %7402 = vst [vmem:[#allocation67_spill] sm:$0xff] %v6167_v1  ;;  %v1405_v46 = vadd.f32 %v1404_v34, %v5983_v54  ;;  %v1669_v6 = vadd.f32 %v1668_v30, %v1580_v31  ;;  %v6179_v31 = vld [vmem:[#allocation7] sm:$0xff] }
 0x2a7   :  { %v1493_v35 = vpop.f32.mrf.mxu1  ;;  %v6182_v30 = vperm.slane %v6179_v31, 4 }
 0x2a8   :  { %v1494_v11 = vadd.f32 %v1493_v35, %v1405_v46  ;;  %1719 = vmatmul.bf16.gmra.mxu0 %v5752_v16  ;;  %v2623_v37 = vmax.f32 %v1669_v6, 0.0  ;;  %1897 = vmatmul.bf16.gmra.mxu2 %v5752_v16 }
 0x2aa   :  { %1808 = vmatmul.bf16.gmra.mxu1 %v5754_v17  ;;  %1986 = vmatmul.bf16.gmra.mxu3 %v5754_v17  ;;  %v6175_v14 = vpack.c.bf16 %v2623_v37, %v2615_v4  ;;  %v2630_v19 = vmax.f32 %v1494_v11, 0.0 }
 0x2ab   :  { %v1582_v39 = vpop.f32.mrf.mxu2 }
 0x2ac   :  { %7403 = vst [vmem:[#allocation68_spill] sm:$0xff] %v6175_v14  ;;  %v1583_v18 = vadd.f32 %v1582_v39, %v5992_v41 }
 0x2ad   :  { %v1671_v62 = vpop.f32.mrf.mxu3  ;;  %v1406_v29 = vpop.f32.mrf.mxu0 }
 0x2ae   :  { %v1407_v21 = vadd.f32 %v1406_v29, %v5983_v54  ;;  %v1672_v36 = vadd.f32 %v1671_v62, %v1583_v18  ;;  %v6192_v29 = vperm.slane %v6179_v31, 5 }
 0x2af   :  { %v1495_v57 = vpop.f32.mrf.mxu1 }
 0x2b0   :  { %v1496_v20 = vadd.f32 %v1495_v57, %v1407_v21  ;;  %v2631_v11 = vmax.f32 %v1672_v36, 0.0  ;;  %v4500_v21 = vld [vmem:[#allocation5 + $0xb8] sm:$0xf0] }
 0x2b2   :  { %v2638_v45 = vmax.f32 %v1496_v20, 0.0  ;;  %v4498_v20 = vld [vmem:[#allocation5 + $0x98] sm:$0xf] }
 0x2b3   :  { %v1584_v34 = vpop.f32.mrf.mxu2 }
 0x2b4   :  { %v6184_v46 = vpack.c.bf16 %v2638_v45, %v2630_v19  ;;  %v1585_v35 = vadd.f32 %v1584_v34, %v5992_v41  ;;  %v5195_v41 = vld [vmem:[#allocation5 + $0x9c] sm:$0xf]  ;;  %v5199_v19 = vld [vmem:[#allocation5 + $0xb4] sm:$0xf0] }
 0x2b5   :  { %v1673_v6 = vpop.f32.mrf.mxu3  ;;  %v1685_v4 = vpop.f32.mrf.mxu0  ;;  %v4503_v57 = vor.u32 %v5195_v41, %v4500_v21  ;;  %v5259_v45 = vld [vmem:[#allocation5 + $0x29c] sm:$0xf]  ;;  %v4499_v36 = vor.u32 %v5199_v19, %v4498_v20  ;;  %v4754_v21 = vld [vmem:[#allocation5 + $0x298] sm:$0xf] }
 0x2b6   :  { %7404 = vst [vmem:[#allocation69_spill] sm:$0xff] %v6184_v46  ;;  %v1686_v37 = vadd.f32 %v1685_v4, %v6182_v30  ;;  %v1674_v39 = vadd.f32 %v1673_v6, %v1585_v35  ;;  %v4756_v6 = vld [vmem:[#allocation5 + $0x2b8] sm:$0xf0] }
 0x2b7   :  { %v1774_v54 = vpop.f32.mrf.mxu1  ;;  %2215 = vmatpush.bf16.msrb.mxu2 %v4503_v57  ;;  %2037 = vmatpush.bf16.msrb.mxu0 %v4499_v36 }
 0x2b8   :  { %v1775_v18 = vadd.f32 %v1774_v54, %v1686_v37  ;;  %1724 = vmatmul.bf16.gmra.mxu0 %v5762_v24  ;;  %v2639_v62 = vmax.f32 %v1674_v39, 0.0  ;;  %1902 = vmatmul.bf16.gmra.mxu2 %v5762_v24  ;;  %v4759_v39 = vor.u32 %v5259_v45, %v4756_v6 }
 0x2ba   :  { %1813 = vmatmul.bf16.gmra.mxu1 %v5764_v28  ;;  %1991 = vmatmul.bf16.gmra.mxu3 %v5764_v28  ;;  %v6195_v34 = vpack.c.bf16 %v2639_v62, %v2631_v11  ;;  %v2392_v11 = vmax.f32 %v1775_v18, 0.0 }
 0x2bb   :  { %v1863_v35 = vpop.f32.mrf.mxu2  ;;  %2304 = vmatpush.bf16.msrb.mxu3 %v4759_v39 }
 0x2bc   :  { %7405 = vst [vmem:[#allocation70_spill] sm:$0xff] %v6195_v34  ;;  %v1864_v4 = vadd.f32 %v1863_v35, %v6192_v29  ;;  %v4755_v34 = vor.u32 %v5263_v51, %v4754_v21 }
 0x2bd   :  { %v1952_v37 = vpop.f32.mrf.mxu3  ;;  %v1687_v54 = vpop.f32.mrf.mxu0 }
 0x2be   :  { %v1688_v46 = vadd.f32 %v1687_v54, %v6182_v30  ;;  %v1953_v1 = vadd.f32 %v1952_v37, %v1864_v4  ;;  %2126 = vmatpush.bf16.msrb.mxu1 %v4755_v34 }
 0x2bf   :  { %v1776_v14 = vpop.f32.mrf.mxu1 }
 0x2c0   :  { %v1777_v41 = vadd.f32 %v1776_v14, %v1688_v46  ;;  %v2393_v14 = vmax.f32 %v1953_v1, 0.0 }
 0x2c2   :  { %v2400_v62 = vmax.f32 %v1777_v41, 0.0 }
 0x2c3   :  { %v1865_v19 = vpop.f32.mrf.mxu2 }
 0x2c4   :  { %v6199_v20 = vpack.c.bf16 %v2400_v62, %v2392_v11  ;;  %v1866_v35 = vadd.f32 %v1865_v19, %v6192_v29 }
 0x2c5   :  { %v1954_v57 = vpop.f32.mrf.mxu3  ;;  %v1690_v45 = vpop.f32.mrf.mxu0 }
 0x2c6   :  { %7406 = vst [vmem:[#allocation71_spill] sm:$0xff] %v6199_v20  ;;  %v1691_v6 = vadd.f32 %v1690_v45, %v6182_v30  ;;  %v1955_v36 = vadd.f32 %v1954_v57, %v1866_v35  ;;  %v5255_v20 = vld [vmem:[#allocation5 + $0x274] sm:$0xf0] }
 0x2c7   :  { %v1779_v54 = vpop.f32.mrf.mxu1 }
 0x2c8   :  { %v1780_v4 = vadd.f32 %v1779_v54, %v1691_v6  ;;  %1729 = vmatmul.bf16.gmra.mxu0 %v5777_v7  ;;  %v2401_v46 = vmax.f32 %v1955_v36, 0.0  ;;  %1907 = vmatmul.bf16.gmra.mxu2 %v5777_v7 }
 0x2ca   :  { %1818 = vmatmul.bf16.gmra.mxu1 %v5780_v13  ;;  %1996 = vmatmul.bf16.gmra.mxu3 %v5780_v13  ;;  %v6207_v51 = vpack.c.bf16 %v2401_v46, %v2393_v14  ;;  %v2408_v1 = vmax.f32 %v1780_v4, 0.0  ;;  %v5187_v4 = vld [vmem:[#allocation5 + $0x5c] sm:$0xf] }
 0x2cb   :  { %v1868_v18 = vpop.f32.mrf.mxu2 }
 0x2cc   :  { %7407 = vst [vmem:[#allocation72_spill] sm:$0xff] %v6207_v51  ;;  %v1869_v34 = vadd.f32 %v1868_v18, %v6192_v29 }
 0x2cd   :  { %v1957_v37 = vpop.f32.mrf.mxu3  ;;  %v1692_v39 = vpop.f32.mrf.mxu0 }
 0x2ce   :  { %v1693_v41 = vadd.f32 %v1692_v39, %v6182_v30  ;;  %v1958_v11 = vadd.f32 %v1957_v37, %v1869_v34  ;;  %v4468_v34 = vld [vmem:[#allocation5 + $0x78] sm:$0xf0] }
 0x2cf   :  { %v1781_v21 = vpop.f32.mrf.mxu1  ;;  %v4471_v37 = vor.u32 %v5187_v4, %v4468_v34  ;;  %v4722_v34 = vld [vmem:[#allocation5 + $0x258] sm:$0xf] }
 0x2d0   :  { %v1782_v62 = vadd.f32 %v1781_v21, %v1693_v41  ;;  %v2409_v39 = vmax.f32 %v1958_v11, 0.0  ;;  %v4466_v41 = vld [vmem:[#allocation5 + $0x58] sm:$0xf] }
 0x2d1   :  { %v5191_v21 = vld [vmem:[#allocation5 + $0x74] sm:$0xf0]  ;;  %2216 = vmatpush.bf16.msrb.mxu2 %v4471_v37 }
 0x2d2   :  { %v2416_v19 = vmax.f32 %v1782_v62, 0.0  ;;  %v5251_v62 = vld [vmem:[#allocation5 + $0x25c] sm:$0xf] }
 0x2d3   :  { %v1870_v35 = vpop.f32.mrf.mxu2 }
 0x2d4   :  { %v6211_v57 = vpack.c.bf16 %v2416_v19, %v2408_v1  ;;  %v1871_v45 = vadd.f32 %v1870_v35, %v6192_v29  ;;  %v4467_v35 = vor.u32 %v5191_v21, %v4466_v41 }
 0x2d5   :  { %v1959_v6 = vpop.f32.mrf.mxu3  ;;  %v1695_v54 = vpop.f32.mrf.mxu0 }
 0x2d6   :  { %7408 = vst [vmem:[#allocation73_spill] sm:$0xff] %v6211_v57  ;;  %v1696_v36 = vadd.f32 %v1695_v54, %v6182_v30  ;;  %v1960_v46 = vadd.f32 %v1959_v6, %v1871_v45  ;;  %v4724_v45 = vld [vmem:[#allocation5 + $0x278] sm:$0xf0]  ;;  %2038 = vmatpush.bf16.msrb.mxu0 %v4467_v35 }
 0x2d7   :  { %v1784_v14 = vpop.f32.mrf.mxu1 }
 0x2d8   :  { %v1785_v18 = vadd.f32 %v1784_v14, %v1696_v36  ;;  %1734 = vmatmul.bf16.gmra.mxu0 %v5791_v48  ;;  %v2417_v51 = vmax.f32 %v1960_v46, 0.0  ;;  %1912 = vmatmul.bf16.gmra.mxu2 %v5791_v48  ;;  %v4727_v36 = vor.u32 %v5251_v62, %v4724_v45 }
 0x2da   :  { %1823 = vmatmul.bf16.gmra.mxu1 %v5796_v55  ;;  %2001 = vmatmul.bf16.gmra.mxu3 %v5796_v55  ;;  %v6219_v1 = vpack.c.bf16 %v2417_v51, %v2409_v39  ;;  %v2424_v51 = vmax.f32 %v1785_v18, 0.0 }
 0x2db   :  { %v1873_v19 = vpop.f32.mrf.mxu2  ;;  %2305 = vmatpush.bf16.msrb.mxu3 %v4727_v36 }
 0x2dc   :  { %7409 = vst [vmem:[#allocation74_spill] sm:$0xff] %v6219_v1  ;;  %v1874_v11 = vadd.f32 %v1873_v19, %v6192_v29  ;;  %v4723_v1 = vor.u32 %v5255_v20, %v4722_v34 }
 0x2dd   :  { %v1962_v6 = vpop.f32.mrf.mxu3  ;;  %v1697_v54 = vpop.f32.mrf.mxu0 }
 0x2de   :  { %v1698_v14 = vadd.f32 %v1697_v54, %v6182_v30  ;;  %v1963_v57 = vadd.f32 %v1962_v6, %v1874_v11  ;;  %2127 = vmatpush.bf16.msrb.mxu1 %v4723_v1 }
 0x2df   :  { %v1786_v46 = vpop.f32.mrf.mxu1 }
 0x2e0   :  { %v1787_v4 = vadd.f32 %v1786_v46, %v1698_v14  ;;  %v2425_v6 = vmax.f32 %v1963_v57, 0.0 }
 0x2e2   :  { %v2432_v39 = vmax.f32 %v1787_v4, 0.0 }
 0x2e3   :  { %v1875_v41 = vpop.f32.mrf.mxu2 }
 0x2e4   :  { %v6223_v21 = vpack.c.bf16 %v2432_v39, %v2424_v51  ;;  %v1876_v19 = vadd.f32 %v1875_v41, %v6192_v29 }
 0x2e5   :  { %v1964_v37 = vpop.f32.mrf.mxu3  ;;  %v1700_v62 = vpop.f32.mrf.mxu0 }
 0x2e6   :  { %7410 = vst [vmem:[#allocation75_spill] sm:$0xff] %v6223_v21  ;;  %v1701_v45 = vadd.f32 %v1700_v62, %v6182_v30  ;;  %v1965_v35 = vadd.f32 %v1964_v37, %v1876_v19  ;;  %v5247_v21 = vld [vmem:[#allocation5 + $0x234] sm:$0xf0] }
 0x2e7   :  { %v1789_v54 = vpop.f32.mrf.mxu1 }
 0x2e8   :  { %v1790_v11 = vadd.f32 %v1789_v54, %v1701_v45  ;;  %1739 = vmatmul.bf16.gmra.mxu0 %v5807_v50  ;;  %v2433_v36 = vmax.f32 %v1965_v35, 0.0  ;;  %1917 = vmatmul.bf16.gmra.mxu2 %v5807_v50 }
 0x2ea   :  { %1828 = vmatmul.bf16.gmra.mxu1 %v5812_v60  ;;  %2006 = vmatmul.bf16.gmra.mxu3 %v5812_v60  ;;  %v6231_v20 = vpack.c.bf16 %v2433_v36, %v2425_v6  ;;  %v2440_v57 = vmax.f32 %v1790_v11, 0.0  ;;  %v5179_v11 = vld [vmem:[#allocation5 + $0x1c] sm:$0xf] }
 0x2eb   :  { %v1878_v18 = vpop.f32.mrf.mxu2 }
 0x2ec   :  { %7411 = vst [vmem:[#allocation76_spill] sm:$0xff] %v6231_v20  ;;  %v1879_v1 = vadd.f32 %v1878_v18, %v6192_v29 }
 0x2ed   :  { %v1967_v14 = vpop.f32.mrf.mxu3  ;;  %v1702_v46 = vpop.f32.mrf.mxu0 }
 0x2ee   :  { %v1703_v4 = vadd.f32 %v1702_v46, %v6182_v30  ;;  %v1968_v51 = vadd.f32 %v1967_v14, %v1879_v1  ;;  %v4436_v1 = vld [vmem:[#allocation5 + $0x38] sm:$0xf0] }
 0x2ef   :  { %v1791_v34 = vpop.f32.mrf.mxu1  ;;  %v4439_v14 = vor.u32 %v5179_v11, %v4436_v1  ;;  %v4690_v1 = vld [vmem:[#allocation5 + $0x218] sm:$0xf] }
 0x2f0   :  { %v1792_v39 = vadd.f32 %v1791_v34, %v1703_v4  ;;  %v2441_v46 = vmax.f32 %v1968_v51, 0.0  ;;  %v4434_v4 = vld [vmem:[#allocation5 + $0x18] sm:$0xf] }
 0x2f1   :  { %v5183_v34 = vld [vmem:[#allocation5 + $0x34] sm:$0xf0]  ;;  %2217 = vmatpush.bf16.msrb.mxu2 %v4439_v14 }
 0x2f2   :  { %v2448_v41 = vmax.f32 %v1792_v39, 0.0  ;;  %v5243_v39 = vld [vmem:[#allocation5 + $0x21c] sm:$0xf] }
 0x2f3   :  { %v1880_v19 = vpop.f32.mrf.mxu2 }
 0x2f4   :  { %v6235_v37 = vpack.c.bf16 %v2448_v41, %v2440_v57  ;;  %v1881_v62 = vadd.f32 %v1880_v19, %v6192_v29  ;;  %v4435_v19 = vor.u32 %v5183_v34, %v4434_v4 }
 0x2f5   :  { %v1969_v45 = vpop.f32.mrf.mxu3  ;;  %v1705_v54 = vpop.f32.mrf.mxu0 }
 0x2f6   :  { %7412 = vst [vmem:[#allocation77_spill] sm:$0xff] %v6235_v37  ;;  %v1706_v35 = vadd.f32 %v1705_v54, %v6182_v30  ;;  %v1970_v36 = vadd.f32 %v1969_v45, %v1881_v62  ;;  %v4692_v62 = vld [vmem:[#allocation5 + $0x238] sm:$0xf0]  ;;  %2039 = vmatpush.bf16.msrb.mxu0 %v4435_v19 }
 0x2f7   :  { %v1794_v6 = vpop.f32.mrf.mxu1 }
 0x2f8   :  { %v1795_v18 = vadd.f32 %v1794_v6, %v1706_v35  ;;  %1744 = vmatmul.bf16.gmra.mxu0 %v5823_v38  ;;  %v2449_v20 = vmax.f32 %v1970_v36, 0.0  ;;  %1922 = vmatmul.bf16.gmra.mxu2 %v5823_v38  ;;  %v4695_v35 = vor.u32 %v5243_v39, %v4692_v62 }
 0x2fa   :  { %1833 = vmatmul.bf16.gmra.mxu1 %v5828_v44  ;;  %2011 = vmatmul.bf16.gmra.mxu3 %v5828_v44  ;;  %v6243_v57 = vpack.c.bf16 %v2449_v20, %v2441_v46  ;;  %v2456_v20 = vmax.f32 %v1795_v18, 0.0 }
 0x2fb   :  { %v1883_v41 = vpop.f32.mrf.mxu2  ;;  %2306 = vmatpush.bf16.msrb.mxu3 %v4695_v35 }
 0x2fc   :  { %7413 = vst [vmem:[#allocation78_spill] sm:$0xff] %v6243_v57  ;;  %v1884_v51 = vadd.f32 %v1883_v41, %v6192_v29  ;;  %v4691_v57 = vor.u32 %v5247_v21, %v4690_v1 }
 0x2fd   :  { %v1972_v45 = vpop.f32.mrf.mxu3  ;;  %v1707_v54 = vpop.f32.mrf.mxu0 }
 0x2fe   :  { %v1708_v6 = vadd.f32 %v1707_v54, %v6182_v30  ;;  %v1973_v37 = vadd.f32 %v1972_v45, %v1884_v51  ;;  %2128 = vmatpush.bf16.msrb.mxu1 %v4691_v57 }
 0x2ff   :  { %v1796_v36 = vpop.f32.mrf.mxu1 }
 0x300   :  { %v1797_v11 = vadd.f32 %v1796_v36, %v1708_v6  ;;  %v2457_v45 = vmax.f32 %v1973_v37, 0.0 }
 0x302   :  { %v2464_v46 = vmax.f32 %v1797_v11, 0.0 }
 0x303   :  { %v1885_v4 = vpop.f32.mrf.mxu2 }
 0x304   :  { %v6247_v34 = vpack.c.bf16 %v2464_v46, %v2456_v20  ;;  %v1886_v41 = vadd.f32 %v1885_v4, %v6192_v29 }
 0x305   :  { %v1974_v14 = vpop.f32.mrf.mxu3  ;;  %v1710_v39 = vpop.f32.mrf.mxu0 }
 0x306   :  { %v1711_v62 = vadd.f32 %v1710_v39, %v6182_v30  ;;  %v1975_v19 = vadd.f32 %v1974_v14, %v1886_v41 }
 0x307   :  { %v1799_v54 = vpop.f32.mrf.mxu1 }
 0x308   :  { %v1800_v51 = vadd.f32 %v1799_v54, %v1711_v62  ;;  %1749 = vmatmul.bf16.gmra.mxu0 %v5839_v63  ;;  %v2465_v35 = vmax.f32 %v1975_v19, 0.0  ;;  %1927 = vmatmul.bf16.gmra.mxu2 %v5839_v63 }
 0x30a   :  { %1838 = vmatmul.bf16.gmra.mxu1 %v5844_v10  ;;  %2016 = vmatmul.bf16.gmra.mxu3 %v5844_v10  ;;  %v6255_v21 = vpack.c.bf16 %v2465_v35, %v2457_v45  ;;  %v2472_v37 = vmax.f32 %v1800_v51, 0.0  ;;  %v5327_v51 = vld [vmem:[#allocation8 + $0xb8] sm:$0xff] }
 0x30b   :  { %v1888_v18 = vpop.f32.mrf.mxu2  ;;  %3466 = vmatpush.bf16.msra.mxu2 %v5327_v51 }
 0x30c   :  { %7414 = vst [vmem:[#allocation79_spill] sm:$0xff] %v6255_v21  ;;  %v1889_v57 = vadd.f32 %v1888_v18, %v6192_v29 }
 0x30d   :  { %v1977_v6 = vpop.f32.mrf.mxu3  ;;  %v1712_v36 = vpop.f32.mrf.mxu0 }
 0x30e   :  { %v1713_v11 = vadd.f32 %v1712_v36, %v6182_v30  ;;  %v1978_v20 = vadd.f32 %v1977_v6, %v1889_v57  ;;  %v5311_v57 = vld [vmem:[#allocation8 + $0x38] sm:$0xff] }
 0x30f   :  { %v1801_v1 = vpop.f32.mrf.mxu1  ;;  %v5335_v6 = vld [vmem:[#allocation8 + $0xf8] sm:$0xff]  ;;  %3288 = vmatpush.bf16.msra.mxu0 %v5311_v57 }
 0x310   :  { %v1802_v46 = vadd.f32 %v1801_v1, %v1713_v11  ;;  %v2473_v36 = vmax.f32 %v1978_v20, 0.0  ;;  %3555 = vmatpush.bf16.msra.mxu3 %v5335_v6 }
 0x312   :  { %v2480_v4 = vmax.f32 %v1802_v46, 0.0 }
 0x313   :  { %v1890_v41 = vpop.f32.mrf.mxu2 }
 0x314   :  { %v6259_v14 = vpack.c.bf16 %v2480_v4, %v2472_v37  ;;  %v1891_v39 = vadd.f32 %v1890_v41, %v6192_v29 }
 0x315   :  { %v1979_v62 = vpop.f32.mrf.mxu3  ;;  %v1715_v54 = vpop.f32.mrf.mxu0 }
 0x316   :  { %7415 = vst [vmem:[#allocation80_spill] sm:$0xff] %v6259_v14  ;;  %v1716_v19 = vadd.f32 %v1715_v54, %v6182_v30  ;;  %v1980_v35 = vadd.f32 %v1979_v62, %v1891_v39  ;;  %v5319_v54 = vld [vmem:[#allocation8 + $0x78] sm:$0xff] }
 0x317   :  { %v1804_v45 = vpop.f32.mrf.mxu1  ;;  %3377 = vmatpush.bf16.msra.mxu1 %v5319_v54 }
 0x318   :  { %v1805_v18 = vadd.f32 %v1804_v45, %v1716_v19  ;;  %1754 = vmatmul.bf16.gmra.mxu0 %v5855_v0  ;;  %v2481_v21 = vmax.f32 %v1980_v35, 0.0  ;;  %1932 = vmatmul.bf16.gmra.mxu2 %v5855_v0 }
 0x31a   :  { %1843 = vmatmul.bf16.gmra.mxu1 %v5860_v56  ;;  %2021 = vmatmul.bf16.gmra.mxu3 %v5860_v56  ;;  %v6267_v11 = vpack.c.bf16 %v2481_v21, %v2473_v36  ;;  %v2488_v19 = vmax.f32 %v1805_v18, 0.0 }
 0x31b   :  { %v1893_v1 = vpop.f32.mrf.mxu2 }
 0x31c   :  { %7416 = vst [vmem:[#allocation81_spill] sm:$0xff] %v6267_v11  ;;  %v1894_v46 = vadd.f32 %v1893_v1, %v6192_v29 }
 0x31d   :  { %v1982_v37 = vpop.f32.mrf.mxu3  ;;  %v1717_v4 = vpop.f32.mrf.mxu0 }
 0x31e   :  { %v1718_v20 = vadd.f32 %v1717_v4, %v6182_v30  ;;  %v1983_v39 = vadd.f32 %v1982_v37, %v1894_v46 }
 0x31f   :  { %v1806_v41 = vpop.f32.mrf.mxu1 }
 0x320   :  { %v1807_v62 = vadd.f32 %v1806_v41, %v1718_v20  ;;  %v2489_v46 = vmax.f32 %v1983_v39, 0.0 }
 0x322   :  { %v2496_v45 = vmax.f32 %v1807_v62, 0.0 }
 0x323   :  { %v1895_v35 = vpop.f32.mrf.mxu2 }
 0x324   :  { %v6271_v21 = vpack.c.bf16 %v2496_v45, %v2488_v19  ;;  %v1896_v36 = vadd.f32 %v1895_v35, %v6192_v29 }
 0x325   :  { %v1984_v51 = vpop.f32.mrf.mxu3  ;;  %v1720_v57 = vpop.f32.mrf.mxu0 }
 0x326   :  { %7417 = vst [vmem:[#allocation82_spill] sm:$0xff] %v6271_v21  ;;  %v1721_v1 = vadd.f32 %v1720_v57, %v6182_v30  ;;  %v1985_v6 = vadd.f32 %v1984_v51, %v1896_v36 }
 0x327   :  { %v1809_v11 = vpop.f32.mrf.mxu1 }
 0x328   :  { %v1810_v14 = vadd.f32 %v1809_v11, %v1721_v1  ;;  %1759 = vmatmul.bf16.gmra.mxu0 %v5871_v61  ;;  %v2497_v37 = vmax.f32 %v1985_v6, 0.0  ;;  %1937 = vmatmul.bf16.gmra.mxu2 %v5871_v61 }
 0x32a   :  { %1848 = vmatmul.bf16.gmra.mxu1 %v5876_v40  ;;  %2026 = vmatmul.bf16.gmra.mxu3 %v5876_v40  ;;  %v6279_v18 = vpack.c.bf16 %v2497_v37, %v2489_v46  ;;  %v2504_v39 = vmax.f32 %v1810_v14, 0.0  ;;  %v5326_v14 = vld [vmem:[#allocation8 + $0xb0] sm:$0xff] }
 0x32b   :  { %v1898_v4 = vpop.f32.mrf.mxu2  ;;  %3467 = vmatpush.bf16.msra.mxu2 %v5326_v14 }
 0x32c   :  { %7418 = vst [vmem:[#allocation83_spill] sm:$0xff] %v6279_v18  ;;  %v1899_v20 = vadd.f32 %v1898_v4, %v6192_v29 }
 0x32d   :  { %v1987_v41 = vpop.f32.mrf.mxu3  ;;  %v1722_v62 = vpop.f32.mrf.mxu0 }
 0x32e   :  { %v1723_v54 = vadd.f32 %v1722_v62, %v6182_v30  ;;  %v1988_v19 = vadd.f32 %v1987_v41, %v1899_v20  ;;  %v5310_v20 = vld [vmem:[#allocation8 + $0x30] sm:$0xff] }
 0x32f   :  { %v1811_v11 = vpop.f32.mrf.mxu1  ;;  %v5334_v41 = vld [vmem:[#allocation8 + $0xf0] sm:$0xff]  ;;  %3289 = vmatpush.bf16.msra.mxu0 %v5310_v20 }
 0x330   :  { %v1812_v45 = vadd.f32 %v1811_v11, %v1723_v54  ;;  %v2505_v62 = vmax.f32 %v1988_v19, 0.0  ;;  %3556 = vmatpush.bf16.msra.mxu3 %v5334_v41 }
 0x332   :  { %v2512_v35 = vmax.f32 %v1812_v45, 0.0 }
 0x333   :  { %v1900_v36 = vpop.f32.mrf.mxu2 }
 0x334   :  { %v6283_v51 = vpack.c.bf16 %v2512_v35, %v2504_v39  ;;  %v1901_v57 = vadd.f32 %v1900_v36, %v6192_v29 }
 0x335   :  { %v1989_v1 = vpop.f32.mrf.mxu3  ;;  %v1725_v6 = vpop.f32.mrf.mxu0 }
 0x336   :  { %v1726_v46 = vadd.f32 %v1725_v6, %v6182_v30  ;;  %v1990_v4 = vadd.f32 %v1989_v1, %v1901_v57  ;;  %v5318_v1 = vld [vmem:[#allocation8 + $0x70] sm:$0xff] }
 0x337   :  { %v1814_v37 = vpop.f32.mrf.mxu1  ;;  %3378 = vmatpush.bf16.msra.mxu1 %v5318_v1 }
 0x338   :  { %v1815_v18 = vadd.f32 %v1814_v37, %v1726_v46  ;;  %2040 = vmatmul.bf16.vlgmr.msrb.gmra.mxu0 %v5696_v43  ;;  %v2513_v21 = vmax.f32 %v1990_v4, 0.0  ;;  %2218 = vmatmul.bf16.vlgmr.msrb.gmra.mxu2 %v5696_v43 }
 0x33a   :  { %2129 = vmatmul.bf16.vlgmr.msrb.gmra.mxu1 %v5698_v47  ;;  %2307 = vmatmul.bf16.vlgmr.msrb.gmra.mxu3 %v5698_v47  ;;  %v6291_v54 = vpack.c.bf16 %v2513_v21, %v2505_v62  ;;  %v2520_v47 = vmax.f32 %v1815_v18, 0.0 }
 0x33b   :  { %v1903_v11 = vpop.f32.mrf.mxu2 }
 0x33c   :  { %v1904_v45 = vadd.f32 %v1903_v11, %v6192_v29 }
 0x33d   :  { %v1992_v39 = vpop.f32.mrf.mxu3  ;;  %v1727_v35 = vpop.f32.mrf.mxu0 }
 0x33e   :  { %v1728_v19 = vadd.f32 %v1727_v35, %v6182_v30  ;;  %v1993_v57 = vadd.f32 %v1992_v39, %v1904_v45 }
 0x33f   :  { %v1816_v36 = vpop.f32.mrf.mxu1 }
 0x340   :  { %v1817_v43 = vadd.f32 %v1816_v36, %v1728_v19  ;;  %v2521_v45 = vmax.f32 %v1993_v57, 0.0 }
 0x342   :  { %v2528_v6 = vmax.f32 %v1817_v43, 0.0 }
 0x343   :  { %v1905_v46 = vpop.f32.mrf.mxu2 }
 0x344   :  { %v6295_v21 = vpack.c.bf16 %v2528_v6, %v2520_v47  ;;  %v1906_v37 = vadd.f32 %v1905_v46, %v6192_v29 }
 0x345   :  { %v1994_v4 = vpop.f32.mrf.mxu3  ;;  %v1730_v62 = vpop.f32.mrf.mxu0 }
 0x346   :  { %v1731_v14 = vadd.f32 %v1730_v62, %v6182_v30  ;;  %v1995_v41 = vadd.f32 %v1994_v4, %v1906_v37 }
 0x347   :  { %v1819_v20 = vpop.f32.mrf.mxu1 }
 0x348   :  { %v1820_v11 = vadd.f32 %v1819_v20, %v1731_v14  ;;  %2045 = vmatmul.bf16.gmra.mxu0 %v5704_v2  ;;  %v2529_v39 = vmax.f32 %v1995_v41, 0.0  ;;  %2223 = vmatmul.bf16.gmra.mxu2 %v5704_v2 }
 0x34a   :  { %2134 = vmatmul.bf16.gmra.mxu1 %v5706_v3  ;;  %2312 = vmatmul.bf16.gmra.mxu3 %v5706_v3  ;;  %v6303_v18 = vpack.c.bf16 %v2529_v39, %v2521_v45  ;;  %v2536_v57 = vmax.f32 %v1820_v11, 0.0  ;;  %v5325_v11 = vld [vmem:[#allocation8 + $0xa8] sm:$0xff] }
 0x34b   :  { %v1908_v35 = vpop.f32.mrf.mxu2  ;;  %3468 = vmatpush.bf16.msra.mxu2 %v5325_v11 }
 0x34c   :  { %v1909_v19 = vadd.f32 %v1908_v35, %v6192_v29 }
 0x34d   :  { %v1997_v36 = vpop.f32.mrf.mxu3  ;;  %v1732_v43 = vpop.f32.mrf.mxu0 }
 0x34e   :  { %v1733_v1 = vadd.f32 %v1732_v43, %v6182_v30  ;;  %v1998_v6 = vadd.f32 %v1997_v36, %v1909_v19  ;;  %v5309_v19 = vld [vmem:[#allocation8 + $0x28] sm:$0xff] }
 0x34f   :  { %v1821_v47 = vpop.f32.mrf.mxu1  ;;  %v5333_v36 = vld [vmem:[#allocation8 + $0xe8] sm:$0xff]  ;;  %3290 = vmatpush.bf16.msra.mxu0 %v5309_v19 }
 0x350   :  { %v1822_v46 = vadd.f32 %v1821_v47, %v1733_v1  ;;  %v2537_v35 = vmax.f32 %v1998_v6, 0.0  ;;  %3557 = vmatpush.bf16.msra.mxu3 %v5333_v36 }
 0x352   :  { %v2544_v37 = vmax.f32 %v1822_v46, 0.0 }
 0x353   :  { %v1910_v4 = vpop.f32.mrf.mxu2 }
 0x354   :  { %v6307_v62 = vpack.c.bf16 %v2544_v37, %v2536_v57  ;;  %v1911_v2 = vadd.f32 %v1910_v4, %v6192_v29 }
 0x355   :  { %v1999_v3 = vpop.f32.mrf.mxu3  ;;  %v1735_v14 = vpop.f32.mrf.mxu0 }
 0x356   :  { %v1736_v20 = vadd.f32 %v1735_v14, %v6182_v30  ;;  %v2000_v45 = vadd.f32 %v1999_v3, %v1911_v2  ;;  %v5317_v3 = vld [vmem:[#allocation8 + $0x68] sm:$0xff] }
 0x357   :  { %v1824_v41 = vpop.f32.mrf.mxu1  ;;  %3379 = vmatpush.bf16.msra.mxu1 %v5317_v3 }
 0x358   :  { %v1825_v39 = vadd.f32 %v1824_v41, %v1736_v20  ;;  %2050 = vmatmul.bf16.gmra.mxu0 %v5712_v8  ;;  %v2545_v43 = vmax.f32 %v2000_v45, 0.0  ;;  %2228 = vmatmul.bf16.gmra.mxu2 %v5712_v8 }
 0x35a   :  { %2139 = vmatmul.bf16.gmra.mxu1 %v5714_v9  ;;  %2317 = vmatmul.bf16.gmra.mxu3 %v5714_v9  ;;  %v6315_v1 = vpack.c.bf16 %v2545_v43, %v2537_v35  ;;  %v2552_v9 = vmax.f32 %v1825_v39, 0.0 }
 0x35b   :  { %v1913_v47 = vpop.f32.mrf.mxu2 }
 0x35c   :  { %v1914_v46 = vadd.f32 %v1913_v47, %v6192_v29 }
 0x35d   :  { %v2002_v57 = vpop.f32.mrf.mxu3  ;;  %v1737_v37 = vpop.f32.mrf.mxu0 }
 0x35e   :  { %v1738_v6 = vadd.f32 %v1737_v37, %v6182_v30  ;;  %v2003_v2 = vadd.f32 %v2002_v57, %v1914_v46 }
 0x35f   :  { %v1826_v4 = vpop.f32.mrf.mxu1 }
 0x360   :  { %v1827_v8 = vadd.f32 %v1826_v4, %v1738_v6  ;;  %v2553_v46 = vmax.f32 %v2003_v2, 0.0 }
 0x362   :  { %v2560_v14 = vmax.f32 %v1827_v8, 0.0 }
 0x363   :  { %v1915_v20 = vpop.f32.mrf.mxu2 }
 0x364   :  { %v6319_v41 = vpack.c.bf16 %v2560_v14, %v2552_v9  ;;  %v1916_v45 = vadd.f32 %v1915_v20, %v6192_v29 }
 0x365   :  { %v2004_v35 = vpop.f32.mrf.mxu3  ;;  %v1740_v43 = vpop.f32.mrf.mxu0 }
 0x366   :  { %v1741_v11 = vadd.f32 %v1740_v43, %v6182_v30  ;;  %v2005_v36 = vadd.f32 %v2004_v35, %v1916_v45 }
 0x367   :  { %v1829_v19 = vpop.f32.mrf.mxu1 }
 0x368   :  { %v1830_v47 = vadd.f32 %v1829_v19, %v1741_v11  ;;  %2055 = vmatmul.bf16.gmra.mxu0 %v5720_v26  ;;  %v2561_v57 = vmax.f32 %v2005_v36, 0.0  ;;  %2233 = vmatmul.bf16.gmra.mxu2 %v5720_v26 }
 0x36a   :  { %2144 = vmatmul.bf16.gmra.mxu1 %v5722_v27  ;;  %2322 = vmatmul.bf16.gmra.mxu3 %v5722_v27  ;;  %v6327_v39 = vpack.c.bf16 %v2561_v57, %v2553_v46  ;;  %v2568_v2 = vmax.f32 %v1830_v47, 0.0  ;;  %v5324_v47 = vld [vmem:[#allocation8 + $0xa0] sm:$0xff] }
 0x36b   :  { %v1918_v37 = vpop.f32.mrf.mxu2  ;;  %3469 = vmatpush.bf16.msra.mxu2 %v5324_v47 }
 0x36c   :  { %v1919_v6 = vadd.f32 %v1918_v37, %v6192_v29 }
 0x36d   :  { %v2007_v4 = vpop.f32.mrf.mxu3  ;;  %v1742_v8 = vpop.f32.mrf.mxu0 }
 0x36e   :  { %v1743_v3 = vadd.f32 %v1742_v8, %v6182_v30  ;;  %v2008_v14 = vadd.f32 %v2007_v4, %v1919_v6  ;;  %v5308_v6 = vld [vmem:[#allocation8 + $0x20] sm:$0xff] }
 0x36f   :  { %v1831_v9 = vpop.f32.mrf.mxu1  ;;  %v5332_v4 = vld [vmem:[#allocation8 + $0xe0] sm:$0xff]  ;;  %3291 = vmatpush.bf16.msra.mxu0 %v5308_v6 }
 0x370   :  { %v1832_v20 = vadd.f32 %v1831_v9, %v1743_v3  ;;  %v2569_v37 = vmax.f32 %v2008_v14, 0.0  ;;  %3558 = vmatpush.bf16.msra.mxu3 %v5332_v4 }
 0x372   :  { %v2576_v45 = vmax.f32 %v1832_v20, 0.0 }
 0x373   :  { %v1920_v35 = vpop.f32.mrf.mxu2 }
 0x374   :  { %v6331_v43 = vpack.c.bf16 %v2576_v45, %v2568_v2  ;;  %v1921_v26 = vadd.f32 %v1920_v35, %v6192_v29 }
 0x375   :  { %v2009_v27 = vpop.f32.mrf.mxu3  ;;  %v1745_v11 = vpop.f32.mrf.mxu0 }
 0x376   :  { %v1746_v19 = vadd.f32 %v1745_v11, %v6182_v30  ;;  %v2010_v46 = vadd.f32 %v2009_v27, %v1921_v26  ;;  %v5316_v27 = vld [vmem:[#allocation8 + $0x60] sm:$0xff] }
 0x377   :  { %v1834_v36 = vpop.f32.mrf.mxu1  ;;  %3380 = vmatpush.bf16.msra.mxu1 %v5316_v27 }
 0x378   :  { %v1835_v57 = vadd.f32 %v1834_v36, %v1746_v19  ;;  %2060 = vmatmul.bf16.gmra.mxu0 %v5728_v32  ;;  %v2577_v8 = vmax.f32 %v2010_v46, 0.0  ;;  %2238 = vmatmul.bf16.gmra.mxu2 %v5728_v32 }
 0x37a   :  { %2149 = vmatmul.bf16.gmra.mxu1 %v5730_v33  ;;  %2327 = vmatmul.bf16.gmra.mxu3 %v5730_v33  ;;  %v6339_v3 = vpack.c.bf16 %v2577_v8, %v2569_v37  ;;  %v2584_v33 = vmax.f32 %v1835_v57, 0.0 }
 0x37b   :  { %v1923_v9 = vpop.f32.mrf.mxu2 }
 0x37c   :  { %v1924_v20 = vadd.f32 %v1923_v9, %v6192_v29 }
 0x37d   :  { %v2012_v2 = vpop.f32.mrf.mxu3  ;;  %v1747_v45 = vpop.f32.mrf.mxu0 }
 0x37e   :  { %v1748_v14 = vadd.f32 %v1747_v45, %v6182_v30  ;;  %v2013_v26 = vadd.f32 %v2012_v2, %v1924_v20 }
 0x37f   :  { %v1836_v35 = vpop.f32.mrf.mxu1 }
 0x380   :  { %v1837_v32 = vadd.f32 %v1836_v35, %v1748_v14  ;;  %v2585_v20 = vmax.f32 %v2013_v26, 0.0 }
 0x382   :  { %v2592_v11 = vmax.f32 %v1837_v32, 0.0 }
 0x383   :  { %v1925_v19 = vpop.f32.mrf.mxu2 }
 0x384   :  { %v6343_v36 = vpack.c.bf16 %v2592_v11, %v2584_v33  ;;  %v1926_v46 = vadd.f32 %v1925_v19, %v6192_v29 }
 0x385   :  { %v2014_v37 = vpop.f32.mrf.mxu3  ;;  %v1750_v8 = vpop.f32.mrf.mxu0 }
 0x386   :  { %v1751_v47 = vadd.f32 %v1750_v8, %v6182_v30  ;;  %v2015_v4 = vadd.f32 %v2014_v37, %v1926_v46 }
 0x387   :  { %v1839_v6 = vpop.f32.mrf.mxu1 }
 0x388   :  { %v1840_v9 = vadd.f32 %v1839_v6, %v1751_v47  ;;  %2065 = vmatmul.bf16.gmra.mxu0 %v5736_v52  ;;  %v2593_v2 = vmax.f32 %v2015_v4, 0.0  ;;  %2243 = vmatmul.bf16.gmra.mxu2 %v5736_v52 }
 0x38a   :  { %2154 = vmatmul.bf16.gmra.mxu1 %v5738_v53  ;;  %2332 = vmatmul.bf16.gmra.mxu3 %v5738_v53  ;;  %v6351_v57 = vpack.c.bf16 %v2593_v2, %v2585_v20  ;;  %v2600_v26 = vmax.f32 %v1840_v9, 0.0  ;;  %v5323_v9 = vld [vmem:[#allocation8 + $0x98] sm:$0xff] }
 0x38b   :  { %v1928_v45 = vpop.f32.mrf.mxu2  ;;  %3470 = vmatpush.bf16.msra.mxu2 %v5323_v9 }
 0x38c   :  { %7419 = vst [vmem:[#allocation84_spill] sm:$0xff] %v6351_v57  ;;  %v1929_v14 = vadd.f32 %v1928_v45, %v6192_v29  ;;  %v7485_v57 = vld [vmem:[#allocation39_spill] sm:$0xff] }
 0x38d   :  { %v2017_v35 = vpop.f32.mrf.mxu3  ;;  %v1752_v32 = vpop.f32.mrf.mxu0 }
 0x38e   :  { %v1753_v27 = vadd.f32 %v1752_v32, %v6182_v30  ;;  %v2018_v11 = vadd.f32 %v2017_v35, %v1929_v14  ;;  %v5307_v14 = vld [vmem:[#allocation8 + $0x18] sm:$0xff] }
 0x38f   :  { %v1841_v33 = vpop.f32.mrf.mxu1  ;;  %v5331_v35 = vld [vmem:[#allocation8 + $0xd8] sm:$0xff]  ;;  %3292 = vmatpush.bf16.msra.mxu0 %v5307_v14 }
 0x390   :  { %v1842_v19 = vadd.f32 %v1841_v33, %v1753_v27  ;;  %v2601_v45 = vmax.f32 %v2018_v11, 0.0  ;;  %3559 = vmatpush.bf16.msra.mxu3 %v5331_v35 }
 0x392   :  { %v2608_v46 = vmax.f32 %v1842_v19, 0.0 }
 0x393   :  { %v1930_v37 = vpop.f32.mrf.mxu2 }
 0x394   :  { %v6355_v8 = vpack.c.bf16 %v2608_v46, %v2600_v26  ;;  %v1931_v52 = vadd.f32 %v1930_v37, %v6192_v29 }
 0x395   :  { %v2019_v53 = vpop.f32.mrf.mxu3  ;;  %v1755_v47 = vpop.f32.mrf.mxu0 }
 0x396   :  { %7420 = vst [vmem:[#allocation85_spill] sm:$0xff] %v6355_v8  ;;  %v1756_v6 = vadd.f32 %v1755_v47, %v6182_v30  ;;  %v2020_v20 = vadd.f32 %v2019_v53, %v1931_v52  ;;  %v5315_v53 = vld [vmem:[#allocation8 + $0x58] sm:$0xff]  ;;  %v7474_v8 = vld [vmem:[#allocation35_spill] sm:$0xff] }
 0x397   :  { %v1844_v4 = vpop.f32.mrf.mxu1  ;;  %3381 = vmatpush.bf16.msra.mxu1 %v5315_v53 }
 0x398   :  { %v1845_v2 = vadd.f32 %v1844_v4, %v1756_v6  ;;  %2070 = vmatmul.bf16.gmra.mxu0 %v5744_v58  ;;  %v2609_v32 = vmax.f32 %v2020_v20, 0.0  ;;  %2248 = vmatmul.bf16.gmra.mxu2 %v5744_v58 }
 0x39a   :  { %2159 = vmatmul.bf16.gmra.mxu1 %v5746_v59  ;;  %2337 = vmatmul.bf16.gmra.mxu3 %v5746_v59  ;;  %v6363_v27 = vpack.c.bf16 %v2609_v32, %v2601_v45  ;;  %v2616_v59 = vmax.f32 %v1845_v2, 0.0 }
 0x39b   :  { %v1933_v33 = vpop.f32.mrf.mxu2 }
 0x39c   :  { %7421 = vst [vmem:[#allocation86_spill] sm:$0xff] %v6363_v27  ;;  %v1934_v19 = vadd.f32 %v1933_v33, %v6192_v29 }
 0x39d   :  { %v2022_v26 = vpop.f32.mrf.mxu3  ;;  %v1757_v46 = vpop.f32.mrf.mxu0 }
 0x39e   :  { %v1758_v11 = vadd.f32 %v1757_v46, %v6182_v30  ;;  %v2023_v52 = vadd.f32 %v2022_v26, %v1934_v19 }
 0x39f   :  { %v1846_v37 = vpop.f32.mrf.mxu1 }
 0x3a0   :  { %v1847_v58 = vadd.f32 %v1846_v37, %v1758_v11  ;;  %v2617_v19 = vmax.f32 %v2023_v52, 0.0 }
 0x3a2   :  { %v2624_v47 = vmax.f32 %v1847_v58, 0.0 }
 0x3a3   :  { %v1935_v6 = vpop.f32.mrf.mxu2 }
 0x3a4   :  { %v6367_v4 = vpack.c.bf16 %v2624_v47, %v2616_v59  ;;  %v1936_v20 = vadd.f32 %v1935_v6, %v6192_v29 }
 0x3a5   :  { %v2024_v45 = vpop.f32.mrf.mxu3  ;;  %v1760_v32 = vpop.f32.mrf.mxu0 }
 0x3a6   :  { %7422 = vst [vmem:[#allocation87_spill] sm:$0xff] %v6367_v4  ;;  %v1761_v9 = vadd.f32 %v1760_v32, %v6182_v30  ;;  %v2025_v35 = vadd.f32 %v2024_v45, %v1936_v20  ;;  %v6380_v45 = vperm.slane %v6179_v31, 6  ;;  %v5512_v31 = vld [vmem:[#allocation7] sm:$0xff] }
 0x3a7   :  { %v1849_v14 = vpop.f32.mrf.mxu1 }
 0x3a8   :  { %v1850_v33 = vadd.f32 %v1849_v14, %v1761_v9  ;;  %2075 = vmatmul.bf16.gmra.mxu0 %v5752_v16  ;;  %v2625_v26 = vmax.f32 %v2025_v35, 0.0  ;;  %2253 = vmatmul.bf16.gmra.mxu2 %v5752_v16 }
 0x3aa   :  { %2164 = vmatmul.bf16.gmra.mxu1 %v5754_v17  ;;  %2342 = vmatmul.bf16.gmra.mxu3 %v5754_v17  ;;  %v6375_v2 = vpack.c.bf16 %v2625_v26, %v2617_v19  ;;  %v2632_v52 = vmax.f32 %v1850_v33, 0.0 }
 0x3ab   :  { %v1938_v46 = vpop.f32.mrf.mxu2 }
 0x3ac   :  { %7423 = vst [vmem:[#allocation88_spill] sm:$0xff] %v6375_v2  ;;  %v1939_v11 = vadd.f32 %v1938_v46, %v6192_v29  ;;  %v7445_v2 = vld [vmem:[#allocation23_spill] sm:$0xff] }
 0x3ad   :  { %v2027_v37 = vpop.f32.mrf.mxu3  ;;  %v1762_v58 = vpop.f32.mrf.mxu0 }
 0x3ae   :  { %v1763_v53 = vadd.f32 %v1762_v58, %v6182_v30  ;;  %v2028_v47 = vadd.f32 %v2027_v37, %v1939_v11  ;;  %v6389_v11 = vperm.slane %v5512_v31, 7  ;;  %v5306_v37 = vld [vmem:[#allocation8 + $0x10] sm:$0xff] }
 0x3af   :  { %v1851_v59 = vpop.f32.mrf.mxu1  ;;  %v5330_v58 = vld [vmem:[#allocation8 + $0xd0] sm:$0xff]  ;;  %3293 = vmatpush.bf16.msra.mxu0 %v5306_v37 }
 0x3b0   :  { %v1852_v6 = vadd.f32 %v1851_v59, %v1763_v53  ;;  %v2633_v46 = vmax.f32 %v2028_v47, 0.0  ;;  %3560 = vmatpush.bf16.msra.mxu3 %v5330_v58 }
 0x3b2   :  { %v2640_v20 = vmax.f32 %v1852_v6, 0.0 }
 0x3b3   :  { %v1940_v16 = vpop.f32.mrf.mxu2 }
 0x3b4   :  { %v6382_v32 = vpack.c.bf16 %v2640_v20, %v2632_v52  ;;  %v1941_v17 = vadd.f32 %v1940_v16, %v6192_v29  ;;  %v5322_v29 = vld [vmem:[#allocation8 + $0x90] sm:$0xff] }
 0x3b5   :  { %v2029_v9 = vpop.f32.mrf.mxu3  ;;  %v2041_v14 = vpop.f32.mrf.mxu0  ;;  %3471 = vmatpush.bf16.msra.mxu2 %v5322_v29 }
 0x3b6   :  { %7424 = vst [vmem:[#allocation89_spill] sm:$0xff] %v6382_v32  ;;  %v2042_v35 = vadd.f32 %v2041_v14, %v6380_v45  ;;  %v2030_v26 = vadd.f32 %v2029_v9, %v1941_v17  ;;  %v5314_v9 = vld [vmem:[#allocation8 + $0x50] sm:$0xff] }
 0x3b7   :  { %v2130_v19 = vpop.f32.mrf.mxu1  ;;  %3382 = vmatpush.bf16.msra.mxu1 %v5314_v9 }
 0x3b8   :  { %v2131_v30 = vadd.f32 %v2130_v19, %v2042_v35  ;;  %2080 = vmatmul.bf16.gmra.mxu0 %v5762_v24  ;;  %v2641_v33 = vmax.f32 %v2030_v26, 0.0  ;;  %2258 = vmatmul.bf16.gmra.mxu2 %v5762_v24 }
 0x3ba   :  { %2169 = vmatmul.bf16.gmra.mxu1 %v5764_v28  ;;  %2347 = vmatmul.bf16.gmra.mxu3 %v5764_v28  ;;  %v6392_v53 = vpack.c.bf16 %v2641_v33, %v2633_v46  ;;  %v2394_v28 = vmax.f32 %v2131_v30, 0.0 }
 0x3bb   :  { %v2219_v59 = vpop.f32.mrf.mxu2 }
 0x3bc   :  { %7425 = vst [vmem:[#allocation90_spill] sm:$0xff] %v6392_v53  ;;  %v2220_v47 = vadd.f32 %v2219_v59, %v6389_v11 }
 0x3bd   :  { %v2308_v6 = vpop.f32.mrf.mxu3  ;;  %v2043_v52 = vpop.f32.mrf.mxu0 }
 0x3be   :  { %v2044_v24 = vadd.f32 %v2043_v52, %v6380_v45  ;;  %v2309_v16 = vadd.f32 %v2308_v6, %v2220_v47 }
 0x3bf   :  { %v2132_v20 = vpop.f32.mrf.mxu1 }
 0x3c0   :  { %v2133_v17 = vadd.f32 %v2132_v20, %v2044_v24  ;;  %v2395_v59 = vmax.f32 %v2309_v16, 0.0 }
 0x3c2   :  { %v2402_v14 = vmax.f32 %v2133_v17, 0.0 }
 0x3c3   :  { %v2221_v19 = vpop.f32.mrf.mxu2 }
 0x3c4   :  { %v6396_v35 = vpack.c.bf16 %v2402_v14, %v2394_v28  ;;  %v2222_v26 = vadd.f32 %v2221_v19, %v6389_v11 }
 0x3c5   :  { %v2310_v46 = vpop.f32.mrf.mxu3  ;;  %v2046_v33 = vpop.f32.mrf.mxu0 }
 0x3c6   :  { %v2047_v31 = vadd.f32 %v2046_v33, %v6380_v45  ;;  %v2311_v37 = vadd.f32 %v2310_v46, %v2222_v26 }
 0x3c7   :  { %v2135_v29 = vpop.f32.mrf.mxu1 }
 0x3c8   :  { %v2136_v58 = vadd.f32 %v2135_v29, %v2047_v31  ;;  %2085 = vmatmul.bf16.gmra.mxu0 %v5777_v7  ;;  %v2403_v47 = vmax.f32 %v2311_v37, 0.0  ;;  %2263 = vmatmul.bf16.gmra.mxu2 %v5777_v7 }
 0x3ca   :  { %2174 = vmatmul.bf16.gmra.mxu1 %v5780_v13  ;;  %2352 = vmatmul.bf16.gmra.mxu3 %v5780_v13  ;;  %v6404_v30 = vpack.c.bf16 %v2403_v47, %v2395_v59  ;;  %v2410_v16 = vmax.f32 %v2136_v58, 0.0  ;;  %v5321_v58 = vld [vmem:[#allocation8 + $0x88] sm:$0xff] }
 0x3cb   :  { %v2224_v6 = vpop.f32.mrf.mxu2  ;;  %3472 = vmatpush.bf16.msra.mxu2 %v5321_v58 }
 0x3cc   :  { %v2225_v52 = vadd.f32 %v2224_v6, %v6389_v11 }
 0x3cd   :  { %v2313_v24 = vpop.f32.mrf.mxu3  ;;  %v2048_v20 = vpop.f32.mrf.mxu0 }
 0x3ce   :  { %v2049_v17 = vadd.f32 %v2048_v20, %v6380_v45  ;;  %v2314_v28 = vadd.f32 %v2313_v24, %v2225_v52  ;;  %v5305_v52 = vld [vmem:[#allocation8 + $0x8] sm:$0xff] }
 0x3cf   :  { %v2137_v9 = vpop.f32.mrf.mxu1  ;;  %v5329_v24 = vld [vmem:[#allocation8 + $0xc8] sm:$0xff]  ;;  %3294 = vmatpush.bf16.msra.mxu0 %v5305_v52 }
 0x3d0   :  { %v2138_v14 = vadd.f32 %v2137_v9, %v2049_v17  ;;  %v2411_v47 = vmax.f32 %v2314_v28, 0.0  ;;  %3561 = vmatpush.bf16.msra.mxu3 %v5329_v24 }
 0x3d2   :  { %v2418_v19 = vmax.f32 %v2138_v14, 0.0 }
 0x3d3   :  { %v2226_v26 = vpop.f32.mrf.mxu2 }
 0x3d4   :  { %v6408_v46 = vpack.c.bf16 %v2418_v19, %v2410_v16  ;;  %v2227_v7 = vadd.f32 %v2226_v26, %v6389_v11 }
 0x3d5   :  { %v2315_v13 = vpop.f32.mrf.mxu3  ;;  %v2051_v33 = vpop.f32.mrf.mxu0 }
 0x3d6   :  { %v2052_v31 = vadd.f32 %v2051_v33, %v6380_v45  ;;  %v2316_v37 = vadd.f32 %v2315_v13, %v2227_v7  ;;  %v5313_v7 = vld [vmem:[#allocation8 + $0x48] sm:$0xff] }
 0x3d7   :  { %v2140_v29 = vpop.f32.mrf.mxu1  ;;  %3383 = vmatpush.bf16.msra.mxu1 %v5313_v7 }
 0x3d8   :  { %v2141_v59 = vadd.f32 %v2140_v29, %v2052_v31  ;;  %2090 = vmatmul.bf16.gmra.mxu0 %v5791_v48  ;;  %v2419_v6 = vmax.f32 %v2316_v37, 0.0  ;;  %2268 = vmatmul.bf16.gmra.mxu2 %v5791_v48 }
 0x3da   :  { %2179 = vmatmul.bf16.gmra.mxu1 %v5796_v55  ;;  %2357 = vmatmul.bf16.gmra.mxu3 %v5796_v55  ;;  %v6416_v20 = vpack.c.bf16 %v2419_v6, %v2411_v47  ;;  %v2426_v55 = vmax.f32 %v2141_v59, 0.0 }
 0x3db   :  { %v2229_v17 = vpop.f32.mrf.mxu2 }
 0x3dc   :  { %v2230_v9 = vadd.f32 %v2229_v17, %v6389_v11 }
 0x3dd   :  { %v2318_v14 = vpop.f32.mrf.mxu3  ;;  %v2053_v16 = vpop.f32.mrf.mxu0 }
 0x3de   :  { %v2054_v28 = vadd.f32 %v2053_v16, %v6380_v45  ;;  %v2319_v26 = vadd.f32 %v2318_v14, %v2230_v9 }
 0x3df   :  { %v2142_v19 = vpop.f32.mrf.mxu1 }
 0x3e0   :  { %v2143_v48 = vadd.f32 %v2142_v19, %v2054_v28  ;;  %v2427_v17 = vmax.f32 %v2319_v26, 0.0 }
 0x3e2   :  { %v2434_v13 = vmax.f32 %v2143_v48, 0.0 }
 0x3e3   :  { %v2231_v33 = vpop.f32.mrf.mxu2 }
 0x3e4   :  { %v6420_v31 = vpack.c.bf16 %v2434_v13, %v2426_v55  ;;  %v2232_v29 = vadd.f32 %v2231_v33, %v6389_v11 }
 0x3e5   :  { %v2320_v37 = vpop.f32.mrf.mxu3  ;;  %v2056_v47 = vpop.f32.mrf.mxu0 }
 0x3e6   :  { %v2057_v6 = vadd.f32 %v2056_v47, %v6380_v45  ;;  %v2321_v52 = vadd.f32 %v2320_v37, %v2232_v29 }
 0x3e7   :  { %v2145_v58 = vpop.f32.mrf.mxu1 }
 0x3e8   :  { %v2146_v24 = vadd.f32 %v2145_v58, %v2057_v6  ;;  %2095 = vmatmul.bf16.gmra.mxu0 %v5807_v50  ;;  %v2435_v9 = vmax.f32 %v2321_v52, 0.0  ;;  %2273 = vmatmul.bf16.gmra.mxu2 %v5807_v50 }
 0x3ea   :  { %2184 = vmatmul.bf16.gmra.mxu1 %v5812_v60  ;;  %2362 = vmatmul.bf16.gmra.mxu3 %v5812_v60  ;;  %v6428_v59 = vpack.c.bf16 %v2435_v9, %v2427_v17  ;;  %v2442_v26 = vmax.f32 %v2146_v24, 0.0  ;;  %v5320_v24 = vld [vmem:[#allocation8 + $0x80] sm:$0xff] }
 0x3eb   :  { %v2234_v14 = vpop.f32.mrf.mxu2  ;;  %3473 = vmatpush.bf16.msra.mxu2 %v5320_v24 }
 0x3ec   :  { %v2235_v16 = vadd.f32 %v2234_v14, %v6389_v11 }
 0x3ed   :  { %v2323_v28 = vpop.f32.mrf.mxu3  ;;  %v2058_v19 = vpop.f32.mrf.mxu0 }
 0x3ee   :  { %v2059_v48 = vadd.f32 %v2058_v19, %v6380_v45  ;;  %v2324_v55 = vadd.f32 %v2323_v28, %v2235_v16  ;;  %v5304_v16 = vld [vmem:[#allocation8] sm:$0xff] }
 0x3ef   :  { %v2147_v7 = vpop.f32.mrf.mxu1  ;;  %v5328_v28 = vld [vmem:[#allocation8 + $0xc0] sm:$0xff]  ;;  %3295 = vmatpush.bf16.msra.mxu0 %v5304_v16 }
 0x3f0   :  { %v2148_v13 = vadd.f32 %v2147_v7, %v2059_v48  ;;  %v2443_v9 = vmax.f32 %v2324_v55, 0.0  ;;  %3562 = vmatpush.bf16.msra.mxu3 %v5328_v28 }
 0x3f2   :  { %v2450_v33 = vmax.f32 %v2148_v13, 0.0 }
 0x3f3   :  { %v2236_v29 = vpop.f32.mrf.mxu2 }
 0x3f4   :  { %v6432_v37 = vpack.c.bf16 %v2450_v33, %v2442_v26  ;;  %v2237_v50 = vadd.f32 %v2236_v29, %v6389_v11 }
 0x3f5   :  { %v2325_v60 = vpop.f32.mrf.mxu3  ;;  %v2061_v47 = vpop.f32.mrf.mxu0 }
 0x3f6   :  { %v2062_v6 = vadd.f32 %v2061_v47, %v6380_v45  ;;  %v2326_v52 = vadd.f32 %v2325_v60, %v2237_v50  ;;  %v5312_v50 = vld [vmem:[#allocation8 + $0x40] sm:$0xff] }
 0x3f7   :  { %v2150_v58 = vpop.f32.mrf.mxu1  ;;  %3384 = vmatpush.bf16.msra.mxu1 %v5312_v50 }
 0x3f8   :  { %v2151_v17 = vadd.f32 %v2150_v58, %v2062_v6  ;;  %2100 = vmatmul.bf16.gmra.mxu0 %v5823_v38  ;;  %v2451_v14 = vmax.f32 %v2326_v52, 0.0  ;;  %2278 = vmatmul.bf16.gmra.mxu2 %v5823_v38 }
 0x3fa   :  { %2189 = vmatmul.bf16.gmra.mxu1 %v5828_v44  ;;  %2367 = vmatmul.bf16.gmra.mxu3 %v5828_v44  ;;  %v6440_v19 = vpack.c.bf16 %v2451_v14, %v2443_v9  ;;  %v2458_v44 = vmax.f32 %v2151_v17, 0.0 }
 0x3fb   :  { %v2239_v48 = vpop.f32.mrf.mxu2 }
 0x3fc   :  { %v2240_v7 = vadd.f32 %v2239_v48, %v6389_v11 }
 0x3fd   :  { %v2328_v13 = vpop.f32.mrf.mxu3  ;;  %v2063_v26 = vpop.f32.mrf.mxu0 }
 0x3fe   :  { %v2064_v55 = vadd.f32 %v2063_v26, %v6380_v45  ;;  %v2329_v29 = vadd.f32 %v2328_v13, %v2240_v7 }
 0x3ff   :  { %v2152_v33 = vpop.f32.mrf.mxu1 }
 0x400   :  { %v2153_v38 = vadd.f32 %v2152_v33, %v2064_v55  ;;  %v2459_v48 = vmax.f32 %v2329_v29, 0.0 }
 0x402   :  { %v2466_v60 = vmax.f32 %v2153_v38, 0.0 }
 0x403   :  { %v2241_v47 = vpop.f32.mrf.mxu2 }
 0x404   :  { %v6444_v6 = vpack.c.bf16 %v2466_v60, %v2458_v44  ;;  %v2242_v58 = vadd.f32 %v2241_v47, %v6389_v11 }
 0x405   :  { %v2330_v52 = vpop.f32.mrf.mxu3  ;;  %v2066_v9 = vpop.f32.mrf.mxu0 }
 0x406   :  { %v2067_v14 = vadd.f32 %v2066_v9, %v6380_v45  ;;  %v2331_v16 = vadd.f32 %v2330_v52, %v2242_v58 }
 0x407   :  { %v2155_v24 = vpop.f32.mrf.mxu1 }
 0x408   :  { %v2156_v28 = vadd.f32 %v2155_v24, %v2067_v14  ;;  %2105 = vmatmul.bf16.gmra.mxu0 %v5839_v63  ;;  %v2467_v7 = vmax.f32 %v2331_v16, 0.0  ;;  %2283 = vmatmul.bf16.gmra.mxu2 %v5839_v63 }
 0x40a   :  { %2194 = vmatmul.bf16.gmra.mxu1 %v5844_v10  ;;  %2372 = vmatmul.bf16.gmra.mxu3 %v5844_v10  ;;  %v6452_v17 = vpack.c.bf16 %v2467_v7, %v2459_v48  ;;  %v2474_v29 = vmax.f32 %v2156_v28, 0.0  ;;  %v5359_v28 = vld [vmem:[#allocation8 + $0x1b8] sm:$0xff] }
 0x40b   :  { %v2244_v13 = vpop.f32.mrf.mxu2  ;;  %3822 = vmatpush.bf16.msrb.mxu2 %v5359_v28 }
 0x40c   :  { %v2245_v26 = vadd.f32 %v2244_v13, %v6389_v11 }
 0x40d   :  { %v2333_v55 = vpop.f32.mrf.mxu3  ;;  %v2068_v33 = vpop.f32.mrf.mxu0 }
 0x40e   :  { %v2069_v38 = vadd.f32 %v2068_v33, %v6380_v45  ;;  %v2334_v44 = vadd.f32 %v2333_v55, %v2245_v26  ;;  %v5343_v26 = vld [vmem:[#allocation8 + $0x138] sm:$0xff] }
 0x40f   :  { %v2157_v50 = vpop.f32.mrf.mxu1  ;;  %v5367_v55 = vld [vmem:[#allocation8 + $0x1f8] sm:$0xff]  ;;  %3644 = vmatpush.bf16.msrb.mxu0 %v5343_v26 }
 0x410   :  { %v2158_v60 = vadd.f32 %v2157_v50, %v2069_v38  ;;  %v2475_v7 = vmax.f32 %v2334_v44, 0.0  ;;  %3911 = vmatpush.bf16.msrb.mxu3 %v5367_v55 }
 0x412   :  { %v2482_v47 = vmax.f32 %v2158_v60, 0.0 }
 0x413   :  { %v2246_v58 = vpop.f32.mrf.mxu2 }
 0x414   :  { %v6456_v52 = vpack.c.bf16 %v2482_v47, %v2474_v29  ;;  %v2247_v63 = vadd.f32 %v2246_v58, %v6389_v11 }
 0x415   :  { %v2335_v10 = vpop.f32.mrf.mxu3  ;;  %v2071_v9 = vpop.f32.mrf.mxu0 }
 0x416   :  { %v2072_v14 = vadd.f32 %v2071_v9, %v6380_v45  ;;  %v2336_v16 = vadd.f32 %v2335_v10, %v2247_v63  ;;  %v5351_v63 = vld [vmem:[#allocation8 + $0x178] sm:$0xff] }
 0x417   :  { %v2160_v24 = vpop.f32.mrf.mxu1  ;;  %3733 = vmatpush.bf16.msrb.mxu1 %v5351_v63 }
 0x418   :  { %v2161_v48 = vadd.f32 %v2160_v24, %v2072_v14  ;;  %2110 = vmatmul.bf16.gmra.mxu0 %v5855_v0  ;;  %v2483_v13 = vmax.f32 %v2336_v16, 0.0  ;;  %2288 = vmatmul.bf16.gmra.mxu2 %v5855_v0 }
 0x41a   :  { %2199 = vmatmul.bf16.gmra.mxu1 %v5860_v56  ;;  %2377 = vmatmul.bf16.gmra.mxu3 %v5860_v56  ;;  %v6464_v33 = vpack.c.bf16 %v2483_v13, %v2475_v7  ;;  %v2490_v56 = vmax.f32 %v2161_v48, 0.0 }
 0x41b   :  { %v2249_v38 = vpop.f32.mrf.mxu2 }
 0x41c   :  { %v2250_v50 = vadd.f32 %v2249_v38, %v6389_v11 }
 0x41d   :  { %v2338_v60 = vpop.f32.mrf.mxu3  ;;  %v2073_v29 = vpop.f32.mrf.mxu0 }
 0x41e   :  { %v2074_v44 = vadd.f32 %v2073_v29, %v6380_v45  ;;  %v2339_v58 = vadd.f32 %v2338_v60, %v2250_v50 }
 0x41f   :  { %v2162_v47 = vpop.f32.mrf.mxu1 }
 0x420   :  { %v2163_v0 = vadd.f32 %v2162_v47, %v2074_v44  ;;  %v2491_v38 = vmax.f32 %v2339_v58, 0.0 }
 0x422   :  { %v2498_v10 = vmax.f32 %v2163_v0, 0.0 }
 0x423   :  { %v2251_v9 = vpop.f32.mrf.mxu2 }
 0x424   :  { %v6468_v14 = vpack.c.bf16 %v2498_v10, %v2490_v56  ;;  %v2252_v24 = vadd.f32 %v2251_v9, %v6389_v11 }
 0x425   :  { %v2340_v16 = vpop.f32.mrf.mxu3  ;;  %v2076_v7 = vpop.f32.mrf.mxu0 }
 0x426   :  { %v2077_v13 = vadd.f32 %v2076_v7, %v6380_v45  ;;  %v2341_v26 = vadd.f32 %v2340_v16, %v2252_v24 }
 0x427   :  { %v2165_v28 = vpop.f32.mrf.mxu1 }
 0x428   :  { %v2166_v55 = vadd.f32 %v2165_v28, %v2077_v13  ;;  %2115 = vmatmul.bf16.gmra.mxu0 %v5871_v61  ;;  %v2499_v50 = vmax.f32 %v2341_v26, 0.0  ;;  %2293 = vmatmul.bf16.gmra.mxu2 %v5871_v61 }
 0x42a   :  { %2204 = vmatmul.bf16.gmra.mxu1 %v5876_v40  ;;  %2382 = vmatmul.bf16.gmra.mxu3 %v5876_v40  ;;  %v6476_v48 = vpack.c.bf16 %v2499_v50, %v2491_v38  ;;  %v2506_v58 = vmax.f32 %v2166_v55, 0.0  ;;  %v5358_v55 = vld [vmem:[#allocation8 + $0x1b0] sm:$0xff] }
 0x42b   :  { %v2254_v60 = vpop.f32.mrf.mxu2  ;;  %3823 = vmatpush.bf16.msrb.mxu2 %v5358_v55 }
 0x42c   :  { %v2255_v29 = vadd.f32 %v2254_v60, %v6389_v11 }
 0x42d   :  { %v2343_v44 = vpop.f32.mrf.mxu3  ;;  %v2078_v47 = vpop.f32.mrf.mxu0 }
 0x42e   :  { %v2079_v0 = vadd.f32 %v2078_v47, %v6380_v45  ;;  %v2344_v56 = vadd.f32 %v2343_v44, %v2255_v29  ;;  %v5342_v29 = vld [vmem:[#allocation8 + $0x130] sm:$0xff] }
 0x42f   :  { %v2167_v63 = vpop.f32.mrf.mxu1  ;;  %v5366_v44 = vld [vmem:[#allocation8 + $0x1f0] sm:$0xff]  ;;  %3645 = vmatpush.bf16.msrb.mxu0 %v5342_v29 }
 0x430   :  { %v2168_v10 = vadd.f32 %v2167_v63, %v2079_v0  ;;  %v2507_v50 = vmax.f32 %v2344_v56, 0.0  ;;  %3912 = vmatpush.bf16.msrb.mxu3 %v5366_v44 }
 0x432   :  { %v2514_v9 = vmax.f32 %v2168_v10, 0.0 }
 0x433   :  { %v2256_v24 = vpop.f32.mrf.mxu2 }
 0x434   :  { %v6480_v16 = vpack.c.bf16 %v2514_v9, %v2506_v58  ;;  %v2257_v61 = vadd.f32 %v2256_v24, %v6389_v11  ;;  %v5350_v9 = vld [vmem:[#allocation8 + $0x170] sm:$0xff] }
 0x435   :  { %v2345_v40 = vpop.f32.mrf.mxu3  ;;  %v2081_v7 = vpop.f32.mrf.mxu0  ;;  %3734 = vmatpush.bf16.msrb.mxu1 %v5350_v9 }
 0x436   :  { %v2082_v13 = vadd.f32 %v2081_v7, %v6380_v45  ;;  %v2346_v26 = vadd.f32 %v2345_v40, %v2257_v61 }
 0x437   :  { %v2170_v28 = vpop.f32.mrf.mxu1 }
 0x438   :  { %v2171_v38 = vadd.f32 %v2170_v28, %v2082_v13  ;;  %3296 = vmatmul.bf16.vlgmr.msra.gmra.mxu0 %v5775_v5  ;;  %v2515_v60 = vmax.f32 %v2346_v26, 0.0  ;;  %3474 = vmatmul.bf16.vlgmr.msra.gmra.mxu2 %v5999_v25 }
 0x43a   :  { %3385 = vmatmul.bf16.vlgmr.msra.gmra.mxu1 %v5787_v23  ;;  %3563 = vmatmul.bf16.vlgmr.msra.gmra.mxu3 %v6007_v42  ;;  %v6488_v47 = vpack.c.bf16 %v2515_v60, %v2507_v50  ;;  %v2522_v42 = vmax.f32 %v2171_v38, 0.0 }
 0x43b   :  { %v2259_v0 = vpop.f32.mrf.mxu2 }
 0x43c   :  { %v2260_v63 = vadd.f32 %v2259_v0, %v6389_v11 }
 0x43d   :  { %v2348_v10 = vpop.f32.mrf.mxu3  ;;  %v2083_v5 = vpop.f32.mrf.mxu0 }
 0x43e   :  { %v2084_v56 = vadd.f32 %v2083_v5, %v6380_v45  ;;  %v2349_v58 = vadd.f32 %v2348_v10, %v2260_v63 }
 0x43f   :  { %v2172_v23 = vpop.f32.mrf.mxu1 }
 0x440   :  { %v2173_v25 = vadd.f32 %v2172_v23, %v2084_v56  ;;  %v2523_v29 = vmax.f32 %v2349_v58, 0.0 }
 0x442   :  { %v2530_v24 = vmax.f32 %v2173_v25, 0.0 }
 0x443   :  { %v2261_v61 = vpop.f32.mrf.mxu2 }
 0x444   :  { %v6492_v40 = vpack.c.bf16 %v2530_v24, %v2522_v42  ;;  %v2262_v7 = vadd.f32 %v2261_v61, %v6389_v11 }
 0x445   :  { %v2350_v13 = vpop.f32.mrf.mxu3  ;;  %v2086_v28 = vpop.f32.mrf.mxu0 }
 0x446   :  { %v2087_v26 = vadd.f32 %v2086_v28, %v6380_v45  ;;  %v2351_v60 = vadd.f32 %v2350_v13, %v2262_v7 }
 0x447   :  { %v2175_v50 = vpop.f32.mrf.mxu1 }
 0x448   :  { %v2176_v55 = vadd.f32 %v2175_v50, %v2087_v26  ;;  %3301 = vmatmul.bf16.gmra.mxu0 %v5793_v49  ;;  %v2531_v44 = vmax.f32 %v2351_v60, 0.0  ;;  %3479 = vmatmul.bf16.gmra.mxu2 %v6011_v22  ;;  %v7426_v26 = vld [vmem:[#allocation15_spill] sm:$0xff] }
 0x44a   :  { %3390 = vmatmul.bf16.gmra.mxu1 %v5803_v12  ;;  %3568 = vmatmul.bf16.gmra.mxu3 %v6019_v15  ;;  %v6500_v38 = vpack.c.bf16 %v2531_v44, %v2523_v29  ;;  %v2538_v58 = vmax.f32 %v2176_v55, 0.0  ;;  %v7427_v29 = vld [vmem:[#allocation16_spill] sm:$0xff]  ;;  %v7428_v55 = vld [vmem:[#allocation43_spill] sm:$0xff] }
 0x44b   :  { %v2264_v0 = vpop.f32.mrf.mxu2  ;;  %v7429_v44 = vld [vmem:[#allocation44_spill] sm:$0xff] }
 0x44c   :  { %v2265_v63 = vadd.f32 %v2264_v0, %v6389_v11  ;;  %v5357_v0 = vld [vmem:[#allocation8 + $0x1a8] sm:$0xff] }
 0x44d   :  { %v2353_v10 = vpop.f32.mrf.mxu3  ;;  %v2088_v5 = vpop.f32.mrf.mxu0  ;;  %3824 = vmatpush.bf16.msrb.mxu2 %v5357_v0 }
 0x44e   :  { %v2089_v56 = vadd.f32 %v2088_v5, %v6380_v45  ;;  %v2354_v25 = vadd.f32 %v2353_v10, %v2265_v63  ;;  %v5341_v63 = vld [vmem:[#allocation8 + $0x128] sm:$0xff] }
 0x44f   :  { %v2177_v23 = vpop.f32.mrf.mxu1  ;;  %v5365_v10 = vld [vmem:[#allocation8 + $0x1e8] sm:$0xff]  ;;  %3646 = vmatpush.bf16.msrb.mxu0 %v5341_v63  ;;  %v7430_v63 = vld [vmem:[#allocation17_spill] sm:$0xff] }
 0x450   :  { %v2178_v49 = vadd.f32 %v2177_v23, %v2089_v56  ;;  %v2539_v50 = vmax.f32 %v2354_v25, 0.0  ;;  %3913 = vmatpush.bf16.msrb.mxu3 %v5365_v10 }
 0x452   :  { %v2546_v9 = vmax.f32 %v2178_v49, 0.0 }
 0x453   :  { %v2266_v42 = vpop.f32.mrf.mxu2 }
 0x454   :  { %v6504_v12 = vpack.c.bf16 %v2546_v9, %v2538_v58  ;;  %v2267_v22 = vadd.f32 %v2266_v42, %v6389_v11 }
 0x455   :  { %v2355_v15 = vpop.f32.mrf.mxu3  ;;  %v2091_v24 = vpop.f32.mrf.mxu0 }
 0x456   :  { %v2092_v61 = vadd.f32 %v2091_v24, %v6380_v45  ;;  %v2356_v13 = vadd.f32 %v2355_v15, %v2267_v22  ;;  %v5349_v15 = vld [vmem:[#allocation8 + $0x168] sm:$0xff] }
 0x457   :  { %v2180_v7 = vpop.f32.mrf.mxu1  ;;  %3735 = vmatpush.bf16.msrb.mxu1 %v5349_v15 }
 0x458   :  { %v2181_v28 = vadd.f32 %v2180_v7, %v2092_v61  ;;  %3306 = vmatmul.bf16.gmra.mxu0 %v7426_v26  ;;  %v2547_v60 = vmax.f32 %v2356_v13, 0.0  ;;  %3484 = vmatmul.bf16.gmra.mxu2 %v7428_v55 }
 0x45a   :  { %3395 = vmatmul.bf16.gmra.mxu1 %v7427_v29  ;;  %3573 = vmatmul.bf16.gmra.mxu3 %v7429_v44  ;;  %v6512_v5 = vpack.c.bf16 %v2547_v60, %v2539_v50  ;;  %v2554_v24 = vmax.f32 %v2181_v28, 0.0  ;;  %v7432_v28 = vld [vmem:[#allocation45_spill] sm:$0xff] }
 0x45b   :  { %v2269_v56 = vpop.f32.mrf.mxu2 }
 0x45c   :  { %v2270_v23 = vadd.f32 %v2269_v56, %v6389_v11 }
 0x45d   :  { %v2358_v49 = vpop.f32.mrf.mxu3  ;;  %v2093_v58 = vpop.f32.mrf.mxu0 }
 0x45e   :  { %v2094_v25 = vadd.f32 %v2093_v58, %v6380_v45  ;;  %v2359_v42 = vadd.f32 %v2358_v49, %v2270_v23  ;;  %v7431_v23 = vld [vmem:[#allocation18_spill] sm:$0xff] }
 0x45f   :  { %v2182_v9 = vpop.f32.mrf.mxu1  ;;  %v7433_v49 = vld [vmem:[#allocation46_spill] sm:$0xff] }
 0x460   :  { %v2183_v22 = vadd.f32 %v2182_v9, %v2094_v25  ;;  %v2555_v10 = vmax.f32 %v2359_v42, 0.0 }
 0x462   :  { %v2562_v61 = vmax.f32 %v2183_v22, 0.0 }
 0x463   :  { %v2271_v7 = vpop.f32.mrf.mxu2 }
 0x464   :  { %v6516_v13 = vpack.c.bf16 %v2562_v61, %v2554_v24  ;;  %v2272_v26 = vadd.f32 %v2271_v7, %v6389_v11 }
 0x465   :  { %v2360_v50 = vpop.f32.mrf.mxu3  ;;  %v2096_v60 = vpop.f32.mrf.mxu0 }
 0x466   :  { %v2097_v29 = vadd.f32 %v2096_v60, %v6380_v45  ;;  %v2361_v44 = vadd.f32 %v2360_v50, %v2272_v26 }
 0x467   :  { %v2185_v55 = vpop.f32.mrf.mxu1 }
 0x468   :  { %v2186_v0 = vadd.f32 %v2185_v55, %v2097_v29  ;;  %3311 = vmatmul.bf16.gmra.mxu0 %v7430_v63  ;;  %v2563_v56 = vmax.f32 %v2361_v44, 0.0  ;;  %3489 = vmatmul.bf16.gmra.mxu2 %v7432_v28 }
 0x46a   :  { %3400 = vmatmul.bf16.gmra.mxu1 %v7431_v23  ;;  %3578 = vmatmul.bf16.gmra.mxu3 %v7433_v49  ;;  %v6524_v58 = vpack.c.bf16 %v2563_v56, %v2555_v10  ;;  %v2570_v42 = vmax.f32 %v2186_v0, 0.0  ;;  %v7434_v49 = vld [vmem:[#allocation19_spill] sm:$0xff] }
 0x46b   :  { %v2274_v25 = vpop.f32.mrf.mxu2  ;;  %v7436_v0 = vld [vmem:[#allocation47_spill] sm:$0xff] }
 0x46c   :  { %v2275_v9 = vadd.f32 %v2274_v25, %v6389_v11 }
 0x46d   :  { %v2363_v22 = vpop.f32.mrf.mxu3  ;;  %v2098_v15 = vpop.f32.mrf.mxu0 }
 0x46e   :  { %v2099_v24 = vadd.f32 %v2098_v15, %v6380_v45  ;;  %v2364_v7 = vadd.f32 %v2363_v22, %v2275_v9  ;;  %v7435_v9 = vld [vmem:[#allocation20_spill] sm:$0xff] }
 0x46f   :  { %v2187_v61 = vpop.f32.mrf.mxu1  ;;  %v7437_v22 = vld [vmem:[#allocation48_spill] sm:$0xff] }
 0x470   :  { %v2188_v26 = vadd.f32 %v2187_v61, %v2099_v24  ;;  %v2571_v25 = vmax.f32 %v2364_v7, 0.0  ;;  %v5356_v24 = vld [vmem:[#allocation8 + $0x1a0] sm:$0xff] }
 0x471   :  { %v5340_v61 = vld [vmem:[#allocation8 + $0x120] sm:$0xff]  ;;  %3825 = vmatpush.bf16.msrb.mxu2 %v5356_v24 }
 0x472   :  { %v2578_v50 = vmax.f32 %v2188_v26, 0.0  ;;  %v5364_v26 = vld [vmem:[#allocation8 + $0x1e0] sm:$0xff]  ;;  %3647 = vmatpush.bf16.msrb.mxu0 %v5340_v61 }
 0x473   :  { %v2276_v60 = vpop.f32.mrf.mxu2  ;;  %3914 = vmatpush.bf16.msrb.mxu3 %v5364_v26 }
 0x474   :  { %v6528_v29 = vpack.c.bf16 %v2578_v50, %v2570_v42  ;;  %v2277_v55 = vadd.f32 %v2276_v60, %v6389_v11 }
 0x475   :  { %v2365_v44 = vpop.f32.mrf.mxu3  ;;  %v2101_v63 = vpop.f32.mrf.mxu0 }
 0x476   :  { %v2102_v10 = vadd.f32 %v2101_v63, %v6380_v45  ;;  %v2366_v23 = vadd.f32 %v2365_v44, %v2277_v55 }
 0x477   :  { %v2190_v56 = vpop.f32.mrf.mxu1 }
 0x478   :  { %v2191_v28 = vadd.f32 %v2190_v56, %v2102_v10  ;;  %3316 = vmatmul.bf16.gmra.mxu0 %v7434_v49  ;;  %v2579_v15 = vmax.f32 %v2366_v23, 0.0  ;;  %3494 = vmatmul.bf16.gmra.mxu2 %v7436_v0  ;;  %v5348_v23 = vld [vmem:[#allocation8 + $0x160] sm:$0xff] }
 0x479   :  { %3736 = vmatpush.bf16.msrb.mxu1 %v5348_v23 }
 0x47a   :  { %3405 = vmatmul.bf16.gmra.mxu1 %v7435_v9  ;;  %3583 = vmatmul.bf16.gmra.mxu3 %v7437_v22  ;;  %v6536_v42 = vpack.c.bf16 %v2579_v15, %v2571_v25  ;;  %v2586_v49 = vmax.f32 %v2191_v28, 0.0  ;;  %v7441_v28 = vld [vmem:[#allocation49_spill] sm:$0xff] }
 0x47b   :  { %v2279_v50 = vpop.f32.mrf.mxu2 }
 0x47c   :  { %v2280_v60 = vadd.f32 %v2279_v50, %v6389_v11 }
 0x47d   :  { %v2368_v55 = vpop.f32.mrf.mxu3  ;;  %v2103_v44 = vpop.f32.mrf.mxu0 }
 0x47e   :  { %v2104_v7 = vadd.f32 %v2103_v44, %v6380_v45  ;;  %v2369_v10 = vadd.f32 %v2368_v55, %v2280_v60  ;;  %v7439_v44 = vld [vmem:[#allocation21_spill] sm:$0xff] }
 0x47f   :  { %v2192_v63 = vpop.f32.mrf.mxu1 }
 0x480   :  { %v2193_v56 = vadd.f32 %v2192_v63, %v2104_v7  ;;  %v2587_v60 = vmax.f32 %v2369_v10, 0.0  ;;  %v7440_v7 = vld [vmem:[#allocation22_spill] sm:$0xff] }
 0x481   :  { %v7442_v63 = vld [vmem:[#allocation50_spill] sm:$0xff] }
 0x482   :  { %v2594_v9 = vmax.f32 %v2193_v56, 0.0 }
 0x483   :  { %v2281_v0 = vpop.f32.mrf.mxu2 }
 0x484   :  { %v6540_v25 = vpack.c.bf16 %v2594_v9, %v2586_v49  ;;  %v2282_v15 = vadd.f32 %v2281_v0, %v6389_v11 }
 0x485   :  { %v2370_v22 = vpop.f32.mrf.mxu3  ;;  %v2106_v24 = vpop.f32.mrf.mxu0 }
 0x486   :  { %7438 = vst [vmem:[#allocation15_spill] sm:$0xff] %v6540_v25  ;;  %v2107_v61 = vadd.f32 %v2106_v24, %v6380_v45  ;;  %v2371_v26 = vadd.f32 %v2370_v22, %v2282_v15 }
 0x487   :  { %v2195_v50 = vpop.f32.mrf.mxu1 }
 0x488   :  { %v2196_v53 = vadd.f32 %v2195_v50, %v2107_v61  ;;  %3321 = vmatmul.bf16.gmra.mxu0 %v7439_v44  ;;  %v2595_v55 = vmax.f32 %v2371_v26, 0.0  ;;  %3499 = vmatmul.bf16.gmra.mxu2 %v7441_v28 }
 0x48a   :  { %3410 = vmatmul.bf16.gmra.mxu1 %v7440_v7  ;;  %3588 = vmatmul.bf16.gmra.mxu3 %v7442_v63  ;;  %v6548_v56 = vpack.c.bf16 %v2595_v55, %v2587_v60  ;;  %v2602_v10 = vmax.f32 %v2196_v53, 0.0  ;;  %v7447_v53 = vld [vmem:[#allocation51_spill] sm:$0xff] }
 0x48b   :  { %v2284_v23 = vpop.f32.mrf.mxu2 }
 0x48c   :  { %7443 = vst [vmem:[#allocation16_spill] sm:$0xff] %v6548_v56  ;;  %v2285_v49 = vadd.f32 %v2284_v23, %v6389_v11 }
 0x48d   :  { %v2373_v9 = vpop.f32.mrf.mxu3  ;;  %v2108_v0 = vpop.f32.mrf.mxu0 }
 0x48e   :  { %v2109_v15 = vadd.f32 %v2108_v0, %v6380_v45  ;;  %v2374_v24 = vadd.f32 %v2373_v9, %v2285_v49  ;;  %v7446_v49 = vld [vmem:[#allocation24_spill] sm:$0xff] }
 0x48f   :  { %v2197_v22 = vpop.f32.mrf.mxu1  ;;  %v7448_v9 = vld [vmem:[#allocation52_spill] sm:$0xff] }
 0x490   :  { %v2198_v61 = vadd.f32 %v2197_v22, %v2109_v15  ;;  %v2603_v0 = vmax.f32 %v2374_v24, 0.0  ;;  %v5355_v15 = vld [vmem:[#allocation8 + $0x198] sm:$0xff] }
 0x491   :  { %v5339_v22 = vld [vmem:[#allocation8 + $0x118] sm:$0xff]  ;;  %3826 = vmatpush.bf16.msrb.mxu2 %v5355_v15 }
 0x492   :  { %v2610_v50 = vmax.f32 %v2198_v61, 0.0  ;;  %v5363_v61 = vld [vmem:[#allocation8 + $0x1d8] sm:$0xff]  ;;  %3648 = vmatpush.bf16.msrb.mxu0 %v5339_v22 }
 0x493   :  { %v2286_v26 = vpop.f32.mrf.mxu2  ;;  %3915 = vmatpush.bf16.msrb.mxu3 %v5363_v61 }
 0x494   :  { %v6552_v44 = vpack.c.bf16 %v2610_v50, %v2602_v10  ;;  %v2287_v7 = vadd.f32 %v2286_v26, %v6389_v11 }
 0x495   :  { %v2375_v28 = vpop.f32.mrf.mxu3  ;;  %v2111_v60 = vpop.f32.mrf.mxu0 }
 0x496   :  { %7444 = vst [vmem:[#allocation43_spill] sm:$0xff] %v6552_v44  ;;  %v2112_v55 = vadd.f32 %v2111_v60, %v6380_v45  ;;  %v2376_v23 = vadd.f32 %v2375_v28, %v2287_v7 }
 0x497   :  { %v2200_v63 = vpop.f32.mrf.mxu1 }
 0x498   :  { %v2201_v32 = vadd.f32 %v2200_v63, %v2112_v55  ;;  %3326 = vmatmul.bf16.gmra.mxu0 %v7445_v2  ;;  %v2611_v4 = vmax.f32 %v2376_v23, 0.0  ;;  %3504 = vmatmul.bf16.gmra.mxu2 %v7447_v53  ;;  %v5347_v55 = vld [vmem:[#allocation8 + $0x158] sm:$0xff] }
 0x499   :  { %3737 = vmatpush.bf16.msrb.mxu1 %v5347_v55 }
 0x49a   :  { %3415 = vmatmul.bf16.gmra.mxu1 %v7446_v49  ;;  %3593 = vmatmul.bf16.gmra.mxu3 %v7448_v9  ;;  %v6560_v10 = vpack.c.bf16 %v2611_v4, %v2603_v0  ;;  %v2618_v23 = vmax.f32 %v2201_v32, 0.0  ;;  %v7453_v32 = vld [vmem:[#allocation53_spill] sm:$0xff] }
 0x49b   :  { %v2289_v50 = vpop.f32.mrf.mxu2 }
 0x49c   :  { %7449 = vst [vmem:[#allocation44_spill] sm:$0xff] %v6560_v10  ;;  %v2290_v26 = vadd.f32 %v2289_v50, %v6389_v11 }
 0x49d   :  { %v2378_v7 = vpop.f32.mrf.mxu3  ;;  %v2113_v2 = vpop.f32.mrf.mxu0 }
 0x49e   :  { %v2114_v24 = vadd.f32 %v2113_v2, %v6380_v45  ;;  %v2379_v60 = vadd.f32 %v2378_v7, %v2290_v26  ;;  %v7451_v2 = vld [vmem:[#allocation25_spill] sm:$0xff] }
 0x49f   :  { %v2202_v28 = vpop.f32.mrf.mxu1 }
 0x4a0   :  { %v2203_v63 = vadd.f32 %v2202_v28, %v2114_v24  ;;  %v2619_v26 = vmax.f32 %v2379_v60, 0.0  ;;  %v7452_v24 = vld [vmem:[#allocation26_spill] sm:$0xff] }
 0x4a1   :  { %v7454_v28 = vld [vmem:[#allocation54_spill] sm:$0xff] }
 0x4a2   :  { %v2626_v49 = vmax.f32 %v2203_v63, 0.0 }
 0x4a3   :  { %v2291_v53 = vpop.f32.mrf.mxu2 }
 0x4a4   :  { %v6564_v4 = vpack.c.bf16 %v2626_v49, %v2618_v23  ;;  %v2292_v0 = vadd.f32 %v2291_v53, %v6389_v11 }
 0x4a5   :  { %v2380_v9 = vpop.f32.mrf.mxu3  ;;  %v2116_v15 = vpop.f32.mrf.mxu0 }
 0x4a6   :  { %7450 = vst [vmem:[#allocation17_spill] sm:$0xff] %v6564_v4  ;;  %v2117_v22 = vadd.f32 %v2116_v15, %v6380_v45  ;;  %v2381_v61 = vadd.f32 %v2380_v9, %v2292_v0 }
 0x4a7   :  { %v2205_v50 = vpop.f32.mrf.mxu1 }
 0x4a8   :  { %v2206_v10 = vadd.f32 %v2205_v50, %v2117_v22  ;;  %3331 = vmatmul.bf16.gmra.mxu0 %v7451_v2  ;;  %v2627_v7 = vmax.f32 %v2381_v61, 0.0  ;;  %3509 = vmatmul.bf16.gmra.mxu2 %v7453_v32  ;;  %v6579_v61 = vld [vmem:[%s7332_s4] ss:$0 sm:$0xff]  ;;  %s5651_s4 = smov [#allocation10]  }
 0x4a9   :  { %s4391_s17 = sshll.u32 %s5651_s4, 4  ;;  %s4392_s17 = int_to_ptr.vmem [resolvable:$true] %s4391_s17 }
 0x4aa   :  { %3420 = vmatmul.bf16.gmra.mxu1 %v7452_v24  ;;  %3598 = vmatmul.bf16.gmra.mxu3 %v7454_v28  ;;  %v6572_v55 = vpack.c.bf16 %v2627_v7, %v2619_v26  ;;  %v2634_v60 = vmax.f32 %v2206_v10, 0.0 }
 0x4ab   :  { %v2294_v63 = vpop.f32.mrf.mxu2 }
 0x4ac   :  { %7455 = vst [vmem:[#allocation18_spill] sm:$0xff] %v6572_v55  ;;  %v2295_v23 = vadd.f32 %v2294_v63, %v6389_v11  ;;  %v7466_v55 = vld [vmem:[#allocation31_spill] sm:$0xff] }
 0x4ad   :  { %v2383_v49 = vpop.f32.mrf.mxu3  ;;  %v2118_v53 = vpop.f32.mrf.mxu0 }
 0x4ae   :  { %v2119_v0 = vadd.f32 %v2118_v53, %v6380_v45  ;;  %v2384_v15 = vadd.f32 %v2383_v49, %v2295_v23  ;;  %v7457_v49 = vld [vmem:[#allocation27_spill] sm:$0xff] }
 0x4af   :  { %v2207_v9 = vpop.f32.mrf.mxu1 }
 0x4b0   :  { %v2208_v22 = vadd.f32 %v2207_v9, %v2119_v0  ;;  %v2635_v10 = vmax.f32 %v2384_v15, 0.0  ;;  %v7458_v0 = vld [vmem:[#allocation28_spill] sm:$0xff]  ;;  %v7459_v9 = vld [vmem:[#allocation55_spill] sm:$0xff] }
 0x4b2   :  { %v2642_v50 = vmax.f32 %v2208_v22, 0.0  ;;  %v7460_v22 = vld [vmem:[#allocation56_spill] sm:$0xff] }
 0x4b3   :  { %v2296_v2 = vpop.f32.mrf.mxu2 }
 0x4b4   :  { %v6581_v26 = vpack.c.bf16 %v2642_v50, %v2634_v60  ;;  %v2297_v7 = vadd.f32 %v2296_v2, %v6389_v11  ;;  %v5354_v60 = vld [vmem:[#allocation8 + $0x190] sm:$0xff] }
 0x4b5   :  { %v2385_v24 = vpop.f32.mrf.mxu3  ;;  %v3297_v32 = vpop.f32.mrf.mxu0  ;;  %v5338_v50 = vld [vmem:[#allocation8 + $0x110] sm:$0xff]  ;;  %3827 = vmatpush.bf16.msrb.mxu2 %v5354_v60 }
 0x4b6   :  { %7456 = vst [vmem:[#allocation45_spill] sm:$0xff] %v6581_v26  ;;  %v3298_v28 = vadd.f32 %v6579_v61, %v3297_v32  ;;  %v2386_v63 = vadd.f32 %v2385_v24, %v2297_v7  ;;  %v5362_v11 = vld [vmem:[#allocation8 + $0x1d0] sm:$0xff]  ;;  %3649 = vmatpush.bf16.msrb.mxu0 %v5338_v50 }
 0x4b7   :  { %v3386_v45 = vpop.f32.mrf.mxu1  ;;  %3916 = vmatpush.bf16.msrb.mxu3 %v5362_v11  ;;  %v7463_v11 = vld [vmem:[#allocation30_spill] sm:$0xff] }
 0x4b8   :  { %v3387_v23 = vadd.f32 %v3386_v45, %v3298_v28  ;;  %3336 = vmatmul.bf16.gmra.mxu0 %v7457_v49  ;;  %v2643_v53 = vmax.f32 %v2386_v63, 0.0  ;;  %3514 = vmatmul.bf16.gmra.mxu2 %v7459_v9  ;;  %v5346_v63 = vld [vmem:[#allocation8 + $0x150] sm:$0xff] }
 0x4b9   :  { %3738 = vmatpush.bf16.msrb.mxu1 %v5346_v63 }
 0x4ba   :  { %3425 = vmatmul.bf16.gmra.mxu1 %v7458_v0  ;;  %3603 = vmatmul.bf16.gmra.mxu3 %v7460_v22  ;;  %v6589_v2 = vpack.c.bf16 %v2643_v53, %v2635_v10 }
 0x4bb   :  { %v3475_v26 = vpop.f32.mrf.mxu2 }
 0x4bc   :  { %7461 = vst [vmem:[#allocation46_spill] sm:$0xff] %v6589_v2  ;;  %v3476_v7 = vadd.f32 %v3475_v26, %v3387_v23  ;;  %v7462_v23 = vld [vmem:[#allocation29_spill] sm:$0xff] }
 0x4bd   :  { %v3564_v24 = vpop.f32.mrf.mxu3  ;;  %v3299_v32 = vpop.f32.mrf.mxu0 }
 0x4be   :  { %v3300_v15 = vadd.f32 %v6579_v61, %v3299_v32  ;;  %v6592_v45 = vadd.f32 %v3564_v24, %v3476_v7  ;;  %v7464_v32 = vld [vmem:[#allocation57_spill] sm:$0xff]  ;;  %v7465_v7 = vld [vmem:[#allocation58_spill] sm:$0xff] }
 0x4bf   :  { %v3388_v28 = vpop.f32.mrf.mxu1 }
 0x4c0   :  { %v3389_v49 = vadd.f32 %v3388_v28, %v3300_v15 }
 0x4c3   :  { %v3477_v0 = vpop.f32.mrf.mxu2 }
 0x4c4   :  { %v3478_v9 = vadd.f32 %v3477_v0, %v3389_v49 }
 0x4c5   :  { %v3566_v22 = vpop.f32.mrf.mxu3  ;;  %v3302_v10 = vpop.f32.mrf.mxu0 }
 0x4c6   :  { %v3303_v53 = vadd.f32 %v6579_v61, %v3302_v10  ;;  %v6595_v50 = vadd.f32 %v3566_v22, %v3478_v9 }
 0x4c7   :  { %v3391_v60 = vpop.f32.mrf.mxu1 }
 0x4c8   :  { %v3392_v26 = vadd.f32 %v3391_v60, %v3303_v53  ;;  %3341 = vmatmul.bf16.gmra.mxu0 %v7462_v23  ;;  %3519 = vmatmul.bf16.gmra.mxu2 %v7464_v32 }
 0x4ca   :  { %3430 = vmatmul.bf16.gmra.mxu1 %v7463_v11  ;;  %3608 = vmatmul.bf16.gmra.mxu3 %v7465_v7 }
 0x4cb   :  { %v3480_v24 = vpop.f32.mrf.mxu2 }
 0x4cc   :  { %v3481_v15 = vadd.f32 %v3480_v24, %v3392_v26  ;;  %v7467_v26 = vld [vmem:[#allocation32_spill] sm:$0xff]  ;;  %v7468_v24 = vld [vmem:[#allocation59_spill] sm:$0xff] }
 0x4cd   :  { %v3569_v28 = vpop.f32.mrf.mxu3  ;;  %v3304_v63 = vpop.f32.mrf.mxu0 }
 0x4ce   :  { %v3305_v49 = vadd.f32 %v6579_v61, %v3304_v63  ;;  %v6602_v10 = vadd.f32 %v3569_v28, %v3481_v15  ;;  %v7469_v63 = vld [vmem:[#allocation60_spill] sm:$0xff] }
 0x4cf   :  { %v3393_v0 = vpop.f32.mrf.mxu1  ;;  %v5353_v15 = vld [vmem:[#allocation8 + $0x188] sm:$0xff] }
 0x4d0   :  { %v3394_v9 = vadd.f32 %v3393_v0, %v3305_v49  ;;  %v5337_v28 = vld [vmem:[#allocation8 + $0x108] sm:$0xff]  ;;  %3828 = vmatpush.bf16.msrb.mxu2 %v5353_v15 }
 0x4d1   :  { %v5361_v49 = vld [vmem:[#allocation8 + $0x1c8] sm:$0xff]  ;;  %3650 = vmatpush.bf16.msrb.mxu0 %v5337_v28 }
 0x4d2   :  { %3917 = vmatpush.bf16.msrb.mxu3 %v5361_v49  ;;  %v7471_v49 = vld [vmem:[#allocation34_spill] sm:$0xff] }
 0x4d3   :  { %v3482_v22 = vpop.f32.mrf.mxu2 }
 0x4d4   :  { %v3483_v53 = vadd.f32 %v3482_v22, %v3394_v9 }
 0x4d5   :  { %v3571_v60 = vpop.f32.mrf.mxu3  ;;  %v3307_v23 = vpop.f32.mrf.mxu0 }
 0x4d6   :  { %v3308_v11 = vadd.f32 %v6579_v61, %v3307_v23  ;;  %v6605_v32 = vadd.f32 %v3571_v60, %v3483_v53  ;;  %v5345_v60 = vld [vmem:[#allocation8 + $0x148] sm:$0xff] }
 0x4d7   :  { %v3396_v2 = vpop.f32.mrf.mxu1  ;;  %3739 = vmatpush.bf16.msrb.mxu1 %v5345_v60 }
 0x4d8   :  { %v3397_v7 = vadd.f32 %v3396_v2, %v3308_v11  ;;  %3346 = vmatmul.bf16.gmra.mxu0 %v7466_v55  ;;  %3524 = vmatmul.bf16.gmra.mxu2 %v7468_v24 }
 0x4da   :  { %3435 = vmatmul.bf16.gmra.mxu1 %v7467_v26  ;;  %3613 = vmatmul.bf16.gmra.mxu3 %v7469_v63 }
 0x4db   :  { %v3485_v0 = vpop.f32.mrf.mxu2 }
 0x4dc   :  { %v3486_v9 = vadd.f32 %v3485_v0, %v3397_v7  ;;  %v7470_v0 = vld [vmem:[#allocation33_spill] sm:$0xff] }
 0x4dd   :  { %v3574_v22 = vpop.f32.mrf.mxu3  ;;  %v3309_v23 = vpop.f32.mrf.mxu0 }
 0x4de   :  { %v3310_v2 = vadd.f32 %v6579_v61, %v3309_v23  ;;  %v6612_v55 = vadd.f32 %v3574_v22, %v3486_v9  ;;  %v7472_v23 = vld [vmem:[#allocation61_spill] sm:$0xff]  ;;  %v7473_v9 = vld [vmem:[#allocation62_spill] sm:$0xff] }
 0x4df   :  { %v3398_v53 = vpop.f32.mrf.mxu1 }
 0x4e0   :  { %v3399_v11 = vadd.f32 %v3398_v53, %v3310_v2 }
 0x4e3   :  { %v3487_v26 = vpop.f32.mrf.mxu2 }
 0x4e4   :  { %v3488_v24 = vadd.f32 %v3487_v26, %v3399_v11 }
 0x4e5   :  { %v3576_v63 = vpop.f32.mrf.mxu3  ;;  %v3312_v4 = vpop.f32.mrf.mxu0 }
 0x4e6   :  { %v3313_v44 = vadd.f32 %v6579_v61, %v3312_v4  ;;  %v6615_v28 = vadd.f32 %v3576_v63, %v3488_v24 }
 0x4e7   :  { %v3401_v15 = vpop.f32.mrf.mxu1 }
 0x4e8   :  { %v3402_v7 = vadd.f32 %v3401_v15, %v3313_v44  ;;  %3351 = vmatmul.bf16.gmra.mxu0 %v7470_v0  ;;  %3529 = vmatmul.bf16.gmra.mxu2 %v7472_v23 }
 0x4ea   :  { %3440 = vmatmul.bf16.gmra.mxu1 %v7471_v49  ;;  %3618 = vmatmul.bf16.gmra.mxu3 %v7473_v9 }
 0x4eb   :  { %v3490_v22 = vpop.f32.mrf.mxu2 }
 0x4ec   :  { %v3491_v2 = vadd.f32 %v3490_v22, %v3402_v7  ;;  %v7475_v7 = vld [vmem:[#allocation36_spill] sm:$0xff]  ;;  %v7476_v22 = vld [vmem:[#allocation63_spill] sm:$0xff] }
 0x4ed   :  { %v3579_v53 = vpop.f32.mrf.mxu3  ;;  %v3314_v60 = vpop.f32.mrf.mxu0 }
 0x4ee   :  { %v3315_v11 = vadd.f32 %v6579_v61, %v3314_v60  ;;  %v6622_v4 = vadd.f32 %v3579_v53, %v3491_v2  ;;  %v7477_v60 = vld [vmem:[#allocation64_spill] sm:$0xff]  ;;  %v5352_v2 = vld [vmem:[#allocation8 + $0x180] sm:$0xff] }
 0x4ef   :  { %v3403_v26 = vpop.f32.mrf.mxu1  ;;  %v5336_v53 = vld [vmem:[#allocation8 + $0x100] sm:$0xff]  ;;  %3829 = vmatpush.bf16.msrb.mxu2 %v5352_v2 }
 0x4f0   :  { %v3404_v24 = vadd.f32 %v3403_v26, %v3315_v11  ;;  %v5360_v11 = vld [vmem:[#allocation8 + $0x1c0] sm:$0xff]  ;;  %3651 = vmatpush.bf16.msrb.mxu0 %v5336_v53 }
 0x4f1   :  { %3918 = vmatpush.bf16.msrb.mxu3 %v5360_v11  ;;  %v7480_v11 = vld [vmem:[#allocation38_spill] sm:$0xff] }
 0x4f3   :  { %v3492_v63 = vpop.f32.mrf.mxu2 }
 0x4f4   :  { %v3493_v44 = vadd.f32 %v3492_v63, %v3404_v24 }
 0x4f5   :  { %v3581_v15 = vpop.f32.mrf.mxu3  ;;  %v3317_v0 = vpop.f32.mrf.mxu0 }
 0x4f6   :  { %v3318_v49 = vadd.f32 %v6579_v61, %v3317_v0  ;;  %v6625_v23 = vadd.f32 %v3581_v15, %v3493_v44  ;;  %v5344_v15 = vld [vmem:[#allocation8 + $0x140] sm:$0xff] }
 0x4f7   :  { %v3406_v27 = vpop.f32.mrf.mxu1  ;;  %3740 = vmatpush.bf16.msrb.mxu1 %v5344_v15 }
 0x4f8   :  { %v3407_v9 = vadd.f32 %v3406_v27, %v3318_v49  ;;  %3356 = vmatmul.bf16.gmra.mxu0 %v7474_v8  ;;  %3534 = vmatmul.bf16.gmra.mxu2 %v7476_v22 }
 0x4fa   :  { %3445 = vmatmul.bf16.gmra.mxu1 %v7475_v7  ;;  %3623 = vmatmul.bf16.gmra.mxu3 %v7477_v60 }
 0x4fb   :  { %v3495_v26 = vpop.f32.mrf.mxu2 }
 0x4fc   :  { %v3496_v24 = vadd.f32 %v3495_v26, %v3407_v9  ;;  %v7479_v26 = vld [vmem:[#allocation37_spill] sm:$0xff] }
 0x4fd   :  { %v3584_v63 = vpop.f32.mrf.mxu3  ;;  %v3319_v0 = vpop.f32.mrf.mxu0 }
 0x4fe   :  { %v3320_v27 = vadd.f32 %v6579_v61, %v3319_v0  ;;  %v6632_v8 = vadd.f32 %v3584_v63, %v3496_v24  ;;  %v7481_v0 = vld [vmem:[#allocation65_spill] sm:$0xff]  ;;  %v7482_v24 = vld [vmem:[#allocation66_spill] sm:$0xff] }
 0x4ff   :  { %v3408_v44 = vpop.f32.mrf.mxu1 }
 0x500   :  { %v3409_v49 = vadd.f32 %v3408_v44, %v3320_v27 }
 0x503   :  { %v3497_v7 = vpop.f32.mrf.mxu2 }
 0x504   :  { %v3498_v22 = vadd.f32 %v3497_v7, %v3409_v49 }
 0x505   :  { %v3586_v60 = vpop.f32.mrf.mxu3  ;;  %v3322_v56 = vpop.f32.mrf.mxu0 }
 0x506   :  { %v3323_v25 = vadd.f32 %v6579_v61, %v3322_v56  ;;  %v6635_v53 = vadd.f32 %v3586_v60, %v3498_v22 }
 0x507   :  { %v3411_v2 = vpop.f32.mrf.mxu1 }
 0x508   :  { %7478 = vst [vmem:[#allocation19_spill] sm:$0xff] %v6635_v53  ;;  %v3412_v9 = vadd.f32 %v3411_v2, %v3323_v25  ;;  %3361 = vmatmul.bf16.gmra.mxu0 %v7479_v26  ;;  %3539 = vmatmul.bf16.gmra.mxu2 %v7481_v0 }
 0x50a   :  { %3450 = vmatmul.bf16.gmra.mxu1 %v7480_v11  ;;  %3628 = vmatmul.bf16.gmra.mxu3 %v7482_v24 }
 0x50b   :  { %v3500_v63 = vpop.f32.mrf.mxu2 }
 0x50c   :  { %v3501_v27 = vadd.f32 %v3500_v63, %v3412_v9  ;;  %v7486_v9 = vld [vmem:[#allocation40_spill] sm:$0xff]  ;;  %v7487_v63 = vld [vmem:[#allocation67_spill] sm:$0xff] }
 0x50d   :  { %v3589_v44 = vpop.f32.mrf.mxu3  ;;  %v3324_v15 = vpop.f32.mrf.mxu0 }
 0x50e   :  { %v3325_v49 = vadd.f32 %v6579_v61, %v3324_v15  ;;  %v6642_v56 = vadd.f32 %v3589_v44, %v3501_v27  ;;  %v7488_v15 = vld [vmem:[#allocation68_spill] sm:$0xff] }
 0x50f   :  { %v3413_v7 = vpop.f32.mrf.mxu1 }
 0x510   :  { %7483 = vst [vmem:[#allocation20_spill] sm:$0xff] %v6642_v56  ;;  %v3414_v22 = vadd.f32 %v3413_v7, %v3325_v49  ;;  %v7491_v56 = vld [vmem:[#allocation41_spill] sm:$0xff] }
 0x513   :  { %v3502_v60 = vpop.f32.mrf.mxu2 }
 0x514   :  { %v3503_v25 = vadd.f32 %v3502_v60, %v3414_v22 }
 0x515   :  { %v3591_v2 = vpop.f32.mrf.mxu3  ;;  %v3327_v26 = vpop.f32.mrf.mxu0 }
 0x516   :  { %v3328_v11 = vadd.f32 %v6579_v61, %v3327_v26  ;;  %v6645_v0 = vadd.f32 %v3591_v2, %v3503_v25 }
 0x517   :  { %v3416_v53 = vpop.f32.mrf.mxu1 }
 0x518   :  { %7484 = vst [vmem:[#allocation47_spill] sm:$0xff] %v6645_v0  ;;  %v3417_v24 = vadd.f32 %v3416_v53, %v3328_v11  ;;  %3366 = vmatmul.bf16.gmra.mxu0 %v7485_v57  ;;  %3544 = vmatmul.bf16.gmra.mxu2 %v7487_v63 }
 0x51a   :  { %3455 = vmatmul.bf16.gmra.mxu1 %v7486_v9  ;;  %3633 = vmatmul.bf16.gmra.mxu3 %v7488_v15 }
 0x51b   :  { %v3505_v27 = vpop.f32.mrf.mxu2 }
 0x51c   :  { %v3506_v44 = vadd.f32 %v3505_v27, %v3417_v24  ;;  %v7492_v24 = vld [vmem:[#allocation42_spill] sm:$0xff]  ;;  %v7493_v27 = vld [vmem:[#allocation69_spill] sm:$0xff] }
 0x51d   :  { %v3594_v49 = vpop.f32.mrf.mxu3  ;;  %v3329_v7 = vpop.f32.mrf.mxu0 }
 0x51e   :  { %v3330_v22 = vadd.f32 %v6579_v61, %v3329_v7  ;;  %v6652_v26 = vadd.f32 %v3594_v49, %v3506_v44  ;;  %v7494_v7 = vld [vmem:[#allocation70_spill] sm:$0xff] }
 0x51f   :  { %v3418_v60 = vpop.f32.mrf.mxu1 }
 0x520   :  { %7489 = vst [vmem:[#allocation48_spill] sm:$0xff] %v6652_v26  ;;  %v3419_v25 = vadd.f32 %v3418_v60, %v3330_v22  ;;  %v7495_v26 = vld [vmem:[#allocation71_spill] sm:$0xff] }
 0x523   :  { %v3507_v2 = vpop.f32.mrf.mxu2 }
 0x524   :  { %v3508_v53 = vadd.f32 %v3507_v2, %v3419_v25 }
 0x525   :  { %v3596_v11 = vpop.f32.mrf.mxu3  ;;  %v3332_v57 = vpop.f32.mrf.mxu0 }
 0x526   :  { %v3333_v9 = vadd.f32 %v6579_v61, %v3332_v57  ;;  %v6655_v63 = vadd.f32 %v3596_v11, %v3508_v53 }
 0x527   :  { %v3421_v0 = vpop.f32.mrf.mxu1 }
 0x528   :  { %7490 = vst [vmem:[#allocation21_spill] sm:$0xff] %v6655_v63  ;;  %v3422_v15 = vadd.f32 %v3421_v0, %v3333_v9  ;;  %3371 = vmatmul.bf16.gmra.mxu0 %v7491_v56  ;;  %3549 = vmatmul.bf16.gmra.mxu2 %v7493_v27 }
 0x52a   :  { %3460 = vmatmul.bf16.gmra.mxu1 %v7492_v24  ;;  %3638 = vmatmul.bf16.gmra.mxu3 %v7494_v7 }
 0x52b   :  { %v3510_v44 = vpop.f32.mrf.mxu2 }
 0x52c   :  { %v3511_v49 = vadd.f32 %v3510_v44, %v3422_v15  ;;  %v7496_v15 = vld [vmem:[#allocation72_spill] sm:$0xff] }
 0x52d   :  { %v3599_v22 = vpop.f32.mrf.mxu3  ;;  %v3334_v60 = vpop.f32.mrf.mxu0 }
 0x52e   :  { %v3335_v25 = vadd.f32 %v6579_v61, %v3334_v60  ;;  %v6662_v57 = vadd.f32 %v3599_v22, %v3511_v49 }
 0x52f   :  { %v3423_v2 = vpop.f32.mrf.mxu1 }
 0x530   :  { %v3424_v53 = vadd.f32 %v3423_v2, %v3335_v25 }
 0x533   :  { %v3512_v11 = vpop.f32.mrf.mxu2 }
 0x534   :  { %v3513_v0 = vadd.f32 %v3512_v11, %v3424_v53 }
 0x535   :  { %v3601_v9 = vpop.f32.mrf.mxu3  ;;  %v3337_v56 = vpop.f32.mrf.mxu0 }
 0x536   :  { %v3338_v24 = vadd.f32 %v6579_v61, %v3337_v56  ;;  %v6665_v27 = vadd.f32 %v3601_v9, %v3513_v0 }
 0x537   :  { %v3426_v63 = vpop.f32.mrf.mxu1 }
 0x538   :  { %v3427_v7 = vadd.f32 %v3426_v63, %v3338_v24  ;;  %3652 = vmatmul.bf16.vlgmr.msrb.gmra.mxu0 %v7495_v26  ;;  %3830 = vmatmul.bf16.vlgmr.msrb.gmra.mxu2 %v6396_v35 }
 0x53a   :  { %3741 = vmatmul.bf16.vlgmr.msrb.gmra.mxu1 %v7496_v15  ;;  %3919 = vmatmul.bf16.vlgmr.msrb.gmra.mxu3 %v6404_v30  ;;  %v7497_v15 = vld [vmem:[#allocation73_spill] sm:$0xff] }
 0x53b   :  { %v3515_v44 = vpop.f32.mrf.mxu2 }
 0x53c   :  { %v3516_v49 = vadd.f32 %v3515_v44, %v3427_v7  ;;  %v7498_v7 = vld [vmem:[#allocation74_spill] sm:$0xff] }
 0x53d   :  { %v3604_v22 = vpop.f32.mrf.mxu3  ;;  %v3339_v60 = vpop.f32.mrf.mxu0 }
 0x53e   :  { %v3340_v25 = vadd.f32 %v6579_v61, %v3339_v60  ;;  %v6672_v53 = vadd.f32 %v3604_v22, %v3516_v49 }
 0x53f   :  { %v3428_v2 = vpop.f32.mrf.mxu1 }
 0x540   :  { %v3429_v11 = vadd.f32 %v3428_v2, %v3340_v25 }
 0x543   :  { %v3517_v0 = vpop.f32.mrf.mxu2 }
 0x544   :  { %v3518_v63 = vadd.f32 %v3517_v0, %v3429_v11 }
 0x545   :  { %v3606_v9 = vpop.f32.mrf.mxu3  ;;  %v3342_v26 = vpop.f32.mrf.mxu0 }
 0x546   :  { %v3343_v56 = vadd.f32 %v6579_v61, %v3342_v26  ;;  %v6675_v35 = vadd.f32 %v3606_v9, %v3518_v63 }
 0x547   :  { %v3431_v24 = vpop.f32.mrf.mxu1 }
 0x548   :  { %v3432_v30 = vadd.f32 %v3431_v24, %v3343_v56  ;;  %3657 = vmatmul.bf16.gmra.mxu0 %v7497_v15  ;;  %3835 = vmatmul.bf16.gmra.mxu2 %v6408_v46 }
 0x54a   :  { %3746 = vmatmul.bf16.gmra.mxu1 %v7498_v7  ;;  %3924 = vmatmul.bf16.gmra.mxu3 %v6416_v20  ;;  %v7499_v7 = vld [vmem:[#allocation75_spill] sm:$0xff] }
 0x54b   :  { %v3520_v44 = vpop.f32.mrf.mxu2 }
 0x54c   :  { %v3521_v49 = vadd.f32 %v3520_v44, %v3432_v30  ;;  %v7500_v30 = vld [vmem:[#allocation76_spill] sm:$0xff] }
 0x54d   :  { %v3609_v22 = vpop.f32.mrf.mxu3  ;;  %v3344_v60 = vpop.f32.mrf.mxu0 }
 0x54e   :  { %v3345_v25 = vadd.f32 %v6579_v61, %v3344_v60  ;;  %v6682_v11 = vadd.f32 %v3609_v22, %v3521_v49 }
 0x54f   :  { %v3433_v2 = vpop.f32.mrf.mxu1 }
 0x550   :  { %v3434_v0 = vadd.f32 %v3433_v2, %v3345_v25 }
 0x553   :  { %v3522_v63 = vpop.f32.mrf.mxu2 }
 0x554   :  { %v3523_v9 = vadd.f32 %v3522_v63, %v3434_v0 }
 0x555   :  { %v3611_v26 = vpop.f32.mrf.mxu3  ;;  %v3347_v56 = vpop.f32.mrf.mxu0 }
 0x556   :  { %v3348_v24 = vadd.f32 %v6579_v61, %v3347_v56  ;;  %v6685_v46 = vadd.f32 %v3611_v26, %v3523_v9 }
 0x557   :  { %v3436_v15 = vpop.f32.mrf.mxu1 }
 0x558   :  { %v3437_v20 = vadd.f32 %v3436_v15, %v3348_v24  ;;  %3662 = vmatmul.bf16.gmra.mxu0 %v7499_v7  ;;  %3840 = vmatmul.bf16.gmra.mxu2 %v6420_v31 }
 0x55a   :  { %3751 = vmatmul.bf16.gmra.mxu1 %v7500_v30  ;;  %3929 = vmatmul.bf16.gmra.mxu3 %v6428_v59  ;;  %v7501_v30 = vld [vmem:[#allocation77_spill] sm:$0xff] }
 0x55b   :  { %v3525_v44 = vpop.f32.mrf.mxu2 }
 0x55c   :  { %v3526_v49 = vadd.f32 %v3525_v44, %v3437_v20  ;;  %v7502_v20 = vld [vmem:[#allocation78_spill] sm:$0xff] }
 0x55d   :  { %v3614_v22 = vpop.f32.mrf.mxu3  ;;  %v3349_v60 = vpop.f32.mrf.mxu0 }
 0x55e   :  { %v3350_v25 = vadd.f32 %v6579_v61, %v3349_v60  ;;  %v6692_v0 = vadd.f32 %v3614_v22, %v3526_v49 }
 0x55f   :  { %v3438_v2 = vpop.f32.mrf.mxu1 }
 0x560   :  { %v3439_v63 = vadd.f32 %v3438_v2, %v3350_v25 }
 0x563   :  { %v3527_v9 = vpop.f32.mrf.mxu2 }
 0x564   :  { %v3528_v26 = vadd.f32 %v3527_v9, %v3439_v63 }
 0x565   :  { %v3616_v56 = vpop.f32.mrf.mxu3  ;;  %v3352_v24 = vpop.f32.mrf.mxu0 }
 0x566   :  { %v3353_v15 = vadd.f32 %v6579_v61, %v3352_v24  ;;  %v6695_v31 = vadd.f32 %v3616_v56, %v3528_v26 }
 0x567   :  { %v3441_v7 = vpop.f32.mrf.mxu1 }
 0x568   :  { %v3442_v59 = vadd.f32 %v3441_v7, %v3353_v15  ;;  %3667 = vmatmul.bf16.gmra.mxu0 %v7501_v30  ;;  %3845 = vmatmul.bf16.gmra.mxu2 %v6432_v37 }
 0x56a   :  { %3756 = vmatmul.bf16.gmra.mxu1 %v7502_v20  ;;  %3934 = vmatmul.bf16.gmra.mxu3 %v6440_v19 }
 0x56b   :  { %v3530_v44 = vpop.f32.mrf.mxu2 }
 0x56c   :  { %v3531_v49 = vadd.f32 %v3530_v44, %v3442_v59  ;;  %v7503_v59 = vld [vmem:[#allocation79_spill] sm:$0xff] }
 0x56d   :  { %v3619_v22 = vpop.f32.mrf.mxu3  ;;  %v3354_v60 = vpop.f32.mrf.mxu0 }
 0x56e   :  { %v3355_v25 = vadd.f32 %v6579_v61, %v3354_v60  ;;  %v6702_v63 = vadd.f32 %v3619_v22, %v3531_v49 }
 0x56f   :  { %v3443_v2 = vpop.f32.mrf.mxu1 }
 0x570   :  { %v3444_v9 = vadd.f32 %v3443_v2, %v3355_v25 }
 0x573   :  { %v3532_v26 = vpop.f32.mrf.mxu2 }
 0x574   :  { %v3533_v56 = vadd.f32 %v3532_v26, %v3444_v9 }
 0x575   :  { %v3621_v24 = vpop.f32.mrf.mxu3  ;;  %v3357_v15 = vpop.f32.mrf.mxu0 }
 0x576   :  { %v3358_v7 = vadd.f32 %v6579_v61, %v3357_v15  ;;  %v6705_v37 = vadd.f32 %v3621_v24, %v3533_v56 }
 0x577   :  { %v3446_v30 = vpop.f32.mrf.mxu1 }
 0x578   :  { %v3447_v19 = vadd.f32 %v3446_v30, %v3358_v7  ;;  %3672 = vmatmul.bf16.gmra.mxu0 %v6247_v34  ;;  %3850 = vmatmul.bf16.gmra.mxu2 %v6444_v6  ;;  %v7504_v30 = vld [vmem:[#allocation80_spill] sm:$0xff] }
 0x57a   :  { %3761 = vmatmul.bf16.gmra.mxu1 %v7503_v59  ;;  %3939 = vmatmul.bf16.gmra.mxu3 %v6452_v17 }
 0x57b   :  { %v3535_v20 = vpop.f32.mrf.mxu2 }
 0x57c   :  { %v3536_v44 = vadd.f32 %v3535_v20, %v3447_v19  ;;  %v7505_v19 = vld [vmem:[#allocation81_spill] sm:$0xff] }
 0x57d   :  { %v3624_v49 = vpop.f32.mrf.mxu3  ;;  %v3359_v22 = vpop.f32.mrf.mxu0 }
 0x57e   :  { %v3360_v60 = vadd.f32 %v6579_v61, %v3359_v22  ;;  %v6712_v2 = vadd.f32 %v3624_v49, %v3536_v44 }
 0x57f   :  { %v3448_v25 = vpop.f32.mrf.mxu1 }
 0x580   :  { %v3449_v9 = vadd.f32 %v3448_v25, %v3360_v60 }
 0x583   :  { %v3537_v26 = vpop.f32.mrf.mxu2 }
 0x584   :  { %v3538_v56 = vadd.f32 %v3537_v26, %v3449_v9 }
 0x585   :  { %v3626_v24 = vpop.f32.mrf.mxu3  ;;  %v3362_v34 = vpop.f32.mrf.mxu0 }
 0x586   :  { %v3363_v15 = vadd.f32 %v6579_v61, %v3362_v34  ;;  %v6715_v6 = vadd.f32 %v3626_v24, %v3538_v56 }
 0x587   :  { %v3451_v7 = vpop.f32.mrf.mxu1 }
 0x588   :  { %v3452_v17 = vadd.f32 %v3451_v7, %v3363_v15  ;;  %3677 = vmatmul.bf16.gmra.mxu0 %v7504_v30  ;;  %3855 = vmatmul.bf16.gmra.mxu2 %v6456_v52  ;;  %v7506_v30 = vld [vmem:[#allocation82_spill] sm:$0xff] }
 0x58a   :  { %3766 = vmatmul.bf16.gmra.mxu1 %v7505_v19  ;;  %3944 = vmatmul.bf16.gmra.mxu3 %v6464_v33 }
 0x58b   :  { %v3540_v59 = vpop.f32.mrf.mxu2 }
 0x58c   :  { %v3541_v20 = vadd.f32 %v3540_v59, %v3452_v17  ;;  %v7507_v17 = vld [vmem:[#allocation83_spill] sm:$0xff] }
 0x58d   :  { %v3629_v44 = vpop.f32.mrf.mxu3  ;;  %v3364_v49 = vpop.f32.mrf.mxu0 }
 0x58e   :  { %v3365_v22 = vadd.f32 %v6579_v61, %v3364_v49  ;;  %v6722_v25 = vadd.f32 %v3629_v44, %v3541_v20 }
 0x58f   :  { %v3453_v60 = vpop.f32.mrf.mxu1 }
 0x590   :  { %v3454_v9 = vadd.f32 %v3453_v60, %v3365_v22 }
 0x593   :  { %v3542_v26 = vpop.f32.mrf.mxu2 }
 0x594   :  { %v3543_v56 = vadd.f32 %v3542_v26, %v3454_v9 }
 0x595   :  { %v3631_v24 = vpop.f32.mrf.mxu3  ;;  %v3367_v34 = vpop.f32.mrf.mxu0 }
 0x596   :  { %v3368_v15 = vadd.f32 %v6579_v61, %v3367_v34  ;;  %v6725_v52 = vadd.f32 %v3631_v24, %v3543_v56 }
 0x597   :  { %v3456_v7 = vpop.f32.mrf.mxu1 }
 0x598   :  { %v3457_v33 = vadd.f32 %v3456_v7, %v3368_v15  ;;  %3682 = vmatmul.bf16.gmra.mxu0 %v7506_v30  ;;  %3860 = vmatmul.bf16.gmra.mxu2 %v6468_v14 }
 0x59a   :  { %3771 = vmatmul.bf16.gmra.mxu1 %v7507_v17  ;;  %3949 = vmatmul.bf16.gmra.mxu3 %v6476_v48 }
 0x59b   :  { %v3545_v19 = vpop.f32.mrf.mxu2 }
 0x59c   :  { %v3546_v59 = vadd.f32 %v3545_v19, %v3457_v33 }
 0x59d   :  { %v3634_v20 = vpop.f32.mrf.mxu3  ;;  %v3369_v44 = vpop.f32.mrf.mxu0 }
 0x59e   :  { %v3370_v49 = vadd.f32 %v6579_v61, %v3369_v44  ;;  %v6732_v60 = vadd.f32 %v3634_v20, %v3546_v59 }
 0x59f   :  { %v3458_v22 = vpop.f32.mrf.mxu1 }
 0x5a0   :  { %v3459_v9 = vadd.f32 %v3458_v22, %v3370_v49 }
 0x5a3   :  { %v3547_v26 = vpop.f32.mrf.mxu2 }
 0x5a4   :  { %v3548_v56 = vadd.f32 %v3547_v26, %v3459_v9 }
 0x5a5   :  { %v3636_v24 = vpop.f32.mrf.mxu3  ;;  %v3372_v34 = vpop.f32.mrf.mxu0 }
 0x5a6   :  { %v3373_v15 = vadd.f32 %v6579_v61, %v3372_v34  ;;  %v6735_v14 = vadd.f32 %v3636_v24, %v3548_v56 }
 0x5a7   :  { %v3461_v7 = vpop.f32.mrf.mxu1 }
 0x5a8   :  { %v3462_v48 = vadd.f32 %v3461_v7, %v3373_v15  ;;  %3687 = vmatmul.bf16.gmra.mxu0 %v6283_v51  ;;  %3865 = vmatmul.bf16.gmra.mxu2 %v6480_v16 }
 0x5aa   :  { %3776 = vmatmul.bf16.gmra.mxu1 %v6291_v54  ;;  %3954 = vmatmul.bf16.gmra.mxu3 %v6488_v47  ;;  %v4000_v54 = vlaneseq }
 0x5ab   :  { %v3550_v33 = vpop.f32.mrf.mxu2 }
 0x5ac   :  { %v3551_v30 = vadd.f32 %v3550_v33, %v3462_v48  ;;  %v6751_v47 = vand.u32 127, %v4000_v54 }
 0x5ad   :  { %v3639_v17 = vpop.f32.mrf.mxu3  ;;  %v3374_v19 = vpop.f32.mrf.mxu0 }
 0x5ae   :  { %v3375_v59 = vadd.f32 %v6579_v61, %v3374_v19  ;;  %v6742_v44 = vadd.f32 %v3639_v17, %v3551_v30  ;;  %vm4002_vm0 = vcmp.lt.s32.totalorder %v6751_v47, 8 }
 0x5af   :  { %v3463_v20 = vpop.f32.mrf.mxu1 }
 0x5b0   :  { %v3464_v49 = vadd.f32 %v3463_v20, %v3375_v59 }
 0x5b3   :  { %v3552_v22 = vpop.f32.mrf.mxu2 }
 0x5b4   :  { %v3553_v9 = vadd.f32 %v3552_v22, %v3464_v49 }
 0x5b5   :  { %v3641_v26 = vpop.f32.mrf.mxu3  ;;  %v3653_v51 = vpop.f32.mrf.mxu0 }
 0x5b6   :  { %v6744_v24 = vadd.f32 %v3641_v26, %v3553_v9  ;;  %v3654_v16 = vadd.f32 %v3653_v51, %v6592_v45 }
 0x5b7   :  { %v3742_v56 = vpop.f32.mrf.mxu1 }
 0x5b8   :  { %3692 = vmatmul.bf16.gmra.mxu0 %v6295_v21  ;;  %3870 = vmatmul.bf16.gmra.mxu2 %v6492_v40  ;;  %v3743_v61 = vadd.f32 %v3742_v56, %v3654_v16 }
 0x5ba   :  { %3781 = vmatmul.bf16.gmra.mxu1 %v6303_v18  ;;  %3959 = vmatmul.bf16.gmra.mxu3 %v6500_v38 }
 0x5bb   :  { %v3831_v34 = vpop.f32.mrf.mxu2 }
 0x5bc   :  { %v3832_v15 = vadd.f32 %v3831_v34, %v3743_v61 }
 0x5bd   :  { %v3920_v7 = vpop.f32.mrf.mxu3  ;;  %v3655_v48 = vpop.f32.mrf.mxu0 }
 0x5be   :  { %v6754_v30 = vadd.f32 %v3920_v7, %v3832_v15  ;;  %v3656_v21 = vadd.f32 %v3655_v48, %v6595_v50 }
 0x5bf   :  { %v3744_v33 = vpop.f32.mrf.mxu1 }
 0x5c0   :  { %v6760_v18 = vsel %vm4002_vm0, %v6754_v30, -inf  ;;  %v3745_v40 = vadd.f32 %v3744_v33, %v3656_v21 }
 0x5c1   :  { %4035 = vmax.xlane.f32.xlu0 %v6760_v18 }
 0x5c3   :  { %v3833_v38 = vpop.f32.mrf.mxu2 }
 0x5c4   :  { %v3834_v45 = vadd.f32 %v3833_v38, %v3745_v40 }
 0x5c5   :  { %v3922_v17 = vpop.f32.mrf.mxu3  ;;  %v3658_v19 = vpop.f32.mrf.mxu0 }
 0x5c6   :  { %v6763_v20 = vadd.f32 %v3922_v17, %v3834_v45  ;;  %v3659_v49 = vadd.f32 %v3658_v19, %v6602_v10 }
 0x5c7   :  { %v3747_v59 = vpop.f32.mrf.mxu1 }
 0x5c8   :  { %3697 = vmatmul.bf16.gmra.mxu0 %v6307_v62  ;;  %3875 = vmatmul.bf16.gmra.mxu2 %v6504_v12  ;;  %v6772_v50 = vsel %vm4002_vm0, %v6763_v20, -inf  ;;  %v3748_v22 = vadd.f32 %v3747_v59, %v3659_v49 }
 0x5c9   :  { %4037 = vmax.xlane.f32.xlu0 %v6772_v50 }
 0x5ca   :  { %3786 = vmatmul.bf16.gmra.mxu1 %v6315_v1  ;;  %3964 = vmatmul.bf16.gmra.mxu3 %v6512_v5 }
 0x5cb   :  { %v3836_v9 = vpop.f32.mrf.mxu2 }
 0x5cc   :  { %v3837_v26 = vadd.f32 %v3836_v9, %v3748_v22 }
 0x5cd   :  { %v3925_v51 = vpop.f32.mrf.mxu3  ;;  %v3660_v10 = vpop.f32.mrf.mxu0 }
 0x5ce   :  { %v6776_v62 = vadd.f32 %v3925_v51, %v3837_v26  ;;  %v3661_v1 = vadd.f32 %v3660_v10, %v6605_v32 }
 0x5cf   :  { %v3749_v56 = vpop.f32.mrf.mxu1 }
 0x5d0   :  { %v6782_v12 = vsel %vm4002_vm0, %v6776_v62, -inf  ;;  %v3750_v5 = vadd.f32 %v3749_v56, %v3661_v1 }
 0x5d1   :  { %4039 = vmax.xlane.f32.xlu1 %v6782_v12 }
 0x5d3   :  { %v3838_v54 = vpop.f32.mrf.mxu2 }
 0x5d4   :  { %v3839_v16 = vadd.f32 %v3838_v54, %v3750_v5 }
 0x5d5   :  { %v3927_v61 = vpop.f32.mrf.mxu3  ;;  %v3663_v34 = vpop.f32.mrf.mxu0 }
 0x5d6   :  { %v6785_v7 = vadd.f32 %v3927_v61, %v3839_v16  ;;  %v3664_v48 = vadd.f32 %v3663_v34, %v6612_v55 }
 0x5d7   :  { %v3752_v15 = vpop.f32.mrf.mxu1 }
 0x5d8   :  { %3702 = vmatmul.bf16.gmra.mxu0 %v6319_v41  ;;  %3880 = vmatmul.bf16.gmra.mxu2 %v6516_v13  ;;  %v6794_v32 = vsel %vm4002_vm0, %v6785_v7, -inf  ;;  %v3753_v33 = vadd.f32 %v3752_v15, %v3664_v48 }
 0x5d9   :  { %4041 = vmax.xlane.f32.xlu1 %v6794_v32 }
 0x5da   :  { %3791 = vmatmul.bf16.gmra.mxu1 %v6327_v39  ;;  %3969 = vmatmul.bf16.gmra.mxu3 %v6524_v58 }
 0x5db   :  { %v3841_v21 = vpop.f32.mrf.mxu2 }
 0x5dc   :  { %v3842_v40 = vadd.f32 %v3841_v21, %v3753_v33  ;;  %v7509_v21 = vld [vmem:[#allocation15_spill] sm:$0xff] }
 0x5dd   :  { %v3930_v38 = vpop.f32.mrf.mxu3  ;;  %v3665_v55 = vpop.f32.mrf.mxu0 }
 0x5de   :  { %v6798_v41 = vadd.f32 %v3930_v38, %v3842_v40  ;;  %v3666_v39 = vadd.f32 %v3665_v55, %v6615_v28  ;;  %v7510_v38 = vld [vmem:[#allocation16_spill] sm:$0xff] }
 0x5df   :  { %v3754_v45 = vpop.f32.mrf.mxu1 }
 0x5e0   :  { %v6804_v13 = vsel %vm4002_vm0, %v6798_v41, -inf  ;;  %v3755_v58 = vadd.f32 %v3754_v45, %v3666_v39 }
 0x5e1   :  { %4043 = vmax.xlane.f32.xlu2 %v6804_v13 }
 0x5e3   :  { %v3843_v17 = vpop.f32.mrf.mxu2 }
 0x5e4   :  { %v3844_v19 = vadd.f32 %v3843_v17, %v3755_v58 }
 0x5e5   :  { %v3932_v59 = vpop.f32.mrf.mxu3  ;;  %v3668_v49 = vpop.f32.mrf.mxu0 }
 0x5e6   :  { %v6807_v9 = vadd.f32 %v3932_v59, %v3844_v19  ;;  %v3669_v26 = vadd.f32 %v3668_v49, %v6622_v4  ;;  %v7511_v19 = vld [vmem:[#allocation19_spill] sm:$0xff] }
 0x5e7   :  { %v3757_v22 = vpop.f32.mrf.mxu1 }
 0x5e8   :  { %3707 = vmatmul.bf16.gmra.mxu0 %v6331_v43  ;;  %3885 = vmatmul.bf16.gmra.mxu2 %v6528_v29  ;;  %v6816_v28 = vsel %vm4002_vm0, %v6807_v9, -inf  ;;  %v3758_v51 = vadd.f32 %v3757_v22, %v3669_v26 }
 0x5e9   :  { %4045 = vmax.xlane.f32.xlu2 %v6816_v28 }
 0x5ea   :  { %3796 = vmatmul.bf16.gmra.mxu1 %v6339_v3  ;;  %3974 = vmatmul.bf16.gmra.mxu3 %v6536_v42 }
 0x5eb   :  { %v3846_v10 = vpop.f32.mrf.mxu2 }
 0x5ec   :  { %v3847_v56 = vadd.f32 %v3846_v10, %v3758_v51 }
 0x5ed   :  { %v3935_v1 = vpop.f32.mrf.mxu3  ;;  %v3670_v4 = vpop.f32.mrf.mxu0 }
 0x5ee   :  { %v6820_v43 = vadd.f32 %v3935_v1, %v3847_v56  ;;  %v3671_v3 = vadd.f32 %v3670_v4, %v6625_v23  ;;  %v7508_v23 = vld [vmem:[#allocation84_spill] sm:$0xff] }
 0x5ef   :  { %v3759_v5 = vpop.f32.mrf.mxu1 }
 0x5f0   :  { %v6826_v29 = vsel %vm4002_vm0, %v6820_v43, -inf  ;;  %v3760_v42 = vadd.f32 %v3759_v5, %v3671_v3  ;;  %v7512_v5 = vld [vmem:[#allocation20_spill] sm:$0xff] }
 0x5f1   :  { %4047 = vmax.xlane.f32.xlu0 %v6826_v29 }
 0x5f3   :  { %v3848_v54 = vpop.f32.mrf.mxu2 }
 0x5f4   :  { %v3849_v16 = vadd.f32 %v3848_v54, %v3760_v42  ;;  %v7513_v42 = vld [vmem:[#allocation85_spill] sm:$0xff]  ;;  %v7514_v54 = vld [vmem:[#allocation86_spill] sm:$0xff] }
 0x5f5   :  { %v3937_v61 = vpop.f32.mrf.mxu3  ;;  %v3673_v34 = vpop.f32.mrf.mxu0 }
 0x5f6   :  { %v6829_v48 = vadd.f32 %v3937_v61, %v3849_v16  ;;  %v3674_v33 = vadd.f32 %v3673_v34, %v6632_v8  ;;  %v7515_v16 = vld [vmem:[#allocation43_spill] sm:$0xff]  ;;  %v7516_v34 = vld [vmem:[#allocation44_spill] sm:$0xff] }
 0x5f7   :  { %v3762_v15 = vpop.f32.mrf.mxu1 }
 0x5f8   :  { %3712 = vmatmul.bf16.gmra.mxu0 %v6343_v36  ;;  %3890 = vmatmul.bf16.gmra.mxu2 %v7509_v21  ;;  %v6838_v40 = vsel %vm4002_vm0, %v6829_v48, -inf  ;;  %v3763_v55 = vadd.f32 %v3762_v15, %v3674_v33 }
 0x5f9   :  { %4049 = vmax.xlane.f32.xlu1 %v6838_v40 }
 0x5fa   :  { %3801 = vmatmul.bf16.gmra.mxu1 %v7508_v23  ;;  %3979 = vmatmul.bf16.gmra.mxu3 %v7510_v38 }
 0x5fb   :  { %v3851_v45 = vpop.f32.mrf.mxu2 }
 0x5fc   :  { %v3852_v39 = vadd.f32 %v3851_v45, %v3763_v55 }
 0x5fd   :  { %v3940_v58 = vpop.f32.mrf.mxu3  ;;  %v3675_v8 = vpop.f32.mrf.mxu0 }
 0x5fe   :  { %v6842_v36 = vadd.f32 %v3940_v58, %v3852_v39  ;;  %v3676_v59 = vadd.f32 %v3675_v8, %v7511_v19  ;;  %v7517_v39 = vld [vmem:[#allocation47_spill] sm:$0xff] }
 0x5ff   :  { %v3764_v17 = vpop.f32.mrf.mxu1 }
 0x600   :  { %v6848_v49 = vsel %vm4002_vm0, %v6842_v36, -inf  ;;  %v3765_v22 = vadd.f32 %v3764_v17, %v3676_v59 }
 0x601   :  { %4051 = vmax.xlane.f32.xlu2 %v6848_v49 }
 0x603   :  { %v3853_v26 = vpop.f32.mrf.mxu2 }
 0x604   :  { %v3854_v51 = vadd.f32 %v3853_v26, %v3765_v22 }
 0x605   :  { %v3942_v10 = vpop.f32.mrf.mxu3  ;;  %v3678_v56 = vpop.f32.mrf.mxu0 }
 0x606   :  { %v6851_v4 = vadd.f32 %v3942_v10, %v3854_v51  ;;  %v3679_v3 = vadd.f32 %v3678_v56, %v7512_v5  ;;  %v7519_v56 = vld [vmem:[#allocation48_spill] sm:$0xff]  ;;  %v7520_v5 = vld [vmem:[#allocation87_spill] sm:$0xff] }
 0x607   :  { %v3767_v1 = vpop.f32.mrf.mxu1 }
 0x608   :  { %3717 = vmatmul.bf16.gmra.mxu0 %v7513_v42  ;;  %3895 = vmatmul.bf16.gmra.mxu2 %v7515_v16  ;;  %v6860_v61 = vsel %vm4002_vm0, %v6851_v4, -inf  ;;  %v3768_v15 = vadd.f32 %v3767_v1, %v3679_v3  ;;  %v7521_v3 = vld [vmem:[#allocation88_spill] sm:$0xff]  ;;  %v7522_v42 = vld [vmem:[#allocation17_spill] sm:$0xff]  ;;  %v7523_v16 = vld [vmem:[#allocation18_spill] sm:$0xff] }
 0x609   :  { %4053 = vmax.xlane.f32.xlu0 %v6860_v61 }
 0x60a   :  { %3806 = vmatmul.bf16.gmra.mxu1 %v7514_v54  ;;  %3984 = vmatmul.bf16.gmra.mxu3 %v7516_v34 }
 0x60b   :  { %v3856_v33 = vpop.f32.mrf.mxu2 }
 0x60c   :  { %v3857_v23 = vadd.f32 %v3856_v33, %v3768_v15 }
 0x60d   :  { %v3945_v21 = vpop.f32.mrf.mxu3  ;;  %v3680_v38 = vpop.f32.mrf.mxu0 }
 0x60e   :  { %v6864_v45 = vadd.f32 %v3945_v21, %v3857_v23  ;;  %v3681_v58 = vadd.f32 %v3680_v38, %v7517_v39  ;;  %v7524_v39 = vld [vmem:[#allocation21_spill] sm:$0xff] }
 0x60f   :  { %v3769_v55 = vpop.f32.mrf.mxu1 }
 0x610   :  { %v6870_v8 = vsel %vm4002_vm0, %v6864_v45, -inf  ;;  %v3770_v17 = vadd.f32 %v3769_v55, %v3681_v58 }
 0x611   :  { %4055 = vmax.xlane.f32.xlu1 %v6870_v8 }
 0x613   :  { %v3858_v19 = vpop.f32.mrf.mxu2 }
 0x614   :  { %v3859_v59 = vadd.f32 %v3858_v19, %v3770_v17 }
 0x615   :  { %v3947_v22 = vpop.f32.mrf.mxu3  ;;  %v3683_v26 = vpop.f32.mrf.mxu0 }
 0x616   :  { %v6873_v10 = vadd.f32 %v3947_v22, %v3859_v59  ;;  %v3684_v1 = vadd.f32 %v3683_v26, %v7519_v56 }
 0x617   :  { %v3772_v51 = vpop.f32.mrf.mxu1 }
 0x618   :  { %7518 = vst [vmem:[#allocation22_spill] sm:$0xff] %v6873_v10  ;;  %3722 = vmatmul.bf16.gmra.mxu0 %v7520_v5  ;;  %3900 = vmatmul.bf16.gmra.mxu2 %v7522_v42  ;;  %v6882_v54 = vsel %vm4002_vm0, %v6873_v10, -inf  ;;  %v3773_v34 = vadd.f32 %v3772_v51, %v3684_v1  ;;  %v7526_v42 = vld [vmem:[#allocation90_spill] sm:$0xff] }
 0x619   :  { %4057 = vmax.xlane.f32.xlu2 %v6882_v54 }
 0x61a   :  { %3811 = vmatmul.bf16.gmra.mxu1 %v7521_v3  ;;  %3989 = vmatmul.bf16.gmra.mxu3 %v7523_v16  ;;  %v7525_v3 = vld [vmem:[#allocation89_spill] sm:$0xff] }
 0x61b   :  { %v3861_v15 = vpop.f32.mrf.mxu2  ;;  %v7527_v16 = vld [vmem:[#allocation45_spill] sm:$0xff] }
 0x61c   :  { %v3862_v33 = vadd.f32 %v3861_v15, %v3773_v34  ;;  %v7528_v15 = vld [vmem:[#allocation46_spill] sm:$0xff] }
 0x61d   :  { %v3950_v23 = vpop.f32.mrf.mxu3  ;;  %v3685_v21 = vpop.f32.mrf.mxu0 }
 0x61e   :  { %v6886_v55 = vadd.f32 %v3950_v23, %v3862_v33  ;;  %v3686_v58 = vadd.f32 %v3685_v21, %v7524_v39 }
 0x61f   :  { %v3774_v38 = vpop.f32.mrf.mxu1 }
 0x620   :  { %v6892_v17 = vsel %vm4002_vm0, %v6886_v55, -inf  ;;  %v3775_v19 = vadd.f32 %v3774_v38, %v3686_v58 }
 0x621   :  { %4059 = vmax.xlane.f32.xlu0 %v6892_v17 }
 0x623   :  { %v3863_v59 = vpop.f32.mrf.mxu2 }
 0x624   :  { %v3864_v22 = vadd.f32 %v3863_v59, %v3775_v19 }
 0x625   :  { %v3952_v26 = vpop.f32.mrf.mxu3  ;;  %v3688_v51 = vpop.f32.mrf.mxu0 }
 0x626   :  { %v6895_v1 = vadd.f32 %v3952_v26, %v3864_v22  ;;  %v3689_v5 = vadd.f32 %v3688_v51, %v6662_v57 }
 0x627   :  { %v3777_v56 = vpop.f32.mrf.mxu1 }
 0x628   :  { %3727 = vmatmul.bf16.gmra.mxu0 %v7525_v3  ;;  %3905 = vmatmul.bf16.gmra.mxu2 %v7527_v16  ;;  %v6904_v34 = vsel %vm4002_vm0, %v6895_v1, -inf  ;;  %v3778_v33 = vadd.f32 %v3777_v56, %v3689_v5 }
 0x629   :  { %4061 = vmax.xlane.f32.xlu1 %v6904_v34 }
 0x62a   :  { %3816 = vmatmul.bf16.gmra.mxu1 %v7526_v42  ;;  %3994 = vmatmul.bf16.gmra.mxu3 %v7528_v15 }
 0x62b   :  { %v3866_v23 = vpop.f32.mrf.mxu2 }
 0x62c   :  { %v3867_v21 = vadd.f32 %v3866_v23, %v3778_v33 }
 0x62d   :  { %v3955_v38 = vpop.f32.mrf.mxu3  ;;  %v3690_v57 = vpop.f32.mrf.mxu0 }
 0x62e   :  { %v6908_v58 = vadd.f32 %v3955_v38, %v3867_v21  ;;  %v3691_v19 = vadd.f32 %v3690_v57, %v6665_v27 }
 0x62f   :  { %v3779_v39 = vpop.f32.mrf.mxu1 }
 0x630   :  { %7529 = vst [vmem:[#allocation49_spill] sm:$0xff] %v6908_v58  ;;  %v6914_v59 = vsel %vm4002_vm0, %v6908_v58, -inf  ;;  %v3780_v22 = vadd.f32 %v3779_v39, %v3691_v19 }
 0x631   :  { %4063 = vmax.xlane.f32.xlu2 %v6914_v59 }
 0x633   :  { %v3868_v26 = vpop.f32.mrf.mxu2 }
 0x634   :  { %v3869_v51 = vadd.f32 %v3868_v26, %v3780_v22  ;;  %v4036_v5 = vpop.xlane.xlu0 %4035 }
 0x635   :  { %v3957_v56 = vpop.f32.mrf.mxu3  ;;  %v4099_v3 = vsub.f32 %v6760_v18, %v4036_v5  ;;  %v3693_v42 = vpop.f32.mrf.mxu0 }
 0x636   :  { %v6918_v15 = vadd.f32 %v3957_v56, %v3869_v51  ;;  %v3694_v27 = vadd.f32 %v3693_v42, %v6672_v53 }
 0x637   :  { %v3782_v16 = vpop.f32.mrf.mxu1  ;;  %v4131_v33 = vmul.f32 1.442695, %v4099_v3 }
 0x638   :  { %v6924_v23 = vsel %vm4002_vm0, %v6918_v15, -inf  ;;  %v3783_v21 = vadd.f32 %v3782_v16, %v3694_v27 }
 0x639   :  { %5382 = vpow2.f32 %v4131_v33  ;;  %4065 = vmax.xlane.f32.xlu0 %v6924_v23 }
 0x63b   :  { %v3871_v38 = vpop.f32.mrf.mxu2 }
 0x63c   :  { %v3872_v57 = vadd.f32 %v3871_v38, %v3783_v21  ;;  %v4038_v18 = vpop.xlane.xlu0 %4037 }
 0x63d   :  { %v3960_v39 = vpop.f32.mrf.mxu3  ;;  %v4100_v19 = vsub.f32 %v6772_v50, %v4038_v18  ;;  %v3695_v22 = vpop.f32.mrf.mxu0 }
 0x63e   :  { %v6928_v51 = vadd.f32 %v3960_v39, %v3872_v57  ;;  %v3696_v53 = vadd.f32 %v3695_v22, %v6675_v35 }
 0x63f   :  { %v3784_v26 = vpop.f32.mrf.mxu1  ;;  %v6931_v56 = vpop.eup %5382  ;;  %v4133_v5 = vmul.f32 1.442695, %v4100_v19 }
 0x640   :  { %7530 = vst [vmem:[#allocation50_spill] sm:$0xff] %v6928_v51  ;;  %4195 = vadd.xlane.f32.xlu2 %v6931_v56  ;;  %v6937_v3 = vsel %vm4002_vm0, %v6928_v51, -inf  ;;  %v3785_v50 = vadd.f32 %v3784_v26, %v3696_v53 }
 0x641   :  { %5384 = vpow2.f32 %v4133_v5  ;;  %4067 = vmax.xlane.f32.xlu1 %v6937_v3 }
 0x643   :  { %v3873_v42 = vpop.f32.mrf.mxu2 }
 0x644   :  { %v3874_v16 = vadd.f32 %v3873_v42, %v3785_v50  ;;  %v4040_v33 = vpop.xlane.xlu1 %4039 }
 0x645   :  { %v3962_v27 = vpop.f32.mrf.mxu3  ;;  %v4101_v35 = vsub.f32 %v6782_v12, %v4040_v33  ;;  %v3698_v21 = vpop.f32.mrf.mxu0 }
 0x646   :  { %v6941_v57 = vadd.f32 %v3962_v27, %v3874_v16  ;;  %v3699_v39 = vadd.f32 %v3698_v21, %v6682_v11 }
 0x647   :  { %v3787_v38 = vpop.f32.mrf.mxu1  ;;  %v6944_v18 = vpop.eup %5384  ;;  %v4135_v19 = vmul.f32 1.442695, %v4101_v35 }
 0x648   :  { %7531 = vst [vmem:[#allocation23_spill] sm:$0xff] %v6941_v57  ;;  %4197 = vadd.xlane.f32.xlu0 %v6944_v18  ;;  %v6950_v22 = vsel %vm4002_vm0, %v6941_v57, -inf  ;;  %v3788_v12 = vadd.f32 %v3787_v38, %v3699_v39 }
 0x649   :  { %5386 = vpow2.f32 %v4135_v19  ;;  %4069 = vmax.xlane.f32.xlu2 %v6950_v22 }
 0x64b   :  { %v3876_v26 = vpop.f32.mrf.mxu2 }
 0x64c   :  { %v3877_v53 = vadd.f32 %v3876_v26, %v3788_v12  ;;  %v4042_v50 = vpop.xlane.xlu1 %4041 }
 0x64d   :  { %v3965_v5 = vpop.f32.mrf.mxu3  ;;  %v4102_v11 = vsub.f32 %v6794_v32, %v4042_v50  ;;  %v3700_v42 = vpop.f32.mrf.mxu0 }
 0x64e   :  { %v6954_v27 = vadd.f32 %v3965_v5, %v3877_v53  ;;  %v3701_v33 = vadd.f32 %v3700_v42, %v6685_v46 }
 0x64f   :  { %v3789_v16 = vpop.f32.mrf.mxu1  ;;  %v6957_v35 = vpop.eup %5386  ;;  %v4137_v21 = vmul.f32 1.442695, %v4102_v11 }
 0x650   :  { %7532 = vst [vmem:[#allocation24_spill] sm:$0xff] %v6954_v27  ;;  %4199 = vadd.xlane.f32.xlu1 %v6957_v35  ;;  %v6963_v38 = vsel %vm4002_vm0, %v6954_v27, -inf  ;;  %v3790_v32 = vadd.f32 %v3789_v16, %v3701_v33 }
 0x651   :  { %5388 = vpow2.f32 %v4137_v21  ;;  %4071 = vmax.xlane.f32.xlu0 %v6963_v38 }
 0x653   :  { %v3878_v39 = vpop.f32.mrf.mxu2 }
 0x654   :  { %v3879_v19 = vadd.f32 %v3878_v39, %v3790_v32  ;;  %v4044_v26 = vpop.xlane.xlu2 %4043 }
 0x655   :  { %v3967_v12 = vpop.f32.mrf.mxu3  ;;  %v4103_v46 = vsub.f32 %v6804_v13, %v4044_v26  ;;  %v3703_v53 = vpop.f32.mrf.mxu0 }
 0x656   :  { %v6967_v50 = vadd.f32 %v3967_v12, %v3879_v19  ;;  %v3704_v11 = vadd.f32 %v3703_v53, %v6692_v0 }
 0x657   :  { %v3792_v5 = vpop.f32.mrf.mxu1  ;;  %v6970_v42 = vpop.eup %5388  ;;  %v4139_v57 = vmul.f32 1.442695, %v4103_v46 }
 0x658   :  { %7533 = vst [vmem:[#allocation51_spill] sm:$0xff] %v6967_v50  ;;  %4201 = vadd.xlane.f32.xlu2 %v6970_v42  ;;  %v6976_v16 = vsel %vm4002_vm0, %v6967_v50, -inf  ;;  %v3793_v13 = vadd.f32 %v3792_v5, %v3704_v11 }
 0x659   :  { %5390 = vpow2.f32 %v4139_v57  ;;  %4073 = vmax.xlane.f32.xlu1 %v6976_v16 }
 0x65b   :  { %v3881_v33 = vpop.f32.mrf.mxu2 }
 0x65c   :  { %v3882_v21 = vadd.f32 %v3881_v33, %v3793_v13  ;;  %v4046_v39 = vpop.xlane.xlu2 %4045 }
 0x65d   :  { %v3970_v32 = vpop.f32.mrf.mxu3  ;;  %v4104_v0 = vsub.f32 %v6816_v28, %v4046_v39  ;;  %v3705_v19 = vpop.f32.mrf.mxu0 }
 0x65e   :  { %v6980_v26 = vadd.f32 %v3970_v32, %v3882_v21  ;;  %v3706_v46 = vadd.f32 %v3705_v19, %v6695_v31 }
 0x65f   :  { %v3794_v12 = vpop.f32.mrf.mxu1  ;;  %v6983_v53 = vpop.eup %5390  ;;  %v4141_v50 = vmul.f32 1.442695, %v4104_v0 }
 0x660   :  { %7534 = vst [vmem:[#allocation52_spill] sm:$0xff] %v6980_v26  ;;  %4203 = vadd.xlane.f32.xlu0 %v6983_v53  ;;  %v6989_v57 = vsel %vm4002_vm0, %v6980_v26, -inf  ;;  %v3795_v28 = vadd.f32 %v3794_v12, %v3706_v46 }
 0x661   :  { %5392 = vpow2.f32 %v4141_v50  ;;  %4075 = vmax.xlane.f32.xlu2 %v6989_v57 }
 0x663   :  { %v3883_v5 = vpop.f32.mrf.mxu2 }
 0x664   :  { %v3884_v11 = vadd.f32 %v3883_v5, %v3795_v28  ;;  %v4048_v33 = vpop.xlane.xlu0 %4047 }
 0x665   :  { %v3972_v13 = vpop.f32.mrf.mxu3  ;;  %v4105_v31 = vsub.f32 %v6826_v29, %v4048_v33  ;;  %v3708_v21 = vpop.f32.mrf.mxu0 }
 0x666   :  { %v6993_v39 = vadd.f32 %v3972_v13, %v3884_v11  ;;  %v3709_v0 = vadd.f32 %v3708_v21, %v6702_v63 }
 0x667   :  { %v3797_v32 = vpop.f32.mrf.mxu1  ;;  %v6996_v19 = vpop.eup %5392  ;;  %v4143_v26 = vmul.f32 1.442695, %v4105_v31 }
 0x668   :  { %7535 = vst [vmem:[#allocation25_spill] sm:$0xff] %v6993_v39  ;;  %4205 = vadd.xlane.f32.xlu1 %v6996_v19  ;;  %v7002_v50 = vsel %vm4002_vm0, %v6993_v39, -inf  ;;  %v3798_v29 = vadd.f32 %v3797_v32, %v3709_v0 }
 0x669   :  { %5394 = vpow2.f32 %v4143_v26  ;;  %4077 = vmax.xlane.f32.xlu0 %v7002_v50 }
 0x66b   :  { %v3886_v12 = vpop.f32.mrf.mxu2 }
 0x66c   :  { %v3887_v46 = vadd.f32 %v3886_v12, %v3798_v29  ;;  %v4050_v5 = vpop.xlane.xlu1 %4049 }
 0x66d   :  { %v3975_v28 = vpop.f32.mrf.mxu3  ;;  %v4106_v63 = vsub.f32 %v6838_v40, %v4050_v5  ;;  %v3710_v11 = vpop.f32.mrf.mxu0 }
 0x66e   :  { %v7006_v33 = vadd.f32 %v3975_v28, %v3887_v46  ;;  %v3711_v31 = vadd.f32 %v3710_v11, %v6705_v37 }
 0x66f   :  { %v3799_v13 = vpop.f32.mrf.mxu1  ;;  %v7009_v21 = vpop.eup %5394  ;;  %v4145_v39 = vmul.f32 1.442695, %v4106_v63 }
 0x670   :  { %7536 = vst [vmem:[#allocation26_spill] sm:$0xff] %v7006_v33  ;;  %4207 = vadd.xlane.f32.xlu2 %v7009_v21  ;;  %v7015_v26 = vsel %vm4002_vm0, %v7006_v33, -inf  ;;  %v3800_v40 = vadd.f32 %v3799_v13, %v3711_v31 }
 0x671   :  { %5396 = vpow2.f32 %v4145_v39  ;;  %4079 = vmax.xlane.f32.xlu1 %v7015_v26 }
 0x673   :  { %v3888_v32 = vpop.f32.mrf.mxu2 }
 0x674   :  { %v3889_v0 = vadd.f32 %v3888_v32, %v3800_v40  ;;  %v4052_v12 = vpop.xlane.xlu2 %4051 }
 0x675   :  { %v3977_v29 = vpop.f32.mrf.mxu3  ;;  %v4107_v37 = vsub.f32 %v6848_v49, %v4052_v12  ;;  %v3713_v46 = vpop.f32.mrf.mxu0 }
 0x676   :  { %v7019_v5 = vadd.f32 %v3977_v29, %v3889_v0  ;;  %v3714_v63 = vadd.f32 %v3713_v46, %v6712_v2 }
 0x677   :  { %v3802_v28 = vpop.f32.mrf.mxu1  ;;  %v7022_v11 = vpop.eup %5396  ;;  %v4147_v33 = vmul.f32 1.442695, %v4107_v37 }
 0x678   :  { %7537 = vst [vmem:[#allocation53_spill] sm:$0xff] %v7019_v5  ;;  %4209 = vadd.xlane.f32.xlu0 %v7022_v11  ;;  %v7028_v39 = vsel %vm4002_vm0, %v7019_v5, -inf  ;;  %v3803_v49 = vadd.f32 %v3802_v28, %v3714_v63 }
 0x679   :  { %5398 = vpow2.f32 %v4147_v33  ;;  %4081 = vmax.xlane.f32.xlu2 %v7028_v39 }
 0x67b   :  { %v3891_v13 = vpop.f32.mrf.mxu2 }
 0x67c   :  { %v3892_v31 = vadd.f32 %v3891_v13, %v3803_v49  ;;  %v4054_v32 = vpop.xlane.xlu0 %4053 }
 0x67d   :  { %v3980_v40 = vpop.f32.mrf.mxu3  ;;  %v4108_v2 = vsub.f32 %v6860_v61, %v4054_v32  ;;  %v3715_v0 = vpop.f32.mrf.mxu0 }
 0x67e   :  { %v7032_v12 = vadd.f32 %v3980_v40, %v3892_v31  ;;  %v3716_v37 = vadd.f32 %v3715_v0, %v6715_v6 }
 0x67f   :  { %v3804_v29 = vpop.f32.mrf.mxu1  ;;  %v7035_v46 = vpop.eup %5398  ;;  %v4149_v5 = vmul.f32 1.442695, %v4108_v2 }
 0x680   :  { %7538 = vst [vmem:[#allocation54_spill] sm:$0xff] %v7032_v12  ;;  %4211 = vadd.xlane.f32.xlu1 %v7035_v46  ;;  %v7041_v33 = vsel %vm4002_vm0, %v7032_v12, -inf  ;;  %v3805_v61 = vadd.f32 %v3804_v29, %v3716_v37 }
 0x681   :  { %5400 = vpow2.f32 %v4149_v5  ;;  %4083 = vmax.xlane.f32.xlu0 %v7041_v33 }
 0x683   :  { %v3893_v28 = vpop.f32.mrf.mxu2 }
 0x684   :  { %v3894_v63 = vadd.f32 %v3893_v28, %v3805_v61  ;;  %v4056_v13 = vpop.xlane.xlu1 %4055 }
 0x685   :  { %v3982_v49 = vpop.f32.mrf.mxu3  ;;  %v4109_v6 = vsub.f32 %v6870_v8, %v4056_v13  ;;  %v3718_v31 = vpop.f32.mrf.mxu0 }
 0x686   :  { %v7045_v32 = vadd.f32 %v3982_v49, %v3894_v63  ;;  %v3719_v2 = vadd.f32 %v3718_v31, %v6722_v25 }
 0x687   :  { %v3807_v40 = vpop.f32.mrf.mxu1  ;;  %v7048_v0 = vpop.eup %5400  ;;  %v4151_v12 = vmul.f32 1.442695, %v4109_v6 }
 0x688   :  { %7539 = vst [vmem:[#allocation27_spill] sm:$0xff] %v7045_v32  ;;  %4213 = vadd.xlane.f32.xlu2 %v7048_v0  ;;  %v7054_v5 = vsel %vm4002_vm0, %v7045_v32, -inf  ;;  %v3808_v8 = vadd.f32 %v3807_v40, %v3719_v2 }
 0x689   :  { %5402 = vpow2.f32 %v4151_v12  ;;  %4085 = vmax.xlane.f32.xlu1 %v7054_v5 }
 0x68b   :  { %v3896_v29 = vpop.f32.mrf.mxu2 }
 0x68c   :  { %v3897_v37 = vadd.f32 %v3896_v29, %v3808_v8 }
 0x68d   :  { %v3985_v61 = vpop.f32.mrf.mxu3  ;;  %v3720_v28 = vpop.f32.mrf.mxu0 }
 0x68e   :  { %v7057_v25 = vadd.f32 %v3985_v61, %v3897_v37  ;;  %v3721_v49 = vadd.f32 %v3720_v28, %v6725_v52 }
 0x68f   :  { %v3809_v63 = vpop.f32.mrf.mxu1  ;;  %v7060_v13 = vpop.eup %5402 }
 0x690   :  { %7540 = vst [vmem:[#allocation28_spill] sm:$0xff] %v7057_v25  ;;  %4215 = vadd.xlane.f32.xlu0 %v7060_v13  ;;  %v7066_v12 = vsel %vm4002_vm0, %v7057_v25, -inf  ;;  %v3810_v6 = vadd.f32 %v3809_v63, %v3721_v49 }
 0x691   :  { %4087 = vmax.xlane.f32.xlu2 %v7066_v12 }
 0x693   :  { %v3898_v31 = vpop.f32.mrf.mxu2 }
 0x694   :  { %v3899_v40 = vadd.f32 %v3898_v31, %v3810_v6 }
 0x695   :  { %v3987_v2 = vpop.f32.mrf.mxu3  ;;  %v3723_v8 = vpop.f32.mrf.mxu0 }
 0x696   :  { %v7069_v37 = vadd.f32 %v3987_v2, %v3899_v40  ;;  %v3724_v52 = vadd.f32 %v3723_v8, %v6732_v60  ;;  %v4060_v2 = vpop.xlane.xlu0 %4059 }
 0x697   :  { %v3812_v29 = vpop.f32.mrf.mxu1  ;;  %v4111_v8 = vsub.f32 %v6892_v17, %v4060_v2 }
 0x698   :  { %7541 = vst [vmem:[#allocation55_spill] sm:$0xff] %v7069_v37  ;;  %v7075_v61 = vsel %vm4002_vm0, %v7069_v37, -inf  ;;  %v3813_v28 = vadd.f32 %v3812_v29, %v3724_v52  ;;  %v4058_v52 = vpop.xlane.xlu2 %4057 }
 0x699   :  { %4089 = vmax.xlane.f32.xlu0 %v7075_v61 }
 0x69b   :  { %v3901_v25 = vpop.f32.mrf.mxu2 }
 0x69c   :  { %v3902_v32 = vadd.f32 %v3901_v25, %v3813_v28 }
 0x69d   :  { %v3990_v63 = vpop.f32.mrf.mxu3  ;;  %v3725_v49 = vpop.f32.mrf.mxu0 }
 0x69e   :  { %v7078_v31 = vadd.f32 %v3990_v63, %v3902_v32  ;;  %v3726_v40 = vadd.f32 %v3725_v49, %v6735_v14  ;;  %v4155_v32 = vmul.f32 1.442695, %v4111_v8  ;;  %v4062_v49 = vpop.xlane.xlu1 %4061 }
 0x69f   :  { %v3814_v6 = vpop.f32.mrf.mxu1  ;;  %v4112_v17 = vsub.f32 %v6904_v34, %v4062_v49 }
 0x6a0   :  { %7542 = vst [vmem:[#allocation56_spill] sm:$0xff] %v7078_v31  ;;  %v7084_v60 = vsel %vm4002_vm0, %v7078_v31, -inf  ;;  %v3815_v29 = vadd.f32 %v3814_v6, %v3726_v40  ;;  %5404 = vpow2.f32 %v4155_v32 }
 0x6a1   :  { %4091 = vmax.xlane.f32.xlu1 %v7084_v60 }
 0x6a3   :  { %v3903_v25 = vpop.f32.mrf.mxu2 }
 0x6a4   :  { %v3904_v28 = vadd.f32 %v3903_v25, %v3815_v29  ;;  %v4064_v40 = vpop.xlane.xlu2 %4063  ;;  %v4157_v25 = vmul.f32 1.442695, %v4112_v17 }
 0x6a5   :  { %v3992_v37 = vpop.f32.mrf.mxu3  ;;  %v3728_v27 = vpop.f32.mrf.mxu0 }
 0x6a6   :  { %v7088_v63 = vadd.f32 %v3992_v37, %v3904_v28  ;;  %v3729_v14 = vadd.f32 %v3728_v27, %v6742_v44  ;;  %v7102_v10 = vpop.eup %5404 }
 0x6a7   :  { %v3817_v58 = vpop.f32.mrf.mxu1 }
 0x6a8   :  { %7543 = vst [vmem:[#allocation29_spill] sm:$0xff] %v7088_v63  ;;  %v7094_v31 = vsel %vm4002_vm0, %v7088_v63, -inf  ;;  %v3818_v6 = vadd.f32 %v3817_v58, %v3729_v14 }
 0x6a9   :  { %4093 = vmax.xlane.f32.xlu2 %v7094_v31 }
 0x6ab   :  { %v3906_v2 = vpop.f32.mrf.mxu2 }
 0x6ac   :  { %v3907_v8 = vadd.f32 %v3906_v2, %v3818_v6  ;;  %v4066_v29 = vpop.xlane.xlu0 %4065 }
 0x6ad   :  { %v3995_v37 = vpop.f32.mrf.mxu3  ;;  %v4114_v44 = vsub.f32 %v6924_v23, %v4066_v29  ;;  %v3730_v27 = vpop.f32.mrf.mxu0  ;;  %v4110_v23 = vsub.f32 %v6882_v54, %v4058_v52 }
 0x6ae   :  { %v7099_v28 = vadd.f32 %v3995_v37, %v3907_v8  ;;  %v3731_v63 = vadd.f32 %v3730_v27, %v6744_v24 }
 0x6af   :  { %v4161_v51 = vmul.f32 1.442695, %v4114_v44  ;;  %v3819_v58 = vpop.f32.mrf.mxu1  ;;  %v4153_v8 = vmul.f32 1.442695, %v4110_v23 }
 0x6b0   :  { %v7107_v34 = vsel %vm4002_vm0, %v7099_v28, -inf  ;;  %v3820_v32 = vadd.f32 %v3819_v58, %v3731_v63 }
 0x6b1   :  { %5406 = vpow2.f32 %v4161_v51  ;;  %4095 = vmax.xlane.f32.xlu0 %v7107_v34  ;;  %4219 = vadd.xlane.f32.xlu2 %v7102_v10 }
 0x6b2   :  { %5408 = vpow2.f32 %v4157_v25 }
 0x6b3   :  { %v3908_v14 = vpop.f32.mrf.mxu2  ;;  %v4196_v24 = vpop.xlane.xlu2 %4195 }
 0x6b4   :  { %v3909_v49 = vadd.f32 %v3908_v14, %v3820_v32  ;;  %5410 = vrcp.f32 %v4196_v24  ;;  %v4068_v17 = vpop.xlane.xlu1 %4067 }
 0x6b5   :  { %v3997_v6 = vpop.f32.mrf.mxu3  ;;  %v4115_v2 = vsub.f32 %v6937_v3, %v4068_v17  ;;  %v4113_v3 = vsub.f32 %v6914_v59, %v4064_v40 }
 0x6b6   :  { %v7113_v37 = vadd.f32 %v3997_v6, %v3909_v49 }
 0x6b7   :  { %v7115_v51 = vpop.eup %5406  ;;  %v4163_v29 = vmul.f32 1.442695, %v4115_v2  ;;  %v4159_v58 = vmul.f32 1.442695, %v4113_v3 }
 0x6b8   :  { %v7117_v44 = vpop.eup %5408  ;;  %v7122_v54 = vsel %vm4002_vm0, %v7113_v37, -inf }
 0x6b9   :  { %5412 = vpow2.f32 %v4163_v29  ;;  %4097 = vmax.xlane.f32.xlu1 %v7122_v54  ;;  %4221 = vadd.xlane.f32.xlu0 %v7117_v44 }
 0x6ba   :  { %v5411_v52 = vpop.eup %5410  ;;  %5414 = vpow2.f32 %v4153_v8  ;;  %4225 = vadd.xlane.f32.xlu2 %v7115_v51 }
 0x6bb   :  { %v4291_v63 = vmul.f32 %v5411_v52, %v6931_v56  ;;  %v4198_v27 = vpop.xlane.xlu0 %4197 }
 0x6bc   :  { %5416 = vrcp.f32 %v4198_v27  ;;  %v4070_v32 = vpop.xlane.xlu2 %4069 }
 0x6bd   :  { %v4323_v25 = vsel %vm4002_vm0, %v4291_v63, %v6754_v30  ;;  %5418 = vpow2.f32 %v4159_v58  ;;  %v4116_v56 = vsub.f32 %v6950_v22, %v4070_v32 }
 0x6be   :  { %4355 = vst [vmem:[#allocation10] sm:$0xff] %v4323_v25 }
 0x6bf   :  { %v7132_v23 = vpop.eup %5412  ;;  %v4165_v6 = vmul.f32 1.442695, %v4116_v56 }
 0x6c0   :  { %v7134_v14 = vpop.eup %5414 }
 0x6c1   :  { %4217 = vadd.xlane.f32.xlu1 %v7134_v14  ;;  %4227 = vadd.xlane.f32.xlu0 %v7132_v23 }
 0x6c2   :  { %v5417_v59 = vpop.eup %5416 }
 0x6c3   :  { %v4292_v40 = vmul.f32 %v5417_v59, %v6944_v18  ;;  %v4200_v24 = vpop.xlane.xlu1 %4199  ;;  %v7144_v8 = vpop.eup %5418 }
 0x6c4   :  { %5420 = vrcp.f32 %v4200_v24  ;;  %v4072_v30 = vpop.xlane.xlu0 %4071 }
 0x6c5   :  { %v4324_v49 = vsel %vm4002_vm0, %v4292_v40, %v6763_v20  ;;  %v4117_v17 = vsub.f32 %v6963_v38, %v4072_v30 }
 0x6c6   :  { %4356 = vst [vmem:[#allocation10 + $0x8] sm:$0xff] %v4324_v49 }
 0x6c7   :  { %v4167_v2 = vmul.f32 1.442695, %v4117_v17 }
 0x6c9   :  { %5422 = vpow2.f32 %v4167_v2  ;;  %4223 = vadd.xlane.f32.xlu1 %v7144_v8 }
 0x6ca   :  { %v5421_v22 = vpop.eup %5420  ;;  %5424 = vpow2.f32 %v4165_v6 }
 0x6cb   :  { %v4293_v18 = vmul.f32 %v5421_v22, %v6957_v35  ;;  %v4202_v29 = vpop.xlane.xlu2 %4201 }
 0x6cc   :  { %5426 = vrcp.f32 %v4202_v29  ;;  %v4074_v52 = vpop.xlane.xlu1 %4073 }
 0x6cd   :  { %v4325_v20 = vsel %vm4002_vm0, %v4293_v18, %v6776_v62  ;;  %v4118_v38 = vsub.f32 %v6976_v16, %v4074_v52 }
 0x6ce   :  { %4357 = vst [vmem:[#allocation10 + $0x10] sm:$0xff] %v4325_v20 }
 0x6cf   :  { %v7152_v3 = vpop.eup %5422  ;;  %v4169_v63 = vmul.f32 1.442695, %v4118_v38 }
 0x6d0   :  { %v7154_v27 = vpop.eup %5424  ;;  %4231 = vadd.xlane.f32.xlu2 %v7152_v3 }
 0x6d1   :  { %5428 = vpow2.f32 %v4169_v63  ;;  %4229 = vadd.xlane.f32.xlu1 %v7154_v27 }
 0x6d2   :  { %v5427_v35 = vpop.eup %5426 }
 0x6d3   :  { %v4294_v25 = vmul.f32 %v5427_v35, %v6970_v42  ;;  %v4204_v58 = vpop.xlane.xlu0 %4203 }
 0x6d4   :  { %5430 = vrcp.f32 %v4204_v58  ;;  %v4076_v32 = vpop.xlane.xlu2 %4075 }
 0x6d5   :  { %v4326_v62 = vsel %vm4002_vm0, %v4294_v25, %v6785_v7  ;;  %v4119_v16 = vsub.f32 %v6989_v57, %v4076_v32 }
 0x6d6   :  { %4358 = vst [vmem:[#allocation10 + $0x18] sm:$0xff] %v4326_v62 }
 0x6d7   :  { %v7163_v59 = vpop.eup %5428  ;;  %v4171_v56 = vmul.f32 1.442695, %v4119_v16 }
 0x6d8   :  { %4233 = vadd.xlane.f32.xlu0 %v7163_v59 }
 0x6d9   :  { %5432 = vpow2.f32 %v4171_v56 }
 0x6da   :  { %v5431_v40 = vpop.eup %5430 }
 0x6db   :  { %v4295_v24 = vmul.f32 %v5431_v40, %v6983_v53  ;;  %v4206_v42 = vpop.xlane.xlu1 %4205 }
 0x6dc   :  { %5434 = vrcp.f32 %v4206_v42  ;;  %v4078_v30 = vpop.xlane.xlu0 %4077 }
 0x6dd   :  { %v4327_v49 = vsel %vm4002_vm0, %v4295_v24, %v6798_v41  ;;  %v4120_v7 = vsub.f32 %v7002_v50, %v4078_v30 }
 0x6de   :  { %4359 = vst [vmem:[#allocation10 + $0x20] sm:$0xff] %v4327_v49 }
 0x6df   :  { %v7171_v57 = vpop.eup %5432  ;;  %v4173_v17 = vmul.f32 1.442695, %v4120_v7 }
 0x6e0   :  { %4235 = vadd.xlane.f32.xlu1 %v7171_v57 }
 0x6e1   :  { %5436 = vpow2.f32 %v4173_v17 }
 0x6e2   :  { %v5435_v6 = vpop.eup %5434 }
 0x6e3   :  { %v4296_v2 = vmul.f32 %v5435_v6, %v6996_v19  ;;  %v4208_v53 = vpop.xlane.xlu2 %4207 }
 0x6e4   :  { %5438 = vrcp.f32 %v4208_v53  ;;  %v4080_v22 = vpop.xlane.xlu1 %4079 }
 0x6e5   :  { %v4328_v18 = vsel %vm4002_vm0, %v4296_v2, %v6807_v9  ;;  %v4121_v41 = vsub.f32 %v7015_v26, %v4080_v22 }
 0x6e6   :  { %4360 = vst [vmem:[#allocation10 + $0x28] sm:$0xff] %v4328_v18 }
 0x6e7   :  { %v7179_v50 = vpop.eup %5436  ;;  %v4175_v29 = vmul.f32 1.442695, %v4121_v41 }
 0x6e8   :  { %4237 = vadd.xlane.f32.xlu2 %v7179_v50 }
 0x6e9   :  { %5440 = vpow2.f32 %v4175_v29 }
 0x6ea   :  { %v5439_v52 = vpop.eup %5438 }
 0x6eb   :  { %v4297_v20 = vmul.f32 %v5439_v52, %v7009_v21  ;;  %v4210_v19 = vpop.xlane.xlu0 %4209 }
 0x6ec   :  { %5442 = vrcp.f32 %v4210_v19  ;;  %v4082_v38 = vpop.xlane.xlu2 %4081 }
 0x6ed   :  { %v4329_v63 = vsel %vm4002_vm0, %v4297_v20, %v6820_v43  ;;  %v4122_v9 = vsub.f32 %v7028_v39, %v4082_v38 }
 0x6ee   :  { %4361 = vst [vmem:[#allocation10 + $0x30] sm:$0xff] %v4329_v63 }
 0x6ef   :  { %v7187_v26 = vpop.eup %5440  ;;  %v4177_v35 = vmul.f32 1.442695, %v4122_v9 }
 0x6f0   :  { %4239 = vadd.xlane.f32.xlu0 %v7187_v26 }
 0x6f1   :  { %5444 = vpow2.f32 %v4177_v35 }
 0x6f2   :  { %v5443_v25 = vpop.eup %5442 }
 0x6f3   :  { %v4298_v58 = vmul.f32 %v5443_v25, %v7022_v11  ;;  %v4212_v21 = vpop.xlane.xlu1 %4211 }
 0x6f4   :  { %5446 = vrcp.f32 %v4212_v21  ;;  %v4084_v32 = vpop.xlane.xlu0 %4083 }
 0x6f5   :  { %v4330_v62 = vsel %vm4002_vm0, %v4298_v58, %v6829_v48  ;;  %v4123_v43 = vsub.f32 %v7041_v33, %v4084_v32 }
 0x6f6   :  { %4362 = vst [vmem:[#allocation10 + $0x38] sm:$0xff] %v4330_v62 }
 0x6f7   :  { %v7195_v39 = vpop.eup %5444  ;;  %v4179_v16 = vmul.f32 1.442695, %v4123_v43 }
 0x6f8   :  { %4241 = vadd.xlane.f32.xlu1 %v7195_v39 }
 0x6f9   :  { %5448 = vpow2.f32 %v4179_v16 }
 0x6fa   :  { %v5447_v56 = vpop.eup %5446 }
 0x6fb   :  { %v4299_v40 = vmul.f32 %v5447_v56, %v7035_v46  ;;  %v4214_v11 = vpop.xlane.xlu2 %4213 }
 0x6fc   :  { %5450 = vrcp.f32 %v4214_v11  ;;  %v4086_v24 = vpop.xlane.xlu1 %4085 }
 0x6fd   :  { %v4331_v42 = vsel %vm4002_vm0, %v4299_v40, %v6842_v36  ;;  %v4124_v48 = vsub.f32 %v7054_v5, %v4086_v24 }
 0x6fe   :  { %4363 = vst [vmem:[#allocation10 + $0x40] sm:$0xff] %v4331_v42 }
 0x6ff   :  { %v7203_v33 = vpop.eup %5448  ;;  %v4181_v30 = vmul.f32 1.442695, %v4124_v48 }
 0x700   :  { %4243 = vadd.xlane.f32.xlu2 %v7203_v33 }
 0x701   :  { %5452 = vpow2.f32 %v4181_v30 }
 0x702   :  { %v5451_v49 = vpop.eup %5450 }
 0x703   :  { %v4300_v7 = vmul.f32 %v5451_v49, %v7048_v0  ;;  %v4216_v46 = vpop.xlane.xlu0 %4215 }
 0x704   :  { %5454 = vrcp.f32 %v4216_v46  ;;  %v4088_v17 = vpop.xlane.xlu2 %4087 }
 0x705   :  { %v4332_v6 = vsel %vm4002_vm0, %v4300_v7, %v6851_v4  ;;  %v4125_v36 = vsub.f32 %v7066_v12, %v4088_v17 }
 0x706   :  { %4364 = vst [vmem:[#allocation10 + $0x48] sm:$0xff] %v4332_v6  ;;  %v7545_v6 = vld [vmem:[#allocation50_spill] sm:$0xff] }
 0x707   :  { %v7211_v5 = vpop.eup %5452  ;;  %v4183_v2 = vmul.f32 1.442695, %v4125_v36 }
 0x708   :  { %4245 = vadd.xlane.f32.xlu0 %v7211_v5 }
 0x709   :  { %5456 = vpow2.f32 %v4183_v2 }
 0x70a   :  { %v5455_v53 = vpop.eup %5454 }
 0x70b   :  { %v4301_v22 = vmul.f32 %v5455_v53, %v7060_v13 }
 0x70c   :  { %v4090_v0 = vpop.xlane.xlu0 %4089 }
 0x70d   :  { %v4333_v18 = vsel %vm4002_vm0, %v4301_v22, %v6864_v45  ;;  %v4126_v41 = vsub.f32 %v7075_v61, %v4090_v0  ;;  %v7546_v22 = vld [vmem:[#allocation49_spill] sm:$0xff] }
 0x70e   :  { %4365 = vst [vmem:[#allocation10 + $0x50] sm:$0xff] %v4333_v18 }
 0x70f   :  { %v7219_v4 = vpop.eup %5456  ;;  %v4185_v12 = vmul.f32 1.442695, %v4126_v41 }
 0x710   :  { %4247 = vadd.xlane.f32.xlu1 %v7219_v4 }
 0x711   :  { %5458 = vpow2.f32 %v4185_v12 }
 0x714   :  { %v4092_v29 = vpop.xlane.xlu1 %4091 }
 0x715   :  { %v4127_v52 = vsub.f32 %v7084_v60, %v4092_v29 }
 0x717   :  { %v7223_v20 = vpop.eup %5458  ;;  %v4187_v13 = vmul.f32 1.442695, %v4127_v52  ;;  %v7547_v52 = vld [vmem:[#allocation24_spill] sm:$0xff] }
 0x718   :  { %4249 = vadd.xlane.f32.xlu2 %v7223_v20 }
 0x719   :  { %5460 = vpow2.f32 %v4187_v13  ;;  %v7548_v13 = vld [vmem:[#allocation23_spill] sm:$0xff] }
 0x71c   :  { %v4094_v19 = vpop.xlane.xlu2 %4093 }
 0x71d   :  { %v4128_v45 = vsub.f32 %v7094_v31, %v4094_v19 }
 0x71f   :  { %v7227_v61 = vpop.eup %5460  ;;  %v4189_v38 = vmul.f32 1.442695, %v4128_v45 }
 0x720   :  { %4251 = vadd.xlane.f32.xlu0 %v7227_v61 }
 0x721   :  { %5462 = vpow2.f32 %v4189_v38 }
 0x724   :  { %v4220_v63 = vpop.xlane.xlu2 %4219  ;;  %v4096_v9 = vpop.xlane.xlu0 %4095 }
 0x725   :  { %5464 = vrcp.f32 %v4220_v63  ;;  %v4129_v60 = vsub.f32 %v7107_v34, %v4096_v9 }
 0x727   :  { %v7231_v35 = vpop.eup %5462  ;;  %v4191_v25 = vmul.f32 1.442695, %v4129_v60 }
 0x728   :  { %4253 = vadd.xlane.f32.xlu1 %v7231_v35 }
 0x729   :  { %5466 = vpow2.f32 %v4191_v25 }
 0x72b   :  { %v5465_v58 = vpop.eup %5464 }
 0x72c   :  { %v4303_v31 = vmul.f32 %v5465_v58, %v7102_v10  ;;  %v4098_v21 = vpop.xlane.xlu1 %4097  ;;  %v4222_v32 = vpop.xlane.xlu0 %4221  ;;  %v7550_v58 = vld [vmem:[#allocation52_spill] sm:$0xff] }
 0x72d   :  { %v4130_v62 = vsub.f32 %v7122_v54, %v4098_v21  ;;  %v4226_v43 = vpop.xlane.xlu2 %4225  ;;  %5468 = vrcp.f32 %v4222_v32 }
 0x72e   :  { %v4335_v16 = vsel %vm4002_vm0, %v4303_v31, %v6886_v55  ;;  %5470 = vrcp.f32 %v4226_v43 }
 0x72f   :  { %v7239_v34 = vpop.eup %5466  ;;  %4367 = vst [vmem:[#allocation10 + $0x60] sm:$0xff] %v4335_v16  ;;  %v4193_v56 = vmul.f32 1.442695, %v4130_v62  ;;  %v7551_v62 = vld [vmem:[#allocation25_spill] sm:$0xff] }
 0x730   :  { %4255 = vadd.xlane.f32.xlu2 %v7239_v34 }
 0x731   :  { %5472 = vpow2.f32 %v4193_v56 }
 0x733   :  { %v5469_v40 = vpop.eup %5468 }
 0x734   :  { %v5471_v10 = vpop.eup %5470  ;;  %v4304_v11 = vmul.f32 %v5469_v40, %v7117_v44  ;;  %v4218_v24 = vpop.xlane.xlu1 %4217  ;;  %v7552_v40 = vld [vmem:[#allocation26_spill] sm:$0xff] }
 0x735   :  { %v4228_v54 = vpop.xlane.xlu0 %4227  ;;  %v4306_v42 = vmul.f32 %v5471_v10, %v7115_v51  ;;  %5474 = vrcp.f32 %v4218_v24 }
 0x736   :  { %v4336_v55 = vsel %vm4002_vm0, %v4304_v11, %v6895_v1  ;;  %5476 = vrcp.f32 %v4228_v54  ;;  %v7544_v1 = vld [vmem:[#allocation22_spill] sm:$0xff]  ;;  %v7553_v54 = vld [vmem:[#allocation53_spill] sm:$0xff] }
 0x737   :  { %v7247_v48 = vpop.eup %5472  ;;  %v4338_v30 = vsel %vm4002_vm0, %v4306_v42, %v6918_v15  ;;  %4368 = vst [vmem:[#allocation10 + $0x68] sm:$0xff] %v4336_v55 }
 0x738   :  { %4370 = vst [vmem:[#allocation10 + $0x78] sm:$0xff] %v4338_v30  ;;  %4257 = vadd.xlane.f32.xlu0 %v7247_v48 }
 0x73b   :  { %v5475_v44 = vpop.eup %5474 }
 0x73c   :  { %v5477_v49 = vpop.eup %5476  ;;  %v4302_v51 = vmul.f32 %v5475_v44, %v7134_v14  ;;  %v4224_v7 = vpop.xlane.xlu1 %4223  ;;  %v7554_v44 = vld [vmem:[#allocation54_spill] sm:$0xff] }
 0x73d   :  { %v4307_v46 = vmul.f32 %v5477_v49, %v7132_v23  ;;  %5478 = vrcp.f32 %v4224_v7 }
 0x73e   :  { %v4334_v17 = vsel %vm4002_vm0, %v4302_v51, %v7544_v1 }
 0x73f   :  { %4366 = vst [vmem:[#allocation10 + $0x58] sm:$0xff] %v4334_v17  ;;  %v4339_v15 = vsel %vm4002_vm0, %v4307_v46, %v7545_v6  ;;  %v7555_v46 = vld [vmem:[#allocation27_spill] sm:$0xff] }
 0x740   :  { %4371 = vst [vmem:[#allocation10 + $0x80] sm:$0xff] %v4339_v15  ;;  %v7556_v15 = vld [vmem:[#allocation28_spill] sm:$0xff] }
 0x743   :  { %v5479_v36 = vpop.eup %5478  ;;  %v4232_v2 = vpop.xlane.xlu2 %4231 }
 0x744   :  { %v4305_v53 = vmul.f32 %v5479_v36, %v7144_v8  ;;  %5480 = vrcp.f32 %v4232_v2  ;;  %v4230_v14 = vpop.xlane.xlu1 %4229 }
 0x745   :  { %5482 = vrcp.f32 %v4230_v14  ;;  %v7557_v14 = vld [vmem:[#allocation55_spill] sm:$0xff] }
 0x746   :  { %v4337_v23 = vsel %vm4002_vm0, %v4305_v53, %v7546_v22 }
 0x747   :  { %4369 = vst [vmem:[#allocation10 + $0x70] sm:$0xff] %v4337_v23 }
 0x74a   :  { %v5481_v0 = vpop.eup %5480 }
 0x74b   :  { %v5483_v18 = vpop.eup %5482  ;;  %v4309_v41 = vmul.f32 %v5481_v0, %v7152_v3  ;;  %v4234_v12 = vpop.xlane.xlu0 %4233  ;;  %v7549_v3 = vld [vmem:[#allocation51_spill] sm:$0xff] }
 0x74c   :  { %v4308_v29 = vmul.f32 %v5483_v18, %v7154_v27  ;;  %5484 = vrcp.f32 %v4234_v12  ;;  %v7558_v18 = vld [vmem:[#allocation56_spill] sm:$0xff] }
 0x74d   :  { %v4341_v8 = vsel %vm4002_vm0, %v4309_v41, %v7547_v52  ;;  %v7559_v52 = vld [vmem:[#allocation29_spill] sm:$0xff] }
 0x74e   :  { %4373 = vst [vmem:[#allocation10 + $0x90] sm:$0xff] %v4341_v8  ;;  %v4340_v19 = vsel %vm4002_vm0, %v4308_v29, %v7548_v13 }
 0x74f   :  { %4372 = vst [vmem:[#allocation10 + $0x88] sm:$0xff] %v4340_v19 }
 0x752   :  { %v5485_v45 = vpop.eup %5484 }
 0x753   :  { %v4310_v38 = vmul.f32 %v5485_v45, %v7163_v59  ;;  %v4236_v63 = vpop.xlane.xlu1 %4235 }
 0x754   :  { %5486 = vrcp.f32 %v4236_v63 }
 0x755   :  { %v4342_v27 = vsel %vm4002_vm0, %v4310_v38, %v7549_v3 }
 0x756   :  { %4374 = vst [vmem:[#allocation10 + $0x98] sm:$0xff] %v4342_v27 }
 0x75a   :  { %v5487_v9 = vpop.eup %5486 }
 0x75b   :  { %v4311_v60 = vmul.f32 %v5487_v9, %v7171_v57  ;;  %v4238_v25 = vpop.xlane.xlu2 %4237 }
 0x75c   :  { %5488 = vrcp.f32 %v4238_v25 }
 0x75d   :  { %v4343_v31 = vsel %vm4002_vm0, %v4311_v60, %v7550_v58 }
 0x75e   :  { %4375 = vst [vmem:[#allocation10 + $0xa0] sm:$0xff] %v4343_v31 }
 0x762   :  { %v5489_v21 = vpop.eup %5488 }
 0x763   :  { %v4312_v59 = vmul.f32 %v5489_v21, %v7179_v50  ;;  %v4240_v32 = vpop.xlane.xlu0 %4239 }
 0x764   :  { %5490 = vrcp.f32 %v4240_v32 }
 0x765   :  { %v4344_v43 = vsel %vm4002_vm0, %v4312_v59, %v7551_v62 }
 0x766   :  { %4376 = vst [vmem:[#allocation10 + $0xa8] sm:$0xff] %v4344_v43 }
 0x76a   :  { %v5491_v16 = vpop.eup %5490 }
 0x76b   :  { %v4313_v57 = vmul.f32 %v5491_v16, %v7187_v26  ;;  %v4242_v56 = vpop.xlane.xlu1 %4241 }
 0x76c   :  { %5492 = vrcp.f32 %v4242_v56 }
 0x76d   :  { %v4345_v10 = vsel %vm4002_vm0, %v4313_v57, %v7552_v40 }
 0x76e   :  { %4377 = vst [vmem:[#allocation10 + $0xb0] sm:$0xff] %v4345_v10 }
 0x772   :  { %v5493_v11 = vpop.eup %5492 }
 0x773   :  { %v4314_v50 = vmul.f32 %v5493_v11, %v7195_v39  ;;  %v4244_v24 = vpop.xlane.xlu2 %4243 }
 0x774   :  { %5494 = vrcp.f32 %v4244_v24 }
 0x775   :  { %v4346_v42 = vsel %vm4002_vm0, %v4314_v50, %v7553_v54 }
 0x776   :  { %4378 = vst [vmem:[#allocation10 + $0xb8] sm:$0xff] %v4346_v42 }
 0x77a   :  { %v5495_v55 = vpop.eup %5494 }
 0x77b   :  { %v4315_v26 = vmul.f32 %v5495_v55, %v7203_v33  ;;  %v4246_v30 = vpop.xlane.xlu0 %4245 }
 0x77c   :  { %5496 = vrcp.f32 %v4246_v30 }
 0x77d   :  { %v4347_v49 = vsel %vm4002_vm0, %v4315_v26, %v7554_v44 }
 0x77e   :  { %4379 = vst [vmem:[#allocation10 + $0xc0] sm:$0xff] %v4347_v49 }
 0x782   :  { %v5497_v51 = vpop.eup %5496 }
 0x783   :  { %v4316_v39 = vmul.f32 %v5497_v51, %v7211_v5  ;;  %v4248_v7 = vpop.xlane.xlu1 %4247 }
 0x784   :  { %5498 = vrcp.f32 %v4248_v7 }
 0x785   :  { %v4348_v1 = vsel %vm4002_vm0, %v4316_v39, %v7555_v46 }
 0x786   :  { %4380 = vst [vmem:[#allocation10 + $0xc8] sm:$0xff] %v4348_v1 }
 0x78a   :  { %v5499_v17 = vpop.eup %5498 }
 0x78b   :  { %v4317_v33 = vmul.f32 %v5499_v17, %v7219_v4  ;;  %v4250_v6 = vpop.xlane.xlu2 %4249 }
 0x78c   :  { %5500 = vrcp.f32 %v4250_v6 }
 0x78d   :  { %v4349_v36 = vsel %vm4002_vm0, %v4317_v33, %v7556_v15 }
 0x78e   :  { %4381 = vst [vmem:[#allocation10 + $0xd0] sm:$0xff] %v4349_v36 }
 0x792   :  { %v5501_v2 = vpop.eup %5500 }
 0x793   :  { %v4318_v5 = vmul.f32 %v5501_v2, %v7223_v20  ;;  %v4252_v53 = vpop.xlane.xlu0 %4251 }
 0x794   :  { %5502 = vrcp.f32 %v4252_v53 }
 0x795   :  { %v4350_v22 = vsel %vm4002_vm0, %v4318_v5, %v7557_v14 }
 0x796   :  { %4382 = vst [vmem:[#allocation10 + $0xd8] sm:$0xff] %v4350_v22 }
 0x79a   :  { %v5503_v23 = vpop.eup %5502 }
 0x79b   :  { %v4319_v4 = vmul.f32 %v5503_v23, %v7227_v61  ;;  %v4254_v0 = vpop.xlane.xlu1 %4253 }
 0x79c   :  { %5504 = vrcp.f32 %v4254_v0 }
 0x79d   :  { %v4351_v41 = vsel %vm4002_vm0, %v4319_v4, %v7558_v18 }
 0x79e   :  { %4383 = vst [vmem:[#allocation10 + $0xe0] sm:$0xff] %v4351_v41 }
 0x7a2   :  { %v5505_v12 = vpop.eup %5504 }
 0x7a3   :  { %v4320_v20 = vmul.f32 %v5505_v12, %v7231_v35  ;;  %v4256_v29 = vpop.xlane.xlu2 %4255 }
 0x7a4   :  { %5506 = vrcp.f32 %v4256_v29 }
 0x7a5   :  { %v4352_v8 = vsel %vm4002_vm0, %v4320_v20, %v7559_v52 }
 0x7a6   :  { %4384 = vst [vmem:[#allocation10 + $0xe8] sm:$0xff] %v4352_v8 }
 0x7aa   :  { %v5507_v13 = vpop.eup %5506 }
 0x7ab   :  { %v4321_v61 = vmul.f32 %v5507_v13, %v7239_v34  ;;  %v4258_v19 = vpop.xlane.xlu0 %4257 }
 0x7ac   :  { %5508 = vrcp.f32 %v4258_v19 }
 0x7ad   :  { %v4353_v45 = vsel %vm4002_vm0, %v4321_v61, %v7099_v28 }
 0x7ae   :  { %4385 = vst [vmem:[#allocation10 + $0xf0] sm:$0xff] %v4353_v45 }
 0x7b2   :  { %v5509_v35 = vpop.eup %5508 }
 0x7b3   :  { %v4322_v38 = vmul.f32 %v5509_v35, %v7247_v48 }
 0x7b5   :  { %v4354_v34 = vsel %vm4002_vm0, %v4322_v38, %v7113_v37 }
 0x7b6   :  { %4386 = vst [vmem:[#allocation10 + $0xf8] sm:$0xff] %v4354_v34 }
 0x7b7   :  { %4399 = dma.vmem_to_hbm [thread:$0]  %s4392_s17, 4096, %s4394_s20, [#allocation4], %s5652_s21, %s5652_s21, %s5653_s22  }
 0x7b8   :  { %5639 = dma.done.wait [#allocation4], 4096  }
 0x7b9   :  { %5640 = vsyncadd [#allocation4], 4294963200 }
 0x7ba   :  { %4404 = vsyncpa [#allocation3], 1 }
 0x7bb   :  { %4405 = vsyncpa [#allocation6], 1 }
 0x7bc   :  { %4406 = vsyncpa [#allocation9], 1 }
 0x7bd   :  { %4407 = vsyncpa [#allocation4], 1 }

</bundles_post_ra>
